<compile_context>
chip_gen: v7x
topology: tpu7x:2x2x1
jax: 0.10.0
libtpu: 0.0.40
codegen_flags: <defaults>
</compile_context>

<pallas_src>
import math

import jax
import jax.numpy as jnp
import numpy as np
from jax import lax
from jax.experimental import pallas as pl
from jax.experimental.pallas import tpu as pltpu

QUANT_SCALE = 0.25  # QuantStub(scale=0.25), qint16


def _roi_align_level_grouped(feat_flat, tile_rois, tile_bidx, *, H, W, scale,
                             OH, OW, SR, R, hw_tile=None):
    """RoIAlign of batch-homogeneous tiles of R RoIs against ONE pyramid level.

    feat_flat : (B, C, H*W)          feature slab (H*W on the lane axis)
    tile_rois : (n_tiles*R*4,) int32 quantized boxes (box/0.25), scalar-prefetched
    tile_bidx : (n_tiles,)     int32 image index of each tile, scalar-prefetched
    returns   : (n_tiles, C, R*OH*OW) float32
    """
    B, C, HW = feat_flat.shape
    assert HW == H * W
    n_tiles = int(tile_bidx.shape[0])
    P = OH * OW
    RP = R * P
    dt = feat_flat.dtype
    isz = jnp.dtype(dt).itemsize

    # ---- pick the HW (contraction) tile so the feature block fits VMEM ----
    if hw_tile is None:
        budget_cols = max(128, (4 * 2 ** 20) // max(1, C * isz))  # ~4 MiB / block
        HWT = (budget_cols // 128) * 128
    else:
        HWT = max(128, (int(hw_tile) // 128) * 128)
    if HWT >= HW:
        HWT, HW_pad = HW, HW            # whole level per step (block == full dim)
    else:
        HW_pad = ((HW + HWT - 1) // HWT) * HWT
    n_k = HW_pad // HWT
    if HW_pad != HW:                     # zero-pad the lane axis to a tile multiple
        feat_flat = jnp.pad(feat_flat, ((0, 0), (0, 0), (0, HW_pad - HW)))

    # Host-precomputed coordinate grids: no in-kernel iota / integer div / mod.
    hgrid = np.full((1, HW_pad), -2.0, np.float32)  # -2 -> exactly-zero weight (pad)
    wgrid = np.full((1, HW_pad), -2.0, np.float32)
    hgrid[0, :HW] = np.repeat(np.arange(H, dtype=np.float32), W)
    wgrid[0, :HW] = np.tile(np.arange(W, dtype=np.float32), H)
    ph_col = np.repeat(np.arange(OH, dtype=np.float32), OW).reshape(P, 1)
    pw_col = np.tile(np.arange(OW, dtype=np.float32), OH).reshape(P, 1)

    Hf, Wf = float(H), float(W)
    inv_sr = 1.0 / SR

    def kernel(bidx_ref, rois_ref, feat_ref, hg_ref, wg_ref, ph_ref, pw_ref,
               out_ref, wm_ref):
        del bidx_ref  # only consumed by the index_maps
        t = pl.program_id(0)
        k = pl.program_id(1)

        hf = hg_ref[...]          # (1, HWT) global h coordinate of each column
        wf = wg_ref[...]          # (1, HWT) global w coordinate of each column
        ph = ph_ref[...]          # (P, 1)  output-bin row index
        pw = pw_ref[...]          # (P, 1)  output-bin col index

        base = t * (R * 4)
        for r in range(R):        # static unroll: R RoIs per grid step
            off = base + r * 4
            x1 = rois_ref[off + 0].astype(jnp.float32) * QUANT_SCALE
            y1 = rois_ref[off + 1].astype(jnp.float32) * QUANT_SCALE
            x2 = rois_ref[off + 2].astype(jnp.float32) * QUANT_SCALE
            y2 = rois_ref[off + 3].astype(jnp.float32) * QUANT_SCALE
            start_w = x1 * scale
            start_h = y1 * scale
            roi_w = jnp.maximum(x2 * scale - start_w, 1.0)  # aligned=False clamp
            roi_h = jnp.maximum(y2 * scale - start_h, 1.0)
            bin_w = roi_w / OW
            bin_h = roi_h / OH

            # Separable bilinear weights: sum over SR*SR sampling points factors as
            # (sum_iy vy*tri_y) * (sum_ix vx*tri_x); 1/S folded as 1/SR per factor.
            wy = None
            wx = None
            for i in range(SR):   # static unroll over sampling offsets
                y = start_h + (ph + (i + 0.5) * inv_sr) * bin_h            # (P,1)
                vy = jnp.where((y >= -1.0) & (y <= Hf), inv_sr, 0.0)       # (P,1)
                yc = jnp.clip(y, 0.0, Hf - 1.0)
                ty = vy * jnp.maximum(1.0 - jnp.abs(yc - hf), 0.0)         # (P,HWT)
                wy = ty if wy is None else wy + ty

                x = start_w + (pw + (i + 0.5) * inv_sr) * bin_w
                vx = jnp.where((x >= -1.0) & (x <= Wf), inv_sr, 0.0)
                xc = jnp.clip(x, 0.0, Wf - 1.0)
                tx = vx * jnp.maximum(1.0 - jnp.abs(xc - wf), 0.0)
                wx = tx if wx is None else wx + tx
            wm_ref[r * P:(r + 1) * P, :] = (wy * wx).astype(wm_ref.dtype)

        # One lane-dense MXU matmul for all R RoIs: (C,HWT) x (RP,HWT)^T -> (C,RP)
        part = lax.dot_general(feat_ref[0], wm_ref[...],
                               (((1,), (1,)), ((), ())),
                               preferred_element_type=jnp.float32)

        @pl.when(k == 0)
        def _():
            out_ref[0] = part

        @pl.when(k != 0)
        def _():
            out_ref[0] = out_ref[0] + part

    grid_spec = pltpu.PrefetchScalarGridSpec(
        num_scalar_prefetch=2,                    # tile_bidx, tile_rois -> SMEM
        grid=(n_tiles, n_k),
        in_specs=[
            pl.BlockSpec((1, C, HWT), lambda t, k, bidx, rois: (bidx[t], 0, k)),
            pl.BlockSpec((1, HWT), lambda t, k, bidx, rois: (0, k)),
            pl.BlockSpec((1, HWT), lambda t, k, bidx, rois: (0, k)),
            pl.BlockSpec((P, 1), lambda t, k, bidx, rois: (0, 0)),
            pl.BlockSpec((P, 1), lambda t, k, bidx, rois: (0, 0)),
        ],
        out_specs=pl.BlockSpec((1, C, RP), lambda t, k, bidx, rois: (t, 0, 0)),
        scratch_shapes=[pltpu.VMEM((RP, HWT), dt)],
    )

    vmem_est = (2 * C * HWT * isz + RP * HWT * isz + 2 * C * RP * 4
                + 4 * HWT * 4 + 2 * P * 4)
    vmem_limit = int(min(110 * 2 ** 20, max(32 * 2 ** 20, 2 * vmem_est)))

    return pl.pallas_call(
        kernel,
        out_shape=jax.ShapeDtypeStruct((n_tiles, C, RP), jnp.float32),
        grid_spec=grid_spec,
        compiler_params=pltpu.CompilerParams(
            dimension_semantics=("parallel", "arbitrary"),
            vmem_limit_bytes=vmem_limit),
    )(tile_bidx, tile_rois, feat_flat,
      jnp.asarray(hgrid), jnp.asarray(wgrid),
      jnp.asarray(ph_col), jnp.asarray(pw_col))


def _map_levels(rois_f, k_min, k_max, canonical_scale, canonical_level):
    w = rois_f[:, 2] - rois_f[:, 0]
    h = rois_f[:, 3] - rois_f[:, 1]
    sz = np.sqrt(np.maximum(w * h, 0.0))
    # torchvision LevelMapper: floor(k0 + log2(s / s0) + eps)
    lvl = np.floor(canonical_level
                   + np.log2(np.maximum(sz, 1e-12) / canonical_scale) + 1e-6)
    lvl = np.clip(lvl, k_min, k_max)
    return (lvl - k_min).astype(np.int32)


def multiscale_roi_align(featmaps, spatial_scales, boxes_list, *,
                         output_size=(4, 4), sampling_ratio=2,
                         canonical_scale=32, canonical_level=3,
                         rois_per_tile=16, hw_tile=None,
                         compute_dtype=jnp.float32):
    """featmaps: list of NCHW arrays; boxes_list: per-image (n_i, 4) float boxes.

    compute_dtype=jnp.bfloat16 halves feature DMA bytes and doubles MXU rate
    (accumulation stays f32); kept f32 by default to preserve the 1e-3 accuracy.
    """
    OH, OW = output_size
    P = OH * OW
    R = int(rois_per_tile)

    boxes_np = [np.asarray(b, np.float32) for b in boxes_list]
    # QuantStub(scale=0.25, qint16) fake-quant of the boxes
    qrois = np.concatenate(
        [np.clip(np.round(b / QUANT_SCALE), -32768, 32767) for b in boxes_np],
        axis=0).astype(np.int32)
    batch_idx = np.concatenate(
        [np.full((b.shape[0],), i, np.int32) for i, b in enumerate(boxes_np)])
    rois_f = qrois.astype(np.float32) * QUANT_SCALE

    k_levels = [int(round(-math.log2(float(s)))) for s in spatial_scales]
    levels = _map_levels(rois_f, k_levels[0], k_levels[-1],
                         canonical_scale, canonical_level)

    N = qrois.shape[0]
    C = featmaps[0].shape[1]
    out = jnp.zeros((N, C, OH, OW), jnp.float32)

    # Group RoIs by (level, image): each level gets ONE pallas_call over its own
    # RoIs; tiles of R RoIs share a single image so the feature slab stays resident.
    for lvl, (fm, spatial_scale) in enumerate(zip(featmaps, spatial_scales)):
        sel = np.nonzero(levels == lvl)[0]
        if sel.size == 0:
            continue
        t_bidx, t_rois, t_src = [], [], []
        for b in np.unique(batch_idx[sel]):
            idx_b = sel[batch_idx[sel] == b]
            pad = (-idx_b.size) % R
            t_src.append(np.concatenate([idx_b, np.full((pad,), -1, np.int64)]))
            t_rois.append(np.concatenate(
                [qrois[idx_b], np.zeros((pad, 4), np.int32)], axis=0))
            t_bidx.append(np.full(((idx_b.size + pad) // R,), b, np.int32))
        t_bidx = np.concatenate(t_bidx)
        t_rois = np.concatenate(t_rois, axis=0)
        t_src = np.concatenate(t_src)
        n_tiles = int(t_bidx.shape[0])

        B, Cl, Hl, Wl = fm.shape
        feat_flat = jnp.asarray(fm, compute_dtype).reshape(B, Cl, Hl * Wl)
        out_lvl = _roi_align_level_grouped(
            feat_flat, jnp.asarray(t_rois.reshape(-1)), jnp.asarray(t_bidx),
            H=Hl, W=Wl, scale=float(spatial_scale), OH=OH, OW=OW,
            SR=sampling_ratio, R=R, hw_tile=hw_tile)
        # (n_tiles, C, R*P) -> (n_tiles*R, C, OH, OW): layout plumbing outside kernel
        out_lvl = (out_lvl.reshape(n_tiles, Cl, R, P)
                   .transpose(0, 2, 1, 3)
                   .reshape(n_tiles * R, Cl, OH, OW))
        keep = np.nonzero(t_src >= 0)[0]
        out = out.at[jnp.asarray(t_src[keep])].set(out_lvl[jnp.asarray(keep)])
    return out


# ---------------- pure numpy reference (loops) ----------------
def _ref_single_roi(feat, box, scale, OH, OW, SR):
    C, H, W = feat.shape
    sw, sh, ew, eh = box[0] * scale, box[1] * scale, box[2] * scale, box[3] * scale
    rw = max(ew - sw, 1.0)
    rh = max(eh - sh, 1.0)
    bw, bh = rw / OW, rh / OH
    out = np.zeros((C, OH, OW), np.float32)
    for phi in range(OH):
        for pwi in range(OW):
            acc = np.zeros(C, np.float32)
            for iy in range(SR):
                for ix in range(SR):
                    y = sh + phi * bh + (iy + 0.5) * bh / SR
                    x = sw + pwi * bw + (ix + 0.5) * bw / SR
                    if y < -1.0 or y > H or x < -1.0 or x > W:
                        continue
                    y = min(max(y, 0.0), H - 1)
                    x = min(max(x, 0.0), W - 1)
                    y0, x0 = int(np.floor(y)), int(np.floor(x))
                    y1, x1 = min(y0 + 1, H - 1), min(x0 + 1, W - 1)
                    ly, lx = y - y0, x - x0
                    acc += (feat[:, y0, x0] * (1 - ly) * (1 - lx) +
                            feat[:, y0, x1] * (1 - ly) * lx +
                            feat[:, y1, x0] * ly * (1 - lx) +
                            feat[:, y1, x1] * ly * lx)
            out[:, phi, pwi] = acc / (SR * SR)
    return out


def _reference(featmaps, spatial_scales, boxes_list, output_size, sampling_ratio,
               canonical_scale, canonical_level):
    OH, OW = output_size
    feats = [np.asarray(f, np.float32) for f in featmaps]
    qb = [np.clip(np.round(np.asarray(b) / QUANT_SCALE), -32768, 32767) * QUANT_SCALE
          for b in boxes_list]
    rois = np.concatenate(qb, 0)
    bidx = np.concatenate([np.full((b.shape[0],), i, np.int32)
                           for i, b in enumerate(boxes_list)])
    k_vals = [int(round(-math.log2(s))) for s in spatial_scales]
    w = rois[:, 2] - rois[:, 0]
    h = rois[:, 3] - rois[:, 1]
    sz = np.sqrt(np.maximum(w * h, 0.0))
    lvl = np.floor(canonical_level
                   + np.log2(np.maximum(sz, 1e-12) / canonical_scale) + 1e-6)
    lvl = np.clip(lvl, k_vals[0], k_vals[-1]).astype(np.int32) - k_vals[0]
    C = feats[0].shape[1]
    out = np.zeros((rois.shape[0], C, OH, OW), np.float32)
    for r in range(rois.shape[0]):
        li = int(lvl[r])
        out[r] = _ref_single_roi(feats[li][int(bidx[r])], rois[r],
                                 float(spatial_scales[li]), OH, OW, sampling_ratio)
    return out


if __name__ == "__main__":
    key = jax.random.PRNGKey(0)
    k0, k1, k2, k3 = jax.random.split(key, 4)

    B, C = 2, 4
    # feature pyramid: level 0 at 1/4 scale (16x16), level 1 at 1/8 scale (8x8)
    featmaps = [
        jax.random.normal(k0, (B, C, 16, 16), jnp.float32),
        jax.random.normal(k1, (B, C, 8, 8), jnp.float32),
    ]
    spatial_scales = (0.25, 0.125)

    # per-image boxes in (x1, y1, x2, y2) image coords (64x64 image)
    def make_boxes(k, n):
        ka, kb = jax.random.split(k)
        xy = jax.random.uniform(ka, (n, 2), jnp.float32, 1.0, 30.0)
        wh = jax.random.uniform(kb, (n, 2), jnp.float32, 6.0, 34.0)
        return jnp.concatenate([xy, jnp.minimum(xy + wh, 63.0)], axis=1)

    boxes_list = [make_boxes(k2, 3), make_boxes(k3, 2)]

    ref = _reference([np.asarray(f) for f in featmaps], spatial_scales,
                     [np.asarray(b) for b in boxes_list], (4, 4), 2, 32, 3)

    # default path: whole level per grid step (fits VMEM at these shapes)
    out = multiscale_roi_align(
        featmaps, spatial_scales, boxes_list,
        output_size=(4, 4), sampling_ratio=2,
        canonical_scale=32, canonical_level=3)
    out = jax.block_until_ready(out)
    assert out.shape == (5, C, 4, 4), out.shape
    np.testing.assert_allclose(np.asarray(out), ref, rtol=1e-3, atol=1e-3)

    # also exercise the HW-tiled accumulation path (level 0: 256 cols -> 2 k-steps)
    out_tiled = multiscale_roi_align(
        featmaps, spatial_scales, boxes_list,
        output_size=(4, 4), sampling_ratio=2,
        canonical_scale=32, canonical_level=3, hw_tile=128)
    out_tiled = jax.block_until_ready(out_tiled)
    np.testing.assert_allclose(np.asarray(out_tiled), ref, rtol=1e-3, atol=1e-3)

    print("KERNEL_OK")
</pallas_src>

<mosaic_0001>
module attributes {stable_mosaic.version = 11 : i64} {
  func.func @kernel(%arg0: i32, %arg1: i32, %arg2: memref<2xi32, #tpu.memory_space<smem>>, %arg3: memref<128xi32, #tpu.memory_space<smem>>, %arg4: memref<1x4x256xf32, #tpu.memory_space<vmem>>, %arg5: memref<1x256xf32, #tpu.memory_space<vmem>>, %arg6: memref<1x256xf32, #tpu.memory_space<vmem>>, %arg7: memref<16x1xf32, #tpu.memory_space<vmem>>, %arg8: memref<16x1xf32, #tpu.memory_space<vmem>>, %arg9: memref<1x4x256xf32, #tpu.memory_space<vmem>>, %arg10: memref<256x256xf32, #tpu.memory_space<vmem>>) attributes {dimension_semantics = [#tpu.dimension_semantics<parallel>, #tpu.dimension_semantics<arbitrary>], iteration_bounds = array<i64: 2, 1>, scalar_prefetch = 2 : i64, scratch_operands = 1 : i64, tpu.core_type = #tpu.core_type<tc>, window_params = [{transform_indices = @transform_0, window_bounds = array<i64: 1, 4, 256>}, {transform_indices = @transform_1, window_bounds = array<i64: 1, 256>}, {transform_indices = @transform_2, window_bounds = array<i64: 1, 256>}, {pipeline_mode = #tpu.pipeline_mode<synchronous>, transform_indices = @transform_3, window_bounds = array<i64: 16, 1>}, {pipeline_mode = #tpu.pipeline_mode<synchronous>, transform_indices = @transform_4, window_bounds = array<i64: 16, 1>}, {transform_indices = @transform_5, window_bounds = array<i64: 1, 4, 256>}]} {
    %c0 = arith.constant 0 : index
    %c0_0 = arith.constant 0 : index
    %0 = vector.load %arg5[%c0, %c0_0] : memref<1x256xf32, #tpu.memory_space<vmem>>, vector<1x256xf32>
    %c0_1 = arith.constant 0 : index
    %c0_2 = arith.constant 0 : index
    %1 = vector.load %arg6[%c0_1, %c0_2] : memref<1x256xf32, #tpu.memory_space<vmem>>, vector<1x256xf32>
    %c0_3 = arith.constant 0 : index
    %c0_4 = arith.constant 0 : index
    %2 = vector.load %arg7[%c0_3, %c0_4] : memref<16x1xf32, #tpu.memory_space<vmem>>, vector<16x1xf32>
    %c0_5 = arith.constant 0 : index
    %c0_6 = arith.constant 0 : index
    %3 = vector.load %arg8[%c0_5, %c0_6] : memref<16x1xf32, #tpu.memory_space<vmem>>, vector<16x1xf32>
    %c64_i32 = arith.constant 64 : i32
    %4 = arith.muli %arg0, %c64_i32 : i32
    %c0_i32 = arith.constant 0 : i32
    %5 = arith.addi %4, %c0_i32 : i32
    %c0_i32_7 = arith.constant 0 : i32
    %6 = arith.addi %5, %c0_i32_7 : i32
    %7 = arith.index_cast %6 : i32 to index
    %8 = memref.load %arg3[%7] : memref<128xi32, #tpu.memory_space<smem>>
    %9 = arith.sitofp %8 : i32 to f32
    %cst = arith.constant 2.500000e-01 : f32
    %10 = arith.mulf %9, %cst : f32
    %c1_i32 = arith.constant 1 : i32
    %11 = arith.addi %5, %c1_i32 : i32
    %12 = arith.index_cast %11 : i32 to index
    %13 = memref.load %arg3[%12] : memref<128xi32, #tpu.memory_space<smem>>
    %14 = arith.sitofp %13 : i32 to f32
    %cst_8 = arith.constant 2.500000e-01 : f32
    %15 = arith.mulf %14, %cst_8 : f32
    %c2_i32 = arith.constant 2 : i32
    %16 = arith.addi %5, %c2_i32 : i32
    %17 = arith.index_cast %16 : i32 to index
    %18 = memref.load %arg3[%17] : memref<128xi32, #tpu.memory_space<smem>>
    %19 = arith.sitofp %18 : i32 to f32
    %cst_9 = arith.constant 2.500000e-01 : f32
    %20 = arith.mulf %19, %cst_9 : f32
    %c3_i32 = arith.constant 3 : i32
    %21 = arith.addi %5, %c3_i32 : i32
    %22 = arith.index_cast %21 : i32 to index
    %23 = memref.load %arg3[%22] : memref<128xi32, #tpu.memory_space<smem>>
    %24 = arith.sitofp %23 : i32 to f32
    %cst_10 = arith.constant 2.500000e-01 : f32
    %25 = arith.mulf %24, %cst_10 : f32
    %cst_11 = arith.constant 2.500000e-01 : f32
    %26 = arith.mulf %10, %cst_11 : f32
    %cst_12 = arith.constant 2.500000e-01 : f32
    %27 = arith.mulf %15, %cst_12 : f32
    %cst_13 = arith.constant 2.500000e-01 : f32
    %28 = arith.mulf %20, %cst_13 : f32
    %29 = arith.subf %28, %26 : f32
    %cst_14 = arith.constant 1.000000e+00 : f32
    %30 = arith.maximumf %29, %cst_14 : f32
    %cst_15 = arith.constant 2.500000e-01 : f32
    %31 = arith.mulf %25, %cst_15 : f32
    %32 = arith.subf %31, %27 : f32
    %cst_16 = arith.constant 1.000000e+00 : f32
    %33 = arith.maximumf %32, %cst_16 : f32
    %cst_17 = arith.constant 4.000000e+00 : f32
    %34 = arith.divf %30, %cst_17 : f32
    %cst_18 = arith.constant 4.000000e+00 : f32
    %35 = arith.divf %33, %cst_18 : f32
    %cst_19 = arith.constant 2.500000e-01 : f32
    %36 = vector.broadcast %cst_19 : f32 to vector<16x1xf32>
    %37 = arith.addf %2, %36 : vector<16x1xf32>
    %38 = vector.broadcast %35 : f32 to vector<16x1xf32>
    %39 = arith.mulf %37, %38 : vector<16x1xf32>
    %40 = vector.broadcast %27 : f32 to vector<16x1xf32>
    %41 = arith.addf %40, %39 : vector<16x1xf32>
    %cst_20 = arith.constant -1.000000e+00 : f32
    %42 = vector.broadcast %cst_20 : f32 to vector<16x1xf32>
    %43 = arith.cmpf oge, %41, %42 : vector<16x1xf32>
    %cst_21 = arith.constant 1.600000e+01 : f32
    %44 = vector.broadcast %cst_21 : f32 to vector<16x1xf32>
    %45 = arith.cmpf ole, %41, %44 : vector<16x1xf32>
    %46 = arith.andi %43, %45 : vector<16x1xi1>
    %cst_22 = arith.constant 5.000000e-01 : f32
    %cst_23 = arith.constant 0.000000e+00 : f32
    %47 = vector.broadcast %cst_22 : f32 to vector<16x1xf32>
    %48 = vector.broadcast %cst_23 : f32 to vector<16x1xf32>
    %49 = arith.select %46, %47, %48 : vector<16x1xi1>, vector<16x1xf32>
    %cst_24 = arith.constant 0.000000e+00 : f32
    %cst_25 = arith.constant 1.500000e+01 : f32
    %50 = vector.broadcast %cst_24 : f32 to vector<16x1xf32>
    %51 = arith.maximumf %50, %41 : vector<16x1xf32>
    %52 = vector.broadcast %cst_25 : f32 to vector<16x1xf32>
    %53 = arith.minimumf %52, %51 : vector<16x1xf32>
    %54 = vector.broadcast %53 : vector<16x1xf32> to vector<16x256xf32>
    %55 = vector.broadcast %0 : vector<1x256xf32> to vector<16x256xf32>
    %56 = arith.subf %54, %55 : vector<16x256xf32>
    %57 = math.absf %56 : vector<16x256xf32>
    %cst_26 = arith.constant 1.000000e+00 : f32
    %58 = vector.broadcast %cst_26 : f32 to vector<16x256xf32>
    %59 = arith.subf %58, %57 : vector<16x256xf32>
    %cst_27 = arith.constant 0.000000e+00 : f32
    %60 = vector.broadcast %cst_27 : f32 to vector<16x256xf32>
    %61 = arith.maximumf %59, %60 : vector<16x256xf32>
    %62 = vector.broadcast %49 : vector<16x1xf32> to vector<16x256xf32>
    %63 = arith.mulf %62, %61 : vector<16x256xf32>
    %cst_28 = arith.constant 2.500000e-01 : f32
    %64 = vector.broadcast %cst_28 : f32 to vector<16x1xf32>
    %65 = arith.addf %3, %64 : vector<16x1xf32>
    %66 = vector.broadcast %34 : f32 to vector<16x1xf32>
    %67 = arith.mulf %65, %66 : vector<16x1xf32>
    %68 = vector.broadcast %26 : f32 to vector<16x1xf32>
    %69 = arith.addf %68, %67 : vector<16x1xf32>
    %cst_29 = arith.constant -1.000000e+00 : f32
    %70 = vector.broadcast %cst_29 : f32 to vector<16x1xf32>
    %71 = arith.cmpf oge, %69, %70 : vector<16x1xf32>
    %cst_30 = arith.constant 1.600000e+01 : f32
    %72 = vector.broadcast %cst_30 : f32 to vector<16x1xf32>
    %73 = arith.cmpf ole, %69, %72 : vector<16x1xf32>
    %74 = arith.andi %71, %73 : vector<16x1xi1>
    %cst_31 = arith.constant 5.000000e-01 : f32
    %cst_32 = arith.constant 0.000000e+00 : f32
    %75 = vector.broadcast %cst_31 : f32 to vector<16x1xf32>
    %76 = vector.broadcast %cst_32 : f32 to vector<16x1xf32>
    %77 = arith.select %74, %75, %76 : vector<16x1xi1>, vector<16x1xf32>
    %cst_33 = arith.constant 0.000000e+00 : f32
    %cst_34 = arith.constant 1.500000e+01 : f32
    %78 = vector.broadcast %cst_33 : f32 to vector<16x1xf32>
    %79 = arith.maximumf %78, %69 : vector<16x1xf32>
    %80 = vector.broadcast %cst_34 : f32 to vector<16x1xf32>
    %81 = arith.minimumf %80, %79 : vector<16x1xf32>
    %82 = vector.broadcast %81 : vector<16x1xf32> to vector<16x256xf32>
    %83 = vector.broadcast %1 : vector<1x256xf32> to vector<16x256xf32>
    %84 = arith.subf %82, %83 : vector<16x256xf32>
    %85 = math.absf %84 : vector<16x256xf32>
    %cst_35 = arith.constant 1.000000e+00 : f32
    %86 = vector.broadcast %cst_35 : f32 to vector<16x256xf32>
    %87 = arith.subf %86, %85 : vector<16x256xf32>
    %cst_36 = arith.constant 0.000000e+00 : f32
    %88 = vector.broadcast %cst_36 : f32 to vector<16x256xf32>
    %89 = arith.maximumf %87, %88 : vector<16x256xf32>
    %90 = vector.broadcast %77 : vector<16x1xf32> to vector<16x256xf32>
    %91 = arith.mulf %90, %89 : vector<16x256xf32>
    %cst_37 = arith.constant 7.500000e-01 : f32
    %92 = vector.broadcast %cst_37 : f32 to vector<16x1xf32>
    %93 = arith.addf %2, %92 : vector<16x1xf32>
    %94 = vector.broadcast %35 : f32 to vector<16x1xf32>
    %95 = arith.mulf %93, %94 : vector<16x1xf32>
    %96 = vector.broadcast %27 : f32 to vector<16x1xf32>
    %97 = arith.addf %96, %95 : vector<16x1xf32>
    %cst_38 = arith.constant -1.000000e+00 : f32
    %98 = vector.broadcast %cst_38 : f32 to vector<16x1xf32>
    %99 = arith.cmpf oge, %97, %98 : vector<16x1xf32>
    %cst_39 = arith.constant 1.600000e+01 : f32
    %100 = vector.broadcast %cst_39 : f32 to vector<16x1xf32>
    %101 = arith.cmpf ole, %97, %100 : vector<16x1xf32>
    %102 = arith.andi %99, %101 : vector<16x1xi1>
    %cst_40 = arith.constant 5.000000e-01 : f32
    %cst_41 = arith.constant 0.000000e+00 : f32
    %103 = vector.broadcast %cst_40 : f32 to vector<16x1xf32>
    %104 = vector.broadcast %cst_41 : f32 to vector<16x1xf32>
    %105 = arith.select %102, %103, %104 : vector<16x1xi1>, vector<16x1xf32>
    %cst_42 = arith.constant 0.000000e+00 : f32
    %cst_43 = arith.constant 1.500000e+01 : f32
    %106 = vector.broadcast %cst_42 : f32 to vector<16x1xf32>
    %107 = arith.maximumf %106, %97 : vector<16x1xf32>
    %108 = vector.broadcast %cst_43 : f32 to vector<16x1xf32>
    %109 = arith.minimumf %108, %107 : vector<16x1xf32>
    %110 = vector.broadcast %109 : vector<16x1xf32> to vector<16x256xf32>
    %111 = vector.broadcast %0 : vector<1x256xf32> to vector<16x256xf32>
    %112 = arith.subf %110, %111 : vector<16x256xf32>
    %113 = math.absf %112 : vector<16x256xf32>
    %cst_44 = arith.constant 1.000000e+00 : f32
    %114 = vector.broadcast %cst_44 : f32 to vector<16x256xf32>
    %115 = arith.subf %114, %113 : vector<16x256xf32>
    %cst_45 = arith.constant 0.000000e+00 : f32
    %116 = vector.broadcast %cst_45 : f32 to vector<16x256xf32>
    %117 = arith.maximumf %115, %116 : vector<16x256xf32>
    %118 = vector.broadcast %105 : vector<16x1xf32> to vector<16x256xf32>
    %119 = arith.mulf %118, %117 : vector<16x256xf32>
    %120 = arith.addf %63, %119 : vector<16x256xf32>
    %cst_46 = arith.constant 7.500000e-01 : f32
    %121 = vector.broadcast %cst_46 : f32 to vector<16x1xf32>
    %122 = arith.addf %3, %121 : vector<16x1xf32>
    %123 = vector.broadcast %34 : f32 to vector<16x1xf32>
    %124 = arith.mulf %122, %123 : vector<16x1xf32>
    %125 = vector.broadcast %26 : f32 to vector<16x1xf32>
    %126 = arith.addf %125, %124 : vector<16x1xf32>
    %cst_47 = arith.constant -1.000000e+00 : f32
    %127 = vector.broadcast %cst_47 : f32 to vector<16x1xf32>
    %128 = arith.cmpf oge, %126, %127 : vector<16x1xf32>
    %cst_48 = arith.constant 1.600000e+01 : f32
    %129 = vector.broadcast %cst_48 : f32 to vector<16x1xf32>
    %130 = arith.cmpf ole, %126, %129 : vector<16x1xf32>
    %131 = arith.andi %128, %130 : vector<16x1xi1>
    %cst_49 = arith.constant 5.000000e-01 : f32
    %cst_50 = arith.constant 0.000000e+00 : f32
    %132 = vector.broadcast %cst_49 : f32 to vector<16x1xf32>
    %133 = vector.broadcast %cst_50 : f32 to vector<16x1xf32>
    %134 = arith.select %131, %132, %133 : vector<16x1xi1>, vector<16x1xf32>
    %cst_51 = arith.constant 0.000000e+00 : f32
    %cst_52 = arith.constant 1.500000e+01 : f32
    %135 = vector.broadcast %cst_51 : f32 to vector<16x1xf32>
    %136 = arith.maximumf %135, %126 : vector<16x1xf32>
    %137 = vector.broadcast %cst_52 : f32 to vector<16x1xf32>
    %138 = arith.minimumf %137, %136 : vector<16x1xf32>
    %139 = vector.broadcast %138 : vector<16x1xf32> to vector<16x256xf32>
    %140 = vector.broadcast %1 : vector<1x256xf32> to vector<16x256xf32>
    %141 = arith.subf %139, %140 : vector<16x256xf32>
    %142 = math.absf %141 : vector<16x256xf32>
    %cst_53 = arith.constant 1.000000e+00 : f32
    %143 = vector.broadcast %cst_53 : f32 to vector<16x256xf32>
    %144 = arith.subf %143, %142 : vector<16x256xf32>
    %cst_54 = arith.constant 0.000000e+00 : f32
    %145 = vector.broadcast %cst_54 : f32 to vector<16x256xf32>
    %146 = arith.maximumf %144, %145 : vector<16x256xf32>
    %147 = vector.broadcast %134 : vector<16x1xf32> to vector<16x256xf32>
    %148 = arith.mulf %147, %146 : vector<16x256xf32>
    %149 = arith.addf %91, %148 : vector<16x256xf32>
    %150 = arith.mulf %120, %149 : vector<16x256xf32>
    %c0_55 = arith.constant 0 : index
    %c0_56 = arith.constant 0 : index
    %151 = vector.load %arg10[%c0_55, %c0_56] : memref<256x256xf32, #tpu.memory_space<vmem>>, vector<16x256xf32>
    tpu.vector_store %arg10[%c0_55, %c0_56], %150 {strides = array<i32>} : memref<256x256xf32, #tpu.memory_space<vmem>>, vector<16x256xf32>,
    %c4_i32 = arith.constant 4 : i32
    %152 = arith.addi %4, %c4_i32 : i32
    %c0_i32_57 = arith.constant 0 : i32
    %153 = arith.addi %152, %c0_i32_57 : i32
    %154 = arith.index_cast %153 : i32 to index
    %155 = memref.load %arg3[%154] : memref<128xi32, #tpu.memory_space<smem>>
    %156 = arith.sitofp %155 : i32 to f32
    %cst_58 = arith.constant 2.500000e-01 : f32
    %157 = arith.mulf %156, %cst_58 : f32
    %c1_i32_59 = arith.constant 1 : i32
    %158 = arith.addi %152, %c1_i32_59 : i32
    %159 = arith.index_cast %158 : i32 to index
    %160 = memref.load %arg3[%159] : memref<128xi32, #tpu.memory_space<smem>>
    %161 = arith.sitofp %160 : i32 to f32
    %cst_60 = arith.constant 2.500000e-01 : f32
    %162 = arith.mulf %161, %cst_60 : f32
    %c2_i32_61 = arith.constant 2 : i32
    %163 = arith.addi %152, %c2_i32_61 : i32
    %164 = arith.index_cast %163 : i32 to index
    %165 = memref.load %arg3[%164] : memref<128xi32, #tpu.memory_space<smem>>
    %166 = arith.sitofp %165 : i32 to f32
    %cst_62 = arith.constant 2.500000e-01 : f32
    %167 = arith.mulf %166, %cst_62 : f32
    %c3_i32_63 = arith.constant 3 : i32
    %168 = arith.addi %152, %c3_i32_63 : i32
    %169 = arith.index_cast %168 : i32 to index
    %170 = memref.load %arg3[%169] : memref<128xi32, #tpu.memory_space<smem>>
    %171 = arith.sitofp %170 : i32 to f32
    %cst_64 = arith.constant 2.500000e-01 : f32
    %172 = arith.mulf %171, %cst_64 : f32
    %cst_65 = arith.constant 2.500000e-01 : f32
    %173 = arith.mulf %157, %cst_65 : f32
    %cst_66 = arith.constant 2.500000e-01 : f32
    %174 = arith.mulf %162, %cst_66 : f32
    %cst_67 = arith.constant 2.500000e-01 : f32
    %175 = arith.mulf %167, %cst_67 : f32
    %176 = arith.subf %175, %173 : f32
    %cst_68 = arith.constant 1.000000e+00 : f32
    %177 = arith.maximumf %176, %cst_68 : f32
    %cst_69 = arith.constant 2.500000e-01 : f32
    %178 = arith.mulf %172, %cst_69 : f32
    %179 = arith.subf %178, %174 : f32
    %cst_70 = arith.constant 1.000000e+00 : f32
    %180 = arith.maximumf %179, %cst_70 : f32
    %cst_71 = arith.constant 4.000000e+00 : f32
    %181 = arith.divf %177, %cst_71 : f32
    %cst_72 = arith.constant 4.000000e+00 : f32
    %182 = arith.divf %180, %cst_72 : f32
    %cst_73 = arith.constant 2.500000e-01 : f32
    %183 = vector.broadcast %cst_73 : f32 to vector<16x1xf32>
    %184 = arith.addf %2, %183 : vector<16x1xf32>
    %185 = vector.broadcast %182 : f32 to vector<16x1xf32>
    %186 = arith.mulf %184, %185 : vector<16x1xf32>
    %187 = vector.broadcast %174 : f32 to vector<16x1xf32>
    %188 = arith.addf %187, %186 : vector<16x1xf32>
    %cst_74 = arith.constant -1.000000e+00 : f32
    %189 = vector.broadcast %cst_74 : f32 to vector<16x1xf32>
    %190 = arith.cmpf oge, %188, %189 : vector<16x1xf32>
    %cst_75 = arith.constant 1.600000e+01 : f32
    %191 = vector.broadcast %cst_75 : f32 to vector<16x1xf32>
    %192 = arith.cmpf ole, %188, %191 : vector<16x1xf32>
    %193 = arith.andi %190, %192 : vector<16x1xi1>
    %cst_76 = arith.constant 5.000000e-01 : f32
    %cst_77 = arith.constant 0.000000e+00 : f32
    %194 = vector.broadcast %cst_76 : f32 to vector<16x1xf32>
    %195 = vector.broadcast %cst_77 : f32 to vector<16x1xf32>
    %196 = arith.select %193, %194, %195 : vector<16x1xi1>, vector<16x1xf32>
    %cst_78 = arith.constant 0.000000e+00 : f32
    %cst_79 = arith.constant 1.500000e+01 : f32
    %197 = vector.broadcast %cst_78 : f32 to vector<16x1xf32>
    %198 = arith.maximumf %197, %188 : vector<16x1xf32>
    %199 = vector.broadcast %cst_79 : f32 to vector<16x1xf32>
    %200 = arith.minimumf %199, %198 : vector<16x1xf32>
    %201 = vector.broadcast %200 : vector<16x1xf32> to vector<16x256xf32>
    %202 = vector.broadcast %0 : vector<1x256xf32> to vector<16x256xf32>
    %203 = arith.subf %201, %202 : vector<16x256xf32>
    %204 = math.absf %203 : vector<16x256xf32>
    %cst_80 = arith.constant 1.000000e+00 : f32
    %205 = vector.broadcast %cst_80 : f32 to vector<16x256xf32>
    %206 = arith.subf %205, %204 : vector<16x256xf32>
    %cst_81 = arith.constant 0.000000e+00 : f32
    %207 = vector.broadcast %cst_81 : f32 to vector<16x256xf32>
    %208 = arith.maximumf %206, %207 : vector<16x256xf32>
    %209 = vector.broadcast %196 : vector<16x1xf32> to vector<16x256xf32>
    %210 = arith.mulf %209, %208 : vector<16x256xf32>
    %cst_82 = arith.constant 2.500000e-01 : f32
    %211 = vector.broadcast %cst_82 : f32 to vector<16x1xf32>
    %212 = arith.addf %3, %211 : vector<16x1xf32>
    %213 = vector.broadcast %181 : f32 to vector<16x1xf32>
    %214 = arith.mulf %212, %213 : vector<16x1xf32>
    %215 = vector.broadcast %173 : f32 to vector<16x1xf32>
    %216 = arith.addf %215, %214 : vector<16x1xf32>
    %cst_83 = arith.constant -1.000000e+00 : f32
    %217 = vector.broadcast %cst_83 : f32 to vector<16x1xf32>
    %218 = arith.cmpf oge, %216, %217 : vector<16x1xf32>
    %cst_84 = arith.constant 1.600000e+01 : f32
    %219 = vector.broadcast %cst_84 : f32 to vector<16x1xf32>
    %220 = arith.cmpf ole, %216, %219 : vector<16x1xf32>
    %221 = arith.andi %218, %220 : vector<16x1xi1>
    %cst_85 = arith.constant 5.000000e-01 : f32
    %cst_86 = arith.constant 0.000000e+00 : f32
    %222 = vector.broadcast %cst_85 : f32 to vector<16x1xf32>
    %223 = vector.broadcast %cst_86 : f32 to vector<16x1xf32>
    %224 = arith.select %221, %222, %223 : vector<16x1xi1>, vector<16x1xf32>
    %cst_87 = arith.constant 0.000000e+00 : f32
    %cst_88 = arith.constant 1.500000e+01 : f32
    %225 = vector.broadcast %cst_87 : f32 to vector<16x1xf32>
    %226 = arith.maximumf %225, %216 : vector<16x1xf32>
    %227 = vector.broadcast %cst_88 : f32 to vector<16x1xf32>
    %228 = arith.minimumf %227, %226 : vector<16x1xf32>
    %229 = vector.broadcast %228 : vector<16x1xf32> to vector<16x256xf32>
    %230 = vector.broadcast %1 : vector<1x256xf32> to vector<16x256xf32>
    %231 = arith.subf %229, %230 : vector<16x256xf32>
    %232 = math.absf %231 : vector<16x256xf32>
    %cst_89 = arith.constant 1.000000e+00 : f32
    %233 = vector.broadcast %cst_89 : f32 to vector<16x256xf32>
    %234 = arith.subf %233, %232 : vector<16x256xf32>
    %cst_90 = arith.constant 0.000000e+00 : f32
    %235 = vector.broadcast %cst_90 : f32 to vector<16x256xf32>
    %236 = arith.maximumf %234, %235 : vector<16x256xf32>
    %237 = vector.broadcast %224 : vector<16x1xf32> to vector<16x256xf32>
    %238 = arith.mulf %237, %236 : vector<16x256xf32>
    %cst_91 = arith.constant 7.500000e-01 : f32
    %239 = vector.broadcast %cst_91 : f32 to vector<16x1xf32>
    %240 = arith.addf %2, %239 : vector<16x1xf32>
    %241 = vector.broadcast %182 : f32 to vector<16x1xf32>
    %242 = arith.mulf %240, %241 : vector<16x1xf32>
    %243 = vector.broadcast %174 : f32 to vector<16x1xf32>
    %244 = arith.addf %243, %242 : vector<16x1xf32>
    %cst_92 = arith.constant -1.000000e+00 : f32
    %245 = vector.broadcast %cst_92 : f32 to vector<16x1xf32>
    %246 = arith.cmpf oge, %244, %245 : vector<16x1xf32>
    %cst_93 = arith.constant 1.600000e+01 : f32
    %247 = vector.broadcast %cst_93 : f32 to vector<16x1xf32>
    %248 = arith.cmpf ole, %244, %247 : vector<16x1xf32>
    %249 = arith.andi %246, %248 : vector<16x1xi1>
    %cst_94 = arith.constant 5.000000e-01 : f32
    %cst_95 = arith.constant 0.000000e+00 : f32
    %250 = vector.broadcast %cst_94 : f32 to vector<16x1xf32>
    %251 = vector.broadcast %cst_95 : f32 to vector<16x1xf32>
    %252 = arith.select %249, %250, %251 : vector<16x1xi1>, vector<16x1xf32>
    %cst_96 = arith.constant 0.000000e+00 : f32
    %cst_97 = arith.constant 1.500000e+01 : f32
    %253 = vector.broadcast %cst_96 : f32 to vector<16x1xf32>
    %254 = arith.maximumf %253, %244 : vector<16x1xf32>
    %255 = vector.broadcast %cst_97 : f32 to vector<16x1xf32>
    %256 = arith.minimumf %255, %254 : vector<16x1xf32>
    %257 = vector.broadcast %256 : vector<16x1xf32> to vector<16x256xf32>
    %258 = vector.broadcast %0 : vector<1x256xf32> to vector<16x256xf32>
    %259 = arith.subf %257, %258 : vector<16x256xf32>
    %260 = math.absf %259 : vector<16x256xf32>
    %cst_98 = arith.constant 1.000000e+00 : f32
    %261 = vector.broadcast %cst_98 : f32 to vector<16x256xf32>
    %262 = arith.subf %261, %260 : vector<16x256xf32>
    %cst_99 = arith.constant 0.000000e+00 : f32
    %263 = vector.broadcast %cst_99 : f32 to vector<16x256xf32>
    %264 = arith.maximumf %262, %263 : vector<16x256xf32>
    %265 = vector.broadcast %252 : vector<16x1xf32> to vector<16x256xf32>
    %266 = arith.mulf %265, %264 : vector<16x256xf32>
    %267 = arith.addf %210, %266 : vector<16x256xf32>
    %cst_100 = arith.constant 7.500000e-01 : f32
    %268 = vector.broadcast %cst_100 : f32 to vector<16x1xf32>
    %269 = arith.addf %3, %268 : vector<16x1xf32>
    %270 = vector.broadcast %181 : f32 to vector<16x1xf32>
    %271 = arith.mulf %269, %270 : vector<16x1xf32>
    %272 = vector.broadcast %173 : f32 to vector<16x1xf32>
    %273 = arith.addf %272, %271 : vector<16x1xf32>
    %cst_101 = arith.constant -1.000000e+00 : f32
    %274 = vector.broadcast %cst_101 : f32 to vector<16x1xf32>
    %275 = arith.cmpf oge, %273, %274 : vector<16x1xf32>
    %cst_102 = arith.constant 1.600000e+01 : f32
    %276 = vector.broadcast %cst_102 : f32 to vector<16x1xf32>
    %277 = arith.cmpf ole, %273, %276 : vector<16x1xf32>
    %278 = arith.andi %275, %277 : vector<16x1xi1>
    %cst_103 = arith.constant 5.000000e-01 : f32
    %cst_104 = arith.constant 0.000000e+00 : f32
    %279 = vector.broadcast %cst_103 : f32 to vector<16x1xf32>
    %280 = vector.broadcast %cst_104 : f32 to vector<16x1xf32>
    %281 = arith.select %278, %279, %280 : vector<16x1xi1>, vector<16x1xf32>
    %cst_105 = arith.constant 0.000000e+00 : f32
    %cst_106 = arith.constant 1.500000e+01 : f32
    %282 = vector.broadcast %cst_105 : f32 to vector<16x1xf32>
    %283 = arith.maximumf %282, %273 : vector<16x1xf32>
    %284 = vector.broadcast %cst_106 : f32 to vector<16x1xf32>
    %285 = arith.minimumf %284, %283 : vector<16x1xf32>
    %286 = vector.broadcast %285 : vector<16x1xf32> to vector<16x256xf32>
    %287 = vector.broadcast %1 : vector<1x256xf32> to vector<16x256xf32>
    %288 = arith.subf %286, %287 : vector<16x256xf32>
    %289 = math.absf %288 : vector<16x256xf32>
    %cst_107 = arith.constant 1.000000e+00 : f32
    %290 = vector.broadcast %cst_107 : f32 to vector<16x256xf32>
    %291 = arith.subf %290, %289 : vector<16x256xf32>
    %cst_108 = arith.constant 0.000000e+00 : f32
    %292 = vector.broadcast %cst_108 : f32 to vector<16x256xf32>
    %293 = arith.maximumf %291, %292 : vector<16x256xf32>
    %294 = vector.broadcast %281 : vector<16x1xf32> to vector<16x256xf32>
    %295 = arith.mulf %294, %293 : vector<16x256xf32>
    %296 = arith.addf %238, %295 : vector<16x256xf32>
    %297 = arith.mulf %267, %296 : vector<16x256xf32>
    %c16 = arith.constant 16 : index
    %c0_109 = arith.constant 0 : index
    %298 = vector.load %arg10[%c16, %c0_109] : memref<256x256xf32, #tpu.memory_space<vmem>>, vector<16x256xf32>
    tpu.vector_store %arg10[%c16, %c0_109], %297 {strides = array<i32>} : memref<256x256xf32, #tpu.memory_space<vmem>>, vector<16x256xf32>,
    %c8_i32 = arith.constant 8 : i32
    %299 = arith.addi %4, %c8_i32 : i32
    %c0_i32_110 = arith.constant 0 : i32
    %300 = arith.addi %299, %c0_i32_110 : i32
    %301 = arith.index_cast %300 : i32 to index
    %302 = memref.load %arg3[%301] : memref<128xi32, #tpu.memory_space<smem>>
    %303 = arith.sitofp %302 : i32 to f32
    %cst_111 = arith.constant 2.500000e-01 : f32
    %304 = arith.mulf %303, %cst_111 : f32
    %c1_i32_112 = arith.constant 1 : i32
    %305 = arith.addi %299, %c1_i32_112 : i32
    %306 = arith.index_cast %305 : i32 to index
    %307 = memref.load %arg3[%306] : memref<128xi32, #tpu.memory_space<smem>>
    %308 = arith.sitofp %307 : i32 to f32
    %cst_113 = arith.constant 2.500000e-01 : f32
    %309 = arith.mulf %308, %cst_113 : f32
    %c2_i32_114 = arith.constant 2 : i32
    %310 = arith.addi %299, %c2_i32_114 : i32
    %311 = arith.index_cast %310 : i32 to index
    %312 = memref.load %arg3[%311] : memref<128xi32, #tpu.memory_space<smem>>
    %313 = arith.sitofp %312 : i32 to f32
    %cst_115 = arith.constant 2.500000e-01 : f32
    %314 = arith.mulf %313, %cst_115 : f32
    %c3_i32_116 = arith.constant 3 : i32
    %315 = arith.addi %299, %c3_i32_116 : i32
    %316 = arith.index_cast %315 : i32 to index
    %317 = memref.load %arg3[%316] : memref<128xi32, #tpu.memory_space<smem>>
    %318 = arith.sitofp %317 : i32 to f32
    %cst_117 = arith.constant 2.500000e-01 : f32
    %319 = arith.mulf %318, %cst_117 : f32
    %cst_118 = arith.constant 2.500000e-01 : f32
    %320 = arith.mulf %304, %cst_118 : f32
    %cst_119 = arith.constant 2.500000e-01 : f32
    %321 = arith.mulf %309, %cst_119 : f32
    %cst_120 = arith.constant 2.500000e-01 : f32
    %322 = arith.mulf %314, %cst_120 : f32
    %323 = arith.subf %322, %320 : f32
    %cst_121 = arith.constant 1.000000e+00 : f32
    %324 = arith.maximumf %323, %cst_121 : f32
    %cst_122 = arith.constant 2.500000e-01 : f32
    %325 = arith.mulf %319, %cst_122 : f32
    %326 = arith.subf %325, %321 : f32
    %cst_123 = arith.constant 1.000000e+00 : f32
    %327 = arith.maximumf %326, %cst_123 : f32
    %cst_124 = arith.constant 4.000000e+00 : f32
    %328 = arith.divf %324, %cst_124 : f32
    %cst_125 = arith.constant 4.000000e+00 : f32
    %329 = arith.divf %327, %cst_125 : f32
    %cst_126 = arith.constant 2.500000e-01 : f32
    %330 = vector.broadcast %cst_126 : f32 to vector<16x1xf32>
    %331 = arith.addf %2, %330 : vector<16x1xf32>
    %332 = vector.broadcast %329 : f32 to vector<16x1xf32>
    %333 = arith.mulf %331, %332 : vector<16x1xf32>
    %334 = vector.broadcast %321 : f32 to vector<16x1xf32>
    %335 = arith.addf %334, %333 : vector<16x1xf32>
    %cst_127 = arith.constant -1.000000e+00 : f32
    %336 = vector.broadcast %cst_127 : f32 to vector<16x1xf32>
    %337 = arith.cmpf oge, %335, %336 : vector<16x1xf32>
    %cst_128 = arith.constant 1.600000e+01 : f32
    %338 = vector.broadcast %cst_128 : f32 to vector<16x1xf32>
    %339 = arith.cmpf ole, %335, %338 : vector<16x1xf32>
    %340 = arith.andi %337, %339 : vector<16x1xi1>
    %cst_129 = arith.constant 5.000000e-01 : f32
    %cst_130 = arith.constant 0.000000e+00 : f32
    %341 = vector.broadcast %cst_129 : f32 to vector<16x1xf32>
    %342 = vector.broadcast %cst_130 : f32 to vector<16x1xf32>
    %343 = arith.select %340, %341, %342 : vector<16x1xi1>, vector<16x1xf32>
    %cst_131 = arith.constant 0.000000e+00 : f32
    %cst_132 = arith.constant 1.500000e+01 : f32
    %344 = vector.broadcast %cst_131 : f32 to vector<16x1xf32>
    %345 = arith.maximumf %344, %335 : vector<16x1xf32>
    %346 = vector.broadcast %cst_132 : f32 to vector<16x1xf32>
    %347 = arith.minimumf %346, %345 : vector<16x1xf32>
    %348 = vector.broadcast %347 : vector<16x1xf32> to vector<16x256xf32>
    %349 = vector.broadcast %0 : vector<1x256xf32> to vector<16x256xf32>
    %350 = arith.subf %348, %349 : vector<16x256xf32>
    %351 = math.absf %350 : vector<16x256xf32>
    %cst_133 = arith.constant 1.000000e+00 : f32
    %352 = vector.broadcast %cst_133 : f32 to vector<16x256xf32>
    %353 = arith.subf %352, %351 : vector<16x256xf32>
    %cst_134 = arith.constant 0.000000e+00 : f32
    %354 = vector.broadcast %cst_134 : f32 to vector<16x256xf32>
    %355 = arith.maximumf %353, %354 : vector<16x256xf32>
    %356 = vector.broadcast %343 : vector<16x1xf32> to vector<16x256xf32>
    %357 = arith.mulf %356, %355 : vector<16x256xf32>
    %cst_135 = arith.constant 2.500000e-01 : f32
    %358 = vector.broadcast %cst_135 : f32 to vector<16x1xf32>
    %359 = arith.addf %3, %358 : vector<16x1xf32>
    %360 = vector.broadcast %328 : f32 to vector<16x1xf32>
    %361 = arith.mulf %359, %360 : vector<16x1xf32>
    %362 = vector.broadcast %320 : f32 to vector<16x1xf32>
    %363 = arith.addf %362, %361 : vector<16x1xf32>
    %cst_136 = arith.constant -1.000000e+00 : f32
    %364 = vector.broadcast %cst_136 : f32 to vector<16x1xf32>
    %365 = arith.cmpf oge, %363, %364 : vector<16x1xf32>
    %cst_137 = arith.constant 1.600000e+01 : f32
    %366 = vector.broadcast %cst_137 : f32 to vector<16x1xf32>
    %367 = arith.cmpf ole, %363, %366 : vector<16x1xf32>
    %368 = arith.andi %365, %367 : vector<16x1xi1>
    %cst_138 = arith.constant 5.000000e-01 : f32
    %cst_139 = arith.constant 0.000000e+00 : f32
    %369 = vector.broadcast %cst_138 : f32 to vector<16x1xf32>
    %370 = vector.broadcast %cst_139 : f32 to vector<16x1xf32>
    %371 = arith.select %368, %369, %370 : vector<16x1xi1>, vector<16x1xf32>
    %cst_140 = arith.constant 0.000000e+00 : f32
    %cst_141 = arith.constant 1.500000e+01 : f32
    %372 = vector.broadcast %cst_140 : f32 to vector<16x1xf32>
    %373 = arith.maximumf %372, %363 : vector<16x1xf32>
    %374 = vector.broadcast %cst_141 : f32 to vector<16x1xf32>
    %375 = arith.minimumf %374, %373 : vector<16x1xf32>
    %376 = vector.broadcast %375 : vector<16x1xf32> to vector<16x256xf32>
    %377 = vector.broadcast %1 : vector<1x256xf32> to vector<16x256xf32>
    %378 = arith.subf %376, %377 : vector<16x256xf32>
    %379 = math.absf %378 : vector<16x256xf32>
    %cst_142 = arith.constant 1.000000e+00 : f32
    %380 = vector.broadcast %cst_142 : f32 to vector<16x256xf32>
    %381 = arith.subf %380, %379 : vector<16x256xf32>
    %cst_143 = arith.constant 0.000000e+00 : f32
    %382 = vector.broadcast %cst_143 : f32 to vector<16x256xf32>
    %383 = arith.maximumf %381, %382 : vector<16x256xf32>
    %384 = vector.broadcast %371 : vector<16x1xf32> to vector<16x256xf32>
    %385 = arith.mulf %384, %383 : vector<16x256xf32>
    %cst_144 = arith.constant 7.500000e-01 : f32
    %386 = vector.broadcast %cst_144 : f32 to vector<16x1xf32>
    %387 = arith.addf %2, %386 : vector<16x1xf32>
    %388 = vector.broadcast %329 : f32 to vector<16x1xf32>
    %389 = arith.mulf %387, %388 : vector<16x1xf32>
    %390 = vector.broadcast %321 : f32 to vector<16x1xf32>
    %391 = arith.addf %390, %389 : vector<16x1xf32>
    %cst_145 = arith.constant -1.000000e+00 : f32
    %392 = vector.broadcast %cst_145 : f32 to vector<16x1xf32>
    %393 = arith.cmpf oge, %391, %392 : vector<16x1xf32>
    %cst_146 = arith.constant 1.600000e+01 : f32
    %394 = vector.broadcast %cst_146 : f32 to vector<16x1xf32>
    %395 = arith.cmpf ole, %391, %394 : vector<16x1xf32>
    %396 = arith.andi %393, %395 : vector<16x1xi1>
    %cst_147 = arith.constant 5.000000e-01 : f32
    %cst_148 = arith.constant 0.000000e+00 : f32
    %397 = vector.broadcast %cst_147 : f32 to vector<16x1xf32>
    %398 = vector.broadcast %cst_148 : f32 to vector<16x1xf32>
    %399 = arith.select %396, %397, %398 : vector<16x1xi1>, vector<16x1xf32>
    %cst_149 = arith.constant 0.000000e+00 : f32
    %cst_150 = arith.constant 1.500000e+01 : f32
    %400 = vector.broadcast %cst_149 : f32 to vector<16x1xf32>
    %401 = arith.maximumf %400, %391 : vector<16x1xf32>
    %402 = vector.broadcast %cst_150 : f32 to vector<16x1xf32>
    %403 = arith.minimumf %402, %401 : vector<16x1xf32>
    %404 = vector.broadcast %403 : vector<16x1xf32> to vector<16x256xf32>
    %405 = vector.broadcast %0 : vector<1x256xf32> to vector<16x256xf32>
    %406 = arith.subf %404, %405 : vector<16x256xf32>
    %407 = math.absf %406 : vector<16x256xf32>
    %cst_151 = arith.constant 1.000000e+00 : f32
    %408 = vector.broadcast %cst_151 : f32 to vector<16x256xf32>
    %409 = arith.subf %408, %407 : vector<16x256xf32>
    %cst_152 = arith.constant 0.000000e+00 : f32
    %410 = vector.broadcast %cst_152 : f32 to vector<16x256xf32>
    %411 = arith.maximumf %409, %410 : vector<16x256xf32>
    %412 = vector.broadcast %399 : vector<16x1xf32> to vector<16x256xf32>
    %413 = arith.mulf %412, %411 : vector<16x256xf32>
    %414 = arith.addf %357, %413 : vector<16x256xf32>
    %cst_153 = arith.constant 7.500000e-01 : f32
    %415 = vector.broadcast %cst_153 : f32 to vector<16x1xf32>
    %416 = arith.addf %3, %415 : vector<16x1xf32>
    %417 = vector.broadcast %328 : f32 to vector<16x1xf32>
    %418 = arith.mulf %416, %417 : vector<16x1xf32>
    %419 = vector.broadcast %320 : f32 to vector<16x1xf32>
    %420 = arith.addf %419, %418 : vector<16x1xf32>
    %cst_154 = arith.constant -1.000000e+00 : f32
    %421 = vector.broadcast %cst_154 : f32 to vector<16x1xf32>
    %422 = arith.cmpf oge, %420, %421 : vector<16x1xf32>
    %cst_155 = arith.constant 1.600000e+01 : f32
    %423 = vector.broadcast %cst_155 : f32 to vector<16x1xf32>
    %424 = arith.cmpf ole, %420, %423 : vector<16x1xf32>
    %425 = arith.andi %422, %424 : vector<16x1xi1>
    %cst_156 = arith.constant 5.000000e-01 : f32
    %cst_157 = arith.constant 0.000000e+00 : f32
    %426 = vector.broadcast %cst_156 : f32 to vector<16x1xf32>
    %427 = vector.broadcast %cst_157 : f32 to vector<16x1xf32>
    %428 = arith.select %425, %426, %427 : vector<16x1xi1>, vector<16x1xf32>
    %cst_158 = arith.constant 0.000000e+00 : f32
    %cst_159 = arith.constant 1.500000e+01 : f32
    %429 = vector.broadcast %cst_158 : f32 to vector<16x1xf32>
    %430 = arith.maximumf %429, %420 : vector<16x1xf32>
    %431 = vector.broadcast %cst_159 : f32 to vector<16x1xf32>
    %432 = arith.minimumf %431, %430 : vector<16x1xf32>
    %433 = vector.broadcast %432 : vector<16x1xf32> to vector<16x256xf32>
    %434 = vector.broadcast %1 : vector<1x256xf32> to vector<16x256xf32>
    %435 = arith.subf %433, %434 : vector<16x256xf32>
    %436 = math.absf %435 : vector<16x256xf32>
    %cst_160 = arith.constant 1.000000e+00 : f32
    %437 = vector.broadcast %cst_160 : f32 to vector<16x256xf32>
    %438 = arith.subf %437, %436 : vector<16x256xf32>
    %cst_161 = arith.constant 0.000000e+00 : f32
    %439 = vector.broadcast %cst_161 : f32 to vector<16x256xf32>
    %440 = arith.maximumf %438, %439 : vector<16x256xf32>
    %441 = vector.broadcast %428 : vector<16x1xf32> to vector<16x256xf32>
    %442 = arith.mulf %441, %440 : vector<16x256xf32>
    %443 = arith.addf %385, %442 : vector<16x256xf32>
    %444 = arith.mulf %414, %443 : vector<16x256xf32>
    %c32 = arith.constant 32 : index
    %c0_162 = arith.constant 0 : index
    %445 = vector.load %arg10[%c32, %c0_162] : memref<256x256xf32, #tpu.memory_space<vmem>>, vector<16x256xf32>
    tpu.vector_store %arg10[%c32, %c0_162], %444 {strides = array<i32>} : memref<256x256xf32, #tpu.memory_space<vmem>>, vector<16x256xf32>,
    %c12_i32 = arith.constant 12 : i32
    %446 = arith.addi %4, %c12_i32 : i32
    %c0_i32_163 = arith.constant 0 : i32
    %447 = arith.addi %446, %c0_i32_163 : i32
    %448 = arith.index_cast %447 : i32 to index
    %449 = memref.load %arg3[%448] : memref<128xi32, #tpu.memory_space<smem>>
    %450 = arith.sitofp %449 : i32 to f32
    %cst_164 = arith.constant 2.500000e-01 : f32
    %451 = arith.mulf %450, %cst_164 : f32
    %c1_i32_165 = arith.constant 1 : i32
    %452 = arith.addi %446, %c1_i32_165 : i32
    %453 = arith.index_cast %452 : i32 to index
    %454 = memref.load %arg3[%453] : memref<128xi32, #tpu.memory_space<smem>>
    %455 = arith.sitofp %454 : i32 to f32
    %cst_166 = arith.constant 2.500000e-01 : f32
    %456 = arith.mulf %455, %cst_166 : f32
    %c2_i32_167 = arith.constant 2 : i32
    %457 = arith.addi %446, %c2_i32_167 : i32
    %458 = arith.index_cast %457 : i32 to index
    %459 = memref.load %arg3[%458] : memref<128xi32, #tpu.memory_space<smem>>
    %460 = arith.sitofp %459 : i32 to f32
    %cst_168 = arith.constant 2.500000e-01 : f32
    %461 = arith.mulf %460, %cst_168 : f32
    %c3_i32_169 = arith.constant 3 : i32
    %462 = arith.addi %446, %c3_i32_169 : i32
    %463 = arith.index_cast %462 : i32 to index
    %464 = memref.load %arg3[%463] : memref<128xi32, #tpu.memory_space<smem>>
    %465 = arith.sitofp %464 : i32 to f32
    %cst_170 = arith.constant 2.500000e-01 : f32
    %466 = arith.mulf %465, %cst_170 : f32
    %cst_171 = arith.constant 2.500000e-01 : f32
    %467 = arith.mulf %451, %cst_171 : f32
    %cst_172 = arith.constant 2.500000e-01 : f32
    %468 = arith.mulf %456, %cst_172 : f32
    %cst_173 = arith.constant 2.500000e-01 : f32
    %469 = arith.mulf %461, %cst_173 : f32
    %470 = arith.subf %469, %467 : f32
    %cst_174 = arith.constant 1.000000e+00 : f32
    %471 = arith.maximumf %470, %cst_174 : f32
    %cst_175 = arith.constant 2.500000e-01 : f32
    %472 = arith.mulf %466, %cst_175 : f32
    %473 = arith.subf %472, %468 : f32
    %cst_176 = arith.constant 1.000000e+00 : f32
    %474 = arith.maximumf %473, %cst_176 : f32
    %cst_177 = arith.constant 4.000000e+00 : f32
    %475 = arith.divf %471, %cst_177 : f32
    %cst_178 = arith.constant 4.000000e+00 : f32
    %476 = arith.divf %474, %cst_178 : f32
    %cst_179 = arith.constant 2.500000e-01 : f32
    %477 = vector.broadcast %cst_179 : f32 to vector<16x1xf32>
    %478 = arith.addf %2, %477 : vector<16x1xf32>
    %479 = vector.broadcast %476 : f32 to vector<16x1xf32>
    %480 = arith.mulf %478, %479 : vector<16x1xf32>
    %481 = vector.broadcast %468 : f32 to vector<16x1xf32>
    %482 = arith.addf %481, %480 : vector<16x1xf32>
    %cst_180 = arith.constant -1.000000e+00 : f32
    %483 = vector.broadcast %cst_180 : f32 to vector<16x1xf32>
    %484 = arith.cmpf oge, %482, %483 : vector<16x1xf32>
    %cst_181 = arith.constant 1.600000e+01 : f32
    %485 = vector.broadcast %cst_181 : f32 to vector<16x1xf32>
    %486 = arith.cmpf ole, %482, %485 : vector<16x1xf32>
    %487 = arith.andi %484, %486 : vector<16x1xi1>
    %cst_182 = arith.constant 5.000000e-01 : f32
    %cst_183 = arith.constant 0.000000e+00 : f32
    %488 = vector.broadcast %cst_182 : f32 to vector<16x1xf32>
    %489 = vector.broadcast %cst_183 : f32 to vector<16x1xf32>
    %490 = arith.select %487, %488, %489 : vector<16x1xi1>, vector<16x1xf32>
    %cst_184 = arith.constant 0.000000e+00 : f32
    %cst_185 = arith.constant 1.500000e+01 : f32
    %491 = vector.broadcast %cst_184 : f32 to vector<16x1xf32>
    %492 = arith.maximumf %491, %482 : vector<16x1xf32>
    %493 = vector.broadcast %cst_185 : f32 to vector<16x1xf32>
    %494 = arith.minimumf %493, %492 : vector<16x1xf32>
    %495 = vector.broadcast %494 : vector<16x1xf32> to vector<16x256xf32>
    %496 = vector.broadcast %0 : vector<1x256xf32> to vector<16x256xf32>
    %497 = arith.subf %495, %496 : vector<16x256xf32>
    %498 = math.absf %497 : vector<16x256xf32>
    %cst_186 = arith.constant 1.000000e+00 : f32
    %499 = vector.broadcast %cst_186 : f32 to vector<16x256xf32>
    %500 = arith.subf %499, %498 : vector<16x256xf32>
    %cst_187 = arith.constant 0.000000e+00 : f32
    %501 = vector.broadcast %cst_187 : f32 to vector<16x256xf32>
    %502 = arith.maximumf %500, %501 : vector<16x256xf32>
    %503 = vector.broadcast %490 : vector<16x1xf32> to vector<16x256xf32>
    %504 = arith.mulf %503, %502 : vector<16x256xf32>
    %cst_188 = arith.constant 2.500000e-01 : f32
    %505 = vector.broadcast %cst_188 : f32 to vector<16x1xf32>
    %506 = arith.addf %3, %505 : vector<16x1xf32>
    %507 = vector.broadcast %475 : f32 to vector<16x1xf32>
    %508 = arith.mulf %506, %507 : vector<16x1xf32>
    %509 = vector.broadcast %467 : f32 to vector<16x1xf32>
    %510 = arith.addf %509, %508 : vector<16x1xf32>
    %cst_189 = arith.constant -1.000000e+00 : f32
    %511 = vector.broadcast %cst_189 : f32 to vector<16x1xf32>
    %512 = arith.cmpf oge, %510, %511 : vector<16x1xf32>
    %cst_190 = arith.constant 1.600000e+01 : f32
    %513 = vector.broadcast %cst_190 : f32 to vector<16x1xf32>
    %514 = arith.cmpf ole, %510, %513 : vector<16x1xf32>
    %515 = arith.andi %512, %514 : vector<16x1xi1>
    %cst_191 = arith.constant 5.000000e-01 : f32
    %cst_192 = arith.constant 0.000000e+00 : f32
    %516 = vector.broadcast %cst_191 : f32 to vector<16x1xf32>
    %517 = vector.broadcast %cst_192 : f32 to vector<16x1xf32>
    %518 = arith.select %515, %516, %517 : vector<16x1xi1>, vector<16x1xf32>
    %cst_193 = arith.constant 0.000000e+00 : f32
    %cst_194 = arith.constant 1.500000e+01 : f32
    %519 = vector.broadcast %cst_193 : f32 to vector<16x1xf32>
    %520 = arith.maximumf %519, %510 : vector<16x1xf32>
    %521 = vector.broadcast %cst_194 : f32 to vector<16x1xf32>
    %522 = arith.minimumf %521, %520 : vector<16x1xf32>
    %523 = vector.broadcast %522 : vector<16x1xf32> to vector<16x256xf32>
    %524 = vector.broadcast %1 : vector<1x256xf32> to vector<16x256xf32>
    %525 = arith.subf %523, %524 : vector<16x256xf32>
    %526 = math.absf %525 : vector<16x256xf32>
    %cst_195 = arith.constant 1.000000e+00 : f32
    %527 = vector.broadcast %cst_195 : f32 to vector<16x256xf32>
    %528 = arith.subf %527, %526 : vector<16x256xf32>
    %cst_196 = arith.constant 0.000000e+00 : f32
    %529 = vector.broadcast %cst_196 : f32 to vector<16x256xf32>
    %530 = arith.maximumf %528, %529 : vector<16x256xf32>
    %531 = vector.broadcast %518 : vector<16x1xf32> to vector<16x256xf32>
    %532 = arith.mulf %531, %530 : vector<16x256xf32>
    %cst_197 = arith.constant 7.500000e-01 : f32
    %533 = vector.broadcast %cst_197 : f32 to vector<16x1xf32>
    %534 = arith.addf %2, %533 : vector<16x1xf32>
    %535 = vector.broadcast %476 : f32 to vector<16x1xf32>
    %536 = arith.mulf %534, %535 : vector<16x1xf32>
    %537 = vector.broadcast %468 : f32 to vector<16x1xf32>
    %538 = arith.addf %537, %536 : vector<16x1xf32>
    %cst_198 = arith.constant -1.000000e+00 : f32
    %539 = vector.broadcast %cst_198 : f32 to vector<16x1xf32>
    %540 = arith.cmpf oge, %538, %539 : vector<16x1xf32>
    %cst_199 = arith.constant 1.600000e+01 : f32
    %541 = vector.broadcast %cst_199 : f32 to vector<16x1xf32>
    %542 = arith.cmpf ole, %538, %541 : vector<16x1xf32>
    %543 = arith.andi %540, %542 : vector<16x1xi1>
    %cst_200 = arith.constant 5.000000e-01 : f32
    %cst_201 = arith.constant 0.000000e+00 : f32
    %544 = vector.broadcast %cst_200 : f32 to vector<16x1xf32>
    %545 = vector.broadcast %cst_201 : f32 to vector<16x1xf32>
    %546 = arith.select %543, %544, %545 : vector<16x1xi1>, vector<16x1xf32>
    %cst_202 = arith.constant 0.000000e+00 : f32
    %cst_203 = arith.constant 1.500000e+01 : f32
    %547 = vector.broadcast %cst_202 : f32 to vector<16x1xf32>
    %548 = arith.maximumf %547, %538 : vector<16x1xf32>
    %549 = vector.broadcast %cst_203 : f32 to vector<16x1xf32>
    %550 = arith.minimumf %549, %548 : vector<16x1xf32>
    %551 = vector.broadcast %550 : vector<16x1xf32> to vector<16x256xf32>
    %552 = vector.broadcast %0 : vector<1x256xf32> to vector<16x256xf32>
    %553 = arith.subf %551, %552 : vector<16x256xf32>
    %554 = math.absf %553 : vector<16x256xf32>
    %cst_204 = arith.constant 1.000000e+00 : f32
    %555 = vector.broadcast %cst_204 : f32 to vector<16x256xf32>
    %556 = arith.subf %555, %554 : vector<16x256xf32>
    %cst_205 = arith.constant 0.000000e+00 : f32
    %557 = vector.broadcast %cst_205 : f32 to vector<16x256xf32>
    %558 = arith.maximumf %556, %557 : vector<16x256xf32>
    %559 = vector.broadcast %546 : vector<16x1xf32> to vector<16x256xf32>
    %560 = arith.mulf %559, %558 : vector<16x256xf32>
    %561 = arith.addf %504, %560 : vector<16x256xf32>
    %cst_206 = arith.constant 7.500000e-01 : f32
    %562 = vector.broadcast %cst_206 : f32 to vector<16x1xf32>
    %563 = arith.addf %3, %562 : vector<16x1xf32>
    %564 = vector.broadcast %475 : f32 to vector<16x1xf32>
    %565 = arith.mulf %563, %564 : vector<16x1xf32>
    %566 = vector.broadcast %467 : f32 to vector<16x1xf32>
    %567 = arith.addf %566, %565 : vector<16x1xf32>
    %cst_207 = arith.constant -1.000000e+00 : f32
    %568 = vector.broadcast %cst_207 : f32 to vector<16x1xf32>
    %569 = arith.cmpf oge, %567, %568 : vector<16x1xf32>
    %cst_208 = arith.constant 1.600000e+01 : f32
    %570 = vector.broadcast %cst_208 : f32 to vector<16x1xf32>
    %571 = arith.cmpf ole, %567, %570 : vector<16x1xf32>
    %572 = arith.andi %569, %571 : vector<16x1xi1>
    %cst_209 = arith.constant 5.000000e-01 : f32
    %cst_210 = arith.constant 0.000000e+00 : f32
    %573 = vector.broadcast %cst_209 : f32 to vector<16x1xf32>
    %574 = vector.broadcast %cst_210 : f32 to vector<16x1xf32>
    %575 = arith.select %572, %573, %574 : vector<16x1xi1>, vector<16x1xf32>
    %cst_211 = arith.constant 0.000000e+00 : f32
    %cst_212 = arith.constant 1.500000e+01 : f32
    %576 = vector.broadcast %cst_211 : f32 to vector<16x1xf32>
    %577 = arith.maximumf %576, %567 : vector<16x1xf32>
    %578 = vector.broadcast %cst_212 : f32 to vector<16x1xf32>
    %579 = arith.minimumf %578, %577 : vector<16x1xf32>
    %580 = vector.broadcast %579 : vector<16x1xf32> to vector<16x256xf32>
    %581 = vector.broadcast %1 : vector<1x256xf32> to vector<16x256xf32>
    %582 = arith.subf %580, %581 : vector<16x256xf32>
    %583 = math.absf %582 : vector<16x256xf32>
    %cst_213 = arith.constant 1.000000e+00 : f32
    %584 = vector.broadcast %cst_213 : f32 to vector<16x256xf32>
    %585 = arith.subf %584, %583 : vector<16x256xf32>
    %cst_214 = arith.constant 0.000000e+00 : f32
    %586 = vector.broadcast %cst_214 : f32 to vector<16x256xf32>
    %587 = arith.maximumf %585, %586 : vector<16x256xf32>
    %588 = vector.broadcast %575 : vector<16x1xf32> to vector<16x256xf32>
    %589 = arith.mulf %588, %587 : vector<16x256xf32>
    %590 = arith.addf %532, %589 : vector<16x256xf32>
    %591 = arith.mulf %561, %590 : vector<16x256xf32>
    %c48 = arith.constant 48 : index
    %c0_215 = arith.constant 0 : index
    %592 = vector.load %arg10[%c48, %c0_215] : memref<256x256xf32, #tpu.memory_space<vmem>>, vector<16x256xf32>
    tpu.vector_store %arg10[%c48, %c0_215], %591 {strides = array<i32>} : memref<256x256xf32, #tpu.memory_space<vmem>>, vector<16x256xf32>,
    %c16_i32 = arith.constant 16 : i32
    %593 = arith.addi %4, %c16_i32 : i32
    %c0_i32_216 = arith.constant 0 : i32
    %594 = arith.addi %593, %c0_i32_216 : i32
    %595 = arith.index_cast %594 : i32 to index
    %596 = memref.load %arg3[%595] : memref<128xi32, #tpu.memory_space<smem>>
    %597 = arith.sitofp %596 : i32 to f32
    %cst_217 = arith.constant 2.500000e-01 : f32
    %598 = arith.mulf %597, %cst_217 : f32
    %c1_i32_218 = arith.constant 1 : i32
    %599 = arith.addi %593, %c1_i32_218 : i32
    %600 = arith.index_cast %599 : i32 to index
    %601 = memref.load %arg3[%600] : memref<128xi32, #tpu.memory_space<smem>>
    %602 = arith.sitofp %601 : i32 to f32
    %cst_219 = arith.constant 2.500000e-01 : f32
    %603 = arith.mulf %602, %cst_219 : f32
    %c2_i32_220 = arith.constant 2 : i32
    %604 = arith.addi %593, %c2_i32_220 : i32
    %605 = arith.index_cast %604 : i32 to index
    %606 = memref.load %arg3[%605] : memref<128xi32, #tpu.memory_space<smem>>
    %607 = arith.sitofp %606 : i32 to f32
    %cst_221 = arith.constant 2.500000e-01 : f32
    %608 = arith.mulf %607, %cst_221 : f32
    %c3_i32_222 = arith.constant 3 : i32
    %609 = arith.addi %593, %c3_i32_222 : i32
    %610 = arith.index_cast %609 : i32 to index
    %611 = memref.load %arg3[%610] : memref<128xi32, #tpu.memory_space<smem>>
    %612 = arith.sitofp %611 : i32 to f32
    %cst_223 = arith.constant 2.500000e-01 : f32
    %613 = arith.mulf %612, %cst_223 : f32
    %cst_224 = arith.constant 2.500000e-01 : f32
    %614 = arith.mulf %598, %cst_224 : f32
    %cst_225 = arith.constant 2.500000e-01 : f32
    %615 = arith.mulf %603, %cst_225 : f32
    %cst_226 = arith.constant 2.500000e-01 : f32
    %616 = arith.mulf %608, %cst_226 : f32
    %617 = arith.subf %616, %614 : f32
    %cst_227 = arith.constant 1.000000e+00 : f32
    %618 = arith.maximumf %617, %cst_227 : f32
    %cst_228 = arith.constant 2.500000e-01 : f32
    %619 = arith.mulf %613, %cst_228 : f32
    %620 = arith.subf %619, %615 : f32
    %cst_229 = arith.constant 1.000000e+00 : f32
    %621 = arith.maximumf %620, %cst_229 : f32
    %cst_230 = arith.constant 4.000000e+00 : f32
    %622 = arith.divf %618, %cst_230 : f32
    %cst_231 = arith.constant 4.000000e+00 : f32
    %623 = arith.divf %621, %cst_231 : f32
    %cst_232 = arith.constant 2.500000e-01 : f32
    %624 = vector.broadcast %cst_232 : f32 to vector<16x1xf32>
    %625 = arith.addf %2, %624 : vector<16x1xf32>
    %626 = vector.broadcast %623 : f32 to vector<16x1xf32>
    %627 = arith.mulf %625, %626 : vector<16x1xf32>
    %628 = vector.broadcast %615 : f32 to vector<16x1xf32>
    %629 = arith.addf %628, %627 : vector<16x1xf32>
    %cst_233 = arith.constant -1.000000e+00 : f32
    %630 = vector.broadcast %cst_233 : f32 to vector<16x1xf32>
    %631 = arith.cmpf oge, %629, %630 : vector<16x1xf32>
    %cst_234 = arith.constant 1.600000e+01 : f32
    %632 = vector.broadcast %cst_234 : f32 to vector<16x1xf32>
    %633 = arith.cmpf ole, %629, %632 : vector<16x1xf32>
    %634 = arith.andi %631, %633 : vector<16x1xi1>
    %cst_235 = arith.constant 5.000000e-01 : f32
    %cst_236 = arith.constant 0.000000e+00 : f32
    %635 = vector.broadcast %cst_235 : f32 to vector<16x1xf32>
    %636 = vector.broadcast %cst_236 : f32 to vector<16x1xf32>
    %637 = arith.select %634, %635, %636 : vector<16x1xi1>, vector<16x1xf32>
    %cst_237 = arith.constant 0.000000e+00 : f32
    %cst_238 = arith.constant 1.500000e+01 : f32
    %638 = vector.broadcast %cst_237 : f32 to vector<16x1xf32>
    %639 = arith.maximumf %638, %629 : vector<16x1xf32>
    %640 = vector.broadcast %cst_238 : f32 to vector<16x1xf32>
    %641 = arith.minimumf %640, %639 : vector<16x1xf32>
    %642 = vector.broadcast %641 : vector<16x1xf32> to vector<16x256xf32>
    %643 = vector.broadcast %0 : vector<1x256xf32> to vector<16x256xf32>
    %644 = arith.subf %642, %643 : vector<16x256xf32>
    %645 = math.absf %644 : vector<16x256xf32>
    %cst_239 = arith.constant 1.000000e+00 : f32
    %646 = vector.broadcast %cst_239 : f32 to vector<16x256xf32>
    %647 = arith.subf %646, %645 : vector<16x256xf32>
    %cst_240 = arith.constant 0.000000e+00 : f32
    %648 = vector.broadcast %cst_240 : f32 to vector<16x256xf32>
    %649 = arith.maximumf %647, %648 : vector<16x256xf32>
    %650 = vector.broadcast %637 : vector<16x1xf32> to vector<16x256xf32>
    %651 = arith.mulf %650, %649 : vector<16x256xf32>
    %cst_241 = arith.constant 2.500000e-01 : f32
    %652 = vector.broadcast %cst_241 : f32 to vector<16x1xf32>
    %653 = arith.addf %3, %652 : vector<16x1xf32>
    %654 = vector.broadcast %622 : f32 to vector<16x1xf32>
    %655 = arith.mulf %653, %654 : vector<16x1xf32>
    %656 = vector.broadcast %614 : f32 to vector<16x1xf32>
    %657 = arith.addf %656, %655 : vector<16x1xf32>
    %cst_242 = arith.constant -1.000000e+00 : f32
    %658 = vector.broadcast %cst_242 : f32 to vector<16x1xf32>
    %659 = arith.cmpf oge, %657, %658 : vector<16x1xf32>
    %cst_243 = arith.constant 1.600000e+01 : f32
    %660 = vector.broadcast %cst_243 : f32 to vector<16x1xf32>
    %661 = arith.cmpf ole, %657, %660 : vector<16x1xf32>
    %662 = arith.andi %659, %661 : vector<16x1xi1>
    %cst_244 = arith.constant 5.000000e-01 : f32
    %cst_245 = arith.constant 0.000000e+00 : f32
    %663 = vector.broadcast %cst_244 : f32 to vector<16x1xf32>
    %664 = vector.broadcast %cst_245 : f32 to vector<16x1xf32>
    %665 = arith.select %662, %663, %664 : vector<16x1xi1>, vector<16x1xf32>
    %cst_246 = arith.constant 0.000000e+00 : f32
    %cst_247 = arith.constant 1.500000e+01 : f32
    %666 = vector.broadcast %cst_246 : f32 to vector<16x1xf32>
    %667 = arith.maximumf %666, %657 : vector<16x1xf32>
    %668 = vector.broadcast %cst_247 : f32 to vector<16x1xf32>
    %669 = arith.minimumf %668, %667 : vector<16x1xf32>
    %670 = vector.broadcast %669 : vector<16x1xf32> to vector<16x256xf32>
    %671 = vector.broadcast %1 : vector<1x256xf32> to vector<16x256xf32>
    %672 = arith.subf %670, %671 : vector<16x256xf32>
    %673 = math.absf %672 : vector<16x256xf32>
    %cst_248 = arith.constant 1.000000e+00 : f32
    %674 = vector.broadcast %cst_248 : f32 to vector<16x256xf32>
    %675 = arith.subf %674, %673 : vector<16x256xf32>
    %cst_249 = arith.constant 0.000000e+00 : f32
    %676 = vector.broadcast %cst_249 : f32 to vector<16x256xf32>
    %677 = arith.maximumf %675, %676 : vector<16x256xf32>
    %678 = vector.broadcast %665 : vector<16x1xf32> to vector<16x256xf32>
    %679 = arith.mulf %678, %677 : vector<16x256xf32>
    %cst_250 = arith.constant 7.500000e-01 : f32
    %680 = vector.broadcast %cst_250 : f32 to vector<16x1xf32>
    %681 = arith.addf %2, %680 : vector<16x1xf32>
    %682 = vector.broadcast %623 : f32 to vector<16x1xf32>
    %683 = arith.mulf %681, %682 : vector<16x1xf32>
    %684 = vector.broadcast %615 : f32 to vector<16x1xf32>
    %685 = arith.addf %684, %683 : vector<16x1xf32>
    %cst_251 = arith.constant -1.000000e+00 : f32
    %686 = vector.broadcast %cst_251 : f32 to vector<16x1xf32>
    %687 = arith.cmpf oge, %685, %686 : vector<16x1xf32>
    %cst_252 = arith.constant 1.600000e+01 : f32
    %688 = vector.broadcast %cst_252 : f32 to vector<16x1xf32>
    %689 = arith.cmpf ole, %685, %688 : vector<16x1xf32>
    %690 = arith.andi %687, %689 : vector<16x1xi1>
    %cst_253 = arith.constant 5.000000e-01 : f32
    %cst_254 = arith.constant 0.000000e+00 : f32
    %691 = vector.broadcast %cst_253 : f32 to vector<16x1xf32>
    %692 = vector.broadcast %cst_254 : f32 to vector<16x1xf32>
    %693 = arith.select %690, %691, %692 : vector<16x1xi1>, vector<16x1xf32>
    %cst_255 = arith.constant 0.000000e+00 : f32
    %cst_256 = arith.constant 1.500000e+01 : f32
    %694 = vector.broadcast %cst_255 : f32 to vector<16x1xf32>
    %695 = arith.maximumf %694, %685 : vector<16x1xf32>
    %696 = vector.broadcast %cst_256 : f32 to vector<16x1xf32>
    %697 = arith.minimumf %696, %695 : vector<16x1xf32>
    %698 = vector.broadcast %697 : vector<16x1xf32> to vector<16x256xf32>
    %699 = vector.broadcast %0 : vector<1x256xf32> to vector<16x256xf32>
    %700 = arith.subf %698, %699 : vector<16x256xf32>
    %701 = math.absf %700 : vector<16x256xf32>
    %cst_257 = arith.constant 1.000000e+00 : f32
    %702 = vector.broadcast %cst_257 : f32 to vector<16x256xf32>
    %703 = arith.subf %702, %701 : vector<16x256xf32>
    %cst_258 = arith.constant 0.000000e+00 : f32
    %704 = vector.broadcast %cst_258 : f32 to vector<16x256xf32>
    %705 = arith.maximumf %703, %704 : vector<16x256xf32>
    %706 = vector.broadcast %693 : vector<16x1xf32> to vector<16x256xf32>
    %707 = arith.mulf %706, %705 : vector<16x256xf32>
    %708 = arith.addf %651, %707 : vector<16x256xf32>
    %cst_259 = arith.constant 7.500000e-01 : f32
    %709 = vector.broadcast %cst_259 : f32 to vector<16x1xf32>
    %710 = arith.addf %3, %709 : vector<16x1xf32>
    %711 = vector.broadcast %622 : f32 to vector<16x1xf32>
    %712 = arith.mulf %710, %711 : vector<16x1xf32>
    %713 = vector.broadcast %614 : f32 to vector<16x1xf32>
    %714 = arith.addf %713, %712 : vector<16x1xf32>
    %cst_260 = arith.constant -1.000000e+00 : f32
    %715 = vector.broadcast %cst_260 : f32 to vector<16x1xf32>
    %716 = arith.cmpf oge, %714, %715 : vector<16x1xf32>
    %cst_261 = arith.constant 1.600000e+01 : f32
    %717 = vector.broadcast %cst_261 : f32 to vector<16x1xf32>
    %718 = arith.cmpf ole, %714, %717 : vector<16x1xf32>
    %719 = arith.andi %716, %718 : vector<16x1xi1>
    %cst_262 = arith.constant 5.000000e-01 : f32
    %cst_263 = arith.constant 0.000000e+00 : f32
    %720 = vector.broadcast %cst_262 : f32 to vector<16x1xf32>
    %721 = vector.broadcast %cst_263 : f32 to vector<16x1xf32>
    %722 = arith.select %719, %720, %721 : vector<16x1xi1>, vector<16x1xf32>
    %cst_264 = arith.constant 0.000000e+00 : f32
    %cst_265 = arith.constant 1.500000e+01 : f32
    %723 = vector.broadcast %cst_264 : f32 to vector<16x1xf32>
    %724 = arith.maximumf %723, %714 : vector<16x1xf32>
    %725 = vector.broadcast %cst_265 : f32 to vector<16x1xf32>
    %726 = arith.minimumf %725, %724 : vector<16x1xf32>
    %727 = vector.broadcast %726 : vector<16x1xf32> to vector<16x256xf32>
    %728 = vector.broadcast %1 : vector<1x256xf32> to vector<16x256xf32>
    %729 = arith.subf %727, %728 : vector<16x256xf32>
    %730 = math.absf %729 : vector<16x256xf32>
    %cst_266 = arith.constant 1.000000e+00 : f32
    %731 = vector.broadcast %cst_266 : f32 to vector<16x256xf32>
    %732 = arith.subf %731, %730 : vector<16x256xf32>
    %cst_267 = arith.constant 0.000000e+00 : f32
    %733 = vector.broadcast %cst_267 : f32 to vector<16x256xf32>
    %734 = arith.maximumf %732, %733 : vector<16x256xf32>
    %735 = vector.broadcast %722 : vector<16x1xf32> to vector<16x256xf32>
    %736 = arith.mulf %735, %734 : vector<16x256xf32>
    %737 = arith.addf %679, %736 : vector<16x256xf32>
    %738 = arith.mulf %708, %737 : vector<16x256xf32>
    %c64 = arith.constant 64 : index
    %c0_268 = arith.constant 0 : index
    %739 = vector.load %arg10[%c64, %c0_268] : memref<256x256xf32, #tpu.memory_space<vmem>>, vector<16x256xf32>
    tpu.vector_store %arg10[%c64, %c0_268], %738 {strides = array<i32>} : memref<256x256xf32, #tpu.memory_space<vmem>>, vector<16x256xf32>,
    %c20_i32 = arith.constant 20 : i32
    %740 = arith.addi %4, %c20_i32 : i32
    %c0_i32_269 = arith.constant 0 : i32
    %741 = arith.addi %740, %c0_i32_269 : i32
    %742 = arith.index_cast %741 : i32 to index
    %743 = memref.load %arg3[%742] : memref<128xi32, #tpu.memory_space<smem>>
    %744 = arith.sitofp %743 : i32 to f32
    %cst_270 = arith.constant 2.500000e-01 : f32
    %745 = arith.mulf %744, %cst_270 : f32
    %c1_i32_271 = arith.constant 1 : i32
    %746 = arith.addi %740, %c1_i32_271 : i32
    %747 = arith.index_cast %746 : i32 to index
    %748 = memref.load %arg3[%747] : memref<128xi32, #tpu.memory_space<smem>>
    %749 = arith.sitofp %748 : i32 to f32
    %cst_272 = arith.constant 2.500000e-01 : f32
    %750 = arith.mulf %749, %cst_272 : f32
    %c2_i32_273 = arith.constant 2 : i32
    %751 = arith.addi %740, %c2_i32_273 : i32
    %752 = arith.index_cast %751 : i32 to index
    %753 = memref.load %arg3[%752] : memref<128xi32, #tpu.memory_space<smem>>
    %754 = arith.sitofp %753 : i32 to f32
    %cst_274 = arith.constant 2.500000e-01 : f32
    %755 = arith.mulf %754, %cst_274 : f32
    %c3_i32_275 = arith.constant 3 : i32
    %756 = arith.addi %740, %c3_i32_275 : i32
    %757 = arith.index_cast %756 : i32 to index
    %758 = memref.load %arg3[%757] : memref<128xi32, #tpu.memory_space<smem>>
    %759 = arith.sitofp %758 : i32 to f32
    %cst_276 = arith.constant 2.500000e-01 : f32
    %760 = arith.mulf %759, %cst_276 : f32
    %cst_277 = arith.constant 2.500000e-01 : f32
    %761 = arith.mulf %745, %cst_277 : f32
    %cst_278 = arith.constant 2.500000e-01 : f32
    %762 = arith.mulf %750, %cst_278 : f32
    %cst_279 = arith.constant 2.500000e-01 : f32
    %763 = arith.mulf %755, %cst_279 : f32
    %764 = arith.subf %763, %761 : f32
    %cst_280 = arith.constant 1.000000e+00 : f32
    %765 = arith.maximumf %764, %cst_280 : f32
    %cst_281 = arith.constant 2.500000e-01 : f32
    %766 = arith.mulf %760, %cst_281 : f32
    %767 = arith.subf %766, %762 : f32
    %cst_282 = arith.constant 1.000000e+00 : f32
    %768 = arith.maximumf %767, %cst_282 : f32
    %cst_283 = arith.constant 4.000000e+00 : f32
    %769 = arith.divf %765, %cst_283 : f32
    %cst_284 = arith.constant 4.000000e+00 : f32
    %770 = arith.divf %768, %cst_284 : f32
    %cst_285 = arith.constant 2.500000e-01 : f32
    %771 = vector.broadcast %cst_285 : f32 to vector<16x1xf32>
    %772 = arith.addf %2, %771 : vector<16x1xf32>
    %773 = vector.broadcast %770 : f32 to vector<16x1xf32>
    %774 = arith.mulf %772, %773 : vector<16x1xf32>
    %775 = vector.broadcast %762 : f32 to vector<16x1xf32>
    %776 = arith.addf %775, %774 : vector<16x1xf32>
    %cst_286 = arith.constant -1.000000e+00 : f32
    %777 = vector.broadcast %cst_286 : f32 to vector<16x1xf32>
    %778 = arith.cmpf oge, %776, %777 : vector<16x1xf32>
    %cst_287 = arith.constant 1.600000e+01 : f32
    %779 = vector.broadcast %cst_287 : f32 to vector<16x1xf32>
    %780 = arith.cmpf ole, %776, %779 : vector<16x1xf32>
    %781 = arith.andi %778, %780 : vector<16x1xi1>
    %cst_288 = arith.constant 5.000000e-01 : f32
    %cst_289 = arith.constant 0.000000e+00 : f32
    %782 = vector.broadcast %cst_288 : f32 to vector<16x1xf32>
    %783 = vector.broadcast %cst_289 : f32 to vector<16x1xf32>
    %784 = arith.select %781, %782, %783 : vector<16x1xi1>, vector<16x1xf32>
    %cst_290 = arith.constant 0.000000e+00 : f32
    %cst_291 = arith.constant 1.500000e+01 : f32
    %785 = vector.broadcast %cst_290 : f32 to vector<16x1xf32>
    %786 = arith.maximumf %785, %776 : vector<16x1xf32>
    %787 = vector.broadcast %cst_291 : f32 to vector<16x1xf32>
    %788 = arith.minimumf %787, %786 : vector<16x1xf32>
    %789 = vector.broadcast %788 : vector<16x1xf32> to vector<16x256xf32>
    %790 = vector.broadcast %0 : vector<1x256xf32> to vector<16x256xf32>
    %791 = arith.subf %789, %790 : vector<16x256xf32>
    %792 = math.absf %791 : vector<16x256xf32>
    %cst_292 = arith.constant 1.000000e+00 : f32
    %793 = vector.broadcast %cst_292 : f32 to vector<16x256xf32>
    %794 = arith.subf %793, %792 : vector<16x256xf32>
    %cst_293 = arith.constant 0.000000e+00 : f32
    %795 = vector.broadcast %cst_293 : f32 to vector<16x256xf32>
    %796 = arith.maximumf %794, %795 : vector<16x256xf32>
    %797 = vector.broadcast %784 : vector<16x1xf32> to vector<16x256xf32>
    %798 = arith.mulf %797, %796 : vector<16x256xf32>
    %cst_294 = arith.constant 2.500000e-01 : f32
    %799 = vector.broadcast %cst_294 : f32 to vector<16x1xf32>
    %800 = arith.addf %3, %799 : vector<16x1xf32>
    %801 = vector.broadcast %769 : f32 to vector<16x1xf32>
    %802 = arith.mulf %800, %801 : vector<16x1xf32>
    %803 = vector.broadcast %761 : f32 to vector<16x1xf32>
    %804 = arith.addf %803, %802 : vector<16x1xf32>
    %cst_295 = arith.constant -1.000000e+00 : f32
    %805 = vector.broadcast %cst_295 : f32 to vector<16x1xf32>
    %806 = arith.cmpf oge, %804, %805 : vector<16x1xf32>
    %cst_296 = arith.constant 1.600000e+01 : f32
    %807 = vector.broadcast %cst_296 : f32 to vector<16x1xf32>
    %808 = arith.cmpf ole, %804, %807 : vector<16x1xf32>
    %809 = arith.andi %806, %808 : vector<16x1xi1>
    %cst_297 = arith.constant 5.000000e-01 : f32
    %cst_298 = arith.constant 0.000000e+00 : f32
    %810 = vector.broadcast %cst_297 : f32 to vector<16x1xf32>
    %811 = vector.broadcast %cst_298 : f32 to vector<16x1xf32>
    %812 = arith.select %809, %810, %811 : vector<16x1xi1>, vector<16x1xf32>
    %cst_299 = arith.constant 0.000000e+00 : f32
    %cst_300 = arith.constant 1.500000e+01 : f32
    %813 = vector.broadcast %cst_299 : f32 to vector<16x1xf32>
    %814 = arith.maximumf %813, %804 : vector<16x1xf32>
    %815 = vector.broadcast %cst_300 : f32 to vector<16x1xf32>
    %816 = arith.minimumf %815, %814 : vector<16x1xf32>
    %817 = vector.broadcast %816 : vector<16x1xf32> to vector<16x256xf32>
    %818 = vector.broadcast %1 : vector<1x256xf32> to vector<16x256xf32>
    %819 = arith.subf %817, %818 : vector<16x256xf32>
    %820 = math.absf %819 : vector<16x256xf32>
    %cst_301 = arith.constant 1.000000e+00 : f32
    %821 = vector.broadcast %cst_301 : f32 to vector<16x256xf32>
    %822 = arith.subf %821, %820 : vector<16x256xf32>
    %cst_302 = arith.constant 0.000000e+00 : f32
    %823 = vector.broadcast %cst_302 : f32 to vector<16x256xf32>
    %824 = arith.maximumf %822, %823 : vector<16x256xf32>
    %825 = vector.broadcast %812 : vector<16x1xf32> to vector<16x256xf32>
    %826 = arith.mulf %825, %824 : vector<16x256xf32>
    %cst_303 = arith.constant 7.500000e-01 : f32
    %827 = vector.broadcast %cst_303 : f32 to vector<16x1xf32>
    %828 = arith.addf %2, %827 : vector<16x1xf32>
    %829 = vector.broadcast %770 : f32 to vector<16x1xf32>
    %830 = arith.mulf %828, %829 : vector<16x1xf32>
    %831 = vector.broadcast %762 : f32 to vector<16x1xf32>
    %832 = arith.addf %831, %830 : vector<16x1xf32>
    %cst_304 = arith.constant -1.000000e+00 : f32
    %833 = vector.broadcast %cst_304 : f32 to vector<16x1xf32>
    %834 = arith.cmpf oge, %832, %833 : vector<16x1xf32>
    %cst_305 = arith.constant 1.600000e+01 : f32
    %835 = vector.broadcast %cst_305 : f32 to vector<16x1xf32>
    %836 = arith.cmpf ole, %832, %835 : vector<16x1xf32>
    %837 = arith.andi %834, %836 : vector<16x1xi1>
    %cst_306 = arith.constant 5.000000e-01 : f32
    %cst_307 = arith.constant 0.000000e+00 : f32
    %838 = vector.broadcast %cst_306 : f32 to vector<16x1xf32>
    %839 = vector.broadcast %cst_307 : f32 to vector<16x1xf32>
    %840 = arith.select %837, %838, %839 : vector<16x1xi1>, vector<16x1xf32>
    %cst_308 = arith.constant 0.000000e+00 : f32
    %cst_309 = arith.constant 1.500000e+01 : f32
    %841 = vector.broadcast %cst_308 : f32 to vector<16x1xf32>
    %842 = arith.maximumf %841, %832 : vector<16x1xf32>
    %843 = vector.broadcast %cst_309 : f32 to vector<16x1xf32>
    %844 = arith.minimumf %843, %842 : vector<16x1xf32>
    %845 = vector.broadcast %844 : vector<16x1xf32> to vector<16x256xf32>
    %846 = vector.broadcast %0 : vector<1x256xf32> to vector<16x256xf32>
    %847 = arith.subf %845, %846 : vector<16x256xf32>
    %848 = math.absf %847 : vector<16x256xf32>
    %cst_310 = arith.constant 1.000000e+00 : f32
    %849 = vector.broadcast %cst_310 : f32 to vector<16x256xf32>
    %850 = arith.subf %849, %848 : vector<16x256xf32>
    %cst_311 = arith.constant 0.000000e+00 : f32
    %851 = vector.broadcast %cst_311 : f32 to vector<16x256xf32>
    %852 = arith.maximumf %850, %851 : vector<16x256xf32>
    %853 = vector.broadcast %840 : vector<16x1xf32> to vector<16x256xf32>
    %854 = arith.mulf %853, %852 : vector<16x256xf32>
    %855 = arith.addf %798, %854 : vector<16x256xf32>
    %cst_312 = arith.constant 7.500000e-01 : f32
    %856 = vector.broadcast %cst_312 : f32 to vector<16x1xf32>
    %857 = arith.addf %3, %856 : vector<16x1xf32>
    %858 = vector.broadcast %769 : f32 to vector<16x1xf32>
    %859 = arith.mulf %857, %858 : vector<16x1xf32>
    %860 = vector.broadcast %761 : f32 to vector<16x1xf32>
    %861 = arith.addf %860, %859 : vector<16x1xf32>
    %cst_313 = arith.constant -1.000000e+00 : f32
    %862 = vector.broadcast %cst_313 : f32 to vector<16x1xf32>
    %863 = arith.cmpf oge, %861, %862 : vector<16x1xf32>
    %cst_314 = arith.constant 1.600000e+01 : f32
    %864 = vector.broadcast %cst_314 : f32 to vector<16x1xf32>
    %865 = arith.cmpf ole, %861, %864 : vector<16x1xf32>
    %866 = arith.andi %863, %865 : vector<16x1xi1>
    %cst_315 = arith.constant 5.000000e-01 : f32
    %cst_316 = arith.constant 0.000000e+00 : f32
    %867 = vector.broadcast %cst_315 : f32 to vector<16x1xf32>
    %868 = vector.broadcast %cst_316 : f32 to vector<16x1xf32>
    %869 = arith.select %866, %867, %868 : vector<16x1xi1>, vector<16x1xf32>
    %cst_317 = arith.constant 0.000000e+00 : f32
    %cst_318 = arith.constant 1.500000e+01 : f32
    %870 = vector.broadcast %cst_317 : f32 to vector<16x1xf32>
    %871 = arith.maximumf %870, %861 : vector<16x1xf32>
    %872 = vector.broadcast %cst_318 : f32 to vector<16x1xf32>
    %873 = arith.minimumf %872, %871 : vector<16x1xf32>
    %874 = vector.broadcast %873 : vector<16x1xf32> to vector<16x256xf32>
    %875 = vector.broadcast %1 : vector<1x256xf32> to vector<16x256xf32>
    %876 = arith.subf %874, %875 : vector<16x256xf32>
    %877 = math.absf %876 : vector<16x256xf32>
    %cst_319 = arith.constant 1.000000e+00 : f32
    %878 = vector.broadcast %cst_319 : f32 to vector<16x256xf32>
    %879 = arith.subf %878, %877 : vector<16x256xf32>
    %cst_320 = arith.constant 0.000000e+00 : f32
    %880 = vector.broadcast %cst_320 : f32 to vector<16x256xf32>
    %881 = arith.maximumf %879, %880 : vector<16x256xf32>
    %882 = vector.broadcast %869 : vector<16x1xf32> to vector<16x256xf32>
    %883 = arith.mulf %882, %881 : vector<16x256xf32>
    %884 = arith.addf %826, %883 : vector<16x256xf32>
    %885 = arith.mulf %855, %884 : vector<16x256xf32>
    %c80 = arith.constant 80 : index
    %c0_321 = arith.constant 0 : index
    %886 = vector.load %arg10[%c80, %c0_321] : memref<256x256xf32, #tpu.memory_space<vmem>>, vector<16x256xf32>
    tpu.vector_store %arg10[%c80, %c0_321], %885 {strides = array<i32>} : memref<256x256xf32, #tpu.memory_space<vmem>>, vector<16x256xf32>,
    %c24_i32 = arith.constant 24 : i32
    %887 = arith.addi %4, %c24_i32 : i32
    %c0_i32_322 = arith.constant 0 : i32
    %888 = arith.addi %887, %c0_i32_322 : i32
    %889 = arith.index_cast %888 : i32 to index
    %890 = memref.load %arg3[%889] : memref<128xi32, #tpu.memory_space<smem>>
    %891 = arith.sitofp %890 : i32 to f32
    %cst_323 = arith.constant 2.500000e-01 : f32
    %892 = arith.mulf %891, %cst_323 : f32
    %c1_i32_324 = arith.constant 1 : i32
    %893 = arith.addi %887, %c1_i32_324 : i32
    %894 = arith.index_cast %893 : i32 to index
    %895 = memref.load %arg3[%894] : memref<128xi32, #tpu.memory_space<smem>>
    %896 = arith.sitofp %895 : i32 to f32
    %cst_325 = arith.constant 2.500000e-01 : f32
    %897 = arith.mulf %896, %cst_325 : f32
    %c2_i32_326 = arith.constant 2 : i32
    %898 = arith.addi %887, %c2_i32_326 : i32
    %899 = arith.index_cast %898 : i32 to index
    %900 = memref.load %arg3[%899] : memref<128xi32, #tpu.memory_space<smem>>
    %901 = arith.sitofp %900 : i32 to f32
    %cst_327 = arith.constant 2.500000e-01 : f32
    %902 = arith.mulf %901, %cst_327 : f32
    %c3_i32_328 = arith.constant 3 : i32
    %903 = arith.addi %887, %c3_i32_328 : i32
    %904 = arith.index_cast %903 : i32 to index
    %905 = memref.load %arg3[%904] : memref<128xi32, #tpu.memory_space<smem>>
    %906 = arith.sitofp %905 : i32 to f32
    %cst_329 = arith.constant 2.500000e-01 : f32
    %907 = arith.mulf %906, %cst_329 : f32
    %cst_330 = arith.constant 2.500000e-01 : f32
    %908 = arith.mulf %892, %cst_330 : f32
    %cst_331 = arith.constant 2.500000e-01 : f32
    %909 = arith.mulf %897, %cst_331 : f32
    %cst_332 = arith.constant 2.500000e-01 : f32
    %910 = arith.mulf %902, %cst_332 : f32
    %911 = arith.subf %910, %908 : f32
    %cst_333 = arith.constant 1.000000e+00 : f32
    %912 = arith.maximumf %911, %cst_333 : f32
    %cst_334 = arith.constant 2.500000e-01 : f32
    %913 = arith.mulf %907, %cst_334 : f32
    %914 = arith.subf %913, %909 : f32
    %cst_335 = arith.constant 1.000000e+00 : f32
    %915 = arith.maximumf %914, %cst_335 : f32
    %cst_336 = arith.constant 4.000000e+00 : f32
    %916 = arith.divf %912, %cst_336 : f32
    %cst_337 = arith.constant 4.000000e+00 : f32
    %917 = arith.divf %915, %cst_337 : f32
    %cst_338 = arith.constant 2.500000e-01 : f32
    %918 = vector.broadcast %cst_338 : f32 to vector<16x1xf32>
    %919 = arith.addf %2, %918 : vector<16x1xf32>
    %920 = vector.broadcast %917 : f32 to vector<16x1xf32>
    %921 = arith.mulf %919, %920 : vector<16x1xf32>
    %922 = vector.broadcast %909 : f32 to vector<16x1xf32>
    %923 = arith.addf %922, %921 : vector<16x1xf32>
    %cst_339 = arith.constant -1.000000e+00 : f32
    %924 = vector.broadcast %cst_339 : f32 to vector<16x1xf32>
    %925 = arith.cmpf oge, %923, %924 : vector<16x1xf32>
    %cst_340 = arith.constant 1.600000e+01 : f32
    %926 = vector.broadcast %cst_340 : f32 to vector<16x1xf32>
    %927 = arith.cmpf ole, %923, %926 : vector<16x1xf32>
    %928 = arith.andi %925, %927 : vector<16x1xi1>
    %cst_341 = arith.constant 5.000000e-01 : f32
    %cst_342 = arith.constant 0.000000e+00 : f32
    %929 = vector.broadcast %cst_341 : f32 to vector<16x1xf32>
    %930 = vector.broadcast %cst_342 : f32 to vector<16x1xf32>
    %931 = arith.select %928, %929, %930 : vector<16x1xi1>, vector<16x1xf32>
    %cst_343 = arith.constant 0.000000e+00 : f32
    %cst_344 = arith.constant 1.500000e+01 : f32
    %932 = vector.broadcast %cst_343 : f32 to vector<16x1xf32>
    %933 = arith.maximumf %932, %923 : vector<16x1xf32>
    %934 = vector.broadcast %cst_344 : f32 to vector<16x1xf32>
    %935 = arith.minimumf %934, %933 : vector<16x1xf32>
    %936 = vector.broadcast %935 : vector<16x1xf32> to vector<16x256xf32>
    %937 = vector.broadcast %0 : vector<1x256xf32> to vector<16x256xf32>
    %938 = arith.subf %936, %937 : vector<16x256xf32>
    %939 = math.absf %938 : vector<16x256xf32>
    %cst_345 = arith.constant 1.000000e+00 : f32
    %940 = vector.broadcast %cst_345 : f32 to vector<16x256xf32>
    %941 = arith.subf %940, %939 : vector<16x256xf32>
    %cst_346 = arith.constant 0.000000e+00 : f32
    %942 = vector.broadcast %cst_346 : f32 to vector<16x256xf32>
    %943 = arith.maximumf %941, %942 : vector<16x256xf32>
    %944 = vector.broadcast %931 : vector<16x1xf32> to vector<16x256xf32>
    %945 = arith.mulf %944, %943 : vector<16x256xf32>
    %cst_347 = arith.constant 2.500000e-01 : f32
    %946 = vector.broadcast %cst_347 : f32 to vector<16x1xf32>
    %947 = arith.addf %3, %946 : vector<16x1xf32>
    %948 = vector.broadcast %916 : f32 to vector<16x1xf32>
    %949 = arith.mulf %947, %948 : vector<16x1xf32>
    %950 = vector.broadcast %908 : f32 to vector<16x1xf32>
    %951 = arith.addf %950, %949 : vector<16x1xf32>
    %cst_348 = arith.constant -1.000000e+00 : f32
    %952 = vector.broadcast %cst_348 : f32 to vector<16x1xf32>
    %953 = arith.cmpf oge, %951, %952 : vector<16x1xf32>
    %cst_349 = arith.constant 1.600000e+01 : f32
    %954 = vector.broadcast %cst_349 : f32 to vector<16x1xf32>
    %955 = arith.cmpf ole, %951, %954 : vector<16x1xf32>
    %956 = arith.andi %953, %955 : vector<16x1xi1>
    %cst_350 = arith.constant 5.000000e-01 : f32
    %cst_351 = arith.constant 0.000000e+00 : f32
    %957 = vector.broadcast %cst_350 : f32 to vector<16x1xf32>
    %958 = vector.broadcast %cst_351 : f32 to vector<16x1xf32>
    %959 = arith.select %956, %957, %958 : vector<16x1xi1>, vector<16x1xf32>
    %cst_352 = arith.constant 0.000000e+00 : f32
    %cst_353 = arith.constant 1.500000e+01 : f32
    %960 = vector.broadcast %cst_352 : f32 to vector<16x1xf32>
    %961 = arith.maximumf %960, %951 : vector<16x1xf32>
    %962 = vector.broadcast %cst_353 : f32 to vector<16x1xf32>
    %963 = arith.minimumf %962, %961 : vector<16x1xf32>
    %964 = vector.broadcast %963 : vector<16x1xf32> to vector<16x256xf32>
    %965 = vector.broadcast %1 : vector<1x256xf32> to vector<16x256xf32>
    %966 = arith.subf %964, %965 : vector<16x256xf32>
    %967 = math.absf %966 : vector<16x256xf32>
    %cst_354 = arith.constant 1.000000e+00 : f32
    %968 = vector.broadcast %cst_354 : f32 to vector<16x256xf32>
    %969 = arith.subf %968, %967 : vector<16x256xf32>
    %cst_355 = arith.constant 0.000000e+00 : f32
    %970 = vector.broadcast %cst_355 : f32 to vector<16x256xf32>
    %971 = arith.maximumf %969, %970 : vector<16x256xf32>
    %972 = vector.broadcast %959 : vector<16x1xf32> to vector<16x256xf32>
    %973 = arith.mulf %972, %971 : vector<16x256xf32>
    %cst_356 = arith.constant 7.500000e-01 : f32
    %974 = vector.broadcast %cst_356 : f32 to vector<16x1xf32>
    %975 = arith.addf %2, %974 : vector<16x1xf32>
    %976 = vector.broadcast %917 : f32 to vector<16x1xf32>
    %977 = arith.mulf %975, %976 : vector<16x1xf32>
    %978 = vector.broadcast %909 : f32 to vector<16x1xf32>
    %979 = arith.addf %978, %977 : vector<16x1xf32>
    %cst_357 = arith.constant -1.000000e+00 : f32
    %980 = vector.broadcast %cst_357 : f32 to vector<16x1xf32>
    %981 = arith.cmpf oge, %979, %980 : vector<16x1xf32>
    %cst_358 = arith.constant 1.600000e+01 : f32
    %982 = vector.broadcast %cst_358 : f32 to vector<16x1xf32>
    %983 = arith.cmpf ole, %979, %982 : vector<16x1xf32>
    %984 = arith.andi %981, %983 : vector<16x1xi1>
    %cst_359 = arith.constant 5.000000e-01 : f32
    %cst_360 = arith.constant 0.000000e+00 : f32
    %985 = vector.broadcast %cst_359 : f32 to vector<16x1xf32>
    %986 = vector.broadcast %cst_360 : f32 to vector<16x1xf32>
    %987 = arith.select %984, %985, %986 : vector<16x1xi1>, vector<16x1xf32>
    %cst_361 = arith.constant 0.000000e+00 : f32
    %cst_362 = arith.constant 1.500000e+01 : f32
    %988 = vector.broadcast %cst_361 : f32 to vector<16x1xf32>
    %989 = arith.maximumf %988, %979 : vector<16x1xf32>
    %990 = vector.broadcast %cst_362 : f32 to vector<16x1xf32>
    %991 = arith.minimumf %990, %989 : vector<16x1xf32>
    %992 = vector.broadcast %991 : vector<16x1xf32> to vector<16x256xf32>
    %993 = vector.broadcast %0 : vector<1x256xf32> to vector<16x256xf32>
    %994 = arith.subf %992, %993 : vector<16x256xf32>
    %995 = math.absf %994 : vector<16x256xf32>
    %cst_363 = arith.constant 1.000000e+00 : f32
    %996 = vector.broadcast %cst_363 : f32 to vector<16x256xf32>
    %997 = arith.subf %996, %995 : vector<16x256xf32>
    %cst_364 = arith.constant 0.000000e+00 : f32
    %998 = vector.broadcast %cst_364 : f32 to vector<16x256xf32>
    %999 = arith.maximumf %997, %998 : vector<16x256xf32>
    %1000 = vector.broadcast %987 : vector<16x1xf32> to vector<16x256xf32>
    %1001 = arith.mulf %1000, %999 : vector<16x256xf32>
    %1002 = arith.addf %945, %1001 : vector<16x256xf32>
    %cst_365 = arith.constant 7.500000e-01 : f32
    %1003 = vector.broadcast %cst_365 : f32 to vector<16x1xf32>
    %1004 = arith.addf %3, %1003 : vector<16x1xf32>
    %1005 = vector.broadcast %916 : f32 to vector<16x1xf32>
    %1006 = arith.mulf %1004, %1005 : vector<16x1xf32>
    %1007 = vector.broadcast %908 : f32 to vector<16x1xf32>
    %1008 = arith.addf %1007, %1006 : vector<16x1xf32>
    %cst_366 = arith.constant -1.000000e+00 : f32
    %1009 = vector.broadcast %cst_366 : f32 to vector<16x1xf32>
    %1010 = arith.cmpf oge, %1008, %1009 : vector<16x1xf32>
    %cst_367 = arith.constant 1.600000e+01 : f32
    %1011 = vector.broadcast %cst_367 : f32 to vector<16x1xf32>
    %1012 = arith.cmpf ole, %1008, %1011 : vector<16x1xf32>
    %1013 = arith.andi %1010, %1012 : vector<16x1xi1>
    %cst_368 = arith.constant 5.000000e-01 : f32
    %cst_369 = arith.constant 0.000000e+00 : f32
    %1014 = vector.broadcast %cst_368 : f32 to vector<16x1xf32>
    %1015 = vector.broadcast %cst_369 : f32 to vector<16x1xf32>
    %1016 = arith.select %1013, %1014, %1015 : vector<16x1xi1>, vector<16x1xf32>
    %cst_370 = arith.constant 0.000000e+00 : f32
    %cst_371 = arith.constant 1.500000e+01 : f32
    %1017 = vector.broadcast %cst_370 : f32 to vector<16x1xf32>
    %1018 = arith.maximumf %1017, %1008 : vector<16x1xf32>
    %1019 = vector.broadcast %cst_371 : f32 to vector<16x1xf32>
    %1020 = arith.minimumf %1019, %1018 : vector<16x1xf32>
    %1021 = vector.broadcast %1020 : vector<16x1xf32> to vector<16x256xf32>
    %1022 = vector.broadcast %1 : vector<1x256xf32> to vector<16x256xf32>
    %1023 = arith.subf %1021, %1022 : vector<16x256xf32>
    %1024 = math.absf %1023 : vector<16x256xf32>
    %cst_372 = arith.constant 1.000000e+00 : f32
    %1025 = vector.broadcast %cst_372 : f32 to vector<16x256xf32>
    %1026 = arith.subf %1025, %1024 : vector<16x256xf32>
    %cst_373 = arith.constant 0.000000e+00 : f32
    %1027 = vector.broadcast %cst_373 : f32 to vector<16x256xf32>
    %1028 = arith.maximumf %1026, %1027 : vector<16x256xf32>
    %1029 = vector.broadcast %1016 : vector<16x1xf32> to vector<16x256xf32>
    %1030 = arith.mulf %1029, %1028 : vector<16x256xf32>
    %1031 = arith.addf %973, %1030 : vector<16x256xf32>
    %1032 = arith.mulf %1002, %1031 : vector<16x256xf32>
    %c96 = arith.constant 96 : index
    %c0_374 = arith.constant 0 : index
    %1033 = vector.load %arg10[%c96, %c0_374] : memref<256x256xf32, #tpu.memory_space<vmem>>, vector<16x256xf32>
    tpu.vector_store %arg10[%c96, %c0_374], %1032 {strides = array<i32>} : memref<256x256xf32, #tpu.memory_space<vmem>>, vector<16x256xf32>,
    %c28_i32 = arith.constant 28 : i32
    %1034 = arith.addi %4, %c28_i32 : i32
    %c0_i32_375 = arith.constant 0 : i32
    %1035 = arith.addi %1034, %c0_i32_375 : i32
    %1036 = arith.index_cast %1035 : i32 to index
    %1037 = memref.load %arg3[%1036] : memref<128xi32, #tpu.memory_space<smem>>
    %1038 = arith.sitofp %1037 : i32 to f32
    %cst_376 = arith.constant 2.500000e-01 : f32
    %1039 = arith.mulf %1038, %cst_376 : f32
    %c1_i32_377 = arith.constant 1 : i32
    %1040 = arith.addi %1034, %c1_i32_377 : i32
    %1041 = arith.index_cast %1040 : i32 to index
    %1042 = memref.load %arg3[%1041] : memref<128xi32, #tpu.memory_space<smem>>
    %1043 = arith.sitofp %1042 : i32 to f32
    %cst_378 = arith.constant 2.500000e-01 : f32
    %1044 = arith.mulf %1043, %cst_378 : f32
    %c2_i32_379 = arith.constant 2 : i32
    %1045 = arith.addi %1034, %c2_i32_379 : i32
    %1046 = arith.index_cast %1045 : i32 to index
    %1047 = memref.load %arg3[%1046] : memref<128xi32, #tpu.memory_space<smem>>
    %1048 = arith.sitofp %1047 : i32 to f32
    %cst_380 = arith.constant 2.500000e-01 : f32
    %1049 = arith.mulf %1048, %cst_380 : f32
    %c3_i32_381 = arith.constant 3 : i32
    %1050 = arith.addi %1034, %c3_i32_381 : i32
    %1051 = arith.index_cast %1050 : i32 to index
    %1052 = memref.load %arg3[%1051] : memref<128xi32, #tpu.memory_space<smem>>
    %1053 = arith.sitofp %1052 : i32 to f32
    %cst_382 = arith.constant 2.500000e-01 : f32
    %1054 = arith.mulf %1053, %cst_382 : f32
    %cst_383 = arith.constant 2.500000e-01 : f32
    %1055 = arith.mulf %1039, %cst_383 : f32
    %cst_384 = arith.constant 2.500000e-01 : f32
    %1056 = arith.mulf %1044, %cst_384 : f32
    %cst_385 = arith.constant 2.500000e-01 : f32
    %1057 = arith.mulf %1049, %cst_385 : f32
    %1058 = arith.subf %1057, %1055 : f32
    %cst_386 = arith.constant 1.000000e+00 : f32
    %1059 = arith.maximumf %1058, %cst_386 : f32
    %cst_387 = arith.constant 2.500000e-01 : f32
    %1060 = arith.mulf %1054, %cst_387 : f32
    %1061 = arith.subf %1060, %1056 : f32
    %cst_388 = arith.constant 1.000000e+00 : f32
    %1062 = arith.maximumf %1061, %cst_388 : f32
    %cst_389 = arith.constant 4.000000e+00 : f32
    %1063 = arith.divf %1059, %cst_389 : f32
    %cst_390 = arith.constant 4.000000e+00 : f32
    %1064 = arith.divf %1062, %cst_390 : f32
    %cst_391 = arith.constant 2.500000e-01 : f32
    %1065 = vector.broadcast %cst_391 : f32 to vector<16x1xf32>
    %1066 = arith.addf %2, %1065 : vector<16x1xf32>
    %1067 = vector.broadcast %1064 : f32 to vector<16x1xf32>
    %1068 = arith.mulf %1066, %1067 : vector<16x1xf32>
    %1069 = vector.broadcast %1056 : f32 to vector<16x1xf32>
    %1070 = arith.addf %1069, %1068 : vector<16x1xf32>
    %cst_392 = arith.constant -1.000000e+00 : f32
    %1071 = vector.broadcast %cst_392 : f32 to vector<16x1xf32>
    %1072 = arith.cmpf oge, %1070, %1071 : vector<16x1xf32>
    %cst_393 = arith.constant 1.600000e+01 : f32
    %1073 = vector.broadcast %cst_393 : f32 to vector<16x1xf32>
    %1074 = arith.cmpf ole, %1070, %1073 : vector<16x1xf32>
    %1075 = arith.andi %1072, %1074 : vector<16x1xi1>
    %cst_394 = arith.constant 5.000000e-01 : f32
    %cst_395 = arith.constant 0.000000e+00 : f32
    %1076 = vector.broadcast %cst_394 : f32 to vector<16x1xf32>
    %1077 = vector.broadcast %cst_395 : f32 to vector<16x1xf32>
    %1078 = arith.select %1075, %1076, %1077 : vector<16x1xi1>, vector<16x1xf32>
    %cst_396 = arith.constant 0.000000e+00 : f32
    %cst_397 = arith.constant 1.500000e+01 : f32
    %1079 = vector.broadcast %cst_396 : f32 to vector<16x1xf32>
    %1080 = arith.maximumf %1079, %1070 : vector<16x1xf32>
    %1081 = vector.broadcast %cst_397 : f32 to vector<16x1xf32>
    %1082 = arith.minimumf %1081, %1080 : vector<16x1xf32>
    %1083 = vector.broadcast %1082 : vector<16x1xf32> to vector<16x256xf32>
    %1084 = vector.broadcast %0 : vector<1x256xf32> to vector<16x256xf32>
    %1085 = arith.subf %1083, %1084 : vector<16x256xf32>
    %1086 = math.absf %1085 : vector<16x256xf32>
    %cst_398 = arith.constant 1.000000e+00 : f32
    %1087 = vector.broadcast %cst_398 : f32 to vector<16x256xf32>
    %1088 = arith.subf %1087, %1086 : vector<16x256xf32>
    %cst_399 = arith.constant 0.000000e+00 : f32
    %1089 = vector.broadcast %cst_399 : f32 to vector<16x256xf32>
    %1090 = arith.maximumf %1088, %1089 : vector<16x256xf32>
    %1091 = vector.broadcast %1078 : vector<16x1xf32> to vector<16x256xf32>
    %1092 = arith.mulf %1091, %1090 : vector<16x256xf32>
    %cst_400 = arith.constant 2.500000e-01 : f32
    %1093 = vector.broadcast %cst_400 : f32 to vector<16x1xf32>
    %1094 = arith.addf %3, %1093 : vector<16x1xf32>
    %1095 = vector.broadcast %1063 : f32 to vector<16x1xf32>
    %1096 = arith.mulf %1094, %1095 : vector<16x1xf32>
    %1097 = vector.broadcast %1055 : f32 to vector<16x1xf32>
    %1098 = arith.addf %1097, %1096 : vector<16x1xf32>
    %cst_401 = arith.constant -1.000000e+00 : f32
    %1099 = vector.broadcast %cst_401 : f32 to vector<16x1xf32>
    %1100 = arith.cmpf oge, %1098, %1099 : vector<16x1xf32>
    %cst_402 = arith.constant 1.600000e+01 : f32
    %1101 = vector.broadcast %cst_402 : f32 to vector<16x1xf32>
    %1102 = arith.cmpf ole, %1098, %1101 : vector<16x1xf32>
    %1103 = arith.andi %1100, %1102 : vector<16x1xi1>
    %cst_403 = arith.constant 5.000000e-01 : f32
    %cst_404 = arith.constant 0.000000e+00 : f32
    %1104 = vector.broadcast %cst_403 : f32 to vector<16x1xf32>
    %1105 = vector.broadcast %cst_404 : f32 to vector<16x1xf32>
    %1106 = arith.select %1103, %1104, %1105 : vector<16x1xi1>, vector<16x1xf32>
    %cst_405 = arith.constant 0.000000e+00 : f32
    %cst_406 = arith.constant 1.500000e+01 : f32
    %1107 = vector.broadcast %cst_405 : f32 to vector<16x1xf32>
    %1108 = arith.maximumf %1107, %1098 : vector<16x1xf32>
    %1109 = vector.broadcast %cst_406 : f32 to vector<16x1xf32>
    %1110 = arith.minimumf %1109, %1108 : vector<16x1xf32>
    %1111 = vector.broadcast %1110 : vector<16x1xf32> to vector<16x256xf32>
    %1112 = vector.broadcast %1 : vector<1x256xf32> to vector<16x256xf32>
    %1113 = arith.subf %1111, %1112 : vector<16x256xf32>
    %1114 = math.absf %1113 : vector<16x256xf32>
    %cst_407 = arith.constant 1.000000e+00 : f32
    %1115 = vector.broadcast %cst_407 : f32 to vector<16x256xf32>
    %1116 = arith.subf %1115, %1114 : vector<16x256xf32>
    %cst_408 = arith.constant 0.000000e+00 : f32
    %1117 = vector.broadcast %cst_408 : f32 to vector<16x256xf32>
    %1118 = arith.maximumf %1116, %1117 : vector<16x256xf32>
    %1119 = vector.broadcast %1106 : vector<16x1xf32> to vector<16x256xf32>
    %1120 = arith.mulf %1119, %1118 : vector<16x256xf32>
    %cst_409 = arith.constant 7.500000e-01 : f32
    %1121 = vector.broadcast %cst_409 : f32 to vector<16x1xf32>
    %1122 = arith.addf %2, %1121 : vector<16x1xf32>
    %1123 = vector.broadcast %1064 : f32 to vector<16x1xf32>
    %1124 = arith.mulf %1122, %1123 : vector<16x1xf32>
    %1125 = vector.broadcast %1056 : f32 to vector<16x1xf32>
    %1126 = arith.addf %1125, %1124 : vector<16x1xf32>
    %cst_410 = arith.constant -1.000000e+00 : f32
    %1127 = vector.broadcast %cst_410 : f32 to vector<16x1xf32>
    %1128 = arith.cmpf oge, %1126, %1127 : vector<16x1xf32>
    %cst_411 = arith.constant 1.600000e+01 : f32
    %1129 = vector.broadcast %cst_411 : f32 to vector<16x1xf32>
    %1130 = arith.cmpf ole, %1126, %1129 : vector<16x1xf32>
    %1131 = arith.andi %1128, %1130 : vector<16x1xi1>
    %cst_412 = arith.constant 5.000000e-01 : f32
    %cst_413 = arith.constant 0.000000e+00 : f32
    %1132 = vector.broadcast %cst_412 : f32 to vector<16x1xf32>
    %1133 = vector.broadcast %cst_413 : f32 to vector<16x1xf32>
    %1134 = arith.select %1131, %1132, %1133 : vector<16x1xi1>, vector<16x1xf32>
    %cst_414 = arith.constant 0.000000e+00 : f32
    %cst_415 = arith.constant 1.500000e+01 : f32
    %1135 = vector.broadcast %cst_414 : f32 to vector<16x1xf32>
    %1136 = arith.maximumf %1135, %1126 : vector<16x1xf32>
    %1137 = vector.broadcast %cst_415 : f32 to vector<16x1xf32>
    %1138 = arith.minimumf %1137, %1136 : vector<16x1xf32>
    %1139 = vector.broadcast %1138 : vector<16x1xf32> to vector<16x256xf32>
    %1140 = vector.broadcast %0 : vector<1x256xf32> to vector<16x256xf32>
    %1141 = arith.subf %1139, %1140 : vector<16x256xf32>
    %1142 = math.absf %1141 : vector<16x256xf32>
    %cst_416 = arith.constant 1.000000e+00 : f32
    %1143 = vector.broadcast %cst_416 : f32 to vector<16x256xf32>
    %1144 = arith.subf %1143, %1142 : vector<16x256xf32>
    %cst_417 = arith.constant 0.000000e+00 : f32
    %1145 = vector.broadcast %cst_417 : f32 to vector<16x256xf32>
    %1146 = arith.maximumf %1144, %1145 : vector<16x256xf32>
    %1147 = vector.broadcast %1134 : vector<16x1xf32> to vector<16x256xf32>
    %1148 = arith.mulf %1147, %1146 : vector<16x256xf32>
    %1149 = arith.addf %1092, %1148 : vector<16x256xf32>
    %cst_418 = arith.constant 7.500000e-01 : f32
    %1150 = vector.broadcast %cst_418 : f32 to vector<16x1xf32>
    %1151 = arith.addf %3, %1150 : vector<16x1xf32>
    %1152 = vector.broadcast %1063 : f32 to vector<16x1xf32>
    %1153 = arith.mulf %1151, %1152 : vector<16x1xf32>
    %1154 = vector.broadcast %1055 : f32 to vector<16x1xf32>
    %1155 = arith.addf %1154, %1153 : vector<16x1xf32>
    %cst_419 = arith.constant -1.000000e+00 : f32
    %1156 = vector.broadcast %cst_419 : f32 to vector<16x1xf32>
    %1157 = arith.cmpf oge, %1155, %1156 : vector<16x1xf32>
    %cst_420 = arith.constant 1.600000e+01 : f32
    %1158 = vector.broadcast %cst_420 : f32 to vector<16x1xf32>
    %1159 = arith.cmpf ole, %1155, %1158 : vector<16x1xf32>
    %1160 = arith.andi %1157, %1159 : vector<16x1xi1>
    %cst_421 = arith.constant 5.000000e-01 : f32
    %cst_422 = arith.constant 0.000000e+00 : f32
    %1161 = vector.broadcast %cst_421 : f32 to vector<16x1xf32>
    %1162 = vector.broadcast %cst_422 : f32 to vector<16x1xf32>
    %1163 = arith.select %1160, %1161, %1162 : vector<16x1xi1>, vector<16x1xf32>
    %cst_423 = arith.constant 0.000000e+00 : f32
    %cst_424 = arith.constant 1.500000e+01 : f32
    %1164 = vector.broadcast %cst_423 : f32 to vector<16x1xf32>
    %1165 = arith.maximumf %1164, %1155 : vector<16x1xf32>
    %1166 = vector.broadcast %cst_424 : f32 to vector<16x1xf32>
    %1167 = arith.minimumf %1166, %1165 : vector<16x1xf32>
    %1168 = vector.broadcast %1167 : vector<16x1xf32> to vector<16x256xf32>
    %1169 = vector.broadcast %1 : vector<1x256xf32> to vector<16x256xf32>
    %1170 = arith.subf %1168, %1169 : vector<16x256xf32>
    %1171 = math.absf %1170 : vector<16x256xf32>
    %cst_425 = arith.constant 1.000000e+00 : f32
    %1172 = vector.broadcast %cst_425 : f32 to vector<16x256xf32>
    %1173 = arith.subf %1172, %1171 : vector<16x256xf32>
    %cst_426 = arith.constant 0.000000e+00 : f32
    %1174 = vector.broadcast %cst_426 : f32 to vector<16x256xf32>
    %1175 = arith.maximumf %1173, %1174 : vector<16x256xf32>
    %1176 = vector.broadcast %1163 : vector<16x1xf32> to vector<16x256xf32>
    %1177 = arith.mulf %1176, %1175 : vector<16x256xf32>
    %1178 = arith.addf %1120, %1177 : vector<16x256xf32>
    %1179 = arith.mulf %1149, %1178 : vector<16x256xf32>
    %c112 = arith.constant 112 : index
    %c0_427 = arith.constant 0 : index
    %1180 = vector.load %arg10[%c112, %c0_427] : memref<256x256xf32, #tpu.memory_space<vmem>>, vector<16x256xf32>
    tpu.vector_store %arg10[%c112, %c0_427], %1179 {strides = array<i32>} : memref<256x256xf32, #tpu.memory_space<vmem>>, vector<16x256xf32>,
    %c32_i32 = arith.constant 32 : i32
    %1181 = arith.addi %4, %c32_i32 : i32
    %c0_i32_428 = arith.constant 0 : i32
    %1182 = arith.addi %1181, %c0_i32_428 : i32
    %1183 = arith.index_cast %1182 : i32 to index
    %1184 = memref.load %arg3[%1183] : memref<128xi32, #tpu.memory_space<smem>>
    %1185 = arith.sitofp %1184 : i32 to f32
    %cst_429 = arith.constant 2.500000e-01 : f32
    %1186 = arith.mulf %1185, %cst_429 : f32
    %c1_i32_430 = arith.constant 1 : i32
    %1187 = arith.addi %1181, %c1_i32_430 : i32
    %1188 = arith.index_cast %1187 : i32 to index
    %1189 = memref.load %arg3[%1188] : memref<128xi32, #tpu.memory_space<smem>>
    %1190 = arith.sitofp %1189 : i32 to f32
    %cst_431 = arith.constant 2.500000e-01 : f32
    %1191 = arith.mulf %1190, %cst_431 : f32
    %c2_i32_432 = arith.constant 2 : i32
    %1192 = arith.addi %1181, %c2_i32_432 : i32
    %1193 = arith.index_cast %1192 : i32 to index
    %1194 = memref.load %arg3[%1193] : memref<128xi32, #tpu.memory_space<smem>>
    %1195 = arith.sitofp %1194 : i32 to f32
    %cst_433 = arith.constant 2.500000e-01 : f32
    %1196 = arith.mulf %1195, %cst_433 : f32
    %c3_i32_434 = arith.constant 3 : i32
    %1197 = arith.addi %1181, %c3_i32_434 : i32
    %1198 = arith.index_cast %1197 : i32 to index
    %1199 = memref.load %arg3[%1198] : memref<128xi32, #tpu.memory_space<smem>>
    %1200 = arith.sitofp %1199 : i32 to f32
    %cst_435 = arith.constant 2.500000e-01 : f32
    %1201 = arith.mulf %1200, %cst_435 : f32
    %cst_436 = arith.constant 2.500000e-01 : f32
    %1202 = arith.mulf %1186, %cst_436 : f32
    %cst_437 = arith.constant 2.500000e-01 : f32
    %1203 = arith.mulf %1191, %cst_437 : f32
    %cst_438 = arith.constant 2.500000e-01 : f32
    %1204 = arith.mulf %1196, %cst_438 : f32
    %1205 = arith.subf %1204, %1202 : f32
    %cst_439 = arith.constant 1.000000e+00 : f32
    %1206 = arith.maximumf %1205, %cst_439 : f32
    %cst_440 = arith.constant 2.500000e-01 : f32
    %1207 = arith.mulf %1201, %cst_440 : f32
    %1208 = arith.subf %1207, %1203 : f32
    %cst_441 = arith.constant 1.000000e+00 : f32
    %1209 = arith.maximumf %1208, %cst_441 : f32
    %cst_442 = arith.constant 4.000000e+00 : f32
    %1210 = arith.divf %1206, %cst_442 : f32
    %cst_443 = arith.constant 4.000000e+00 : f32
    %1211 = arith.divf %1209, %cst_443 : f32
    %cst_444 = arith.constant 2.500000e-01 : f32
    %1212 = vector.broadcast %cst_444 : f32 to vector<16x1xf32>
    %1213 = arith.addf %2, %1212 : vector<16x1xf32>
    %1214 = vector.broadcast %1211 : f32 to vector<16x1xf32>
    %1215 = arith.mulf %1213, %1214 : vector<16x1xf32>
    %1216 = vector.broadcast %1203 : f32 to vector<16x1xf32>
    %1217 = arith.addf %1216, %1215 : vector<16x1xf32>
    %cst_445 = arith.constant -1.000000e+00 : f32
    %1218 = vector.broadcast %cst_445 : f32 to vector<16x1xf32>
    %1219 = arith.cmpf oge, %1217, %1218 : vector<16x1xf32>
    %cst_446 = arith.constant 1.600000e+01 : f32
    %1220 = vector.broadcast %cst_446 : f32 to vector<16x1xf32>
    %1221 = arith.cmpf ole, %1217, %1220 : vector<16x1xf32>
    %1222 = arith.andi %1219, %1221 : vector<16x1xi1>
    %cst_447 = arith.constant 5.000000e-01 : f32
    %cst_448 = arith.constant 0.000000e+00 : f32
    %1223 = vector.broadcast %cst_447 : f32 to vector<16x1xf32>
    %1224 = vector.broadcast %cst_448 : f32 to vector<16x1xf32>
    %1225 = arith.select %1222, %1223, %1224 : vector<16x1xi1>, vector<16x1xf32>
    %cst_449 = arith.constant 0.000000e+00 : f32
    %cst_450 = arith.constant 1.500000e+01 : f32
    %1226 = vector.broadcast %cst_449 : f32 to vector<16x1xf32>
    %1227 = arith.maximumf %1226, %1217 : vector<16x1xf32>
    %1228 = vector.broadcast %cst_450 : f32 to vector<16x1xf32>
    %1229 = arith.minimumf %1228, %1227 : vector<16x1xf32>
    %1230 = vector.broadcast %1229 : vector<16x1xf32> to vector<16x256xf32>
    %1231 = vector.broadcast %0 : vector<1x256xf32> to vector<16x256xf32>
    %1232 = arith.subf %1230, %1231 : vector<16x256xf32>
    %1233 = math.absf %1232 : vector<16x256xf32>
    %cst_451 = arith.constant 1.000000e+00 : f32
    %1234 = vector.broadcast %cst_451 : f32 to vector<16x256xf32>
    %1235 = arith.subf %1234, %1233 : vector<16x256xf32>
    %cst_452 = arith.constant 0.000000e+00 : f32
    %1236 = vector.broadcast %cst_452 : f32 to vector<16x256xf32>
    %1237 = arith.maximumf %1235, %1236 : vector<16x256xf32>
    %1238 = vector.broadcast %1225 : vector<16x1xf32> to vector<16x256xf32>
    %1239 = arith.mulf %1238, %1237 : vector<16x256xf32>
    %cst_453 = arith.constant 2.500000e-01 : f32
    %1240 = vector.broadcast %cst_453 : f32 to vector<16x1xf32>
    %1241 = arith.addf %3, %1240 : vector<16x1xf32>
    %1242 = vector.broadcast %1210 : f32 to vector<16x1xf32>
    %1243 = arith.mulf %1241, %1242 : vector<16x1xf32>
    %1244 = vector.broadcast %1202 : f32 to vector<16x1xf32>
    %1245 = arith.addf %1244, %1243 : vector<16x1xf32>
    %cst_454 = arith.constant -1.000000e+00 : f32
    %1246 = vector.broadcast %cst_454 : f32 to vector<16x1xf32>
    %1247 = arith.cmpf oge, %1245, %1246 : vector<16x1xf32>
    %cst_455 = arith.constant 1.600000e+01 : f32
    %1248 = vector.broadcast %cst_455 : f32 to vector<16x1xf32>
    %1249 = arith.cmpf ole, %1245, %1248 : vector<16x1xf32>
    %1250 = arith.andi %1247, %1249 : vector<16x1xi1>
    %cst_456 = arith.constant 5.000000e-01 : f32
    %cst_457 = arith.constant 0.000000e+00 : f32
    %1251 = vector.broadcast %cst_456 : f32 to vector<16x1xf32>
    %1252 = vector.broadcast %cst_457 : f32 to vector<16x1xf32>
    %1253 = arith.select %1250, %1251, %1252 : vector<16x1xi1>, vector<16x1xf32>
    %cst_458 = arith.constant 0.000000e+00 : f32
    %cst_459 = arith.constant 1.500000e+01 : f32
    %1254 = vector.broadcast %cst_458 : f32 to vector<16x1xf32>
    %1255 = arith.maximumf %1254, %1245 : vector<16x1xf32>
    %1256 = vector.broadcast %cst_459 : f32 to vector<16x1xf32>
    %1257 = arith.minimumf %1256, %1255 : vector<16x1xf32>
    %1258 = vector.broadcast %1257 : vector<16x1xf32> to vector<16x256xf32>
    %1259 = vector.broadcast %1 : vector<1x256xf32> to vector<16x256xf32>
    %1260 = arith.subf %1258, %1259 : vector<16x256xf32>
    %1261 = math.absf %1260 : vector<16x256xf32>
    %cst_460 = arith.constant 1.000000e+00 : f32
    %1262 = vector.broadcast %cst_460 : f32 to vector<16x256xf32>
    %1263 = arith.subf %1262, %1261 : vector<16x256xf32>
    %cst_461 = arith.constant 0.000000e+00 : f32
    %1264 = vector.broadcast %cst_461 : f32 to vector<16x256xf32>
    %1265 = arith.maximumf %1263, %1264 : vector<16x256xf32>
    %1266 = vector.broadcast %1253 : vector<16x1xf32> to vector<16x256xf32>
    %1267 = arith.mulf %1266, %1265 : vector<16x256xf32>
    %cst_462 = arith.constant 7.500000e-01 : f32
    %1268 = vector.broadcast %cst_462 : f32 to vector<16x1xf32>
    %1269 = arith.addf %2, %1268 : vector<16x1xf32>
    %1270 = vector.broadcast %1211 : f32 to vector<16x1xf32>
    %1271 = arith.mulf %1269, %1270 : vector<16x1xf32>
    %1272 = vector.broadcast %1203 : f32 to vector<16x1xf32>
    %1273 = arith.addf %1272, %1271 : vector<16x1xf32>
    %cst_463 = arith.constant -1.000000e+00 : f32
    %1274 = vector.broadcast %cst_463 : f32 to vector<16x1xf32>
    %1275 = arith.cmpf oge, %1273, %1274 : vector<16x1xf32>
    %cst_464 = arith.constant 1.600000e+01 : f32
    %1276 = vector.broadcast %cst_464 : f32 to vector<16x1xf32>
    %1277 = arith.cmpf ole, %1273, %1276 : vector<16x1xf32>
    %1278 = arith.andi %1275, %1277 : vector<16x1xi1>
    %cst_465 = arith.constant 5.000000e-01 : f32
    %cst_466 = arith.constant 0.000000e+00 : f32
    %1279 = vector.broadcast %cst_465 : f32 to vector<16x1xf32>
    %1280 = vector.broadcast %cst_466 : f32 to vector<16x1xf32>
    %1281 = arith.select %1278, %1279, %1280 : vector<16x1xi1>, vector<16x1xf32>
    %cst_467 = arith.constant 0.000000e+00 : f32
    %cst_468 = arith.constant 1.500000e+01 : f32
    %1282 = vector.broadcast %cst_467 : f32 to vector<16x1xf32>
    %1283 = arith.maximumf %1282, %1273 : vector<16x1xf32>
    %1284 = vector.broadcast %cst_468 : f32 to vector<16x1xf32>
    %1285 = arith.minimumf %1284, %1283 : vector<16x1xf32>
    %1286 = vector.broadcast %1285 : vector<16x1xf32> to vector<16x256xf32>
    %1287 = vector.broadcast %0 : vector<1x256xf32> to vector<16x256xf32>
    %1288 = arith.subf %1286, %1287 : vector<16x256xf32>
    %1289 = math.absf %1288 : vector<16x256xf32>
    %cst_469 = arith.constant 1.000000e+00 : f32
    %1290 = vector.broadcast %cst_469 : f32 to vector<16x256xf32>
    %1291 = arith.subf %1290, %1289 : vector<16x256xf32>
    %cst_470 = arith.constant 0.000000e+00 : f32
    %1292 = vector.broadcast %cst_470 : f32 to vector<16x256xf32>
    %1293 = arith.maximumf %1291, %1292 : vector<16x256xf32>
    %1294 = vector.broadcast %1281 : vector<16x1xf32> to vector<16x256xf32>
    %1295 = arith.mulf %1294, %1293 : vector<16x256xf32>
    %1296 = arith.addf %1239, %1295 : vector<16x256xf32>
    %cst_471 = arith.constant 7.500000e-01 : f32
    %1297 = vector.broadcast %cst_471 : f32 to vector<16x1xf32>
    %1298 = arith.addf %3, %1297 : vector<16x1xf32>
    %1299 = vector.broadcast %1210 : f32 to vector<16x1xf32>
    %1300 = arith.mulf %1298, %1299 : vector<16x1xf32>
    %1301 = vector.broadcast %1202 : f32 to vector<16x1xf32>
    %1302 = arith.addf %1301, %1300 : vector<16x1xf32>
    %cst_472 = arith.constant -1.000000e+00 : f32
    %1303 = vector.broadcast %cst_472 : f32 to vector<16x1xf32>
    %1304 = arith.cmpf oge, %1302, %1303 : vector<16x1xf32>
    %cst_473 = arith.constant 1.600000e+01 : f32
    %1305 = vector.broadcast %cst_473 : f32 to vector<16x1xf32>
    %1306 = arith.cmpf ole, %1302, %1305 : vector<16x1xf32>
    %1307 = arith.andi %1304, %1306 : vector<16x1xi1>
    %cst_474 = arith.constant 5.000000e-01 : f32
    %cst_475 = arith.constant 0.000000e+00 : f32
    %1308 = vector.broadcast %cst_474 : f32 to vector<16x1xf32>
    %1309 = vector.broadcast %cst_475 : f32 to vector<16x1xf32>
    %1310 = arith.select %1307, %1308, %1309 : vector<16x1xi1>, vector<16x1xf32>
    %cst_476 = arith.constant 0.000000e+00 : f32
    %cst_477 = arith.constant 1.500000e+01 : f32
    %1311 = vector.broadcast %cst_476 : f32 to vector<16x1xf32>
    %1312 = arith.maximumf %1311, %1302 : vector<16x1xf32>
    %1313 = vector.broadcast %cst_477 : f32 to vector<16x1xf32>
    %1314 = arith.minimumf %1313, %1312 : vector<16x1xf32>
    %1315 = vector.broadcast %1314 : vector<16x1xf32> to vector<16x256xf32>
    %1316 = vector.broadcast %1 : vector<1x256xf32> to vector<16x256xf32>
    %1317 = arith.subf %1315, %1316 : vector<16x256xf32>
    %1318 = math.absf %1317 : vector<16x256xf32>
    %cst_478 = arith.constant 1.000000e+00 : f32
    %1319 = vector.broadcast %cst_478 : f32 to vector<16x256xf32>
    %1320 = arith.subf %1319, %1318 : vector<16x256xf32>
    %cst_479 = arith.constant 0.000000e+00 : f32
    %1321 = vector.broadcast %cst_479 : f32 to vector<16x256xf32>
    %1322 = arith.maximumf %1320, %1321 : vector<16x256xf32>
    %1323 = vector.broadcast %1310 : vector<16x1xf32> to vector<16x256xf32>
    %1324 = arith.mulf %1323, %1322 : vector<16x256xf32>
    %1325 = arith.addf %1267, %1324 : vector<16x256xf32>
    %1326 = arith.mulf %1296, %1325 : vector<16x256xf32>
    %c128 = arith.constant 128 : index
    %c0_480 = arith.constant 0 : index
    %1327 = vector.load %arg10[%c128, %c0_480] : memref<256x256xf32, #tpu.memory_space<vmem>>, vector<16x256xf32>
    tpu.vector_store %arg10[%c128, %c0_480], %1326 {strides = array<i32>} : memref<256x256xf32, #tpu.memory_space<vmem>>, vector<16x256xf32>,
    %c36_i32 = arith.constant 36 : i32
    %1328 = arith.addi %4, %c36_i32 : i32
    %c0_i32_481 = arith.constant 0 : i32
    %1329 = arith.addi %1328, %c0_i32_481 : i32
    %1330 = arith.index_cast %1329 : i32 to index
    %1331 = memref.load %arg3[%1330] : memref<128xi32, #tpu.memory_space<smem>>
    %1332 = arith.sitofp %1331 : i32 to f32
    %cst_482 = arith.constant 2.500000e-01 : f32
    %1333 = arith.mulf %1332, %cst_482 : f32
    %c1_i32_483 = arith.constant 1 : i32
    %1334 = arith.addi %1328, %c1_i32_483 : i32
    %1335 = arith.index_cast %1334 : i32 to index
    %1336 = memref.load %arg3[%1335] : memref<128xi32, #tpu.memory_space<smem>>
    %1337 = arith.sitofp %1336 : i32 to f32
    %cst_484 = arith.constant 2.500000e-01 : f32
    %1338 = arith.mulf %1337, %cst_484 : f32
    %c2_i32_485 = arith.constant 2 : i32
    %1339 = arith.addi %1328, %c2_i32_485 : i32
    %1340 = arith.index_cast %1339 : i32 to index
    %1341 = memref.load %arg3[%1340] : memref<128xi32, #tpu.memory_space<smem>>
    %1342 = arith.sitofp %1341 : i32 to f32
    %cst_486 = arith.constant 2.500000e-01 : f32
    %1343 = arith.mulf %1342, %cst_486 : f32
    %c3_i32_487 = arith.constant 3 : i32
    %1344 = arith.addi %1328, %c3_i32_487 : i32
    %1345 = arith.index_cast %1344 : i32 to index
    %1346 = memref.load %arg3[%1345] : memref<128xi32, #tpu.memory_space<smem>>
    %1347 = arith.sitofp %1346 : i32 to f32
    %cst_488 = arith.constant 2.500000e-01 : f32
    %1348 = arith.mulf %1347, %cst_488 : f32
    %cst_489 = arith.constant 2.500000e-01 : f32
    %1349 = arith.mulf %1333, %cst_489 : f32
    %cst_490 = arith.constant 2.500000e-01 : f32
    %1350 = arith.mulf %1338, %cst_490 : f32
    %cst_491 = arith.constant 2.500000e-01 : f32
    %1351 = arith.mulf %1343, %cst_491 : f32
    %1352 = arith.subf %1351, %1349 : f32
    %cst_492 = arith.constant 1.000000e+00 : f32
    %1353 = arith.maximumf %1352, %cst_492 : f32
    %cst_493 = arith.constant 2.500000e-01 : f32
    %1354 = arith.mulf %1348, %cst_493 : f32
    %1355 = arith.subf %1354, %1350 : f32
    %cst_494 = arith.constant 1.000000e+00 : f32
    %1356 = arith.maximumf %1355, %cst_494 : f32
    %cst_495 = arith.constant 4.000000e+00 : f32
    %1357 = arith.divf %1353, %cst_495 : f32
    %cst_496 = arith.constant 4.000000e+00 : f32
    %1358 = arith.divf %1356, %cst_496 : f32
    %cst_497 = arith.constant 2.500000e-01 : f32
    %1359 = vector.broadcast %cst_497 : f32 to vector<16x1xf32>
    %1360 = arith.addf %2, %1359 : vector<16x1xf32>
    %1361 = vector.broadcast %1358 : f32 to vector<16x1xf32>
    %1362 = arith.mulf %1360, %1361 : vector<16x1xf32>
    %1363 = vector.broadcast %1350 : f32 to vector<16x1xf32>
    %1364 = arith.addf %1363, %1362 : vector<16x1xf32>
    %cst_498 = arith.constant -1.000000e+00 : f32
    %1365 = vector.broadcast %cst_498 : f32 to vector<16x1xf32>
    %1366 = arith.cmpf oge, %1364, %1365 : vector<16x1xf32>
    %cst_499 = arith.constant 1.600000e+01 : f32
    %1367 = vector.broadcast %cst_499 : f32 to vector<16x1xf32>
    %1368 = arith.cmpf ole, %1364, %1367 : vector<16x1xf32>
    %1369 = arith.andi %1366, %1368 : vector<16x1xi1>
    %cst_500 = arith.constant 5.000000e-01 : f32
    %cst_501 = arith.constant 0.000000e+00 : f32
    %1370 = vector.broadcast %cst_500 : f32 to vector<16x1xf32>
    %1371 = vector.broadcast %cst_501 : f32 to vector<16x1xf32>
    %1372 = arith.select %1369, %1370, %1371 : vector<16x1xi1>, vector<16x1xf32>
    %cst_502 = arith.constant 0.000000e+00 : f32
    %cst_503 = arith.constant 1.500000e+01 : f32
    %1373 = vector.broadcast %cst_502 : f32 to vector<16x1xf32>
    %1374 = arith.maximumf %1373, %1364 : vector<16x1xf32>
    %1375 = vector.broadcast %cst_503 : f32 to vector<16x1xf32>
    %1376 = arith.minimumf %1375, %1374 : vector<16x1xf32>
    %1377 = vector.broadcast %1376 : vector<16x1xf32> to vector<16x256xf32>
    %1378 = vector.broadcast %0 : vector<1x256xf32> to vector<16x256xf32>
    %1379 = arith.subf %1377, %1378 : vector<16x256xf32>
    %1380 = math.absf %1379 : vector<16x256xf32>
    %cst_504 = arith.constant 1.000000e+00 : f32
    %1381 = vector.broadcast %cst_504 : f32 to vector<16x256xf32>
    %1382 = arith.subf %1381, %1380 : vector<16x256xf32>
    %cst_505 = arith.constant 0.000000e+00 : f32
    %1383 = vector.broadcast %cst_505 : f32 to vector<16x256xf32>
    %1384 = arith.maximumf %1382, %1383 : vector<16x256xf32>
    %1385 = vector.broadcast %1372 : vector<16x1xf32> to vector<16x256xf32>
    %1386 = arith.mulf %1385, %1384 : vector<16x256xf32>
    %cst_506 = arith.constant 2.500000e-01 : f32
    %1387 = vector.broadcast %cst_506 : f32 to vector<16x1xf32>
    %1388 = arith.addf %3, %1387 : vector<16x1xf32>
    %1389 = vector.broadcast %1357 : f32 to vector<16x1xf32>
    %1390 = arith.mulf %1388, %1389 : vector<16x1xf32>
    %1391 = vector.broadcast %1349 : f32 to vector<16x1xf32>
    %1392 = arith.addf %1391, %1390 : vector<16x1xf32>
    %cst_507 = arith.constant -1.000000e+00 : f32
    %1393 = vector.broadcast %cst_507 : f32 to vector<16x1xf32>
    %1394 = arith.cmpf oge, %1392, %1393 : vector<16x1xf32>
    %cst_508 = arith.constant 1.600000e+01 : f32
    %1395 = vector.broadcast %cst_508 : f32 to vector<16x1xf32>
    %1396 = arith.cmpf ole, %1392, %1395 : vector<16x1xf32>
    %1397 = arith.andi %1394, %1396 : vector<16x1xi1>
    %cst_509 = arith.constant 5.000000e-01 : f32
    %cst_510 = arith.constant 0.000000e+00 : f32
    %1398 = vector.broadcast %cst_509 : f32 to vector<16x1xf32>
    %1399 = vector.broadcast %cst_510 : f32 to vector<16x1xf32>
    %1400 = arith.select %1397, %1398, %1399 : vector<16x1xi1>, vector<16x1xf32>
    %cst_511 = arith.constant 0.000000e+00 : f32
    %cst_512 = arith.constant 1.500000e+01 : f32
    %1401 = vector.broadcast %cst_511 : f32 to vector<16x1xf32>
    %1402 = arith.maximumf %1401, %1392 : vector<16x1xf32>
    %1403 = vector.broadcast %cst_512 : f32 to vector<16x1xf32>
    %1404 = arith.minimumf %1403, %1402 : vector<16x1xf32>
    %1405 = vector.broadcast %1404 : vector<16x1xf32> to vector<16x256xf32>
    %1406 = vector.broadcast %1 : vector<1x256xf32> to vector<16x256xf32>
    %1407 = arith.subf %1405, %1406 : vector<16x256xf32>
    %1408 = math.absf %1407 : vector<16x256xf32>
    %cst_513 = arith.constant 1.000000e+00 : f32
    %1409 = vector.broadcast %cst_513 : f32 to vector<16x256xf32>
    %1410 = arith.subf %1409, %1408 : vector<16x256xf32>
    %cst_514 = arith.constant 0.000000e+00 : f32
    %1411 = vector.broadcast %cst_514 : f32 to vector<16x256xf32>
    %1412 = arith.maximumf %1410, %1411 : vector<16x256xf32>
    %1413 = vector.broadcast %1400 : vector<16x1xf32> to vector<16x256xf32>
    %1414 = arith.mulf %1413, %1412 : vector<16x256xf32>
    %cst_515 = arith.constant 7.500000e-01 : f32
    %1415 = vector.broadcast %cst_515 : f32 to vector<16x1xf32>
    %1416 = arith.addf %2, %1415 : vector<16x1xf32>
    %1417 = vector.broadcast %1358 : f32 to vector<16x1xf32>
    %1418 = arith.mulf %1416, %1417 : vector<16x1xf32>
    %1419 = vector.broadcast %1350 : f32 to vector<16x1xf32>
    %1420 = arith.addf %1419, %1418 : vector<16x1xf32>
    %cst_516 = arith.constant -1.000000e+00 : f32
    %1421 = vector.broadcast %cst_516 : f32 to vector<16x1xf32>
    %1422 = arith.cmpf oge, %1420, %1421 : vector<16x1xf32>
    %cst_517 = arith.constant 1.600000e+01 : f32
    %1423 = vector.broadcast %cst_517 : f32 to vector<16x1xf32>
    %1424 = arith.cmpf ole, %1420, %1423 : vector<16x1xf32>
    %1425 = arith.andi %1422, %1424 : vector<16x1xi1>
    %cst_518 = arith.constant 5.000000e-01 : f32
    %cst_519 = arith.constant 0.000000e+00 : f32
    %1426 = vector.broadcast %cst_518 : f32 to vector<16x1xf32>
    %1427 = vector.broadcast %cst_519 : f32 to vector<16x1xf32>
    %1428 = arith.select %1425, %1426, %1427 : vector<16x1xi1>, vector<16x1xf32>
    %cst_520 = arith.constant 0.000000e+00 : f32
    %cst_521 = arith.constant 1.500000e+01 : f32
    %1429 = vector.broadcast %cst_520 : f32 to vector<16x1xf32>
    %1430 = arith.maximumf %1429, %1420 : vector<16x1xf32>
    %1431 = vector.broadcast %cst_521 : f32 to vector<16x1xf32>
    %1432 = arith.minimumf %1431, %1430 : vector<16x1xf32>
    %1433 = vector.broadcast %1432 : vector<16x1xf32> to vector<16x256xf32>
    %1434 = vector.broadcast %0 : vector<1x256xf32> to vector<16x256xf32>
    %1435 = arith.subf %1433, %1434 : vector<16x256xf32>
    %1436 = math.absf %1435 : vector<16x256xf32>
    %cst_522 = arith.constant 1.000000e+00 : f32
    %1437 = vector.broadcast %cst_522 : f32 to vector<16x256xf32>
    %1438 = arith.subf %1437, %1436 : vector<16x256xf32>
    %cst_523 = arith.constant 0.000000e+00 : f32
    %1439 = vector.broadcast %cst_523 : f32 to vector<16x256xf32>
    %1440 = arith.maximumf %1438, %1439 : vector<16x256xf32>
    %1441 = vector.broadcast %1428 : vector<16x1xf32> to vector<16x256xf32>
    %1442 = arith.mulf %1441, %1440 : vector<16x256xf32>
    %1443 = arith.addf %1386, %1442 : vector<16x256xf32>
    %cst_524 = arith.constant 7.500000e-01 : f32
    %1444 = vector.broadcast %cst_524 : f32 to vector<16x1xf32>
    %1445 = arith.addf %3, %1444 : vector<16x1xf32>
    %1446 = vector.broadcast %1357 : f32 to vector<16x1xf32>
    %1447 = arith.mulf %1445, %1446 : vector<16x1xf32>
    %1448 = vector.broadcast %1349 : f32 to vector<16x1xf32>
    %1449 = arith.addf %1448, %1447 : vector<16x1xf32>
    %cst_525 = arith.constant -1.000000e+00 : f32
    %1450 = vector.broadcast %cst_525 : f32 to vector<16x1xf32>
    %1451 = arith.cmpf oge, %1449, %1450 : vector<16x1xf32>
    %cst_526 = arith.constant 1.600000e+01 : f32
    %1452 = vector.broadcast %cst_526 : f32 to vector<16x1xf32>
    %1453 = arith.cmpf ole, %1449, %1452 : vector<16x1xf32>
    %1454 = arith.andi %1451, %1453 : vector<16x1xi1>
    %cst_527 = arith.constant 5.000000e-01 : f32
    %cst_528 = arith.constant 0.000000e+00 : f32
    %1455 = vector.broadcast %cst_527 : f32 to vector<16x1xf32>
    %1456 = vector.broadcast %cst_528 : f32 to vector<16x1xf32>
    %1457 = arith.select %1454, %1455, %1456 : vector<16x1xi1>, vector<16x1xf32>
    %cst_529 = arith.constant 0.000000e+00 : f32
    %cst_530 = arith.constant 1.500000e+01 : f32
    %1458 = vector.broadcast %cst_529 : f32 to vector<16x1xf32>
    %1459 = arith.maximumf %1458, %1449 : vector<16x1xf32>
    %1460 = vector.broadcast %cst_530 : f32 to vector<16x1xf32>
    %1461 = arith.minimumf %1460, %1459 : vector<16x1xf32>
    %1462 = vector.broadcast %1461 : vector<16x1xf32> to vector<16x256xf32>
    %1463 = vector.broadcast %1 : vector<1x256xf32> to vector<16x256xf32>
    %1464 = arith.subf %1462, %1463 : vector<16x256xf32>
    %1465 = math.absf %1464 : vector<16x256xf32>
    %cst_531 = arith.constant 1.000000e+00 : f32
    %1466 = vector.broadcast %cst_531 : f32 to vector<16x256xf32>
    %1467 = arith.subf %1466, %1465 : vector<16x256xf32>
    %cst_532 = arith.constant 0.000000e+00 : f32
    %1468 = vector.broadcast %cst_532 : f32 to vector<16x256xf32>
    %1469 = arith.maximumf %1467, %1468 : vector<16x256xf32>
    %1470 = vector.broadcast %1457 : vector<16x1xf32> to vector<16x256xf32>
    %1471 = arith.mulf %1470, %1469 : vector<16x256xf32>
    %1472 = arith.addf %1414, %1471 : vector<16x256xf32>
    %1473 = arith.mulf %1443, %1472 : vector<16x256xf32>
    %c144 = arith.constant 144 : index
    %c0_533 = arith.constant 0 : index
    %1474 = vector.load %arg10[%c144, %c0_533] : memref<256x256xf32, #tpu.memory_space<vmem>>, vector<16x256xf32>
    tpu.vector_store %arg10[%c144, %c0_533], %1473 {strides = array<i32>} : memref<256x256xf32, #tpu.memory_space<vmem>>, vector<16x256xf32>,
    %c40_i32 = arith.constant 40 : i32
    %1475 = arith.addi %4, %c40_i32 : i32
    %c0_i32_534 = arith.constant 0 : i32
    %1476 = arith.addi %1475, %c0_i32_534 : i32
    %1477 = arith.index_cast %1476 : i32 to index
    %1478 = memref.load %arg3[%1477] : memref<128xi32, #tpu.memory_space<smem>>
    %1479 = arith.sitofp %1478 : i32 to f32
    %cst_535 = arith.constant 2.500000e-01 : f32
    %1480 = arith.mulf %1479, %cst_535 : f32
    %c1_i32_536 = arith.constant 1 : i32
    %1481 = arith.addi %1475, %c1_i32_536 : i32
    %1482 = arith.index_cast %1481 : i32 to index
    %1483 = memref.load %arg3[%1482] : memref<128xi32, #tpu.memory_space<smem>>
    %1484 = arith.sitofp %1483 : i32 to f32
    %cst_537 = arith.constant 2.500000e-01 : f32
    %1485 = arith.mulf %1484, %cst_537 : f32
    %c2_i32_538 = arith.constant 2 : i32
    %1486 = arith.addi %1475, %c2_i32_538 : i32
    %1487 = arith.index_cast %1486 : i32 to index
    %1488 = memref.load %arg3[%1487] : memref<128xi32, #tpu.memory_space<smem>>
    %1489 = arith.sitofp %1488 : i32 to f32
    %cst_539 = arith.constant 2.500000e-01 : f32
    %1490 = arith.mulf %1489, %cst_539 : f32
    %c3_i32_540 = arith.constant 3 : i32
    %1491 = arith.addi %1475, %c3_i32_540 : i32
    %1492 = arith.index_cast %1491 : i32 to index
    %1493 = memref.load %arg3[%1492] : memref<128xi32, #tpu.memory_space<smem>>
    %1494 = arith.sitofp %1493 : i32 to f32
    %cst_541 = arith.constant 2.500000e-01 : f32
    %1495 = arith.mulf %1494, %cst_541 : f32
    %cst_542 = arith.constant 2.500000e-01 : f32
    %1496 = arith.mulf %1480, %cst_542 : f32
    %cst_543 = arith.constant 2.500000e-01 : f32
    %1497 = arith.mulf %1485, %cst_543 : f32
    %cst_544 = arith.constant 2.500000e-01 : f32
    %1498 = arith.mulf %1490, %cst_544 : f32
    %1499 = arith.subf %1498, %1496 : f32
    %cst_545 = arith.constant 1.000000e+00 : f32
    %1500 = arith.maximumf %1499, %cst_545 : f32
    %cst_546 = arith.constant 2.500000e-01 : f32
    %1501 = arith.mulf %1495, %cst_546 : f32
    %1502 = arith.subf %1501, %1497 : f32
    %cst_547 = arith.constant 1.000000e+00 : f32
    %1503 = arith.maximumf %1502, %cst_547 : f32
    %cst_548 = arith.constant 4.000000e+00 : f32
    %1504 = arith.divf %1500, %cst_548 : f32
    %cst_549 = arith.constant 4.000000e+00 : f32
    %1505 = arith.divf %1503, %cst_549 : f32
    %cst_550 = arith.constant 2.500000e-01 : f32
    %1506 = vector.broadcast %cst_550 : f32 to vector<16x1xf32>
    %1507 = arith.addf %2, %1506 : vector<16x1xf32>
    %1508 = vector.broadcast %1505 : f32 to vector<16x1xf32>
    %1509 = arith.mulf %1507, %1508 : vector<16x1xf32>
    %1510 = vector.broadcast %1497 : f32 to vector<16x1xf32>
    %1511 = arith.addf %1510, %1509 : vector<16x1xf32>
    %cst_551 = arith.constant -1.000000e+00 : f32
    %1512 = vector.broadcast %cst_551 : f32 to vector<16x1xf32>
    %1513 = arith.cmpf oge, %1511, %1512 : vector<16x1xf32>
    %cst_552 = arith.constant 1.600000e+01 : f32
    %1514 = vector.broadcast %cst_552 : f32 to vector<16x1xf32>
    %1515 = arith.cmpf ole, %1511, %1514 : vector<16x1xf32>
    %1516 = arith.andi %1513, %1515 : vector<16x1xi1>
    %cst_553 = arith.constant 5.000000e-01 : f32
    %cst_554 = arith.constant 0.000000e+00 : f32
    %1517 = vector.broadcast %cst_553 : f32 to vector<16x1xf32>
    %1518 = vector.broadcast %cst_554 : f32 to vector<16x1xf32>
    %1519 = arith.select %1516, %1517, %1518 : vector<16x1xi1>, vector<16x1xf32>
    %cst_555 = arith.constant 0.000000e+00 : f32
    %cst_556 = arith.constant 1.500000e+01 : f32
    %1520 = vector.broadcast %cst_555 : f32 to vector<16x1xf32>
    %1521 = arith.maximumf %1520, %1511 : vector<16x1xf32>
    %1522 = vector.broadcast %cst_556 : f32 to vector<16x1xf32>
    %1523 = arith.minimumf %1522, %1521 : vector<16x1xf32>
    %1524 = vector.broadcast %1523 : vector<16x1xf32> to vector<16x256xf32>
    %1525 = vector.broadcast %0 : vector<1x256xf32> to vector<16x256xf32>
    %1526 = arith.subf %1524, %1525 : vector<16x256xf32>
    %1527 = math.absf %1526 : vector<16x256xf32>
    %cst_557 = arith.constant 1.000000e+00 : f32
    %1528 = vector.broadcast %cst_557 : f32 to vector<16x256xf32>
    %1529 = arith.subf %1528, %1527 : vector<16x256xf32>
    %cst_558 = arith.constant 0.000000e+00 : f32
    %1530 = vector.broadcast %cst_558 : f32 to vector<16x256xf32>
    %1531 = arith.maximumf %1529, %1530 : vector<16x256xf32>
    %1532 = vector.broadcast %1519 : vector<16x1xf32> to vector<16x256xf32>
    %1533 = arith.mulf %1532, %1531 : vector<16x256xf32>
    %cst_559 = arith.constant 2.500000e-01 : f32
    %1534 = vector.broadcast %cst_559 : f32 to vector<16x1xf32>
    %1535 = arith.addf %3, %1534 : vector<16x1xf32>
    %1536 = vector.broadcast %1504 : f32 to vector<16x1xf32>
    %1537 = arith.mulf %1535, %1536 : vector<16x1xf32>
    %1538 = vector.broadcast %1496 : f32 to vector<16x1xf32>
    %1539 = arith.addf %1538, %1537 : vector<16x1xf32>
    %cst_560 = arith.constant -1.000000e+00 : f32
    %1540 = vector.broadcast %cst_560 : f32 to vector<16x1xf32>
    %1541 = arith.cmpf oge, %1539, %1540 : vector<16x1xf32>
    %cst_561 = arith.constant 1.600000e+01 : f32
    %1542 = vector.broadcast %cst_561 : f32 to vector<16x1xf32>
    %1543 = arith.cmpf ole, %1539, %1542 : vector<16x1xf32>
    %1544 = arith.andi %1541, %1543 : vector<16x1xi1>
    %cst_562 = arith.constant 5.000000e-01 : f32
    %cst_563 = arith.constant 0.000000e+00 : f32
    %1545 = vector.broadcast %cst_562 : f32 to vector<16x1xf32>
    %1546 = vector.broadcast %cst_563 : f32 to vector<16x1xf32>
    %1547 = arith.select %1544, %1545, %1546 : vector<16x1xi1>, vector<16x1xf32>
    %cst_564 = arith.constant 0.000000e+00 : f32
    %cst_565 = arith.constant 1.500000e+01 : f32
    %1548 = vector.broadcast %cst_564 : f32 to vector<16x1xf32>
    %1549 = arith.maximumf %1548, %1539 : vector<16x1xf32>
    %1550 = vector.broadcast %cst_565 : f32 to vector<16x1xf32>
    %1551 = arith.minimumf %1550, %1549 : vector<16x1xf32>
    %1552 = vector.broadcast %1551 : vector<16x1xf32> to vector<16x256xf32>
    %1553 = vector.broadcast %1 : vector<1x256xf32> to vector<16x256xf32>
    %1554 = arith.subf %1552, %1553 : vector<16x256xf32>
    %1555 = math.absf %1554 : vector<16x256xf32>
    %cst_566 = arith.constant 1.000000e+00 : f32
    %1556 = vector.broadcast %cst_566 : f32 to vector<16x256xf32>
    %1557 = arith.subf %1556, %1555 : vector<16x256xf32>
    %cst_567 = arith.constant 0.000000e+00 : f32
    %1558 = vector.broadcast %cst_567 : f32 to vector<16x256xf32>
    %1559 = arith.maximumf %1557, %1558 : vector<16x256xf32>
    %1560 = vector.broadcast %1547 : vector<16x1xf32> to vector<16x256xf32>
    %1561 = arith.mulf %1560, %1559 : vector<16x256xf32>
    %cst_568 = arith.constant 7.500000e-01 : f32
    %1562 = vector.broadcast %cst_568 : f32 to vector<16x1xf32>
    %1563 = arith.addf %2, %1562 : vector<16x1xf32>
    %1564 = vector.broadcast %1505 : f32 to vector<16x1xf32>
    %1565 = arith.mulf %1563, %1564 : vector<16x1xf32>
    %1566 = vector.broadcast %1497 : f32 to vector<16x1xf32>
    %1567 = arith.addf %1566, %1565 : vector<16x1xf32>
    %cst_569 = arith.constant -1.000000e+00 : f32
    %1568 = vector.broadcast %cst_569 : f32 to vector<16x1xf32>
    %1569 = arith.cmpf oge, %1567, %1568 : vector<16x1xf32>
    %cst_570 = arith.constant 1.600000e+01 : f32
    %1570 = vector.broadcast %cst_570 : f32 to vector<16x1xf32>
    %1571 = arith.cmpf ole, %1567, %1570 : vector<16x1xf32>
    %1572 = arith.andi %1569, %1571 : vector<16x1xi1>
    %cst_571 = arith.constant 5.000000e-01 : f32
    %cst_572 = arith.constant 0.000000e+00 : f32
    %1573 = vector.broadcast %cst_571 : f32 to vector<16x1xf32>
    %1574 = vector.broadcast %cst_572 : f32 to vector<16x1xf32>
    %1575 = arith.select %1572, %1573, %1574 : vector<16x1xi1>, vector<16x1xf32>
    %cst_573 = arith.constant 0.000000e+00 : f32
    %cst_574 = arith.constant 1.500000e+01 : f32
    %1576 = vector.broadcast %cst_573 : f32 to vector<16x1xf32>
    %1577 = arith.maximumf %1576, %1567 : vector<16x1xf32>
    %1578 = vector.broadcast %cst_574 : f32 to vector<16x1xf32>
    %1579 = arith.minimumf %1578, %1577 : vector<16x1xf32>
    %1580 = vector.broadcast %1579 : vector<16x1xf32> to vector<16x256xf32>
    %1581 = vector.broadcast %0 : vector<1x256xf32> to vector<16x256xf32>
    %1582 = arith.subf %1580, %1581 : vector<16x256xf32>
    %1583 = math.absf %1582 : vector<16x256xf32>
    %cst_575 = arith.constant 1.000000e+00 : f32
    %1584 = vector.broadcast %cst_575 : f32 to vector<16x256xf32>
    %1585 = arith.subf %1584, %1583 : vector<16x256xf32>
    %cst_576 = arith.constant 0.000000e+00 : f32
    %1586 = vector.broadcast %cst_576 : f32 to vector<16x256xf32>
    %1587 = arith.maximumf %1585, %1586 : vector<16x256xf32>
    %1588 = vector.broadcast %1575 : vector<16x1xf32> to vector<16x256xf32>
    %1589 = arith.mulf %1588, %1587 : vector<16x256xf32>
    %1590 = arith.addf %1533, %1589 : vector<16x256xf32>
    %cst_577 = arith.constant 7.500000e-01 : f32
    %1591 = vector.broadcast %cst_577 : f32 to vector<16x1xf32>
    %1592 = arith.addf %3, %1591 : vector<16x1xf32>
    %1593 = vector.broadcast %1504 : f32 to vector<16x1xf32>
    %1594 = arith.mulf %1592, %1593 : vector<16x1xf32>
    %1595 = vector.broadcast %1496 : f32 to vector<16x1xf32>
    %1596 = arith.addf %1595, %1594 : vector<16x1xf32>
    %cst_578 = arith.constant -1.000000e+00 : f32
    %1597 = vector.broadcast %cst_578 : f32 to vector<16x1xf32>
    %1598 = arith.cmpf oge, %1596, %1597 : vector<16x1xf32>
    %cst_579 = arith.constant 1.600000e+01 : f32
    %1599 = vector.broadcast %cst_579 : f32 to vector<16x1xf32>
    %1600 = arith.cmpf ole, %1596, %1599 : vector<16x1xf32>
    %1601 = arith.andi %1598, %1600 : vector<16x1xi1>
    %cst_580 = arith.constant 5.000000e-01 : f32
    %cst_581 = arith.constant 0.000000e+00 : f32
    %1602 = vector.broadcast %cst_580 : f32 to vector<16x1xf32>
    %1603 = vector.broadcast %cst_581 : f32 to vector<16x1xf32>
    %1604 = arith.select %1601, %1602, %1603 : vector<16x1xi1>, vector<16x1xf32>
    %cst_582 = arith.constant 0.000000e+00 : f32
    %cst_583 = arith.constant 1.500000e+01 : f32
    %1605 = vector.broadcast %cst_582 : f32 to vector<16x1xf32>
    %1606 = arith.maximumf %1605, %1596 : vector<16x1xf32>
    %1607 = vector.broadcast %cst_583 : f32 to vector<16x1xf32>
    %1608 = arith.minimumf %1607, %1606 : vector<16x1xf32>
    %1609 = vector.broadcast %1608 : vector<16x1xf32> to vector<16x256xf32>
    %1610 = vector.broadcast %1 : vector<1x256xf32> to vector<16x256xf32>
    %1611 = arith.subf %1609, %1610 : vector<16x256xf32>
    %1612 = math.absf %1611 : vector<16x256xf32>
    %cst_584 = arith.constant 1.000000e+00 : f32
    %1613 = vector.broadcast %cst_584 : f32 to vector<16x256xf32>
    %1614 = arith.subf %1613, %1612 : vector<16x256xf32>
    %cst_585 = arith.constant 0.000000e+00 : f32
    %1615 = vector.broadcast %cst_585 : f32 to vector<16x256xf32>
    %1616 = arith.maximumf %1614, %1615 : vector<16x256xf32>
    %1617 = vector.broadcast %1604 : vector<16x1xf32> to vector<16x256xf32>
    %1618 = arith.mulf %1617, %1616 : vector<16x256xf32>
    %1619 = arith.addf %1561, %1618 : vector<16x256xf32>
    %1620 = arith.mulf %1590, %1619 : vector<16x256xf32>
    %c160 = arith.constant 160 : index
    %c0_586 = arith.constant 0 : index
    %1621 = vector.load %arg10[%c160, %c0_586] : memref<256x256xf32, #tpu.memory_space<vmem>>, vector<16x256xf32>
    tpu.vector_store %arg10[%c160, %c0_586], %1620 {strides = array<i32>} : memref<256x256xf32, #tpu.memory_space<vmem>>, vector<16x256xf32>,
    %c44_i32 = arith.constant 44 : i32
    %1622 = arith.addi %4, %c44_i32 : i32
    %c0_i32_587 = arith.constant 0 : i32
    %1623 = arith.addi %1622, %c0_i32_587 : i32
    %1624 = arith.index_cast %1623 : i32 to index
    %1625 = memref.load %arg3[%1624] : memref<128xi32, #tpu.memory_space<smem>>
    %1626 = arith.sitofp %1625 : i32 to f32
    %cst_588 = arith.constant 2.500000e-01 : f32
    %1627 = arith.mulf %1626, %cst_588 : f32
    %c1_i32_589 = arith.constant 1 : i32
    %1628 = arith.addi %1622, %c1_i32_589 : i32
    %1629 = arith.index_cast %1628 : i32 to index
    %1630 = memref.load %arg3[%1629] : memref<128xi32, #tpu.memory_space<smem>>
    %1631 = arith.sitofp %1630 : i32 to f32
    %cst_590 = arith.constant 2.500000e-01 : f32
    %1632 = arith.mulf %1631, %cst_590 : f32
    %c2_i32_591 = arith.constant 2 : i32
    %1633 = arith.addi %1622, %c2_i32_591 : i32
    %1634 = arith.index_cast %1633 : i32 to index
    %1635 = memref.load %arg3[%1634] : memref<128xi32, #tpu.memory_space<smem>>
    %1636 = arith.sitofp %1635 : i32 to f32
    %cst_592 = arith.constant 2.500000e-01 : f32
    %1637 = arith.mulf %1636, %cst_592 : f32
    %c3_i32_593 = arith.constant 3 : i32
    %1638 = arith.addi %1622, %c3_i32_593 : i32
    %1639 = arith.index_cast %1638 : i32 to index
    %1640 = memref.load %arg3[%1639] : memref<128xi32, #tpu.memory_space<smem>>
    %1641 = arith.sitofp %1640 : i32 to f32
    %cst_594 = arith.constant 2.500000e-01 : f32
    %1642 = arith.mulf %1641, %cst_594 : f32
    %cst_595 = arith.constant 2.500000e-01 : f32
    %1643 = arith.mulf %1627, %cst_595 : f32
    %cst_596 = arith.constant 2.500000e-01 : f32
    %1644 = arith.mulf %1632, %cst_596 : f32
    %cst_597 = arith.constant 2.500000e-01 : f32
    %1645 = arith.mulf %1637, %cst_597 : f32
    %1646 = arith.subf %1645, %1643 : f32
    %cst_598 = arith.constant 1.000000e+00 : f32
    %1647 = arith.maximumf %1646, %cst_598 : f32
    %cst_599 = arith.constant 2.500000e-01 : f32
    %1648 = arith.mulf %1642, %cst_599 : f32
    %1649 = arith.subf %1648, %1644 : f32
    %cst_600 = arith.constant 1.000000e+00 : f32
    %1650 = arith.maximumf %1649, %cst_600 : f32
    %cst_601 = arith.constant 4.000000e+00 : f32
    %1651 = arith.divf %1647, %cst_601 : f32
    %cst_602 = arith.constant 4.000000e+00 : f32
    %1652 = arith.divf %1650, %cst_602 : f32
    %cst_603 = arith.constant 2.500000e-01 : f32
    %1653 = vector.broadcast %cst_603 : f32 to vector<16x1xf32>
    %1654 = arith.addf %2, %1653 : vector<16x1xf32>
    %1655 = vector.broadcast %1652 : f32 to vector<16x1xf32>
    %1656 = arith.mulf %1654, %1655 : vector<16x1xf32>
    %1657 = vector.broadcast %1644 : f32 to vector<16x1xf32>
    %1658 = arith.addf %1657, %1656 : vector<16x1xf32>
    %cst_604 = arith.constant -1.000000e+00 : f32
    %1659 = vector.broadcast %cst_604 : f32 to vector<16x1xf32>
    %1660 = arith.cmpf oge, %1658, %1659 : vector<16x1xf32>
    %cst_605 = arith.constant 1.600000e+01 : f32
    %1661 = vector.broadcast %cst_605 : f32 to vector<16x1xf32>
    %1662 = arith.cmpf ole, %1658, %1661 : vector<16x1xf32>
    %1663 = arith.andi %1660, %1662 : vector<16x1xi1>
    %cst_606 = arith.constant 5.000000e-01 : f32
    %cst_607 = arith.constant 0.000000e+00 : f32
    %1664 = vector.broadcast %cst_606 : f32 to vector<16x1xf32>
    %1665 = vector.broadcast %cst_607 : f32 to vector<16x1xf32>
    %1666 = arith.select %1663, %1664, %1665 : vector<16x1xi1>, vector<16x1xf32>
    %cst_608 = arith.constant 0.000000e+00 : f32
    %cst_609 = arith.constant 1.500000e+01 : f32
    %1667 = vector.broadcast %cst_608 : f32 to vector<16x1xf32>
    %1668 = arith.maximumf %1667, %1658 : vector<16x1xf32>
    %1669 = vector.broadcast %cst_609 : f32 to vector<16x1xf32>
    %1670 = arith.minimumf %1669, %1668 : vector<16x1xf32>
    %1671 = vector.broadcast %1670 : vector<16x1xf32> to vector<16x256xf32>
    %1672 = vector.broadcast %0 : vector<1x256xf32> to vector<16x256xf32>
    %1673 = arith.subf %1671, %1672 : vector<16x256xf32>
    %1674 = math.absf %1673 : vector<16x256xf32>
    %cst_610 = arith.constant 1.000000e+00 : f32
    %1675 = vector.broadcast %cst_610 : f32 to vector<16x256xf32>
    %1676 = arith.subf %1675, %1674 : vector<16x256xf32>
    %cst_611 = arith.constant 0.000000e+00 : f32
    %1677 = vector.broadcast %cst_611 : f32 to vector<16x256xf32>
    %1678 = arith.maximumf %1676, %1677 : vector<16x256xf32>
    %1679 = vector.broadcast %1666 : vector<16x1xf32> to vector<16x256xf32>
    %1680 = arith.mulf %1679, %1678 : vector<16x256xf32>
    %cst_612 = arith.constant 2.500000e-01 : f32
    %1681 = vector.broadcast %cst_612 : f32 to vector<16x1xf32>
    %1682 = arith.addf %3, %1681 : vector<16x1xf32>
    %1683 = vector.broadcast %1651 : f32 to vector<16x1xf32>
    %1684 = arith.mulf %1682, %1683 : vector<16x1xf32>
    %1685 = vector.broadcast %1643 : f32 to vector<16x1xf32>
    %1686 = arith.addf %1685, %1684 : vector<16x1xf32>
    %cst_613 = arith.constant -1.000000e+00 : f32
    %1687 = vector.broadcast %cst_613 : f32 to vector<16x1xf32>
    %1688 = arith.cmpf oge, %1686, %1687 : vector<16x1xf32>
    %cst_614 = arith.constant 1.600000e+01 : f32
    %1689 = vector.broadcast %cst_614 : f32 to vector<16x1xf32>
    %1690 = arith.cmpf ole, %1686, %1689 : vector<16x1xf32>
    %1691 = arith.andi %1688, %1690 : vector<16x1xi1>
    %cst_615 = arith.constant 5.000000e-01 : f32
    %cst_616 = arith.constant 0.000000e+00 : f32
    %1692 = vector.broadcast %cst_615 : f32 to vector<16x1xf32>
    %1693 = vector.broadcast %cst_616 : f32 to vector<16x1xf32>
    %1694 = arith.select %1691, %1692, %1693 : vector<16x1xi1>, vector<16x1xf32>
    %cst_617 = arith.constant 0.000000e+00 : f32
    %cst_618 = arith.constant 1.500000e+01 : f32
    %1695 = vector.broadcast %cst_617 : f32 to vector<16x1xf32>
    %1696 = arith.maximumf %1695, %1686 : vector<16x1xf32>
    %1697 = vector.broadcast %cst_618 : f32 to vector<16x1xf32>
    %1698 = arith.minimumf %1697, %1696 : vector<16x1xf32>
    %1699 = vector.broadcast %1698 : vector<16x1xf32> to vector<16x256xf32>
    %1700 = vector.broadcast %1 : vector<1x256xf32> to vector<16x256xf32>
    %1701 = arith.subf %1699, %1700 : vector<16x256xf32>
    %1702 = math.absf %1701 : vector<16x256xf32>
    %cst_619 = arith.constant 1.000000e+00 : f32
    %1703 = vector.broadcast %cst_619 : f32 to vector<16x256xf32>
    %1704 = arith.subf %1703, %1702 : vector<16x256xf32>
    %cst_620 = arith.constant 0.000000e+00 : f32
    %1705 = vector.broadcast %cst_620 : f32 to vector<16x256xf32>
    %1706 = arith.maximumf %1704, %1705 : vector<16x256xf32>
    %1707 = vector.broadcast %1694 : vector<16x1xf32> to vector<16x256xf32>
    %1708 = arith.mulf %1707, %1706 : vector<16x256xf32>
    %cst_621 = arith.constant 7.500000e-01 : f32
    %1709 = vector.broadcast %cst_621 : f32 to vector<16x1xf32>
    %1710 = arith.addf %2, %1709 : vector<16x1xf32>
    %1711 = vector.broadcast %1652 : f32 to vector<16x1xf32>
    %1712 = arith.mulf %1710, %1711 : vector<16x1xf32>
    %1713 = vector.broadcast %1644 : f32 to vector<16x1xf32>
    %1714 = arith.addf %1713, %1712 : vector<16x1xf32>
    %cst_622 = arith.constant -1.000000e+00 : f32
    %1715 = vector.broadcast %cst_622 : f32 to vector<16x1xf32>
    %1716 = arith.cmpf oge, %1714, %1715 : vector<16x1xf32>
    %cst_623 = arith.constant 1.600000e+01 : f32
    %1717 = vector.broadcast %cst_623 : f32 to vector<16x1xf32>
    %1718 = arith.cmpf ole, %1714, %1717 : vector<16x1xf32>
    %1719 = arith.andi %1716, %1718 : vector<16x1xi1>
    %cst_624 = arith.constant 5.000000e-01 : f32
    %cst_625 = arith.constant 0.000000e+00 : f32
    %1720 = vector.broadcast %cst_624 : f32 to vector<16x1xf32>
    %1721 = vector.broadcast %cst_625 : f32 to vector<16x1xf32>
    %1722 = arith.select %1719, %1720, %1721 : vector<16x1xi1>, vector<16x1xf32>
    %cst_626 = arith.constant 0.000000e+00 : f32
    %cst_627 = arith.constant 1.500000e+01 : f32
    %1723 = vector.broadcast %cst_626 : f32 to vector<16x1xf32>
    %1724 = arith.maximumf %1723, %1714 : vector<16x1xf32>
    %1725 = vector.broadcast %cst_627 : f32 to vector<16x1xf32>
    %1726 = arith.minimumf %1725, %1724 : vector<16x1xf32>
    %1727 = vector.broadcast %1726 : vector<16x1xf32> to vector<16x256xf32>
    %1728 = vector.broadcast %0 : vector<1x256xf32> to vector<16x256xf32>
    %1729 = arith.subf %1727, %1728 : vector<16x256xf32>
    %1730 = math.absf %1729 : vector<16x256xf32>
    %cst_628 = arith.constant 1.000000e+00 : f32
    %1731 = vector.broadcast %cst_628 : f32 to vector<16x256xf32>
    %1732 = arith.subf %1731, %1730 : vector<16x256xf32>
    %cst_629 = arith.constant 0.000000e+00 : f32
    %1733 = vector.broadcast %cst_629 : f32 to vector<16x256xf32>
    %1734 = arith.maximumf %1732, %1733 : vector<16x256xf32>
    %1735 = vector.broadcast %1722 : vector<16x1xf32> to vector<16x256xf32>
    %1736 = arith.mulf %1735, %1734 : vector<16x256xf32>
    %1737 = arith.addf %1680, %1736 : vector<16x256xf32>
    %cst_630 = arith.constant 7.500000e-01 : f32
    %1738 = vector.broadcast %cst_630 : f32 to vector<16x1xf32>
    %1739 = arith.addf %3, %1738 : vector<16x1xf32>
    %1740 = vector.broadcast %1651 : f32 to vector<16x1xf32>
    %1741 = arith.mulf %1739, %1740 : vector<16x1xf32>
    %1742 = vector.broadcast %1643 : f32 to vector<16x1xf32>
    %1743 = arith.addf %1742, %1741 : vector<16x1xf32>
    %cst_631 = arith.constant -1.000000e+00 : f32
    %1744 = vector.broadcast %cst_631 : f32 to vector<16x1xf32>
    %1745 = arith.cmpf oge, %1743, %1744 : vector<16x1xf32>
    %cst_632 = arith.constant 1.600000e+01 : f32
    %1746 = vector.broadcast %cst_632 : f32 to vector<16x1xf32>
    %1747 = arith.cmpf ole, %1743, %1746 : vector<16x1xf32>
    %1748 = arith.andi %1745, %1747 : vector<16x1xi1>
    %cst_633 = arith.constant 5.000000e-01 : f32
    %cst_634 = arith.constant 0.000000e+00 : f32
    %1749 = vector.broadcast %cst_633 : f32 to vector<16x1xf32>
    %1750 = vector.broadcast %cst_634 : f32 to vector<16x1xf32>
    %1751 = arith.select %1748, %1749, %1750 : vector<16x1xi1>, vector<16x1xf32>
    %cst_635 = arith.constant 0.000000e+00 : f32
    %cst_636 = arith.constant 1.500000e+01 : f32
    %1752 = vector.broadcast %cst_635 : f32 to vector<16x1xf32>
    %1753 = arith.maximumf %1752, %1743 : vector<16x1xf32>
    %1754 = vector.broadcast %cst_636 : f32 to vector<16x1xf32>
    %1755 = arith.minimumf %1754, %1753 : vector<16x1xf32>
    %1756 = vector.broadcast %1755 : vector<16x1xf32> to vector<16x256xf32>
    %1757 = vector.broadcast %1 : vector<1x256xf32> to vector<16x256xf32>
    %1758 = arith.subf %1756, %1757 : vector<16x256xf32>
    %1759 = math.absf %1758 : vector<16x256xf32>
    %cst_637 = arith.constant 1.000000e+00 : f32
    %1760 = vector.broadcast %cst_637 : f32 to vector<16x256xf32>
    %1761 = arith.subf %1760, %1759 : vector<16x256xf32>
    %cst_638 = arith.constant 0.000000e+00 : f32
    %1762 = vector.broadcast %cst_638 : f32 to vector<16x256xf32>
    %1763 = arith.maximumf %1761, %1762 : vector<16x256xf32>
    %1764 = vector.broadcast %1751 : vector<16x1xf32> to vector<16x256xf32>
    %1765 = arith.mulf %1764, %1763 : vector<16x256xf32>
    %1766 = arith.addf %1708, %1765 : vector<16x256xf32>
    %1767 = arith.mulf %1737, %1766 : vector<16x256xf32>
    %c176 = arith.constant 176 : index
    %c0_639 = arith.constant 0 : index
    %1768 = vector.load %arg10[%c176, %c0_639] : memref<256x256xf32, #tpu.memory_space<vmem>>, vector<16x256xf32>
    tpu.vector_store %arg10[%c176, %c0_639], %1767 {strides = array<i32>} : memref<256x256xf32, #tpu.memory_space<vmem>>, vector<16x256xf32>,
    %c48_i32 = arith.constant 48 : i32
    %1769 = arith.addi %4, %c48_i32 : i32
    %c0_i32_640 = arith.constant 0 : i32
    %1770 = arith.addi %1769, %c0_i32_640 : i32
    %1771 = arith.index_cast %1770 : i32 to index
    %1772 = memref.load %arg3[%1771] : memref<128xi32, #tpu.memory_space<smem>>
    %1773 = arith.sitofp %1772 : i32 to f32
    %cst_641 = arith.constant 2.500000e-01 : f32
    %1774 = arith.mulf %1773, %cst_641 : f32
    %c1_i32_642 = arith.constant 1 : i32
    %1775 = arith.addi %1769, %c1_i32_642 : i32
    %1776 = arith.index_cast %1775 : i32 to index
    %1777 = memref.load %arg3[%1776] : memref<128xi32, #tpu.memory_space<smem>>
    %1778 = arith.sitofp %1777 : i32 to f32
    %cst_643 = arith.constant 2.500000e-01 : f32
    %1779 = arith.mulf %1778, %cst_643 : f32
    %c2_i32_644 = arith.constant 2 : i32
    %1780 = arith.addi %1769, %c2_i32_644 : i32
    %1781 = arith.index_cast %1780 : i32 to index
    %1782 = memref.load %arg3[%1781] : memref<128xi32, #tpu.memory_space<smem>>
    %1783 = arith.sitofp %1782 : i32 to f32
    %cst_645 = arith.constant 2.500000e-01 : f32
    %1784 = arith.mulf %1783, %cst_645 : f32
    %c3_i32_646 = arith.constant 3 : i32
    %1785 = arith.addi %1769, %c3_i32_646 : i32
    %1786 = arith.index_cast %1785 : i32 to index
    %1787 = memref.load %arg3[%1786] : memref<128xi32, #tpu.memory_space<smem>>
    %1788 = arith.sitofp %1787 : i32 to f32
    %cst_647 = arith.constant 2.500000e-01 : f32
    %1789 = arith.mulf %1788, %cst_647 : f32
    %cst_648 = arith.constant 2.500000e-01 : f32
    %1790 = arith.mulf %1774, %cst_648 : f32
    %cst_649 = arith.constant 2.500000e-01 : f32
    %1791 = arith.mulf %1779, %cst_649 : f32
    %cst_650 = arith.constant 2.500000e-01 : f32
    %1792 = arith.mulf %1784, %cst_650 : f32
    %1793 = arith.subf %1792, %1790 : f32
    %cst_651 = arith.constant 1.000000e+00 : f32
    %1794 = arith.maximumf %1793, %cst_651 : f32
    %cst_652 = arith.constant 2.500000e-01 : f32
    %1795 = arith.mulf %1789, %cst_652 : f32
    %1796 = arith.subf %1795, %1791 : f32
    %cst_653 = arith.constant 1.000000e+00 : f32
    %1797 = arith.maximumf %1796, %cst_653 : f32
    %cst_654 = arith.constant 4.000000e+00 : f32
    %1798 = arith.divf %1794, %cst_654 : f32
    %cst_655 = arith.constant 4.000000e+00 : f32
    %1799 = arith.divf %1797, %cst_655 : f32
    %cst_656 = arith.constant 2.500000e-01 : f32
    %1800 = vector.broadcast %cst_656 : f32 to vector<16x1xf32>
    %1801 = arith.addf %2, %1800 : vector<16x1xf32>
    %1802 = vector.broadcast %1799 : f32 to vector<16x1xf32>
    %1803 = arith.mulf %1801, %1802 : vector<16x1xf32>
    %1804 = vector.broadcast %1791 : f32 to vector<16x1xf32>
    %1805 = arith.addf %1804, %1803 : vector<16x1xf32>
    %cst_657 = arith.constant -1.000000e+00 : f32
    %1806 = vector.broadcast %cst_657 : f32 to vector<16x1xf32>
    %1807 = arith.cmpf oge, %1805, %1806 : vector<16x1xf32>
    %cst_658 = arith.constant 1.600000e+01 : f32
    %1808 = vector.broadcast %cst_658 : f32 to vector<16x1xf32>
    %1809 = arith.cmpf ole, %1805, %1808 : vector<16x1xf32>
    %1810 = arith.andi %1807, %1809 : vector<16x1xi1>
    %cst_659 = arith.constant 5.000000e-01 : f32
    %cst_660 = arith.constant 0.000000e+00 : f32
    %1811 = vector.broadcast %cst_659 : f32 to vector<16x1xf32>
    %1812 = vector.broadcast %cst_660 : f32 to vector<16x1xf32>
    %1813 = arith.select %1810, %1811, %1812 : vector<16x1xi1>, vector<16x1xf32>
    %cst_661 = arith.constant 0.000000e+00 : f32
    %cst_662 = arith.constant 1.500000e+01 : f32
    %1814 = vector.broadcast %cst_661 : f32 to vector<16x1xf32>
    %1815 = arith.maximumf %1814, %1805 : vector<16x1xf32>
    %1816 = vector.broadcast %cst_662 : f32 to vector<16x1xf32>
    %1817 = arith.minimumf %1816, %1815 : vector<16x1xf32>
    %1818 = vector.broadcast %1817 : vector<16x1xf32> to vector<16x256xf32>
    %1819 = vector.broadcast %0 : vector<1x256xf32> to vector<16x256xf32>
    %1820 = arith.subf %1818, %1819 : vector<16x256xf32>
    %1821 = math.absf %1820 : vector<16x256xf32>
    %cst_663 = arith.constant 1.000000e+00 : f32
    %1822 = vector.broadcast %cst_663 : f32 to vector<16x256xf32>
    %1823 = arith.subf %1822, %1821 : vector<16x256xf32>
    %cst_664 = arith.constant 0.000000e+00 : f32
    %1824 = vector.broadcast %cst_664 : f32 to vector<16x256xf32>
    %1825 = arith.maximumf %1823, %1824 : vector<16x256xf32>
    %1826 = vector.broadcast %1813 : vector<16x1xf32> to vector<16x256xf32>
    %1827 = arith.mulf %1826, %1825 : vector<16x256xf32>
    %cst_665 = arith.constant 2.500000e-01 : f32
    %1828 = vector.broadcast %cst_665 : f32 to vector<16x1xf32>
    %1829 = arith.addf %3, %1828 : vector<16x1xf32>
    %1830 = vector.broadcast %1798 : f32 to vector<16x1xf32>
    %1831 = arith.mulf %1829, %1830 : vector<16x1xf32>
    %1832 = vector.broadcast %1790 : f32 to vector<16x1xf32>
    %1833 = arith.addf %1832, %1831 : vector<16x1xf32>
    %cst_666 = arith.constant -1.000000e+00 : f32
    %1834 = vector.broadcast %cst_666 : f32 to vector<16x1xf32>
    %1835 = arith.cmpf oge, %1833, %1834 : vector<16x1xf32>
    %cst_667 = arith.constant 1.600000e+01 : f32
    %1836 = vector.broadcast %cst_667 : f32 to vector<16x1xf32>
    %1837 = arith.cmpf ole, %1833, %1836 : vector<16x1xf32>
    %1838 = arith.andi %1835, %1837 : vector<16x1xi1>
    %cst_668 = arith.constant 5.000000e-01 : f32
    %cst_669 = arith.constant 0.000000e+00 : f32
    %1839 = vector.broadcast %cst_668 : f32 to vector<16x1xf32>
    %1840 = vector.broadcast %cst_669 : f32 to vector<16x1xf32>
    %1841 = arith.select %1838, %1839, %1840 : vector<16x1xi1>, vector<16x1xf32>
    %cst_670 = arith.constant 0.000000e+00 : f32
    %cst_671 = arith.constant 1.500000e+01 : f32
    %1842 = vector.broadcast %cst_670 : f32 to vector<16x1xf32>
    %1843 = arith.maximumf %1842, %1833 : vector<16x1xf32>
    %1844 = vector.broadcast %cst_671 : f32 to vector<16x1xf32>
    %1845 = arith.minimumf %1844, %1843 : vector<16x1xf32>
    %1846 = vector.broadcast %1845 : vector<16x1xf32> to vector<16x256xf32>
    %1847 = vector.broadcast %1 : vector<1x256xf32> to vector<16x256xf32>
    %1848 = arith.subf %1846, %1847 : vector<16x256xf32>
    %1849 = math.absf %1848 : vector<16x256xf32>
    %cst_672 = arith.constant 1.000000e+00 : f32
    %1850 = vector.broadcast %cst_672 : f32 to vector<16x256xf32>
    %1851 = arith.subf %1850, %1849 : vector<16x256xf32>
    %cst_673 = arith.constant 0.000000e+00 : f32
    %1852 = vector.broadcast %cst_673 : f32 to vector<16x256xf32>
    %1853 = arith.maximumf %1851, %1852 : vector<16x256xf32>
    %1854 = vector.broadcast %1841 : vector<16x1xf32> to vector<16x256xf32>
    %1855 = arith.mulf %1854, %1853 : vector<16x256xf32>
    %cst_674 = arith.constant 7.500000e-01 : f32
    %1856 = vector.broadcast %cst_674 : f32 to vector<16x1xf32>
    %1857 = arith.addf %2, %1856 : vector<16x1xf32>
    %1858 = vector.broadcast %1799 : f32 to vector<16x1xf32>
    %1859 = arith.mulf %1857, %1858 : vector<16x1xf32>
    %1860 = vector.broadcast %1791 : f32 to vector<16x1xf32>
    %1861 = arith.addf %1860, %1859 : vector<16x1xf32>
    %cst_675 = arith.constant -1.000000e+00 : f32
    %1862 = vector.broadcast %cst_675 : f32 to vector<16x1xf32>
    %1863 = arith.cmpf oge, %1861, %1862 : vector<16x1xf32>
    %cst_676 = arith.constant 1.600000e+01 : f32
    %1864 = vector.broadcast %cst_676 : f32 to vector<16x1xf32>
    %1865 = arith.cmpf ole, %1861, %1864 : vector<16x1xf32>
    %1866 = arith.andi %1863, %1865 : vector<16x1xi1>
    %cst_677 = arith.constant 5.000000e-01 : f32
    %cst_678 = arith.constant 0.000000e+00 : f32
    %1867 = vector.broadcast %cst_677 : f32 to vector<16x1xf32>
    %1868 = vector.broadcast %cst_678 : f32 to vector<16x1xf32>
    %1869 = arith.select %1866, %1867, %1868 : vector<16x1xi1>, vector<16x1xf32>
    %cst_679 = arith.constant 0.000000e+00 : f32
    %cst_680 = arith.constant 1.500000e+01 : f32
    %1870 = vector.broadcast %cst_679 : f32 to vector<16x1xf32>
    %1871 = arith.maximumf %1870, %1861 : vector<16x1xf32>
    %1872 = vector.broadcast %cst_680 : f32 to vector<16x1xf32>
    %1873 = arith.minimumf %1872, %1871 : vector<16x1xf32>
    %1874 = vector.broadcast %1873 : vector<16x1xf32> to vector<16x256xf32>
    %1875 = vector.broadcast %0 : vector<1x256xf32> to vector<16x256xf32>
    %1876 = arith.subf %1874, %1875 : vector<16x256xf32>
    %1877 = math.absf %1876 : vector<16x256xf32>
    %cst_681 = arith.constant 1.000000e+00 : f32
    %1878 = vector.broadcast %cst_681 : f32 to vector<16x256xf32>
    %1879 = arith.subf %1878, %1877 : vector<16x256xf32>
    %cst_682 = arith.constant 0.000000e+00 : f32
    %1880 = vector.broadcast %cst_682 : f32 to vector<16x256xf32>
    %1881 = arith.maximumf %1879, %1880 : vector<16x256xf32>
    %1882 = vector.broadcast %1869 : vector<16x1xf32> to vector<16x256xf32>
    %1883 = arith.mulf %1882, %1881 : vector<16x256xf32>
    %1884 = arith.addf %1827, %1883 : vector<16x256xf32>
    %cst_683 = arith.constant 7.500000e-01 : f32
    %1885 = vector.broadcast %cst_683 : f32 to vector<16x1xf32>
    %1886 = arith.addf %3, %1885 : vector<16x1xf32>
    %1887 = vector.broadcast %1798 : f32 to vector<16x1xf32>
    %1888 = arith.mulf %1886, %1887 : vector<16x1xf32>
    %1889 = vector.broadcast %1790 : f32 to vector<16x1xf32>
    %1890 = arith.addf %1889, %1888 : vector<16x1xf32>
    %cst_684 = arith.constant -1.000000e+00 : f32
    %1891 = vector.broadcast %cst_684 : f32 to vector<16x1xf32>
    %1892 = arith.cmpf oge, %1890, %1891 : vector<16x1xf32>
    %cst_685 = arith.constant 1.600000e+01 : f32
    %1893 = vector.broadcast %cst_685 : f32 to vector<16x1xf32>
    %1894 = arith.cmpf ole, %1890, %1893 : vector<16x1xf32>
    %1895 = arith.andi %1892, %1894 : vector<16x1xi1>
    %cst_686 = arith.constant 5.000000e-01 : f32
    %cst_687 = arith.constant 0.000000e+00 : f32
    %1896 = vector.broadcast %cst_686 : f32 to vector<16x1xf32>
    %1897 = vector.broadcast %cst_687 : f32 to vector<16x1xf32>
    %1898 = arith.select %1895, %1896, %1897 : vector<16x1xi1>, vector<16x1xf32>
    %cst_688 = arith.constant 0.000000e+00 : f32
    %cst_689 = arith.constant 1.500000e+01 : f32
    %1899 = vector.broadcast %cst_688 : f32 to vector<16x1xf32>
    %1900 = arith.maximumf %1899, %1890 : vector<16x1xf32>
    %1901 = vector.broadcast %cst_689 : f32 to vector<16x1xf32>
    %1902 = arith.minimumf %1901, %1900 : vector<16x1xf32>
    %1903 = vector.broadcast %1902 : vector<16x1xf32> to vector<16x256xf32>
    %1904 = vector.broadcast %1 : vector<1x256xf32> to vector<16x256xf32>
    %1905 = arith.subf %1903, %1904 : vector<16x256xf32>
    %1906 = math.absf %1905 : vector<16x256xf32>
    %cst_690 = arith.constant 1.000000e+00 : f32
    %1907 = vector.broadcast %cst_690 : f32 to vector<16x256xf32>
    %1908 = arith.subf %1907, %1906 : vector<16x256xf32>
    %cst_691 = arith.constant 0.000000e+00 : f32
    %1909 = vector.broadcast %cst_691 : f32 to vector<16x256xf32>
    %1910 = arith.maximumf %1908, %1909 : vector<16x256xf32>
    %1911 = vector.broadcast %1898 : vector<16x1xf32> to vector<16x256xf32>
    %1912 = arith.mulf %1911, %1910 : vector<16x256xf32>
    %1913 = arith.addf %1855, %1912 : vector<16x256xf32>
    %1914 = arith.mulf %1884, %1913 : vector<16x256xf32>
    %c192 = arith.constant 192 : index
    %c0_692 = arith.constant 0 : index
    %1915 = vector.load %arg10[%c192, %c0_692] : memref<256x256xf32, #tpu.memory_space<vmem>>, vector<16x256xf32>
    tpu.vector_store %arg10[%c192, %c0_692], %1914 {strides = array<i32>} : memref<256x256xf32, #tpu.memory_space<vmem>>, vector<16x256xf32>,
    %c52_i32 = arith.constant 52 : i32
    %1916 = arith.addi %4, %c52_i32 : i32
    %c0_i32_693 = arith.constant 0 : i32
    %1917 = arith.addi %1916, %c0_i32_693 : i32
    %1918 = arith.index_cast %1917 : i32 to index
    %1919 = memref.load %arg3[%1918] : memref<128xi32, #tpu.memory_space<smem>>
    %1920 = arith.sitofp %1919 : i32 to f32
    %cst_694 = arith.constant 2.500000e-01 : f32
    %1921 = arith.mulf %1920, %cst_694 : f32
    %c1_i32_695 = arith.constant 1 : i32
    %1922 = arith.addi %1916, %c1_i32_695 : i32
    %1923 = arith.index_cast %1922 : i32 to index
    %1924 = memref.load %arg3[%1923] : memref<128xi32, #tpu.memory_space<smem>>
    %1925 = arith.sitofp %1924 : i32 to f32
    %cst_696 = arith.constant 2.500000e-01 : f32
    %1926 = arith.mulf %1925, %cst_696 : f32
    %c2_i32_697 = arith.constant 2 : i32
    %1927 = arith.addi %1916, %c2_i32_697 : i32
    %1928 = arith.index_cast %1927 : i32 to index
    %1929 = memref.load %arg3[%1928] : memref<128xi32, #tpu.memory_space<smem>>
    %1930 = arith.sitofp %1929 : i32 to f32
    %cst_698 = arith.constant 2.500000e-01 : f32
    %1931 = arith.mulf %1930, %cst_698 : f32
    %c3_i32_699 = arith.constant 3 : i32
    %1932 = arith.addi %1916, %c3_i32_699 : i32
    %1933 = arith.index_cast %1932 : i32 to index
    %1934 = memref.load %arg3[%1933] : memref<128xi32, #tpu.memory_space<smem>>
    %1935 = arith.sitofp %1934 : i32 to f32
    %cst_700 = arith.constant 2.500000e-01 : f32
    %1936 = arith.mulf %1935, %cst_700 : f32
    %cst_701 = arith.constant 2.500000e-01 : f32
    %1937 = arith.mulf %1921, %cst_701 : f32
    %cst_702 = arith.constant 2.500000e-01 : f32
    %1938 = arith.mulf %1926, %cst_702 : f32
    %cst_703 = arith.constant 2.500000e-01 : f32
    %1939 = arith.mulf %1931, %cst_703 : f32
    %1940 = arith.subf %1939, %1937 : f32
    %cst_704 = arith.constant 1.000000e+00 : f32
    %1941 = arith.maximumf %1940, %cst_704 : f32
    %cst_705 = arith.constant 2.500000e-01 : f32
    %1942 = arith.mulf %1936, %cst_705 : f32
    %1943 = arith.subf %1942, %1938 : f32
    %cst_706 = arith.constant 1.000000e+00 : f32
    %1944 = arith.maximumf %1943, %cst_706 : f32
    %cst_707 = arith.constant 4.000000e+00 : f32
    %1945 = arith.divf %1941, %cst_707 : f32
    %cst_708 = arith.constant 4.000000e+00 : f32
    %1946 = arith.divf %1944, %cst_708 : f32
    %cst_709 = arith.constant 2.500000e-01 : f32
    %1947 = vector.broadcast %cst_709 : f32 to vector<16x1xf32>
    %1948 = arith.addf %2, %1947 : vector<16x1xf32>
    %1949 = vector.broadcast %1946 : f32 to vector<16x1xf32>
    %1950 = arith.mulf %1948, %1949 : vector<16x1xf32>
    %1951 = vector.broadcast %1938 : f32 to vector<16x1xf32>
    %1952 = arith.addf %1951, %1950 : vector<16x1xf32>
    %cst_710 = arith.constant -1.000000e+00 : f32
    %1953 = vector.broadcast %cst_710 : f32 to vector<16x1xf32>
    %1954 = arith.cmpf oge, %1952, %1953 : vector<16x1xf32>
    %cst_711 = arith.constant 1.600000e+01 : f32
    %1955 = vector.broadcast %cst_711 : f32 to vector<16x1xf32>
    %1956 = arith.cmpf ole, %1952, %1955 : vector<16x1xf32>
    %1957 = arith.andi %1954, %1956 : vector<16x1xi1>
    %cst_712 = arith.constant 5.000000e-01 : f32
    %cst_713 = arith.constant 0.000000e+00 : f32
    %1958 = vector.broadcast %cst_712 : f32 to vector<16x1xf32>
    %1959 = vector.broadcast %cst_713 : f32 to vector<16x1xf32>
    %1960 = arith.select %1957, %1958, %1959 : vector<16x1xi1>, vector<16x1xf32>
    %cst_714 = arith.constant 0.000000e+00 : f32
    %cst_715 = arith.constant 1.500000e+01 : f32
    %1961 = vector.broadcast %cst_714 : f32 to vector<16x1xf32>
    %1962 = arith.maximumf %1961, %1952 : vector<16x1xf32>
    %1963 = vector.broadcast %cst_715 : f32 to vector<16x1xf32>
    %1964 = arith.minimumf %1963, %1962 : vector<16x1xf32>
    %1965 = vector.broadcast %1964 : vector<16x1xf32> to vector<16x256xf32>
    %1966 = vector.broadcast %0 : vector<1x256xf32> to vector<16x256xf32>
    %1967 = arith.subf %1965, %1966 : vector<16x256xf32>
    %1968 = math.absf %1967 : vector<16x256xf32>
    %cst_716 = arith.constant 1.000000e+00 : f32
    %1969 = vector.broadcast %cst_716 : f32 to vector<16x256xf32>
    %1970 = arith.subf %1969, %1968 : vector<16x256xf32>
    %cst_717 = arith.constant 0.000000e+00 : f32
    %1971 = vector.broadcast %cst_717 : f32 to vector<16x256xf32>
    %1972 = arith.maximumf %1970, %1971 : vector<16x256xf32>
    %1973 = vector.broadcast %1960 : vector<16x1xf32> to vector<16x256xf32>
    %1974 = arith.mulf %1973, %1972 : vector<16x256xf32>
    %cst_718 = arith.constant 2.500000e-01 : f32
    %1975 = vector.broadcast %cst_718 : f32 to vector<16x1xf32>
    %1976 = arith.addf %3, %1975 : vector<16x1xf32>
    %1977 = vector.broadcast %1945 : f32 to vector<16x1xf32>
    %1978 = arith.mulf %1976, %1977 : vector<16x1xf32>
    %1979 = vector.broadcast %1937 : f32 to vector<16x1xf32>
    %1980 = arith.addf %1979, %1978 : vector<16x1xf32>
    %cst_719 = arith.constant -1.000000e+00 : f32
    %1981 = vector.broadcast %cst_719 : f32 to vector<16x1xf32>
    %1982 = arith.cmpf oge, %1980, %1981 : vector<16x1xf32>
    %cst_720 = arith.constant 1.600000e+01 : f32
    %1983 = vector.broadcast %cst_720 : f32 to vector<16x1xf32>
    %1984 = arith.cmpf ole, %1980, %1983 : vector<16x1xf32>
    %1985 = arith.andi %1982, %1984 : vector<16x1xi1>
    %cst_721 = arith.constant 5.000000e-01 : f32
    %cst_722 = arith.constant 0.000000e+00 : f32
    %1986 = vector.broadcast %cst_721 : f32 to vector<16x1xf32>
    %1987 = vector.broadcast %cst_722 : f32 to vector<16x1xf32>
    %1988 = arith.select %1985, %1986, %1987 : vector<16x1xi1>, vector<16x1xf32>
    %cst_723 = arith.constant 0.000000e+00 : f32
    %cst_724 = arith.constant 1.500000e+01 : f32
    %1989 = vector.broadcast %cst_723 : f32 to vector<16x1xf32>
    %1990 = arith.maximumf %1989, %1980 : vector<16x1xf32>
    %1991 = vector.broadcast %cst_724 : f32 to vector<16x1xf32>
    %1992 = arith.minimumf %1991, %1990 : vector<16x1xf32>
    %1993 = vector.broadcast %1992 : vector<16x1xf32> to vector<16x256xf32>
    %1994 = vector.broadcast %1 : vector<1x256xf32> to vector<16x256xf32>
    %1995 = arith.subf %1993, %1994 : vector<16x256xf32>
    %1996 = math.absf %1995 : vector<16x256xf32>
    %cst_725 = arith.constant 1.000000e+00 : f32
    %1997 = vector.broadcast %cst_725 : f32 to vector<16x256xf32>
    %1998 = arith.subf %1997, %1996 : vector<16x256xf32>
    %cst_726 = arith.constant 0.000000e+00 : f32
    %1999 = vector.broadcast %cst_726 : f32 to vector<16x256xf32>
    %2000 = arith.maximumf %1998, %1999 : vector<16x256xf32>
    %2001 = vector.broadcast %1988 : vector<16x1xf32> to vector<16x256xf32>
    %2002 = arith.mulf %2001, %2000 : vector<16x256xf32>
    %cst_727 = arith.constant 7.500000e-01 : f32
    %2003 = vector.broadcast %cst_727 : f32 to vector<16x1xf32>
    %2004 = arith.addf %2, %2003 : vector<16x1xf32>
    %2005 = vector.broadcast %1946 : f32 to vector<16x1xf32>
    %2006 = arith.mulf %2004, %2005 : vector<16x1xf32>
    %2007 = vector.broadcast %1938 : f32 to vector<16x1xf32>
    %2008 = arith.addf %2007, %2006 : vector<16x1xf32>
    %cst_728 = arith.constant -1.000000e+00 : f32
    %2009 = vector.broadcast %cst_728 : f32 to vector<16x1xf32>
    %2010 = arith.cmpf oge, %2008, %2009 : vector<16x1xf32>
    %cst_729 = arith.constant 1.600000e+01 : f32
    %2011 = vector.broadcast %cst_729 : f32 to vector<16x1xf32>
    %2012 = arith.cmpf ole, %2008, %2011 : vector<16x1xf32>
    %2013 = arith.andi %2010, %2012 : vector<16x1xi1>
    %cst_730 = arith.constant 5.000000e-01 : f32
    %cst_731 = arith.constant 0.000000e+00 : f32
    %2014 = vector.broadcast %cst_730 : f32 to vector<16x1xf32>
    %2015 = vector.broadcast %cst_731 : f32 to vector<16x1xf32>
    %2016 = arith.select %2013, %2014, %2015 : vector<16x1xi1>, vector<16x1xf32>
    %cst_732 = arith.constant 0.000000e+00 : f32
    %cst_733 = arith.constant 1.500000e+01 : f32
    %2017 = vector.broadcast %cst_732 : f32 to vector<16x1xf32>
    %2018 = arith.maximumf %2017, %2008 : vector<16x1xf32>
    %2019 = vector.broadcast %cst_733 : f32 to vector<16x1xf32>
    %2020 = arith.minimumf %2019, %2018 : vector<16x1xf32>
    %2021 = vector.broadcast %2020 : vector<16x1xf32> to vector<16x256xf32>
    %2022 = vector.broadcast %0 : vector<1x256xf32> to vector<16x256xf32>
    %2023 = arith.subf %2021, %2022 : vector<16x256xf32>
    %2024 = math.absf %2023 : vector<16x256xf32>
    %cst_734 = arith.constant 1.000000e+00 : f32
    %2025 = vector.broadcast %cst_734 : f32 to vector<16x256xf32>
    %2026 = arith.subf %2025, %2024 : vector<16x256xf32>
    %cst_735 = arith.constant 0.000000e+00 : f32
    %2027 = vector.broadcast %cst_735 : f32 to vector<16x256xf32>
    %2028 = arith.maximumf %2026, %2027 : vector<16x256xf32>
    %2029 = vector.broadcast %2016 : vector<16x1xf32> to vector<16x256xf32>
    %2030 = arith.mulf %2029, %2028 : vector<16x256xf32>
    %2031 = arith.addf %1974, %2030 : vector<16x256xf32>
    %cst_736 = arith.constant 7.500000e-01 : f32
    %2032 = vector.broadcast %cst_736 : f32 to vector<16x1xf32>
    %2033 = arith.addf %3, %2032 : vector<16x1xf32>
    %2034 = vector.broadcast %1945 : f32 to vector<16x1xf32>
    %2035 = arith.mulf %2033, %2034 : vector<16x1xf32>
    %2036 = vector.broadcast %1937 : f32 to vector<16x1xf32>
    %2037 = arith.addf %2036, %2035 : vector<16x1xf32>
    %cst_737 = arith.constant -1.000000e+00 : f32
    %2038 = vector.broadcast %cst_737 : f32 to vector<16x1xf32>
    %2039 = arith.cmpf oge, %2037, %2038 : vector<16x1xf32>
    %cst_738 = arith.constant 1.600000e+01 : f32
    %2040 = vector.broadcast %cst_738 : f32 to vector<16x1xf32>
    %2041 = arith.cmpf ole, %2037, %2040 : vector<16x1xf32>
    %2042 = arith.andi %2039, %2041 : vector<16x1xi1>
    %cst_739 = arith.constant 5.000000e-01 : f32
    %cst_740 = arith.constant 0.000000e+00 : f32
    %2043 = vector.broadcast %cst_739 : f32 to vector<16x1xf32>
    %2044 = vector.broadcast %cst_740 : f32 to vector<16x1xf32>
    %2045 = arith.select %2042, %2043, %2044 : vector<16x1xi1>, vector<16x1xf32>
    %cst_741 = arith.constant 0.000000e+00 : f32
    %cst_742 = arith.constant 1.500000e+01 : f32
    %2046 = vector.broadcast %cst_741 : f32 to vector<16x1xf32>
    %2047 = arith.maximumf %2046, %2037 : vector<16x1xf32>
    %2048 = vector.broadcast %cst_742 : f32 to vector<16x1xf32>
    %2049 = arith.minimumf %2048, %2047 : vector<16x1xf32>
    %2050 = vector.broadcast %2049 : vector<16x1xf32> to vector<16x256xf32>
    %2051 = vector.broadcast %1 : vector<1x256xf32> to vector<16x256xf32>
    %2052 = arith.subf %2050, %2051 : vector<16x256xf32>
    %2053 = math.absf %2052 : vector<16x256xf32>
    %cst_743 = arith.constant 1.000000e+00 : f32
    %2054 = vector.broadcast %cst_743 : f32 to vector<16x256xf32>
    %2055 = arith.subf %2054, %2053 : vector<16x256xf32>
    %cst_744 = arith.constant 0.000000e+00 : f32
    %2056 = vector.broadcast %cst_744 : f32 to vector<16x256xf32>
    %2057 = arith.maximumf %2055, %2056 : vector<16x256xf32>
    %2058 = vector.broadcast %2045 : vector<16x1xf32> to vector<16x256xf32>
    %2059 = arith.mulf %2058, %2057 : vector<16x256xf32>
    %2060 = arith.addf %2002, %2059 : vector<16x256xf32>
    %2061 = arith.mulf %2031, %2060 : vector<16x256xf32>
    %c208 = arith.constant 208 : index
    %c0_745 = arith.constant 0 : index
    %2062 = vector.load %arg10[%c208, %c0_745] : memref<256x256xf32, #tpu.memory_space<vmem>>, vector<16x256xf32>
    tpu.vector_store %arg10[%c208, %c0_745], %2061 {strides = array<i32>} : memref<256x256xf32, #tpu.memory_space<vmem>>, vector<16x256xf32>,
    %c56_i32 = arith.constant 56 : i32
    %2063 = arith.addi %4, %c56_i32 : i32
    %c0_i32_746 = arith.constant 0 : i32
    %2064 = arith.addi %2063, %c0_i32_746 : i32
    %2065 = arith.index_cast %2064 : i32 to index
    %2066 = memref.load %arg3[%2065] : memref<128xi32, #tpu.memory_space<smem>>
    %2067 = arith.sitofp %2066 : i32 to f32
    %cst_747 = arith.constant 2.500000e-01 : f32
    %2068 = arith.mulf %2067, %cst_747 : f32
    %c1_i32_748 = arith.constant 1 : i32
    %2069 = arith.addi %2063, %c1_i32_748 : i32
    %2070 = arith.index_cast %2069 : i32 to index
    %2071 = memref.load %arg3[%2070] : memref<128xi32, #tpu.memory_space<smem>>
    %2072 = arith.sitofp %2071 : i32 to f32
    %cst_749 = arith.constant 2.500000e-01 : f32
    %2073 = arith.mulf %2072, %cst_749 : f32
    %c2_i32_750 = arith.constant 2 : i32
    %2074 = arith.addi %2063, %c2_i32_750 : i32
    %2075 = arith.index_cast %2074 : i32 to index
    %2076 = memref.load %arg3[%2075] : memref<128xi32, #tpu.memory_space<smem>>
    %2077 = arith.sitofp %2076 : i32 to f32
    %cst_751 = arith.constant 2.500000e-01 : f32
    %2078 = arith.mulf %2077, %cst_751 : f32
    %c3_i32_752 = arith.constant 3 : i32
    %2079 = arith.addi %2063, %c3_i32_752 : i32
    %2080 = arith.index_cast %2079 : i32 to index
    %2081 = memref.load %arg3[%2080] : memref<128xi32, #tpu.memory_space<smem>>
    %2082 = arith.sitofp %2081 : i32 to f32
    %cst_753 = arith.constant 2.500000e-01 : f32
    %2083 = arith.mulf %2082, %cst_753 : f32
    %cst_754 = arith.constant 2.500000e-01 : f32
    %2084 = arith.mulf %2068, %cst_754 : f32
    %cst_755 = arith.constant 2.500000e-01 : f32
    %2085 = arith.mulf %2073, %cst_755 : f32
    %cst_756 = arith.constant 2.500000e-01 : f32
    %2086 = arith.mulf %2078, %cst_756 : f32
    %2087 = arith.subf %2086, %2084 : f32
    %cst_757 = arith.constant 1.000000e+00 : f32
    %2088 = arith.maximumf %2087, %cst_757 : f32
    %cst_758 = arith.constant 2.500000e-01 : f32
    %2089 = arith.mulf %2083, %cst_758 : f32
    %2090 = arith.subf %2089, %2085 : f32
    %cst_759 = arith.constant 1.000000e+00 : f32
    %2091 = arith.maximumf %2090, %cst_759 : f32
    %cst_760 = arith.constant 4.000000e+00 : f32
    %2092 = arith.divf %2088, %cst_760 : f32
    %cst_761 = arith.constant 4.000000e+00 : f32
    %2093 = arith.divf %2091, %cst_761 : f32
    %cst_762 = arith.constant 2.500000e-01 : f32
    %2094 = vector.broadcast %cst_762 : f32 to vector<16x1xf32>
    %2095 = arith.addf %2, %2094 : vector<16x1xf32>
    %2096 = vector.broadcast %2093 : f32 to vector<16x1xf32>
    %2097 = arith.mulf %2095, %2096 : vector<16x1xf32>
    %2098 = vector.broadcast %2085 : f32 to vector<16x1xf32>
    %2099 = arith.addf %2098, %2097 : vector<16x1xf32>
    %cst_763 = arith.constant -1.000000e+00 : f32
    %2100 = vector.broadcast %cst_763 : f32 to vector<16x1xf32>
    %2101 = arith.cmpf oge, %2099, %2100 : vector<16x1xf32>
    %cst_764 = arith.constant 1.600000e+01 : f32
    %2102 = vector.broadcast %cst_764 : f32 to vector<16x1xf32>
    %2103 = arith.cmpf ole, %2099, %2102 : vector<16x1xf32>
    %2104 = arith.andi %2101, %2103 : vector<16x1xi1>
    %cst_765 = arith.constant 5.000000e-01 : f32
    %cst_766 = arith.constant 0.000000e+00 : f32
    %2105 = vector.broadcast %cst_765 : f32 to vector<16x1xf32>
    %2106 = vector.broadcast %cst_766 : f32 to vector<16x1xf32>
    %2107 = arith.select %2104, %2105, %2106 : vector<16x1xi1>, vector<16x1xf32>
    %cst_767 = arith.constant 0.000000e+00 : f32
    %cst_768 = arith.constant 1.500000e+01 : f32
    %2108 = vector.broadcast %cst_767 : f32 to vector<16x1xf32>
    %2109 = arith.maximumf %2108, %2099 : vector<16x1xf32>
    %2110 = vector.broadcast %cst_768 : f32 to vector<16x1xf32>
    %2111 = arith.minimumf %2110, %2109 : vector<16x1xf32>
    %2112 = vector.broadcast %2111 : vector<16x1xf32> to vector<16x256xf32>
    %2113 = vector.broadcast %0 : vector<1x256xf32> to vector<16x256xf32>
    %2114 = arith.subf %2112, %2113 : vector<16x256xf32>
    %2115 = math.absf %2114 : vector<16x256xf32>
    %cst_769 = arith.constant 1.000000e+00 : f32
    %2116 = vector.broadcast %cst_769 : f32 to vector<16x256xf32>
    %2117 = arith.subf %2116, %2115 : vector<16x256xf32>
    %cst_770 = arith.constant 0.000000e+00 : f32
    %2118 = vector.broadcast %cst_770 : f32 to vector<16x256xf32>
    %2119 = arith.maximumf %2117, %2118 : vector<16x256xf32>
    %2120 = vector.broadcast %2107 : vector<16x1xf32> to vector<16x256xf32>
    %2121 = arith.mulf %2120, %2119 : vector<16x256xf32>
    %cst_771 = arith.constant 2.500000e-01 : f32
    %2122 = vector.broadcast %cst_771 : f32 to vector<16x1xf32>
    %2123 = arith.addf %3, %2122 : vector<16x1xf32>
    %2124 = vector.broadcast %2092 : f32 to vector<16x1xf32>
    %2125 = arith.mulf %2123, %2124 : vector<16x1xf32>
    %2126 = vector.broadcast %2084 : f32 to vector<16x1xf32>
    %2127 = arith.addf %2126, %2125 : vector<16x1xf32>
    %cst_772 = arith.constant -1.000000e+00 : f32
    %2128 = vector.broadcast %cst_772 : f32 to vector<16x1xf32>
    %2129 = arith.cmpf oge, %2127, %2128 : vector<16x1xf32>
    %cst_773 = arith.constant 1.600000e+01 : f32
    %2130 = vector.broadcast %cst_773 : f32 to vector<16x1xf32>
    %2131 = arith.cmpf ole, %2127, %2130 : vector<16x1xf32>
    %2132 = arith.andi %2129, %2131 : vector<16x1xi1>
    %cst_774 = arith.constant 5.000000e-01 : f32
    %cst_775 = arith.constant 0.000000e+00 : f32
    %2133 = vector.broadcast %cst_774 : f32 to vector<16x1xf32>
    %2134 = vector.broadcast %cst_775 : f32 to vector<16x1xf32>
    %2135 = arith.select %2132, %2133, %2134 : vector<16x1xi1>, vector<16x1xf32>
    %cst_776 = arith.constant 0.000000e+00 : f32
    %cst_777 = arith.constant 1.500000e+01 : f32
    %2136 = vector.broadcast %cst_776 : f32 to vector<16x1xf32>
    %2137 = arith.maximumf %2136, %2127 : vector<16x1xf32>
    %2138 = vector.broadcast %cst_777 : f32 to vector<16x1xf32>
    %2139 = arith.minimumf %2138, %2137 : vector<16x1xf32>
    %2140 = vector.broadcast %2139 : vector<16x1xf32> to vector<16x256xf32>
    %2141 = vector.broadcast %1 : vector<1x256xf32> to vector<16x256xf32>
    %2142 = arith.subf %2140, %2141 : vector<16x256xf32>
    %2143 = math.absf %2142 : vector<16x256xf32>
    %cst_778 = arith.constant 1.000000e+00 : f32
    %2144 = vector.broadcast %cst_778 : f32 to vector<16x256xf32>
    %2145 = arith.subf %2144, %2143 : vector<16x256xf32>
    %cst_779 = arith.constant 0.000000e+00 : f32
    %2146 = vector.broadcast %cst_779 : f32 to vector<16x256xf32>
    %2147 = arith.maximumf %2145, %2146 : vector<16x256xf32>
    %2148 = vector.broadcast %2135 : vector<16x1xf32> to vector<16x256xf32>
    %2149 = arith.mulf %2148, %2147 : vector<16x256xf32>
    %cst_780 = arith.constant 7.500000e-01 : f32
    %2150 = vector.broadcast %cst_780 : f32 to vector<16x1xf32>
    %2151 = arith.addf %2, %2150 : vector<16x1xf32>
    %2152 = vector.broadcast %2093 : f32 to vector<16x1xf32>
    %2153 = arith.mulf %2151, %2152 : vector<16x1xf32>
    %2154 = vector.broadcast %2085 : f32 to vector<16x1xf32>
    %2155 = arith.addf %2154, %2153 : vector<16x1xf32>
    %cst_781 = arith.constant -1.000000e+00 : f32
    %2156 = vector.broadcast %cst_781 : f32 to vector<16x1xf32>
    %2157 = arith.cmpf oge, %2155, %2156 : vector<16x1xf32>
    %cst_782 = arith.constant 1.600000e+01 : f32
    %2158 = vector.broadcast %cst_782 : f32 to vector<16x1xf32>
    %2159 = arith.cmpf ole, %2155, %2158 : vector<16x1xf32>
    %2160 = arith.andi %2157, %2159 : vector<16x1xi1>
    %cst_783 = arith.constant 5.000000e-01 : f32
    %cst_784 = arith.constant 0.000000e+00 : f32
    %2161 = vector.broadcast %cst_783 : f32 to vector<16x1xf32>
    %2162 = vector.broadcast %cst_784 : f32 to vector<16x1xf32>
    %2163 = arith.select %2160, %2161, %2162 : vector<16x1xi1>, vector<16x1xf32>
    %cst_785 = arith.constant 0.000000e+00 : f32
    %cst_786 = arith.constant 1.500000e+01 : f32
    %2164 = vector.broadcast %cst_785 : f32 to vector<16x1xf32>
    %2165 = arith.maximumf %2164, %2155 : vector<16x1xf32>
    %2166 = vector.broadcast %cst_786 : f32 to vector<16x1xf32>
    %2167 = arith.minimumf %2166, %2165 : vector<16x1xf32>
    %2168 = vector.broadcast %2167 : vector<16x1xf32> to vector<16x256xf32>
    %2169 = vector.broadcast %0 : vector<1x256xf32> to vector<16x256xf32>
    %2170 = arith.subf %2168, %2169 : vector<16x256xf32>
    %2171 = math.absf %2170 : vector<16x256xf32>
    %cst_787 = arith.constant 1.000000e+00 : f32
    %2172 = vector.broadcast %cst_787 : f32 to vector<16x256xf32>
    %2173 = arith.subf %2172, %2171 : vector<16x256xf32>
    %cst_788 = arith.constant 0.000000e+00 : f32
    %2174 = vector.broadcast %cst_788 : f32 to vector<16x256xf32>
    %2175 = arith.maximumf %2173, %2174 : vector<16x256xf32>
    %2176 = vector.broadcast %2163 : vector<16x1xf32> to vector<16x256xf32>
    %2177 = arith.mulf %2176, %2175 : vector<16x256xf32>
    %2178 = arith.addf %2121, %2177 : vector<16x256xf32>
    %cst_789 = arith.constant 7.500000e-01 : f32
    %2179 = vector.broadcast %cst_789 : f32 to vector<16x1xf32>
    %2180 = arith.addf %3, %2179 : vector<16x1xf32>
    %2181 = vector.broadcast %2092 : f32 to vector<16x1xf32>
    %2182 = arith.mulf %2180, %2181 : vector<16x1xf32>
    %2183 = vector.broadcast %2084 : f32 to vector<16x1xf32>
    %2184 = arith.addf %2183, %2182 : vector<16x1xf32>
    %cst_790 = arith.constant -1.000000e+00 : f32
    %2185 = vector.broadcast %cst_790 : f32 to vector<16x1xf32>
    %2186 = arith.cmpf oge, %2184, %2185 : vector<16x1xf32>
    %cst_791 = arith.constant 1.600000e+01 : f32
    %2187 = vector.broadcast %cst_791 : f32 to vector<16x1xf32>
    %2188 = arith.cmpf ole, %2184, %2187 : vector<16x1xf32>
    %2189 = arith.andi %2186, %2188 : vector<16x1xi1>
    %cst_792 = arith.constant 5.000000e-01 : f32
    %cst_793 = arith.constant 0.000000e+00 : f32
    %2190 = vector.broadcast %cst_792 : f32 to vector<16x1xf32>
    %2191 = vector.broadcast %cst_793 : f32 to vector<16x1xf32>
    %2192 = arith.select %2189, %2190, %2191 : vector<16x1xi1>, vector<16x1xf32>
    %cst_794 = arith.constant 0.000000e+00 : f32
    %cst_795 = arith.constant 1.500000e+01 : f32
    %2193 = vector.broadcast %cst_794 : f32 to vector<16x1xf32>
    %2194 = arith.maximumf %2193, %2184 : vector<16x1xf32>
    %2195 = vector.broadcast %cst_795 : f32 to vector<16x1xf32>
    %2196 = arith.minimumf %2195, %2194 : vector<16x1xf32>
    %2197 = vector.broadcast %2196 : vector<16x1xf32> to vector<16x256xf32>
    %2198 = vector.broadcast %1 : vector<1x256xf32> to vector<16x256xf32>
    %2199 = arith.subf %2197, %2198 : vector<16x256xf32>
    %2200 = math.absf %2199 : vector<16x256xf32>
    %cst_796 = arith.constant 1.000000e+00 : f32
    %2201 = vector.broadcast %cst_796 : f32 to vector<16x256xf32>
    %2202 = arith.subf %2201, %2200 : vector<16x256xf32>
    %cst_797 = arith.constant 0.000000e+00 : f32
    %2203 = vector.broadcast %cst_797 : f32 to vector<16x256xf32>
    %2204 = arith.maximumf %2202, %2203 : vector<16x256xf32>
    %2205 = vector.broadcast %2192 : vector<16x1xf32> to vector<16x256xf32>
    %2206 = arith.mulf %2205, %2204 : vector<16x256xf32>
    %2207 = arith.addf %2149, %2206 : vector<16x256xf32>
    %2208 = arith.mulf %2178, %2207 : vector<16x256xf32>
    %c224 = arith.constant 224 : index
    %c0_798 = arith.constant 0 : index
    %2209 = vector.load %arg10[%c224, %c0_798] : memref<256x256xf32, #tpu.memory_space<vmem>>, vector<16x256xf32>
    tpu.vector_store %arg10[%c224, %c0_798], %2208 {strides = array<i32>} : memref<256x256xf32, #tpu.memory_space<vmem>>, vector<16x256xf32>,
    %c60_i32 = arith.constant 60 : i32
    %2210 = arith.addi %4, %c60_i32 : i32
    %c0_i32_799 = arith.constant 0 : i32
    %2211 = arith.addi %2210, %c0_i32_799 : i32
    %2212 = arith.index_cast %2211 : i32 to index
    %2213 = memref.load %arg3[%2212] : memref<128xi32, #tpu.memory_space<smem>>
    %2214 = arith.sitofp %2213 : i32 to f32
    %cst_800 = arith.constant 2.500000e-01 : f32
    %2215 = arith.mulf %2214, %cst_800 : f32
    %c1_i32_801 = arith.constant 1 : i32
    %2216 = arith.addi %2210, %c1_i32_801 : i32
    %2217 = arith.index_cast %2216 : i32 to index
    %2218 = memref.load %arg3[%2217] : memref<128xi32, #tpu.memory_space<smem>>
    %2219 = arith.sitofp %2218 : i32 to f32
    %cst_802 = arith.constant 2.500000e-01 : f32
    %2220 = arith.mulf %2219, %cst_802 : f32
    %c2_i32_803 = arith.constant 2 : i32
    %2221 = arith.addi %2210, %c2_i32_803 : i32
    %2222 = arith.index_cast %2221 : i32 to index
    %2223 = memref.load %arg3[%2222] : memref<128xi32, #tpu.memory_space<smem>>
    %2224 = arith.sitofp %2223 : i32 to f32
    %cst_804 = arith.constant 2.500000e-01 : f32
    %2225 = arith.mulf %2224, %cst_804 : f32
    %c3_i32_805 = arith.constant 3 : i32
    %2226 = arith.addi %2210, %c3_i32_805 : i32
    %2227 = arith.index_cast %2226 : i32 to index
    %2228 = memref.load %arg3[%2227] : memref<128xi32, #tpu.memory_space<smem>>
    %2229 = arith.sitofp %2228 : i32 to f32
    %cst_806 = arith.constant 2.500000e-01 : f32
    %2230 = arith.mulf %2229, %cst_806 : f32
    %cst_807 = arith.constant 2.500000e-01 : f32
    %2231 = arith.mulf %2215, %cst_807 : f32
    %cst_808 = arith.constant 2.500000e-01 : f32
    %2232 = arith.mulf %2220, %cst_808 : f32
    %cst_809 = arith.constant 2.500000e-01 : f32
    %2233 = arith.mulf %2225, %cst_809 : f32
    %2234 = arith.subf %2233, %2231 : f32
    %cst_810 = arith.constant 1.000000e+00 : f32
    %2235 = arith.maximumf %2234, %cst_810 : f32
    %cst_811 = arith.constant 2.500000e-01 : f32
    %2236 = arith.mulf %2230, %cst_811 : f32
    %2237 = arith.subf %2236, %2232 : f32
    %cst_812 = arith.constant 1.000000e+00 : f32
    %2238 = arith.maximumf %2237, %cst_812 : f32
    %cst_813 = arith.constant 4.000000e+00 : f32
    %2239 = arith.divf %2235, %cst_813 : f32
    %cst_814 = arith.constant 4.000000e+00 : f32
    %2240 = arith.divf %2238, %cst_814 : f32
    %cst_815 = arith.constant 2.500000e-01 : f32
    %2241 = vector.broadcast %cst_815 : f32 to vector<16x1xf32>
    %2242 = arith.addf %2, %2241 : vector<16x1xf32>
    %2243 = vector.broadcast %2240 : f32 to vector<16x1xf32>
    %2244 = arith.mulf %2242, %2243 : vector<16x1xf32>
    %2245 = vector.broadcast %2232 : f32 to vector<16x1xf32>
    %2246 = arith.addf %2245, %2244 : vector<16x1xf32>
    %cst_816 = arith.constant -1.000000e+00 : f32
    %2247 = vector.broadcast %cst_816 : f32 to vector<16x1xf32>
    %2248 = arith.cmpf oge, %2246, %2247 : vector<16x1xf32>
    %cst_817 = arith.constant 1.600000e+01 : f32
    %2249 = vector.broadcast %cst_817 : f32 to vector<16x1xf32>
    %2250 = arith.cmpf ole, %2246, %2249 : vector<16x1xf32>
    %2251 = arith.andi %2248, %2250 : vector<16x1xi1>
    %cst_818 = arith.constant 5.000000e-01 : f32
    %cst_819 = arith.constant 0.000000e+00 : f32
    %2252 = vector.broadcast %cst_818 : f32 to vector<16x1xf32>
    %2253 = vector.broadcast %cst_819 : f32 to vector<16x1xf32>
    %2254 = arith.select %2251, %2252, %2253 : vector<16x1xi1>, vector<16x1xf32>
    %cst_820 = arith.constant 0.000000e+00 : f32
    %cst_821 = arith.constant 1.500000e+01 : f32
    %2255 = vector.broadcast %cst_820 : f32 to vector<16x1xf32>
    %2256 = arith.maximumf %2255, %2246 : vector<16x1xf32>
    %2257 = vector.broadcast %cst_821 : f32 to vector<16x1xf32>
    %2258 = arith.minimumf %2257, %2256 : vector<16x1xf32>
    %2259 = vector.broadcast %2258 : vector<16x1xf32> to vector<16x256xf32>
    %2260 = vector.broadcast %0 : vector<1x256xf32> to vector<16x256xf32>
    %2261 = arith.subf %2259, %2260 : vector<16x256xf32>
    %2262 = math.absf %2261 : vector<16x256xf32>
    %cst_822 = arith.constant 1.000000e+00 : f32
    %2263 = vector.broadcast %cst_822 : f32 to vector<16x256xf32>
    %2264 = arith.subf %2263, %2262 : vector<16x256xf32>
    %cst_823 = arith.constant 0.000000e+00 : f32
    %2265 = vector.broadcast %cst_823 : f32 to vector<16x256xf32>
    %2266 = arith.maximumf %2264, %2265 : vector<16x256xf32>
    %2267 = vector.broadcast %2254 : vector<16x1xf32> to vector<16x256xf32>
    %2268 = arith.mulf %2267, %2266 : vector<16x256xf32>
    %cst_824 = arith.constant 2.500000e-01 : f32
    %2269 = vector.broadcast %cst_824 : f32 to vector<16x1xf32>
    %2270 = arith.addf %3, %2269 : vector<16x1xf32>
    %2271 = vector.broadcast %2239 : f32 to vector<16x1xf32>
    %2272 = arith.mulf %2270, %2271 : vector<16x1xf32>
    %2273 = vector.broadcast %2231 : f32 to vector<16x1xf32>
    %2274 = arith.addf %2273, %2272 : vector<16x1xf32>
    %cst_825 = arith.constant -1.000000e+00 : f32
    %2275 = vector.broadcast %cst_825 : f32 to vector<16x1xf32>
    %2276 = arith.cmpf oge, %2274, %2275 : vector<16x1xf32>
    %cst_826 = arith.constant 1.600000e+01 : f32
    %2277 = vector.broadcast %cst_826 : f32 to vector<16x1xf32>
    %2278 = arith.cmpf ole, %2274, %2277 : vector<16x1xf32>
    %2279 = arith.andi %2276, %2278 : vector<16x1xi1>
    %cst_827 = arith.constant 5.000000e-01 : f32
    %cst_828 = arith.constant 0.000000e+00 : f32
    %2280 = vector.broadcast %cst_827 : f32 to vector<16x1xf32>
    %2281 = vector.broadcast %cst_828 : f32 to vector<16x1xf32>
    %2282 = arith.select %2279, %2280, %2281 : vector<16x1xi1>, vector<16x1xf32>
    %cst_829 = arith.constant 0.000000e+00 : f32
    %cst_830 = arith.constant 1.500000e+01 : f32
    %2283 = vector.broadcast %cst_829 : f32 to vector<16x1xf32>
    %2284 = arith.maximumf %2283, %2274 : vector<16x1xf32>
    %2285 = vector.broadcast %cst_830 : f32 to vector<16x1xf32>
    %2286 = arith.minimumf %2285, %2284 : vector<16x1xf32>
    %2287 = vector.broadcast %2286 : vector<16x1xf32> to vector<16x256xf32>
    %2288 = vector.broadcast %1 : vector<1x256xf32> to vector<16x256xf32>
    %2289 = arith.subf %2287, %2288 : vector<16x256xf32>
    %2290 = math.absf %2289 : vector<16x256xf32>
    %cst_831 = arith.constant 1.000000e+00 : f32
    %2291 = vector.broadcast %cst_831 : f32 to vector<16x256xf32>
    %2292 = arith.subf %2291, %2290 : vector<16x256xf32>
    %cst_832 = arith.constant 0.000000e+00 : f32
    %2293 = vector.broadcast %cst_832 : f32 to vector<16x256xf32>
    %2294 = arith.maximumf %2292, %2293 : vector<16x256xf32>
    %2295 = vector.broadcast %2282 : vector<16x1xf32> to vector<16x256xf32>
    %2296 = arith.mulf %2295, %2294 : vector<16x256xf32>
    %cst_833 = arith.constant 7.500000e-01 : f32
    %2297 = vector.broadcast %cst_833 : f32 to vector<16x1xf32>
    %2298 = arith.addf %2, %2297 : vector<16x1xf32>
    %2299 = vector.broadcast %2240 : f32 to vector<16x1xf32>
    %2300 = arith.mulf %2298, %2299 : vector<16x1xf32>
    %2301 = vector.broadcast %2232 : f32 to vector<16x1xf32>
    %2302 = arith.addf %2301, %2300 : vector<16x1xf32>
    %cst_834 = arith.constant -1.000000e+00 : f32
    %2303 = vector.broadcast %cst_834 : f32 to vector<16x1xf32>
    %2304 = arith.cmpf oge, %2302, %2303 : vector<16x1xf32>
    %cst_835 = arith.constant 1.600000e+01 : f32
    %2305 = vector.broadcast %cst_835 : f32 to vector<16x1xf32>
    %2306 = arith.cmpf ole, %2302, %2305 : vector<16x1xf32>
    %2307 = arith.andi %2304, %2306 : vector<16x1xi1>
    %cst_836 = arith.constant 5.000000e-01 : f32
    %cst_837 = arith.constant 0.000000e+00 : f32
    %2308 = vector.broadcast %cst_836 : f32 to vector<16x1xf32>
    %2309 = vector.broadcast %cst_837 : f32 to vector<16x1xf32>
    %2310 = arith.select %2307, %2308, %2309 : vector<16x1xi1>, vector<16x1xf32>
    %cst_838 = arith.constant 0.000000e+00 : f32
    %cst_839 = arith.constant 1.500000e+01 : f32
    %2311 = vector.broadcast %cst_838 : f32 to vector<16x1xf32>
    %2312 = arith.maximumf %2311, %2302 : vector<16x1xf32>
    %2313 = vector.broadcast %cst_839 : f32 to vector<16x1xf32>
    %2314 = arith.minimumf %2313, %2312 : vector<16x1xf32>
    %2315 = vector.broadcast %2314 : vector<16x1xf32> to vector<16x256xf32>
    %2316 = vector.broadcast %0 : vector<1x256xf32> to vector<16x256xf32>
    %2317 = arith.subf %2315, %2316 : vector<16x256xf32>
    %2318 = math.absf %2317 : vector<16x256xf32>
    %cst_840 = arith.constant 1.000000e+00 : f32
    %2319 = vector.broadcast %cst_840 : f32 to vector<16x256xf32>
    %2320 = arith.subf %2319, %2318 : vector<16x256xf32>
    %cst_841 = arith.constant 0.000000e+00 : f32
    %2321 = vector.broadcast %cst_841 : f32 to vector<16x256xf32>
    %2322 = arith.maximumf %2320, %2321 : vector<16x256xf32>
    %2323 = vector.broadcast %2310 : vector<16x1xf32> to vector<16x256xf32>
    %2324 = arith.mulf %2323, %2322 : vector<16x256xf32>
    %2325 = arith.addf %2268, %2324 : vector<16x256xf32>
    %cst_842 = arith.constant 7.500000e-01 : f32
    %2326 = vector.broadcast %cst_842 : f32 to vector<16x1xf32>
    %2327 = arith.addf %3, %2326 : vector<16x1xf32>
    %2328 = vector.broadcast %2239 : f32 to vector<16x1xf32>
    %2329 = arith.mulf %2327, %2328 : vector<16x1xf32>
    %2330 = vector.broadcast %2231 : f32 to vector<16x1xf32>
    %2331 = arith.addf %2330, %2329 : vector<16x1xf32>
    %cst_843 = arith.constant -1.000000e+00 : f32
    %2332 = vector.broadcast %cst_843 : f32 to vector<16x1xf32>
    %2333 = arith.cmpf oge, %2331, %2332 : vector<16x1xf32>
    %cst_844 = arith.constant 1.600000e+01 : f32
    %2334 = vector.broadcast %cst_844 : f32 to vector<16x1xf32>
    %2335 = arith.cmpf ole, %2331, %2334 : vector<16x1xf32>
    %2336 = arith.andi %2333, %2335 : vector<16x1xi1>
    %cst_845 = arith.constant 5.000000e-01 : f32
    %cst_846 = arith.constant 0.000000e+00 : f32
    %2337 = vector.broadcast %cst_845 : f32 to vector<16x1xf32>
    %2338 = vector.broadcast %cst_846 : f32 to vector<16x1xf32>
    %2339 = arith.select %2336, %2337, %2338 : vector<16x1xi1>, vector<16x1xf32>
    %cst_847 = arith.constant 0.000000e+00 : f32
    %cst_848 = arith.constant 1.500000e+01 : f32
    %2340 = vector.broadcast %cst_847 : f32 to vector<16x1xf32>
    %2341 = arith.maximumf %2340, %2331 : vector<16x1xf32>
    %2342 = vector.broadcast %cst_848 : f32 to vector<16x1xf32>
    %2343 = arith.minimumf %2342, %2341 : vector<16x1xf32>
    %2344 = vector.broadcast %2343 : vector<16x1xf32> to vector<16x256xf32>
    %2345 = vector.broadcast %1 : vector<1x256xf32> to vector<16x256xf32>
    %2346 = arith.subf %2344, %2345 : vector<16x256xf32>
    %2347 = math.absf %2346 : vector<16x256xf32>
    %cst_849 = arith.constant 1.000000e+00 : f32
    %2348 = vector.broadcast %cst_849 : f32 to vector<16x256xf32>
    %2349 = arith.subf %2348, %2347 : vector<16x256xf32>
    %cst_850 = arith.constant 0.000000e+00 : f32
    %2350 = vector.broadcast %cst_850 : f32 to vector<16x256xf32>
    %2351 = arith.maximumf %2349, %2350 : vector<16x256xf32>
    %2352 = vector.broadcast %2339 : vector<16x1xf32> to vector<16x256xf32>
    %2353 = arith.mulf %2352, %2351 : vector<16x256xf32>
    %2354 = arith.addf %2296, %2353 : vector<16x256xf32>
    %2355 = arith.mulf %2325, %2354 : vector<16x256xf32>
    %c240 = arith.constant 240 : index
    %c0_851 = arith.constant 0 : index
    %2356 = vector.load %arg10[%c240, %c0_851] : memref<256x256xf32, #tpu.memory_space<vmem>>, vector<16x256xf32>
    tpu.vector_store %arg10[%c240, %c0_851], %2355 {strides = array<i32>} : memref<256x256xf32, #tpu.memory_space<vmem>>, vector<16x256xf32>,
    %c0_852 = arith.constant 0 : index
    %c0_853 = arith.constant 0 : index
    %c0_854 = arith.constant 0 : index
    %2357 = vector.load %arg4[%c0_852, %c0_853, %c0_854] : memref<1x4x256xf32, #tpu.memory_space<vmem>>, vector<1x4x256xf32>
    %2358 = vector.shape_cast %2357 : vector<1x4x256xf32> to vector<4x256xf32>
    %c0_855 = arith.constant 0 : index
    %c0_856 = arith.constant 0 : index
    %2359 = vector.load %arg10[%c0_855, %c0_856] : memref<256x256xf32, #tpu.memory_space<vmem>>, vector<256x256xf32>
    %cst_857 = arith.constant dense<0.000000e+00> : vector<4x256xf32>
    %2360 = tpu.matmul %2358, %2359, %cst_857 {dimension_numbers = #tpu.dot_dimension_numbers<[1], [1], [0], [0], [0, 0, 1, 0], [], []>} : vector<4x256xf32>, vector<256x256xf32>, vector<4x256xf32> -> vector<4x256xf32>
    %c0_i32_858 = arith.constant 0 : i32
    %2361 = arith.cmpi eq, %arg1, %c0_i32_858 : i32
    %2362 = arith.extui %2361 : i1 to i32
    %c0_i32_859 = arith.constant 0 : i32
    %2363 = arith.cmpi ne, %2362, %c0_i32_859 : i32
    scf.if %2363 {
      %c0_862 = arith.constant 0 : index
      %c0_863 = arith.constant 0 : index
      %c0_864 = arith.constant 0 : index
      %2367 = vector.load %arg9[%c0_862, %c0_863, %c0_864] : memref<1x4x256xf32, #tpu.memory_space<vmem>>, vector<1x4x256xf32>
      %2368 = vector.shape_cast %2367 : vector<1x4x256xf32> to vector<4x256xf32>
      %2369 = vector.shape_cast %2360 : vector<4x256xf32> to vector<1x4x256xf32>
      tpu.vector_store %arg9[%c0_862, %c0_863, %c0_864], %2369 {strides = array<i32>} : memref<1x4x256xf32, #tpu.memory_space<vmem>>, vector<1x4x256xf32>,
    } else {
    }
    %c0_i32_860 = arith.constant 0 : i32
    %2364 = arith.cmpi ne, %arg1, %c0_i32_860 : i32
    %2365 = arith.extui %2364 : i1 to i32
    %c0_i32_861 = arith.constant 0 : i32
    %2366 = arith.cmpi ne, %2365, %c0_i32_861 : i32
    scf.if %2366 {
      %c0_862 = arith.constant 0 : index
      %c0_863 = arith.constant 0 : index
      %c0_864 = arith.constant 0 : index
      %2367 = vector.load %arg9[%c0_862, %c0_863, %c0_864] : memref<1x4x256xf32, #tpu.memory_space<vmem>>, vector<1x4x256xf32>
      %2368 = vector.shape_cast %2367 : vector<1x4x256xf32> to vector<4x256xf32>
      %2369 = arith.addf %2368, %2360 : vector<4x256xf32>
      %c0_865 = arith.constant 0 : index
      %c0_866 = arith.constant 0 : index
      %c0_867 = arith.constant 0 : index
      %2370 = vector.load %arg9[%c0_865, %c0_866, %c0_867] : memref<1x4x256xf32, #tpu.memory_space<vmem>>, vector<1x4x256xf32>
      %2371 = vector.shape_cast %2370 : vector<1x4x256xf32> to vector<4x256xf32>
      %2372 = vector.shape_cast %2369 : vector<4x256xf32> to vector<1x4x256xf32>
      tpu.vector_store %arg9[%c0_865, %c0_866, %c0_867], %2372 {strides = array<i32>} : memref<1x4x256xf32, #tpu.memory_space<vmem>>, vector<1x4x256xf32>,
    } else {
    }
    return
  }
  func.func @transform_0(%arg0: i32, %arg1: i32, %arg2: memref<2xi32, #tpu.memory_space<smem>>, %arg3: memref<128xi32, #tpu.memory_space<smem>>) -> (i32, i32, i32) {
    %0 = arith.index_cast %arg0 : i32 to index
    %1 = memref.load %arg2[%0] : memref<2xi32, #tpu.memory_space<smem>>
    %c0_i32 = arith.constant 0 : i32
    %c0_i32_0 = arith.constant 0 : i32
    return %1, %c0_i32, %arg1 : i32, i32, i32
  }
  func.func @transform_1(%arg0: i32, %arg1: i32, %arg2: memref<2xi32, #tpu.memory_space<smem>>, %arg3: memref<128xi32, #tpu.memory_space<smem>>) -> (i32, i32) {
    %c0_i32 = arith.constant 0 : i32
    %c0_i32_0 = arith.constant 0 : i32
    return %c0_i32, %arg1 : i32, i32
  }
  func.func @transform_2(%arg0: i32, %arg1: i32, %arg2: memref<2xi32, #tpu.memory_space<smem>>, %arg3: memref<128xi32, #tpu.memory_space<smem>>) -> (i32, i32) {
    %c0_i32 = arith.constant 0 : i32
    %c0_i32_0 = arith.constant 0 : i32
    return %c0_i32, %arg1 : i32, i32
  }
  func.func @transform_3(%arg0: i32, %arg1: i32, %arg2: memref<2xi32, #tpu.memory_space<smem>>, %arg3: memref<128xi32, #tpu.memory_space<smem>>) -> (i32, i32) {
    %c0_i32 = arith.constant 0 : i32
    %c0_i32_0 = arith.constant 0 : i32
    %c0_i32_1 = arith.constant 0 : i32
    return %c0_i32, %c0_i32_0 : i32, i32
  }
  func.func @transform_4(%arg0: i32, %arg1: i32, %arg2: memref<2xi32, #tpu.memory_space<smem>>, %arg3: memref<128xi32, #tpu.memory_space<smem>>) -> (i32, i32) {
    %c0_i32 = arith.constant 0 : i32
    %c0_i32_0 = arith.constant 0 : i32
    %c0_i32_1 = arith.constant 0 : i32
    return %c0_i32, %c0_i32_0 : i32, i32
  }
  func.func @transform_5(%arg0: i32, %arg1: i32, %arg2: memref<2xi32, #tpu.memory_space<smem>>, %arg3: memref<128xi32, #tpu.memory_space<smem>>) -> (i32, i32, i32) {
    %c0_i32 = arith.constant 0 : i32
    %c0_i32_0 = arith.constant 0 : i32
    %c0_i32_1 = arith.constant 0 : i32
    return %arg0, %c0_i32, %c0_i32_0 : i32, i32, i32
  }
}

</mosaic_0001>

<bundles_post_ra>
// kernel: tpu_custom_call.1
= control target key start
LH: loop header
LB: loop body
LE: loop exit
PB: predicated region body
PF: predicated region fallthrough
CT: control target
= control target key end

     0   :  { %s9367_s0 = inlined_call_operand.vmem [shape: s32[2], index: 0, kind: input, shape index: {}]   ;;  %s9368_s2 = inlined_call_operand.vmem [shape: f32[2,4,256], index: 2, kind: input, shape index: {}]   ;;  %s9369_s3 = inlined_call_operand.vmem [shape: f32[1,256], index: 3, kind: input, shape index: {}]   ;;  %s9370_s4 = inlined_call_operand.vmem [shape: f32[1,256], index: 4, kind: input, shape index: {}]   ;;  %s9371_s5 = inlined_call_operand.vmem [shape: f32[16,1], index: 5, kind: input, shape index: {}]   ;;  %s9372_s6 = inlined_call_operand.vmem [shape: f32[16,1], index: 6, kind: input, shape index: {}]   ;;  %s9373_s7 = inlined_call_operand.hbm [shape: f32[2,4,256], index: 7, kind: output, shape index: {}]   ;;  %s9374_s1 = inlined_call_operand.vmem [shape: s32[128], index: 1, kind: input, shape index: {}]  }
   0x1   :  { %9434 = sst [smem:[#allocation65_spill]] %s9373_s7  ;;  %s12_s26 = sshll.u32 %s9367_s0, 4  ;;  %s13_s26 = int_to_ptr.vmem [resolvable:$true] %s12_s26 }
   0x2   :  { %s16_s29 = sshll.u32 %s9374_s1, 4  ;;  %s5464_s30 = scalar_lea.vmem %s13_s26, 16  ;;  %s17_s29 = int_to_ptr.vmem [resolvable:$true] %s16_s29 }
   0x3   :  { %p5465_p0 = scmp.ne.s32.totalorder %s13_s26, %s5464_s30  ;;  %p5469_p1 = scmp.lt.s32.totalorder %s13_s26, %s13_s26 }
   0x4   :  { %p5470_p2 = scmp.lt.s32.totalorder %s5464_s30, %s5464_s30 }
   0x6   :  { %p5471_p3 = por %p5470_p2, %p5469_p1 }
   0x8   :  { %p5472_p4 = pnand %p5471_p3, %p5465_p0 }
   0xa   :  { %5475 = shalt.err (!%p5472_p4)  }
   0xb   :  { %s5570_s8 = smov [#allocation4]   ;;  %s5476_s9 = scalar_lea.vmem %s17_s29, 16 }
   0xc   :  { %15 = dma.vmem_to_smem %s13_s26, 16, %s5570_s8, [#allocation3] }
   0xd   :  { %p5477_p5 = scmp.ne.s32.totalorder %s17_s29, %s5476_s9  ;;  %p5481_p6 = scmp.lt.s32.totalorder %s17_s29, %s17_s29 }
   0xe   :  { %p5482_p7 = scmp.lt.s32.totalorder %s5476_s9, %s5476_s9 }
  0x10   :  { %p5483_p8 = por %p5482_p7, %p5481_p6 }
  0x12   :  { %p5484_p9 = pnand %p5483_p8, %p5477_p5 }
  0x14   :  { %5487 = shalt.err (!%p5484_p9)  }
  0x15   :  { %s5571_s0 = smov [#allocation5]  }
  0x16   :  { %19 = dma.vmem_to_smem %s17_s29, 16, %s5571_s0, [#allocation3] }
  0x17   :  { %5540 = dma.done.wait [#allocation3], 32 }
  0x18   :  { %5541 = vsyncadd [#allocation3], 4294967264 }
  0x19   :  { %21 = sfence }
  0x1a   :  { %22 = vsyncpa [#allocation7], 0 }
  0x1b   :  { %24 = vsyncpa [#allocation7 + $0x1], 0  ;;  %s5622_s1 = smov 0   ;;  %s5624_s10 = smov 0  }
  0x1c   :  { %s5626_s11 = smov 0   ;;  %s5628_s12 = smov 0  }
  0x1d   :  { %s5630_s13 = smov 0   ;;  %s5632_s14 = smov 0  }
  0x1e LB: > { %9435 = sst [smem:[#allocation10_spill]] %s5548_s1  ;;  %s4999_s15 = sadd.s32 4294967295, %s5568_s14   ;;  %s5568_s14 = sphi %s5632_s14, %s30_s14   ;;  %s5564_s13 = sphi %s5630_s13, %s9599_s13   ;;  %s5560_s12 = sphi %s5628_s12, %s9598_s12   ;;  %s5556_s11 = sphi %s5626_s11, %s9597_s11   ;;  %s5552_s10 = sphi %s5624_s10, %s9601_s10   ;;  %s5548_s1 = sphi %s5622_s1, %s9600_s1  }
  0x1f   : > { %9436 = sst [smem:[#allocation11_spill]] %s5556_s11  ;;  %s5000_s16 = sadd.s32 4294967294, %s5568_s14  }
  0x20   : > { %9437 = sst [smem:[#allocation12_spill]] %s5564_s13  ;;  %s42_s17 = sadd.s32 1, %s5564_s13 }
  0x21   : > { %9438 = sst [smem:[#allocation13_spill]] %s5568_s14  ;;  %s173_s18 = sadd.s32 1, %s5556_s11 }
  0x22   : > { %p44_p10 = scmp.ge.s32.totalorder %s42_s17, 2  ;;  %p183_p11 = scmp.ne.s32.totalorder %s5556_s11, %s5552_s10 }
  0x23   : > { %p184_p12 = scmp.eq.s32.totalorder %s4999_s15, 1  ;;  %p189_p13 = scmp.ne.s32.totalorder %s5552_s10, %s5548_s1 }
  0x24   : > { %s9603_s17 = smov (%p44_p10, %s42_s17), 0  ;;  %p190_p1 = scmp.eq.s32.totalorder %s5000_s16, 1 }
  0x25   : > { %9439 = sst [smem:[#allocation14_spill]] %s9603_s17  ;;  %p5662_p0 = por %p184_p12, %p183_p11 }
  0x26   : > { %s170_s20 = ssub.s32 %s5564_s13, %s9603_s17  ;;  %p5005_p2 = scmp.ge.s32.totalorder %s5568_s14, 1 }
  0x27   : > { %p171_p3 = scmp.eq.s32.totalorder %s170_s20, 0  ;;  %p5669_p4 = por %p190_p1, %p189_p13 }
  0x28   : > { %p245_p5 = scmp.lt.s32.totalorder %s5568_s14, 3 }
  0x29   : > { %s9441_s21 = scalar_select %p5669_p4, 1, 0 }
  0x2a   : > { %s5675_s22 = scalar_select %p171_p3, %s5556_s11, %s173_s18  }
  0x2b   : > { %9442 = sst [smem:[#allocation15_spill]] %s9441_s21  ;;  %p246_p6 = pnand %p5005_p2, %p245_p5 }
  0x2c   : > { %9443 = sst [smem:[#allocation16_spill]] %s5675_s22 }
  0x2d   : > { %249 = sbr.rel (%p246_p6) target bundleno = 990 (0x3de), region = 40 }
  0x34   : > { %s5678_s23 = sshll.u32 %s5560_s12, 6  ;;  %v5572_v0 = vmov 0   ;;  %v310_v1 = vld [vmem:[%s9371_s5] sm:$0xff]  ;;  %v311_v2 = vld [vmem:[%s9371_s5 + $0x8] sm:$0xff]  ;;  %v9386_v24 = vmov 0.0  }
  0x35   : > { %5152 = vset.pattern.permute.xlu0 %v5572_v0  ;;  %5141 = vset.pattern.permute.xlu1 %v5572_v0  ;;  %s318_s24 = sadd.s32 1, %s5678_s23  ;;  %s326_s25 = sadd.s32 3, %s5678_s23  ;;  %v5714_v3 = vadd.f32 0.75, %v310_v1  ;;  %v5716_v4 = vadd.f32 0.75, %v311_v2  ;;  %v5718_v5 = vadd.f32 0.25, %v310_v1  ;;  %v5720_v6 = vadd.f32 0.25, %v311_v2 }
  0x36   : > { %s319_s26 = sld [smem:[#allocation5 + %s318_s24]]  ;;  %s622_s28 = sadd.s32 5, %s5678_s23  ;;  %v312_v7 = vld [vmem:[%s9372_s6] sm:$0xff]  ;;  %v313_v14 = vld [vmem:[%s9372_s6 + $0x8] sm:$0xff] }
  0x37   : > { %s327_s27 = sld [smem:[#allocation5 + %s326_s25]]  ;;  %s630_s29 = sadd.s32 7, %s5678_s23  ;;  %9444 = vst [vmem:[#allocation17_spill] sm:$0xff] %v5714_v3  ;;  %9445 = vst [vmem:[#allocation18_spill] sm:$0xff] %v5716_v4  ;;  %v5743_v15 = vadd.f32 0.25, %v312_v7  ;;  %v5763_v22 = vadd.f32 0.25, %v313_v14 }
  0x38   : > { %s623_s30 = sld [smem:[#allocation5 + %s622_s28]]  ;;  %s322_s0 = sadd.s32 2, %s5678_s23  ;;  %9446 = vst [vmem:[#allocation19_spill] sm:$0xff] %v5718_v5  ;;  %9447 = vst [vmem:[#allocation20_spill] sm:$0xff] %v5720_v6  ;;  %v5765_v23 = vadd.f32 0.75, %v312_v7  ;;  %v5795_v28 = vadd.f32 0.75, %v313_v14 }
  0x39   : > { %s631_s8 = sld [smem:[#allocation5 + %s630_s29]]  ;;  %s618_s16 = sadd.s32 4, %s5678_s23  ;;  %9448 = vst [vmem:[#allocation21_spill] sm:$0xff] %v5743_v15  ;;  %9449 = vst [vmem:[#allocation22_spill] sm:$0xff] %v5763_v22 }
  0x3a   : > { %s5685_s9 = sld [smem:[#allocation5 + %s5678_s23]]  ;;  %s626_s20 = sadd.s32 6, %s5678_s23  ;;  %9450 = vst [vmem:[#allocation23_spill] sm:$0xff] %v5765_v23  ;;  %9451 = vst [vmem:[#allocation24_spill] sm:$0xff] %v5795_v28 }
  0x3b   : > { %s5688_s15 = sld [smem:[#allocation5 + %s322_s0]]  ;;  %s896_s25 = sadd.s32 9, %s5678_s23 }
  0x3c   : > { %s5691_s18 = sld [smem:[#allocation5 + %s618_s16]]  ;;  %s320_s17 = scvt.s32.f32 %s319_s26 }
  0x3d   : > { %s328_s13 = scvt.s32.f32 %s327_s27  ;;  %s5694_s24 = sld [smem:[#allocation5 + %s626_s20]] }
  0x3e   : > { %s5697_s28 = smul.f32 0.25, %s320_s17  ;;  %s624_s29 = scvt.s32.f32 %s623_s30 }
  0x3f   : > { %s329_s22 = smul.f32 0.25, %s328_s13  ;;  %s632_s11 = scvt.s32.f32 %s631_s8 }
  0x40   : > { %s331_s0 = smul.f32 0.25, %s5697_s28  ;;  %s316_s21 = scvt.s32.f32 %s5685_s9 }
  0x41   : > { %s335_s1 = smul.f32 0.25, %s329_s22  ;;  %s324_s14 = scvt.s32.f32 %s5688_s15 }
  0x42   : > { %s5708_s20 = smul.f32 0.25, %s624_s29  ;;  %s620_s17 = scvt.s32.f32 %s5691_s18  ;;  %v349_v9 = vstv %s331_s0 }
  0x43   : > { %s336_s30 = ssub.f32 %s335_s1, %s331_s0  ;;  %s633_s13 = smul.f32 0.25, %s632_s11 }
  0x44   : > { %s635_s8 = smul.f32 0.25, %s5708_s20  ;;  %s628_s28 = scvt.s32.f32 %s5694_s24 }
  0x45   : > { %s9383_s22 = smov 1.0   ;;  %s639_s7 = smul.f32 0.25, %s633_s13 }
  0x46   : > { %s337_s9 = smax.f32 %s9383_s22, %s336_s30  ;;  %s5722_s29 = sld [smem:[#allocation5 + %s896_s25]]  ;;  %v5761_v21 = vstv %s635_s8 }
  0x47   : > { %s343_s15 = smul.f32 0.25, %s337_s9  ;;  %s640_s1 = ssub.f32 %s639_s7, %s635_s8 }
  0x48   : > { %s5729_s26 = smul.f32 0.25, %s316_s21  ;;  %s904_s30 = sadd.s32 11, %s5678_s23 }
  0x49   : > { %v346_v8 = vstv %s343_s15  ;;  %s5731_s27 = smul.f32 0.25, %s324_s14  ;;  %s641_s21 = smax.f32 %s9383_s22, %s640_s1 }
  0x4a   : > { %v488_v10 = vmul.f32 %v5714_v3, %v346_v8  ;;  %v489_v11 = vmul.f32 %v5716_v4, %v346_v8  ;;  %v347_v12 = vmul.f32 %v346_v8, %v5718_v5  ;;  %v348_v13 = vmul.f32 %v346_v8, %v5720_v6  ;;  %s330_s14 = smul.f32 0.25, %s5729_s26  ;;  %s5745_s9 = sld [smem:[#allocation5 + %s904_s30]] }
  0x4b   : > { %s647_s0 = smul.f32 0.25, %s641_s21  ;;  %s892_s15 = sadd.s32 8, %s5678_s23 }
  0x4c   : > { %v5747_v16 = vadd.f32 %v488_v10, %v349_v9  ;;  %v5749_v17 = vadd.f32 %v489_v11, %v349_v9  ;;  %v5751_v18 = vadd.f32 %v349_v9, %v347_v12  ;;  %v5753_v19 = vadd.f32 %v349_v9, %v348_v13  ;;  %s332_s7 = smul.f32 0.25, %s5731_s27  ;;  %s898_s11 = scvt.s32.f32 %s5722_s29 }
  0x4d   : > { %v5757_v20 = vstv %s647_s0  ;;  %s5769_s1 = smul.f32 0.25, %s620_s17  ;;  %s5787_s17 = sld [smem:[#allocation5 + %s892_s15]]  ;;  %v420_v30 = vstv %s330_s14 }
  0x4e   : > { %vm492_vm0 = vcmp.ge.f32.partialorder %v5747_v16, -1.0  ;;  %vm493_vm1 = vcmp.ge.f32.partialorder %v5749_v17, -1.0  ;;  %vm494_vm2 = vcmp.le.f32.partialorder %v5747_v16, 16.0  ;;  %vm495_vm3 = vcmp.le.f32.partialorder %v5749_v17, 16.0  ;;  %s333_s20 = ssub.f32 %s332_s7, %s330_s14  ;;  %s5780_s8 = smul.f32 0.25, %s628_s28 }
  0x4f   : > { %vm496_vm4 = vmand %vm492_vm0, %vm494_vm2  ;;  %vm352_vm5 = vcmp.ge.f32.partialorder %v5751_v18, -1.0  ;;  %vm353_vm6 = vcmp.ge.f32.partialorder %v5753_v19, -1.0  ;;  %vm354_vm7 = vcmp.le.f32.partialorder %v5751_v18, 16.0  ;;  %vm355_vm8 = vcmp.le.f32.partialorder %v5753_v19, 16.0  ;;  %s634_s18 = smul.f32 0.25, %s5769_s1  ;;  %s900_s25 = sadd.s32 10, %s5678_s23 }
  0x50   : > { %vm497_vm9 = vmand %vm493_vm1, %vm495_vm3  ;;  %v498_v25 = vsel %vm496_vm4, 0.5, %v9386_v24  ;;  %v649_v26 = vmul.f32 %v5757_v20, %v5718_v5  ;;  %v650_v27 = vmul.f32 %v5757_v20, %v5720_v6  ;;  %s334_s24 = smax.f32 %s9383_s22, %s333_s20  ;;  %s636_s28 = smul.f32 0.25, %s5780_s8  ;;  %v360_v31 = vmax.f32 %v5751_v18, 0.0 }
  0x51   : > { %v499_v29 = vsel %vm497_vm9, 0.5, %v9386_v24  ;;  %vm356_vm10 = vmand %vm352_vm5, %vm354_vm7  ;;  %s340_s16 = smul.f32 0.25, %s334_s24  ;;  %v361_v32 = vmax.f32 %v5753_v19, 0.0  ;;  %s906_s27 = scvt.s32.f32 %s5745_s9  ;;  %v501_v39 = vmax.f32 %v5749_v17, 0.0  ;;  %v500_v40 = vmax.f32 %v5747_v16, 0.0 }
  0x52   : > { %v5153_v33 = vpack.i.bf16 %v499_v29, %v498_v25  ;;  %vm357_vm11 = vmand %vm353_vm6, %vm355_vm8  ;;  %v358_v34 = vsel %vm356_vm10, 0.5, %v9386_v24  ;;  %v5812_v35 = vadd.f32 %v5761_v21, %v649_v26  ;;  %v5815_v36 = vadd.f32 %v5761_v21, %v650_v27  ;;  %s637_s26 = ssub.f32 %s636_s28, %s634_s18  ;;  %s5821_s30 = smul.f32 0.25, %s898_s11 }
  0x53   : > { %v359_v37 = vsel %vm357_vm11, 0.5, %v9386_v24  ;;  %v417_v38 = vstv %s340_s16  ;;  %s5826_s21 = smul.f32 0.25, %s906_s27  ;;  %s894_s0 = scvt.s32.f32 %s5787_s17  ;;  %v362_v46 = vmin.f32 %v360_v31, 15.0  ;;  %v5844_v48 = vmin.f32 %v361_v32, 15.0 }
  0x54   : > { %5154 = vperm.xlu0 %5152, %v5153_v33   ;;  %v5142_v41 = vpack.i.bf16 %v359_v37, %v358_v34  ;;  %vm654_vm12 = vcmp.ge.f32.partialorder %v5812_v35, -1.0  ;;  %vm655_vm13 = vcmp.ge.f32.partialorder %v5815_v36, -1.0  ;;  %vm656_vm14 = vcmp.le.f32.partialorder %v5812_v35, 16.0  ;;  %s5833_s29 = smax.f32 %s9383_s22, %s637_s26  ;;  %s909_s13 = smul.f32 0.25, %s5821_s30 }
  0x55   : > { %vm657_vm15 = vcmp.le.f32.partialorder %v5815_v36, 16.0  ;;  %vm658_vm0 = vmand %vm654_vm12, %vm656_vm14  ;;  %v418_v42 = vmul.f32 %v417_v38, %v5743_v15  ;;  %v419_v43 = vmul.f32 %v417_v38, %v5763_v22  ;;  %v550_v44 = vmul.f32 %v5765_v23, %v417_v38  ;;  %s644_s14 = smul.f32 0.25, %s5833_s29  ;;  %s5847_s7 = sld [smem:[#allocation5 + %s900_s25]] }
  0x56   : > { %5143 = vperm.xlu1 %5141, %v5142_v41   ;;  %vm659_vm1 = vmand %vm655_vm13, %vm657_vm15  ;;  %v660_v45 = vsel %vm658_vm0, 0.5, %v9386_v24  ;;  %v551_v47 = vmul.f32 %v5795_v28, %v417_v38  ;;  %s913_s9 = smul.f32 0.25, %s5826_s21  ;;  %s1170_s11 = sadd.s32 13, %s5678_s23  ;;  %v663_v55 = vmax.f32 %v5815_v36, 0.0  ;;  %v662_v56 = vmax.f32 %v5812_v35, 0.0 }
  0x57   : > { %v661_v49 = vsel %vm659_vm1, 0.5, %v9386_v24  ;;  %v421_v50 = vadd.f32 %v420_v30, %v418_v42  ;;  %v422_v51 = vadd.f32 %v420_v30, %v419_v43  ;;  %v5850_v52 = vadd.f32 %v550_v44, %v420_v30  ;;  %s5852_s15 = smul.f32 0.25, %s894_s0  ;;  %s5859_s8 = sld [smem:[#allocation5 + %s1170_s11]] }
  0x58   : > { %v5163_v53 = vpack.i.bf16 %v661_v49, %v660_v45  ;;  %v553_v54 = vadd.f32 %v551_v47, %v420_v30  ;;  %s914_s20 = ssub.f32 %s913_s9, %s909_s13  ;;  %s1178_s24 = sadd.s32 15, %s5678_s23  ;;  %v5871_v60 = vmin.f32 %v501_v39, 15.0  ;;  %v5876_v62 = vmin.f32 %v500_v40, 15.0 }
  0x59   : > { %vm423_vm2 = vcmp.ge.f32.partialorder %v421_v50, -1.0  ;;  %vm424_vm3 = vcmp.ge.f32.partialorder %v422_v51, -1.0  ;;  %vm425_vm4 = vcmp.le.f32.partialorder %v421_v50, 16.0  ;;  %vm426_vm5 = vcmp.le.f32.partialorder %v422_v51, 16.0  ;;  %s908_s17 = smul.f32 0.25, %s5852_s15  ;;  %s5868_s16 = sld [smem:[#allocation5 + %s1178_s24]] }
  0x5a   : > { %5164 = vperm.xlu0 %5152, %v5163_v53   ;;  %vm427_vm6 = vmand %vm423_vm2, %vm425_vm4  ;;  %vm554_vm7 = vcmp.ge.f32.partialorder %v5850_v52, -1.0  ;;  %vm555_vm8 = vcmp.ge.f32.partialorder %v553_v54, -1.0  ;;  %vm556_vm9 = vcmp.le.f32.partialorder %v5850_v52, 16.0  ;;  %vm557_vm10 = vcmp.le.f32.partialorder %v553_v54, 16.0  ;;  %s5866_s28 = smax.f32 %s9383_s22, %s914_s20  ;;  %s1166_s26 = sadd.s32 12, %s5678_s23 }
  0x5b   : > { %vm428_vm11 = vmand %vm424_vm3, %vm426_vm5  ;;  %v429_v57 = vsel %vm427_vm6, 0.5, %v9386_v24  ;;  %v431_v58 = vmax.f32 %v421_v50, 0.0  ;;  %v432_v59 = vmax.f32 %v422_v51, 0.0  ;;  %s921_s27 = smul.f32 0.25, %s5866_s28  ;;  %v562_v63 = vmax.f32 %v5850_v52, 0.0  ;;  %s902_s21 = scvt.s32.f32 %s5847_s7 }
  0x5c   : > { %v430_v61 = vsel %vm428_vm11, 0.5, %v9386_v24  ;;  %vm558_vm12 = vmand %vm554_vm7, %vm556_vm9  ;;  %v563_v0 = vmax.f32 %v553_v54, 0.0  ;;  %s5880_s25 = sld [smem:[#allocation5 + %s1166_s26]]  ;;  %v5885_v7 = vmin.f32 %v663_v55, 15.0  ;;  %v5887_v8 = vmin.f32 %v662_v56, 15.0  ;;  %s1174_s0 = sadd.s32 14, %s5678_s23 }
  0x5d   : > { %v5147_v1 = vpack.i.bf16 %v430_v61, %v429_v57  ;;  %vm559_vm13 = vmand %vm555_vm8, %vm557_vm10  ;;  %v560_v2 = vsel %vm558_vm12, 0.5, %v9386_v24  ;;  %s1444_s9 = sadd.s32 17, %s5678_s23  ;;  %v433_v10 = vmin.f32 %v431_v58, 15.0  ;;  %v434_v11 = vmin.f32 %v432_v59, 15.0  ;;  %s903_s7 = smul.f32 0.25, %s902_s21 }
  0x5e   : > { %366 = vperm.xlu0 %5152, %v362_v46   ;;  %v561_v9 = vsel %vm559_vm13, 0.5, %v9386_v24  ;;  %v706_v12 = vstv %s644_s14  ;;  %s1172_s11 = scvt.s32.f32 %s5859_s8  ;;  %v709_v16 = vstv %s634_s18  ;;  %s5899_s20 = sld [smem:[#allocation5 + %s1174_s0]]  ;;  %v764_v18 = vmul.f32 %v5757_v20, %v5714_v3 }
  0x5f   : > { %5148 = vperm.xlu1 %5141, %v5147_v1   ;;  %v5158_v13 = vpack.i.bf16 %v561_v9, %v560_v2  ;;  %v707_v14 = vmul.f32 %v706_v12, %v5743_v15  ;;  %v708_v17 = vmul.f32 %v706_v12, %v5763_v22  ;;  %s5901_s24 = sld [smem:[#allocation5 + %s1444_s9]]  ;;  %v765_v19 = vmul.f32 %v5757_v20, %v5716_v4  ;;  %s910_s1 = smul.f32 0.25, %s903_s7 }
  0x60   : > { %v824_v25 = vmul.f32 %v706_v12, %v5765_v23  ;;  %v825_v26 = vmul.f32 %v706_v12, %v5795_v28  ;;  %s1180_s29 = scvt.s32.f32 %s5868_s16  ;;  %v5910_v27 = vmin.f32 %v562_v63, 15.0  ;;  %v5912_v29 = vmin.f32 %v563_v0, 15.0  ;;  %s5914_s18 = smul.f32 0.25, %s1172_s11 }
  0x61   : > { %v710_v30 = vadd.f32 %v709_v16, %v707_v14  ;;  %v711_v31 = vadd.f32 %v709_v16, %v708_v17  ;;  %s1452_s14 = sadd.s32 19, %s5678_s23  ;;  %v766_v20 = vadd.f32 %v764_v18, %v5761_v21  ;;  %v767_v32 = vadd.f32 %v765_v19, %v5761_v21  ;;  %s911_s8 = ssub.f32 %s910_s1, %s908_s17 }
  0x62   : > { %371 = vperm.xlu0 %5152, %v5844_v48   ;;  %v826_v33 = vadd.f32 %v824_v25, %v709_v16  ;;  %v827_v34 = vadd.f32 %v825_v26, %v709_v16  ;;  %s1181_s16 = smul.f32 0.25, %s1180_s29  ;;  %s1168_s21 = scvt.s32.f32 %s5880_s25  ;;  %v922_v21 = vstv %s921_s27  ;;  %v5931_v39 = vstv %s909_s13 }
  0x63   : > { %5159 = vperm.xlu1 %5141, %v5158_v13   ;;  %v720_v35 = vmax.f32 %v710_v30, 0.0  ;;  %v721_v36 = vmax.f32 %v711_v31, 0.0  ;;  %vm712_vm14 = vcmp.ge.f32.partialorder %v710_v30, -1.0  ;;  %vm713_vm15 = vcmp.ge.f32.partialorder %v711_v31, -1.0  ;;  %s1183_s26 = smul.f32 0.25, %s5914_s18  ;;  %s5925_s0 = smax.f32 %s9383_s22, %s911_s8 }
  0x64   : > { %vm714_vm0 = vcmp.le.f32.partialorder %v710_v30, 16.0  ;;  %vm715_vm1 = vcmp.le.f32.partialorder %v711_v31, 16.0  ;;  %v776_v37 = vmax.f32 %v766_v20, 0.0  ;;  %v777_v38 = vmax.f32 %v767_v32, 0.0  ;;  %s1187_s9 = smul.f32 0.25, %s1181_s16  ;;  %s1176_s25 = scvt.s32.f32 %s5899_s20 }
  0x65   : > { %vm716_vm2 = vmand %vm712_vm14, %vm714_vm0  ;;  %vm768_vm3 = vcmp.ge.f32.partialorder %v766_v20, -1.0  ;;  %vm769_vm4 = vcmp.ge.f32.partialorder %v767_v32, -1.0  ;;  %s918_s7 = smul.f32 0.25, %s5925_s0  ;;  %v5935_v40 = vmin.f32 %v720_v35, 15.0  ;;  %v5937_v41 = vmin.f32 %v721_v36, 15.0  ;;  %s1446_s27 = scvt.s32.f32 %s5901_s24 }
  0x66   : > { %442 = vperm.xlu0 %5152, %v434_v11   ;;  %vm717_vm5 = vmand %vm713_vm15, %vm715_vm1  ;;  %v5942_v42 = vsel %vm716_vm2, 0.5, %v9386_v24  ;;  %vm770_vm6 = vcmp.le.f32.partialorder %v766_v20, 16.0  ;;  %s1188_s28 = ssub.f32 %s1187_s9, %s1183_s26  ;;  %s5946_s30 = smul.f32 0.25, %s1168_s21  ;;  %vm771_vm7 = vcmp.le.f32.partialorder %v767_v32, 16.0  ;;  %v836_v44 = vmax.f32 %v826_v33, 0.0 }
  0x67   : > { %437 = vperm.xlu1 %5141, %v433_v10   ;;  %v5949_v43 = vsel %vm717_vm5, 0.5, %v9386_v24  ;;  %vm772_vm8 = vmand %vm768_vm3, %vm770_vm6  ;;  %v837_v45 = vmax.f32 %v827_v34, 0.0  ;;  %s5952_s13 = smul.f32 0.25, %s1176_s25  ;;  %v5955_v46 = vmin.f32 %v776_v37, 15.0  ;;  %v5957_v47 = vmin.f32 %v777_v38, 15.0  ;;  %s5975_s1 = sld [smem:[#allocation5 + %s1452_s14]] }
  0x68   : > { %vm773_vm9 = vmand %vm769_vm4, %vm771_vm7  ;;  %vm828_vm10 = vcmp.ge.f32.partialorder %v826_v33, -1.0  ;;  %vm829_vm11 = vcmp.ge.f32.partialorder %v827_v34, -1.0  ;;  %s5961_s11 = smax.f32 %s9383_s22, %s1188_s28  ;;  %s1182_s20 = smul.f32 0.25, %s5946_s30  ;;  %v5168_v48 = vpack.i.bf16 %v5949_v43, %v5942_v42  ;;  %v5967_v49 = vsel %vm772_vm8, 0.5, %v9386_v24 }
  0x69   : > { %v5970_v50 = vsel %vm773_vm9, 0.5, %v9386_v24  ;;  %vm830_vm12 = vcmp.le.f32.partialorder %v826_v33, 16.0  ;;  %s1195_s24 = smul.f32 0.25, %s5961_s11  ;;  %v5978_v51 = vmin.f32 %v836_v44, 15.0  ;;  %vm831_vm13 = vcmp.le.f32.partialorder %v827_v34, 16.0  ;;  %s1440_s8 = sadd.s32 16, %s5678_s23 }
  0x6a   : > { %506 = vperm.xlu0 %5152, %v5876_v62   ;;  %vm832_vm14 = vmand %vm828_vm10, %vm830_vm12  ;;  %v923_v52 = vmul.f32 %v922_v21, %v5718_v5  ;;  %v924_v53 = vmul.f32 %v922_v21, %v5720_v6  ;;  %s1184_s29 = smul.f32 0.25, %s5952_s13  ;;  %v5985_v54 = vmin.f32 %v837_v45, 15.0  ;;  %v5993_v56 = vstv %s918_s7  ;;  %s5998_s16 = sld [smem:[#allocation5 + %s1440_s8]] }
  0x6b   : > { %511 = vperm.xlu1 %5141, %v5871_v60   ;;  %vm833_vm15 = vmand %vm829_vm11, %vm831_vm13  ;;  %v5989_v55 = vsel %vm832_vm14, 0.5, %v9386_v24  ;;  %v1038_v57 = vmul.f32 %v922_v21, %v5714_v3  ;;  %s5996_s14 = smul.f32 0.25, %s1446_s27  ;;  %v981_v60 = vmul.f32 %v5993_v56, %v5743_v15  ;;  %v6006_v61 = vstv %s908_s17  ;;  %s1448_s0 = sadd.s32 18, %s5678_s23 }
  0x6c   : > { %v926_v58 = vadd.f32 %v5931_v39, %v923_v52  ;;  %v927_v59 = vadd.f32 %v5931_v39, %v924_v53  ;;  %s1185_s21 = ssub.f32 %s1184_s29, %s1182_s20  ;;  %v6012_v62 = vsel %vm833_vm15, 0.5, %v9386_v24  ;;  %v982_v63 = vmul.f32 %v5993_v56, %v5763_v22  ;;  %s6019_s7 = sld [smem:[#allocation5 + %s1448_s0]] }
  0x6d   : > { %v1040_v0 = vadd.f32 %v1038_v57, %v5931_v39  ;;  %v1039_v1 = vmul.f32 %v922_v21, %v5716_v4  ;;  %s1457_s9 = smul.f32 0.25, %s5996_s14  ;;  %s1718_s17 = sadd.s32 21, %s5678_s23  ;;  %v984_v10 = vadd.f32 %v6006_v61, %v981_v60  ;;  %v5173_v12 = vpack.i.bf16 %v5970_v50, %v5967_v49 }
  0x6e   : > { %573 = vperm.xlu0 %5152, %v5912_v29   ;;  %v936_v2 = vmax.f32 %v926_v58, 0.0  ;;  %v937_v9 = vmax.f32 %v927_v59, 0.0  ;;  %vm928_vm0 = vcmp.ge.f32.partialorder %v926_v58, -1.0  ;;  %vm929_vm1 = vcmp.ge.f32.partialorder %v927_v59, -1.0  ;;  %s6023_s15 = smax.f32 %s9383_s22, %s1185_s21  ;;  %s1454_s28 = scvt.s32.f32 %s5975_s1 }
  0x6f   : > { %568 = vperm.xlu1 %5141, %v5910_v27   ;;  %vm930_vm2 = vcmp.le.f32.partialorder %v926_v58, 16.0  ;;  %vm931_vm3 = vcmp.le.f32.partialorder %v927_v59, 16.0  ;;  %v985_v11 = vadd.f32 %v6006_v61, %v982_v63  ;;  %s1192_s25 = smul.f32 0.25, %s6023_s15  ;;  %v5178_v13 = vpack.i.bf16 %v6012_v62, %v5989_v55  ;;  %s6038_s13 = sld [smem:[#allocation5 + %s1718_s17]] }
  0x70   : > { %vm932_vm4 = vmand %vm928_vm0, %vm930_vm2  ;;  %v1050_v14 = vmax.f32 %v1040_v0, 0.0  ;;  %v6036_v16 = vadd.f32 %v1039_v1, %v5931_v39  ;;  %s1726_s27 = sadd.s32 23, %s5678_s23  ;;  %v994_v18 = vmax.f32 %v984_v10, 0.0  ;;  %vm986_vm6 = vcmp.ge.f32.partialorder %v984_v10, -1.0  ;;  %s6045_s1 = smul.f32 0.25, %s1454_s28 }
  0x71   : > { %vm933_vm5 = vmand %vm929_vm1, %vm931_vm3  ;;  %v6043_v17 = vsel %vm932_vm4, 0.5, %v9386_v24  ;;  %v995_v19 = vmax.f32 %v985_v11, 0.0  ;;  %s1442_s29 = scvt.s32.f32 %s5998_s16  ;;  %vm987_vm7 = vcmp.ge.f32.partialorder %v985_v11, -1.0  ;;  %vm988_vm8 = vcmp.le.f32.partialorder %v984_v10, 16.0  ;;  %s6052_s8 = sld [smem:[#allocation5 + %s1726_s27]] }
  0x72   : > { %668 = vperm.xlu0 %5152, %v5887_v8   ;;  %v6050_v25 = vsel %vm933_vm5, 0.5, %v9386_v24  ;;  %vm989_vm9 = vcmp.le.f32.partialorder %v985_v11, 16.0  ;;  %s1714_s21 = sadd.s32 20, %s5678_s23  ;;  %v6056_v26 = vmin.f32 %v936_v2, 15.0  ;;  %v6058_v27 = vmin.f32 %v937_v9, 15.0  ;;  %vm990_vm10 = vmand %vm986_vm6, %vm988_vm8  ;;  %s1461_s16 = smul.f32 0.25, %s6045_s1 }
  0x73   : > { %673 = vperm.xlu1 %5141, %v5885_v7   ;;  %v5183_v29 = vpack.i.bf16 %v6050_v25, %v6043_v17  ;;  %v6062_v30 = vmin.f32 %v994_v18, 15.0  ;;  %s1450_s0 = scvt.s32.f32 %s6019_s7  ;;  %v6067_v8 = vmin.f32 %v995_v19, 15.0  ;;  %vm991_vm11 = vmand %vm987_vm7, %vm989_vm9  ;;  %v6070_v31 = vsel %vm990_vm10, 0.5, %v9386_v24  ;;  %s6073_s17 = smul.f32 0.25, %s1442_s29 }
  0x74   : > { %vm1042_vm12 = vcmp.ge.f32.partialorder %v1040_v0, -1.0  ;;  %vm1043_vm13 = vcmp.ge.f32.partialorder %v6036_v16, -1.0  ;;  %v6076_v7 = vsel %vm991_vm11, 0.5, %v9386_v24  ;;  %vm1044_vm14 = vcmp.le.f32.partialorder %v1040_v0, 16.0  ;;  %s6093_s28 = sld [smem:[#allocation5 + %s1714_s21]]  ;;  %s1462_s11 = ssub.f32 %s1461_s16, %s1457_s9 }
  0x75   : > { %vm1045_vm15 = vcmp.le.f32.partialorder %v6036_v16, 16.0  ;;  %v1098_v20 = vmul.f32 %v5993_v56, %v5765_v23  ;;  %s6081_s7 = smul.f32 0.25, %s1450_s0  ;;  %v6084_v32 = vmin.f32 %v1050_v14, 15.0  ;;  %v1051_v33 = vmax.f32 %v6036_v16, 0.0  ;;  %vm1046_vm0 = vmand %vm1042_vm12, %vm1044_vm14  ;;  %s1720_s18 = scvt.s32.f32 %s6038_s13 }
  0x76   : > { %731 = vperm.xlu0 %5152, %v5937_v41   ;;  %v1099_v34 = vmul.f32 %v5993_v56, %v5795_v28  ;;  %v6091_v35 = vstv %s1195_s24  ;;  %v5188_v36 = vpack.i.bf16 %v6076_v7, %v6070_v31  ;;  %vm1047_vm1 = vmand %vm1043_vm13, %vm1045_vm15  ;;  %v6105_v21 = vstv %s1183_s26  ;;  %s1456_s24 = smul.f32 0.25, %s6073_s17  ;;  %s6140_s15 = smax.f32 %s9383_s22, %s1462_s11 }
  0x77   : > { %726 = vperm.xlu1 %5141, %v5935_v40   ;;  %v1100_v37 = vadd.f32 %v1098_v20, %v6006_v61  ;;  %v1197_v38 = vmul.f32 %v6091_v35, %v5718_v5  ;;  %v6111_v39 = vsel %vm1046_vm0, 0.5, %v9386_v24  ;;  %v1198_v41 = vmul.f32 %v6091_v35, %v5720_v6  ;;  %s1458_s27 = smul.f32 0.25, %s6081_s7  ;;  %s1728_s26 = scvt.s32.f32 %s6052_s8 }
  0x78   : > { %v1101_v40 = vadd.f32 %v1099_v34, %v6006_v61  ;;  %v6118_v44 = vstv %s1192_s25  ;;  %v6122_v45 = vsel %vm1047_vm1, 0.5, %v9386_v24  ;;  %v6131_v57 = vmin.f32 %v1051_v33, 15.0  ;;  %s1722_s13 = sadd.s32 22, %s5678_s23  ;;  %s6156_s1 = smul.f32 0.25, %s1720_s18 }
  0x79   : > { %v1110_v52 = vmax.f32 %v1100_v37, 0.0  ;;  %vm1102_vm2 = vcmp.ge.f32.partialorder %v1100_v37, -1.0  ;;  %vm1104_vm3 = vcmp.le.f32.partialorder %v1100_v37, 16.0  ;;  %v1200_v56 = vadd.f32 %v6105_v21, %v1197_v38  ;;  %s6151_s25 = ssub.f32 %s1458_s27, %s1456_s24  ;;  %s6158_s29 = sld [smem:[#allocation5 + %s1722_s13]] }
  0x7a   : > { %782 = vperm.xlu0 %5152, %v5955_v46   ;;  %v1111_v53 = vmax.f32 %v1101_v40, 0.0  ;;  %vm1103_vm4 = vcmp.ge.f32.partialorder %v1101_v40, -1.0  ;;  %vm1105_vm5 = vcmp.le.f32.partialorder %v1101_v40, 16.0  ;;  %vm1106_vm6 = vmand %vm1102_vm2, %vm1104_vm3  ;;  %v1201_v46 = vadd.f32 %v6105_v21, %v1198_v41  ;;  %s6171_s8 = smul.f32 0.25, %s1728_s26  ;;  %s1992_s21 = sadd.s32 25, %s5678_s23 }
  0x7b   : > { %5169 = vperm.xlu1 %5141, %v5168_v48   ;;  %vm1107_vm7 = vmand %vm1103_vm4, %vm1105_vm5  ;;  %v6134_v58 = vsel %vm1106_vm6, 0.5, %v9386_v24  ;;  %v1255_v59 = vmul.f32 %v6118_v44, %v5743_v15  ;;  %v5193_v60 = vpack.i.bf16 %v6122_v45, %v6111_v39  ;;  %v6144_v42 = vmin.f32 %v1110_v52, 15.0  ;;  %s1469_s30 = smul.f32 0.25, %s6140_s15  ;;  %s6191_s16 = sld [smem:[#allocation5 + %s1992_s21]] }
  0x7c   : > { %v6147_v43 = vsel %vm1107_vm7, 0.5, %v9386_v24  ;;  %vm1202_vm8 = vcmp.ge.f32.partialorder %v1200_v56, -1.0  ;;  %v6154_v48 = vmin.f32 %v1111_v53, 15.0  ;;  %v1210_v61 = vmax.f32 %v1200_v56, 0.0  ;;  %s2000_s0 = sadd.s32 27, %s5678_s23  ;;  %s1731_s7 = smul.f32 0.25, %s6156_s1 }
  0x7d   : > { %vm1203_vm9 = vcmp.ge.f32.partialorder %v1201_v46, -1.0  ;;  %vm1204_vm10 = vcmp.le.f32.partialorder %v1200_v56, 16.0  ;;  %v5198_v63 = vpack.i.bf16 %v6147_v43, %v6134_v58  ;;  %vm1205_vm11 = vcmp.le.f32.partialorder %v1201_v46, 16.0  ;;  %s6197_s11 = sld [smem:[#allocation5 + %s2000_s0]]  ;;  %s6203_s27 = smax.f32 %s9383_s22, %s6151_s25 }
  0x7e   : > { %5174 = vperm.xlu0 %5152, %v5173_v12   ;;  %vm1206_vm12 = vmand %vm1202_vm8, %vm1204_vm10  ;;  %v6167_v0 = vstv %s1182_s20  ;;  %v1256_v1 = vmul.f32 %v6118_v44, %v5763_v22  ;;  %v1211_v49 = vmax.f32 %v1201_v46, 0.0  ;;  %v1312_v9 = vmul.f32 %v6091_v35, %v5714_v3  ;;  %s1716_s20 = scvt.s32.f32 %s6093_s28  ;;  %s1735_s18 = smul.f32 0.25, %s6171_s8 }
  0x7f   : > { %787 = vperm.xlu1 %5141, %v5957_v47   ;;  %vm1207_vm13 = vmand %vm1203_vm9, %vm1205_vm11  ;;  %v6176_v50 = vsel %vm1206_vm12, 0.5, %v9386_v24  ;;  %v1258_v2 = vadd.f32 %v6167_v0, %v1255_v59  ;;  %v1313_v47 = vmul.f32 %v6091_v35, %v5716_v4  ;;  %v1372_v12 = vmul.f32 %v6118_v44, %v5765_v23  ;;  %s1724_s26 = scvt.s32.f32 %s6158_s29  ;;  %s1988_s13 = sadd.s32 24, %s5678_s23 }
  0x80   : > { %v6184_v10 = vsel %vm1207_vm13, 0.5, %v9386_v24  ;;  %v1259_v11 = vadd.f32 %v6167_v0, %v1256_v1  ;;  %v6194_v14 = vmin.f32 %v1210_v61, 15.0  ;;  %v1314_v19 = vadd.f32 %v1312_v9, %v6105_v21  ;;  %s6223_s25 = smul.f32 0.25, %s1716_s20  ;;  %s1996_s21 = sadd.s32 26, %s5678_s23 }
  0x81   : > { %v1268_v16 = vmax.f32 %v1258_v2, 0.0  ;;  %vm1260_vm14 = vcmp.ge.f32.partialorder %v1258_v2, -1.0  ;;  %vm1262_vm15 = vcmp.le.f32.partialorder %v1258_v2, 16.0  ;;  %v6207_v20 = vmin.f32 %v1211_v49, 15.0  ;;  %s6228_s29 = smul.f32 0.25, %s1724_s26  ;;  %s6236_s20 = sld [smem:[#allocation5 + %s1988_s13]] }
  0x82   : > { %847 = vperm.xlu0 %5152, %v5985_v54   ;;  %v1269_v18 = vmax.f32 %v1259_v11, 0.0  ;;  %vm1261_vm0 = vcmp.ge.f32.partialorder %v1259_v11, -1.0  ;;  %vm1263_vm1 = vcmp.le.f32.partialorder %v1259_v11, 16.0  ;;  %vm1264_vm2 = vmand %vm1260_vm14, %vm1262_vm15  ;;  %v5203_v33 = vpack.i.bf16 %v6184_v10, %v6176_v50  ;;  %s1466_s28 = smul.f32 0.25, %s6203_s27  ;;  %s1736_s0 = ssub.f32 %s1735_s18, %s1731_s7  ;;  %v308_v50 = vld [vmem:[%s9369_s3] sm:$0x3] }
  0x83   : > { %842 = vperm.xlu1 %5141, %v5978_v51   ;;  %vm1265_vm3 = vmand %vm1261_vm0, %vm1263_vm1  ;;  %v1315_v54 = vadd.f32 %v1313_v47, %v6105_v21  ;;  %v1374_v34 = vadd.f32 %v1372_v12, %v6167_v0  ;;  %v6216_v35 = vsel %vm1264_vm2, 0.5, %v9386_v24  ;;  %v1324_v51 = vmax.f32 %v1314_v19, 0.0  ;;  %s6249_s26 = sld [smem:[#allocation5 + %s1996_s21]]  ;;  %s1730_s13 = smul.f32 0.25, %s6223_s25 }
  0x84   : > { %v6219_v37 = vsel %vm1265_vm3, 0.5, %v9386_v24  ;;  %vm1316_vm4 = vcmp.ge.f32.partialorder %v1314_v19, -1.0  ;;  %v6226_v38 = vmin.f32 %v1268_v16, 15.0  ;;  %vm1318_vm6 = vcmp.le.f32.partialorder %v1314_v19, 16.0  ;;  %s1994_s22 = scvt.s32.f32 %s6191_s16  ;;  %s1732_s15 = smul.f32 0.25, %s6228_s29 }
  0x85   : > { %v1325_v21 = vmax.f32 %v1315_v54, 0.0  ;;  %vm1317_vm5 = vcmp.ge.f32.partialorder %v1315_v54, -1.0  ;;  %v6231_v40 = vmin.f32 %v1269_v18, 15.0  ;;  %vm1319_vm7 = vcmp.le.f32.partialorder %v1315_v54, 16.0  ;;  %vm1320_vm8 = vmand %vm1316_vm4, %vm1318_vm6  ;;  %s2002_s8 = scvt.s32.f32 %s6197_s11  ;;  %s9454_s14 = smov 1.0  }
  0x86   : > { %942 = vperm.xlu0 %5152, %v6056_v26   ;;  %v1384_v41 = vmax.f32 %v1374_v34, 0.0  ;;  %v1373_v52 = vmul.f32 %v6118_v44, %v5795_v28  ;;  %v5208_v26 = vpack.i.bf16 %v6219_v37, %v6216_v35  ;;  %v6243_v53 = vmin.f32 %v1324_v51, 15.0  ;;  %vm1321_vm9 = vmand %vm1317_vm5, %vm1319_vm7  ;;  %s6311_s17 = smul.f32 0.25, %s1994_s22  ;;  %s2274_s29 = sadd.s32 31, %s5678_s23 }
  0x87   : > { %5179 = vperm.xlu1 %5141, %v5178_v13   ;;  %vm1376_vm10 = vcmp.ge.f32.partialorder %v1374_v34, -1.0  ;;  %vm1378_vm11 = vcmp.le.f32.partialorder %v1374_v34, 16.0  ;;  %v6251_v44 = vmin.f32 %v1325_v21, 15.0  ;;  %v6254_v55 = vsel %vm1320_vm8, 0.5, %v9386_v24  ;;  %s6318_s16 = smul.f32 0.25, %s2002_s8  ;;  %s1990_s11 = scvt.s32.f32 %s6236_s20 }
  0x88   : > { %v1375_v62 = vadd.f32 %v1373_v52, %v6167_v0  ;;  %v6259_v13 = vstv %s1469_s30  ;;  %v6264_v56 = vsel %vm1321_vm9, 0.5, %v9386_v24  ;;  %v6266_v46 = vmin.f32 %v1384_v41, 15.0  ;;  %vm6268_vm12 = vmand %vm1376_vm10, %vm1378_vm11  ;;  %s1733_s30 = ssub.f32 %s1732_s15, %s1730_s13  ;;  %s2005_s21 = smul.f32 0.25, %s6311_s17 }
  0x89   : > { %v1471_v61 = vmul.f32 %v6259_v13, %v5718_v5  ;;  %v6276_v0 = vstv %s1457_s9  ;;  %v1472_v49 = vmul.f32 %v6259_v13, %v5720_v6  ;;  %v6289_v9 = vstv %s1466_s28  ;;  %s6298_s9 = smax.f32 %s9454_s14, %s1736_s0  ;;  %s1998_s27 = scvt.s32.f32 %s6249_s26 }
  0x8a   : > { %5184 = vperm.xlu0 %5152, %v5183_v29   ;;  %v1385_v1 = vmax.f32 %v1375_v62, 0.0  ;;  %vm1377_vm13 = vcmp.ge.f32.partialorder %v1375_v62, -1.0  ;;  %vm1379_vm14 = vcmp.le.f32.partialorder %v1375_v62, 16.0  ;;  %v6293_v11 = vstv %s1456_s24  ;;  %s2266_s24 = sadd.s32 29, %s5678_s23  ;;  %s1743_s22 = smul.f32 0.25, %s6298_s9 }
  0x8b   : > { %947 = vperm.xlu1 %5141, %v6058_v27   ;;  %vm1381_vm15 = vmand %vm1377_vm13, %vm1379_vm14  ;;  %v1474_v2 = vadd.f32 %v6276_v0, %v1471_v61  ;;  %v1586_v17 = vmul.f32 %v6259_v13, %v5714_v3  ;;  %v6303_v25 = vsel %vm6268_vm12, 0.5, %v9386_v24  ;;  %v1475_v29 = vadd.f32 %v6276_v0, %v1472_v49  ;;  %s6333_s18 = sld [smem:[#allocation5 + %s2266_s24]]  ;;  %s6347_s28 = smax.f32 %s9454_s14, %s1733_s30 }
  0x8c   : > { %v6306_v27 = vsel %vm1381_vm15, 0.5, %v9386_v24  ;;  %v1529_v47 = vmul.f32 %v6289_v9, %v5743_v15  ;;  %v5213_v12 = vpack.i.bf16 %v6264_v56, %v6254_v55  ;;  %v6325_v54 = vmin.f32 %v1385_v1, 15.0  ;;  %s2009_s20 = smul.f32 0.25, %s6318_s16  ;;  %s6370_s15 = sld [smem:[#allocation5 + %s2274_s29]] }
  0x8d   : > { %v1484_v16 = vmax.f32 %v1474_v2, 0.0  ;;  %vm1476_vm0 = vcmp.ge.f32.partialorder %v1474_v2, -1.0  ;;  %vm1478_vm1 = vcmp.le.f32.partialorder %v1474_v2, 16.0  ;;  %v1485_v18 = vmax.f32 %v1475_v29, 0.0  ;;  %s6359_s0 = smul.f32 0.25, %s1990_s11  ;;  %s2262_s24 = sadd.s32 28, %s5678_s23 }
  0x8e   : > { %1005 = vperm.xlu0 %5152, %v6067_v8   ;;  %vm1477_vm2 = vcmp.ge.f32.partialorder %v1475_v29, -1.0  ;;  %vm1479_vm3 = vcmp.le.f32.partialorder %v1475_v29, 16.0  ;;  %vm1480_vm4 = vmand %vm1476_vm0, %vm1478_vm1  ;;  %v1532_v19 = vadd.f32 %v6293_v11, %v1529_v47  ;;  %v1530_v8 = vmul.f32 %v6289_v9, %v5763_v22  ;;  %s6368_s26 = smul.f32 0.25, %s1998_s27  ;;  %s2270_s11 = sadd.s32 30, %s5678_s23 }
  0x8f   : > { %1000 = vperm.xlu1 %5141, %v6062_v30   ;;  %vm1481_vm5 = vmand %vm1477_vm2, %vm1479_vm3  ;;  %v1588_v51 = vadd.f32 %v1586_v17, %v6276_v0  ;;  %v6336_v21 = vsel %vm1480_vm4, 0.5, %v9386_v24  ;;  %v6343_v52 = vmin.f32 %v1484_v16, 15.0  ;;  %v6351_v61 = vmin.f32 %v1485_v18, 15.0  ;;  %s1740_s8 = smul.f32 0.25, %s6347_s28  ;;  %s6426_s27 = sld [smem:[#allocation5 + %s2262_s24]] }
  0x90   : > { %v6339_v30 = vsel %vm1481_vm5, 0.5, %v9386_v24  ;;  %v1542_v41 = vmax.f32 %v1532_v19, 0.0  ;;  %vm1534_vm6 = vcmp.ge.f32.partialorder %v1532_v19, -1.0  ;;  %v1533_v62 = vadd.f32 %v6293_v11, %v1530_v8  ;;  %s9385_s30 = smul.f32 0.25, %s6359_s0 }
  0x91   : > { %vm1536_vm7 = vcmp.le.f32.partialorder %v1532_v19, 16.0  ;;  %v1598_v59 = vmax.f32 %v1588_v51, 0.0  ;;  %v1587_v49 = vmul.f32 %v6259_v13, %v5716_v4  ;;  %vm1590_vm9 = vcmp.ge.f32.partialorder %v1588_v51, -1.0  ;;  %s2006_s9 = smul.f32 0.25, %s6368_s26  ;;  %s2268_s1 = scvt.s32.f32 %s6333_s18 }
  0x92   : > { %1056 = vperm.xlu0 %5152, %v6084_v32   ;;  %vm6353_vm8 = vmand %vm1534_vm6, %vm1536_vm7  ;;  %vm1592_vm10 = vcmp.le.f32.partialorder %v1588_v51, 16.0  ;;  %v6366_v2 = vmin.f32 %v1542_v41, 15.0  ;;  %vm1535_vm11 = vcmp.ge.f32.partialorder %v1533_v62, -1.0  ;;  %vm1537_vm12 = vcmp.le.f32.partialorder %v1533_v62, 16.0  ;;  %s2276_s18 = scvt.s32.f32 %s6370_s15 }
  0x93   : > { %5189 = vperm.xlu1 %5141, %v5188_v36   ;;  %vm1594_vm13 = vmand %vm1590_vm9, %vm1592_vm10  ;;  %v1543_v13 = vmax.f32 %v1533_v62, 0.0  ;;  %v6375_v31 = vsel %vm6353_vm8, 0.5, %v9386_v24  ;;  %v1589_v7 = vadd.f32 %v1587_v49, %v6276_v0  ;;  %v1646_v36 = vmul.f32 %v6289_v9, %v5765_v23  ;;  %s2007_s16 = ssub.f32 %s2006_s9, %s9385_s30  ;;  %s6456_s28 = smul.f32 0.25, %s2268_s1 }
  0x94   : > { %vm1539_vm14 = vmand %vm1535_vm11, %vm1537_vm12  ;;  %v6381_v17 = vmin.f32 %v1598_v59, 15.0  ;;  %v6384_v29 = vsel %vm1594_vm13, 0.5, %v9386_v24  ;;  %v1647_v47 = vmul.f32 %v6289_v9, %v5795_v28  ;;  %v6390_v16 = vstv %s1743_s22  ;;  %s6424_s22 = ssub.f32 %s2009_s20, %s2005_s21  ;;  %s2536_s9 = sadd.s32 32, %s5678_s23 }
  0x95   : > { %v6397_v0 = vsel %vm1539_vm14, 0.5, %v9386_v24  ;;  %v1599_v18 = vmax.f32 %v1589_v7, 0.0  ;;  %vm1591_vm15 = vcmp.ge.f32.partialorder %v1589_v7, -1.0  ;;  %vm1593_vm0 = vcmp.le.f32.partialorder %v1589_v7, 16.0  ;;  %s6481_s25 = smax.f32 %s9454_s14, %s2007_s16  ;;  %s2264_s26 = scvt.s32.f32 %s6426_s27 }
  0x96   : > { %5194 = vperm.xlu0 %5152, %v5193_v60   ;;  %vm1595_vm1 = vmand %vm1591_vm15, %vm1593_vm0  ;;  %v1648_v9 = vadd.f32 %v1646_v36, %v6293_v11  ;;  %v1649_v19 = vadd.f32 %v1647_v47, %v6293_v11  ;;  %v1745_v39 = vmul.f32 %v6390_v16, %v5718_v5  ;;  %v6408_v45 = vstv %s1731_s7  ;;  %s6431_s7 = sld [smem:[#allocation5 + %s2270_s11]]  ;;  %s6454_s29 = smax.f32 %s9454_s14, %s6424_s22 }
  0x97   : > { %1061 = vperm.xlu1 %5141, %v6131_v57   ;;  %v6411_v60 = vmin.f32 %v1543_v13, 15.0  ;;  %v6414_v8 = vsel %vm1595_vm1, 0.5, %v9386_v24  ;;  %v1746_v57 = vmul.f32 %v6390_v16, %v5720_v6  ;;  %v6418_v51 = vstv %s1740_s8  ;;  %s2017_s20 = smul.f32 0.25, %s6454_s29  ;;  %s2540_s27 = sadd.s32 33, %s5678_s23 }
  0x98   : > { %v1658_v41 = vmax.f32 %v1648_v9, 0.0  ;;  %v1659_v62 = vmax.f32 %v1649_v19, 0.0  ;;  %vm1650_vm2 = vcmp.ge.f32.partialorder %v1648_v9, -1.0  ;;  %vm1651_vm3 = vcmp.ge.f32.partialorder %v1649_v19, -1.0  ;;  %s2279_s15 = smul.f32 0.25, %s6456_s28  ;;  %s2544_s16 = sadd.s32 34, %s5678_s23 }
  0x99   : > { %vm1652_vm4 = vcmp.le.f32.partialorder %v1648_v9, 16.0  ;;  %vm1653_vm5 = vcmp.le.f32.partialorder %v1649_v19, 16.0  ;;  %v1748_v59 = vadd.f32 %v6408_v45, %v1745_v39  ;;  %v6436_v1 = vmin.f32 %v1599_v18, 15.0  ;;  %s2014_s24 = smul.f32 0.25, %s6481_s25  ;;  %s6580_s30 = sld [smem:[#allocation5 + %s2536_s9]] }
  0x9a   : > { %1121 = vperm.xlu0 %5152, %v6154_v48   ;;  %vm1654_vm6 = vmand %vm1650_vm2, %vm1652_vm4  ;;  %v1749_v13 = vadd.f32 %v6408_v45, %v1746_v57  ;;  %v1803_v7 = vmul.f32 %v6418_v51, %v5743_v15  ;;  %v6459_v18 = vmin.f32 %v1658_v41, 15.0  ;;  %v6461_v9 = vmin.f32 %v1659_v62, 15.0  ;;  %s6519_s1 = smul.f32 0.25, %s2264_s26  ;;  %s6542_s26 = sld [smem:[#allocation5 + %s2540_s27]] }
  0x9b   : > { %1116 = vperm.xlu1 %5141, %v6144_v42   ;;  %vm1655_vm7 = vmand %vm1651_vm3, %vm1653_vm5  ;;  %v6447_v48 = vsel %vm1654_vm6, 0.5, %v9386_v24  ;;  %v1758_v42 = vmax.f32 %v1748_v59, 0.0  ;;  %vm1750_vm8 = vcmp.ge.f32.partialorder %v1748_v59, -1.0  ;;  %vm1752_vm9 = vcmp.le.f32.partialorder %v1748_v59, 16.0  ;;  %s6591_s29 = sld [smem:[#allocation5 + %s2544_s16]]  ;;  %s9457_s25 = smul.f32 0.25, %s6359_s0 }
  0x9c   : > { %v6450_v36 = vsel %vm1655_vm7, 0.5, %v9386_v24  ;;  %v1759_v47 = vmax.f32 %v1749_v13, 0.0  ;;  %vm1751_vm10 = vcmp.ge.f32.partialorder %v1749_v13, -1.0  ;;  %vm1753_vm11 = vcmp.le.f32.partialorder %v1749_v13, 16.0  ;;  %vm1754_vm12 = vmand %vm1750_vm8, %vm1752_vm9  ;;  %s2272_s8 = scvt.s32.f32 %s6431_s7  ;;  %s2548_s7 = sadd.s32 35, %s5678_s23 }
  0x9d   : > { %vm1755_vm13 = vmand %vm1751_vm10, %vm1753_vm11  ;;  %v6467_v39 = vstv %s1730_s13  ;;  %v6472_v57 = vmin.f32 %v1758_v42, 15.0  ;;  %v1804_v62 = vmul.f32 %v6418_v51, %v5763_v22  ;;  %s6483_s13 = smul.f32 0.25, %s2276_s18  ;;  %v1860_v58 = vmul.f32 %v6390_v16, %v5714_v3 }
  0x9e   : > { %1216 = vperm.xlu0 %5152, %v6194_v14   ;;  %v6475_v14 = vsel %vm1754_vm12, 0.5, %v9386_v24  ;;  %v1806_v41 = vadd.f32 %v6467_v39, %v1803_v7  ;;  %v6485_v59 = vmin.f32 %v1759_v47, 15.0  ;;  %v1861_v43 = vmul.f32 %v6390_v16, %v5716_v4  ;;  %s6531_s11 = smul.f32 0.25, %s2272_s8  ;;  %s6548_s8 = sld [smem:[#allocation5 + %s2548_s7]] }
  0x9f   : > { %5199 = vperm.xlu1 %5141, %v5198_v63   ;;  %v375_v63 = vlaneseq  ;;  %v6494_v13 = vsel %vm1755_vm13, 0.5, %v9386_v24  ;;  %v1807_v7 = vadd.f32 %v6467_v39, %v1804_v62  ;;  %v1862_v42 = vadd.f32 %v1860_v58, %v6408_v45  ;;  %s2283_s22 = smul.f32 0.25, %s6483_s13 }
  0xa0   : > { %vm1808_vm14 = vcmp.ge.f32.partialorder %v1806_v41, -1.0  ;;  %vm1810_vm15 = vcmp.le.f32.partialorder %v1806_v41, 16.0  ;;  %v1816_v16 = vmax.f32 %v1806_v41, 0.0  ;;  %v1863_v47 = vadd.f32 %v1861_v43, %v6408_v45  ;;  %s2278_s18 = smul.f32 0.25, %s6519_s1  ;;  %s2542_s13 = scvt.s32.f32 %s6542_s26 }
  0xa1   : > { %vm1812_vm0 = vmand %vm1808_vm14, %vm1810_vm15  ;;  %v6504_v19 = vshrl.u32 %v375_v63, 7  ;;  %v1817_v62 = vmax.f32 %v1807_v7, 0.0  ;;  %vm1809_vm1 = vcmp.ge.f32.partialorder %v1807_v7, -1.0  ;;  %vm1811_vm2 = vcmp.le.f32.partialorder %v1807_v7, 16.0  ;;  %v309_v7 = vld [vmem:[%s9370_s4] sm:$0x3]  ;;  %s6563_s27 = ssub.f32 %s2283_s22, %s2279_s15  ;;  %s2538_s22 = scvt.s32.f32 %s6580_s30 }
  0xa2   : > { %5204 = vperm.xlu0 %5152, %v5203_v33   ;;  %v1920_v10 = vmul.f32 %v6418_v51, %v5765_v23  ;;  %vm1813_vm3 = vmand %vm1809_vm1, %vm1811_vm2  ;;  %v6516_v33 = vsel %vm1812_vm0, 0.5, %v9386_v24  ;;  %v1872_v45 = vmax.f32 %v1862_v42, 0.0  ;;  %v1873_v41 = vmax.f32 %v1863_v47, 0.0  ;;  %s2280_s7 = smul.f32 0.25, %s6531_s11  ;;  %s2546_s26 = scvt.s32.f32 %s6591_s29 }
  0xa3   : > { %1221 = vperm.xlu1 %5141, %v6207_v20   ;;  %v377_v20 = vsub.s32 0, %v6504_v19  ;;  %v6525_v43 = vsel %vm1813_vm3, 0.5, %v9386_v24  ;;  %v381_v63 = vsub.s32 1, %v6504_v19  ;;  %vm1864_vm4 = vcmp.ge.f32.partialorder %v1862_v42, -1.0  ;;  %s6610_s17 = smax.f32 %s9454_s14, %s6563_s27  ;;  %s6651_s11 = smul.f32 0.25, %s2542_s13 }
  0xa4   : > { %v6534_v49 = vmin.f32 %v1816_v16, 15.0  ;;  %v6536_v11 = vmin.f32 %v1817_v62, 15.0  ;;  %v6540_v19 = vmin.f32 %v1872_v45, 15.0  ;;  %v6546_v32 = vmin.f32 %v1873_v41, 15.0  ;;  %s2291_s0 = smul.f32 0.25, %s6610_s17  ;;  %s2814_s29 = sadd.s32 37, %s5678_s23 }
  0xa5   : > { %vm1865_vm5 = vcmp.ge.f32.partialorder %v1863_v47, -1.0  ;;  %vm1866_vm6 = vcmp.le.f32.partialorder %v1862_v42, 16.0  ;;  %vm1867_vm7 = vcmp.le.f32.partialorder %v1863_v47, 16.0  ;;  %v6553_v16 = vrot.slane %v308_v50, %v381_v63  ;;  %s6683_s16 = smul.f32 0.25, %s2546_s26  ;;  %s2810_s13 = sadd.s32 36, %s5678_s23 }
  0xa6   : > { %1279 = vperm.xlu0 %5152, %v6231_v40   ;;  %v6551_v40 = vrot.slane %v308_v50, %v377_v20  ;;  %vm1868_vm8 = vmand %vm1864_vm4, %vm1866_vm6  ;;  %v1921_v62 = vmul.f32 %v6418_v51, %v5795_v28  ;;  %v6569_v45 = vrot.slane %v309_v7, %v377_v20  ;;  %v6573_v42 = vstv %s2017_s20  ;;  %s2550_s20 = scvt.s32.f32 %s6548_s8  ;;  %s6678_s8 = smul.f32 0.25, %s2538_s22 }
  0xa7   : > { %1274 = vperm.xlu1 %5141, %v6226_v38   ;;  %v1922_v38 = vadd.f32 %v1920_v10, %v6467_v39  ;;  %vm1869_vm9 = vmand %vm1865_vm5, %vm1867_vm7  ;;  %v6567_v47 = vsel %vm1868_vm8, 0.5, %v9386_v24  ;;  %v6577_v50 = vstv %s2005_s21  ;;  %v6589_v41 = vstv %s2014_s24  ;;  %s2281_s21 = ssub.f32 %s2280_s7, %s2278_s18  ;;  %s2553_s27 = smul.f32 0.25, %s6651_s11 }
  0xa8   : > { %v6584_v51 = vsel %vm1869_vm9, 0.5, %v9386_v24  ;;  %v1923_v10 = vadd.f32 %v1921_v62, %v6467_v39  ;;  %v2020_v39 = vmul.f32 %v6573_v42, %v5720_v6  ;;  %v6602_v58 = vrot.slane %v309_v7, %v381_v63  ;;  %s6660_s30 = smul.f32 0.25, %s2550_s20  ;;  %s6777_s22 = sld [smem:[#allocation5 + %s2810_s13]] }
  0xa9   : > { %vm1924_vm10 = vcmp.ge.f32.partialorder %v1922_v38, -1.0  ;;  %v1932_v20 = vmax.f32 %v1922_v38, 0.0  ;;  %vm1926_vm11 = vcmp.le.f32.partialorder %v1922_v38, 16.0  ;;  %v2077_v38 = vmul.f32 %v6589_v41, %v5743_v15  ;;  %s6644_s24 = smax.f32 %s9454_s14, %s2281_s21  ;;  %s2552_s17 = smul.f32 0.25, %s6678_s8 }
  0xaa   : > { %1330 = vperm.xlu0 %5152, %v6243_v53   ;;  %v2019_v53 = vmul.f32 %v6573_v42, %v5718_v5  ;;  %vm1925_vm12 = vcmp.ge.f32.partialorder %v1923_v10, -1.0  ;;  %vm1927_vm13 = vcmp.le.f32.partialorder %v1923_v10, 16.0  ;;  %vm1928_vm14 = vmand %vm1924_vm10, %vm1926_vm11  ;;  %v1933_v35 = vmax.f32 %v1923_v10, 0.0  ;;  %s2288_s9 = smul.f32 0.25, %s6644_s24  ;;  %s2822_s21 = sadd.s32 39, %s5678_s23 }
  0xab   : > { %5209 = vperm.xlu1 %5141, %v5208_v26   ;;  %vm1929_vm15 = vmand %vm1925_vm12, %vm1927_vm13  ;;  %v2023_v26 = vadd.f32 %v6577_v50, %v2020_v39  ;;  %v6618_v63 = vsel %vm1928_vm14, 0.5, %v9386_v24  ;;  %v6625_v10 = vstv %s9457_s25  ;;  %v6631_v39 = vmin.f32 %v1932_v20, 15.0  ;;  %s2557_s7 = smul.f32 0.25, %s6660_s30  ;;  %s6757_s20 = sld [smem:[#allocation5 + %s2822_s21]] }
  0xac   : > { %v2022_v37 = vadd.f32 %v6577_v50, %v2019_v53  ;;  %v6621_v7 = vsel %vm1929_vm15, 0.5, %v9386_v24  ;;  %v2078_v53 = vmul.f32 %v6589_v41, %v5763_v22  ;;  %v6636_v62 = vmin.f32 %v1933_v35, 15.0  ;;  %s2554_s28 = smul.f32 0.25, %s6683_s16 }
  0xad   : > { %v2033_v56 = vmax.f32 %v2023_v26, 0.0  ;;  %vm2025_vm1 = vcmp.ge.f32.partialorder %v2023_v26, -1.0  ;;  %vm2027_vm3 = vcmp.le.f32.partialorder %v2023_v26, 16.0  ;;  %v2134_v20 = vmul.f32 %v6573_v42, %v5714_v3  ;;  %s6746_s25 = ssub.f32 %s2557_s7, %s2553_s27 }
  0xae   : > { %5214 = vperm.xlu0 %5152, %v5213_v12   ;;  %v2032_v55 = vmax.f32 %v2022_v37, 0.0  ;;  %vm2024_vm0 = vcmp.ge.f32.partialorder %v2022_v37, -1.0  ;;  %vm2026_vm2 = vcmp.le.f32.partialorder %v2022_v37, 16.0  ;;  %v2080_v12 = vadd.f32 %v6625_v10, %v2077_v38  ;;  %vm2029_vm5 = vmand %vm2025_vm1, %vm2027_vm3  ;;  %s2555_s24 = ssub.f32 %s2554_s28, %s2552_s17  ;;  %s2812_s28 = scvt.s32.f32 %s6777_s22 }
  0xaf   : > { %1335 = vperm.xlu1 %5141, %v6251_v44   ;;  %vm2028_vm4 = vmand %vm2024_vm0, %vm2026_vm2  ;;  %v2081_v44 = vadd.f32 %v6625_v10, %v2078_v53  ;;  %v6658_v38 = vsel %vm2029_vm5, 0.5, %v9386_v24  ;;  %v2136_v34 = vadd.f32 %v2134_v20, %v6577_v50  ;;  %s6796_s1 = smax.f32 %s9454_s14, %s6746_s25 }
  0xb0   : > { %v6649_v37 = vsel %vm2028_vm4, 0.5, %v9386_v24  ;;  %v2090_v35 = vmax.f32 %v2080_v12, 0.0  ;;  %vm2082_vm6 = vcmp.ge.f32.partialorder %v2080_v12, -1.0  ;;  %vm2084_vm7 = vcmp.le.f32.partialorder %v2080_v12, 16.0  ;;  %s6858_s13 = smul.f32 0.25, %s2812_s28  ;;  %s3092_s28 = sadd.s32 42, %s5678_s23 }
  0xb1   : > { %v6655_v26 = vmin.f32 %v2032_v55, 15.0  ;;  %vm2083_vm8 = vcmp.ge.f32.partialorder %v2081_v44, -1.0  ;;  %vm2085_vm9 = vcmp.le.f32.partialorder %v2081_v44, 16.0  ;;  %vm2086_vm10 = vmand %vm2082_vm6, %vm2084_vm7  ;;  %v2091_v12 = vmax.f32 %v2081_v44, 0.0  ;;  %s2824_s7 = scvt.s32.f32 %s6757_s20 }
  0xb2   : > { %1395 = vperm.xlu0 %5152, %v6325_v54   ;;  %v6662_v54 = vmin.f32 %v2033_v56, 15.0  ;;  %vm2087_vm11 = vmand %vm2083_vm8, %vm2085_vm9  ;;  %v2135_v56 = vmul.f32 %v6573_v42, %v5716_v4  ;;  %v6681_v44 = vmin.f32 %v2090_v35, 15.0  ;;  %v2146_v20 = vmax.f32 %v2136_v34, 0.0  ;;  %s2826_s8 = smul.f32 0.25, %s6858_s13 }
  0xb3   : > { %1390 = vperm.xlu1 %5141, %v6266_v46   ;;  %v6669_v46 = vsel %vm2086_vm10, 0.5, %v9386_v24  ;;  %v6672_v55 = vsel %vm2087_vm11, 0.5, %v9386_v24  ;;  %vm2138_vm12 = vcmp.ge.f32.partialorder %v2136_v34, -1.0  ;;  %vm2140_vm13 = vcmp.le.f32.partialorder %v2136_v34, 16.0  ;;  %s6844_s21 = smul.f32 0.25, %s2824_s7  ;;  %s3084_s7 = sadd.s32 40, %s5678_s23 }
  0xb4   : > { %9458 = vst [vmem:[#allocation25_spill] sm:$0xff] %v6662_v54  ;;  %9459 = vst [vmem:[#allocation26_spill] sm:$0xff] %v6669_v46  ;;  %v2194_v54 = vmul.f32 %v6589_v41, %v5765_v23  ;;  %v9461_v42 = vpack.i.bf16 %v6306_v27, %v6303_v25  ;;  %v2137_v53 = vadd.f32 %v2135_v56, %v6577_v50  ;;  %v6694_v35 = vstv %s2291_s0  ;;  %s2818_s0 = sadd.s32 38, %s5678_s23 }
  0xb5   : > { %9460 = vst [vmem:[#allocation27_spill] sm:$0xff] %v6681_v44  ;;  %v6697_v44 = vmin.f32 %v2091_v12, 15.0  ;;  %vm6701_vm14 = vmand %vm2138_vm12, %vm2140_vm13  ;;  %v2293_v27 = vmul.f32 %v6694_v35, %v5718_v5  ;;  %v6709_v50 = vstv %s2279_s15  ;;  %v9464_v12 = vpack.i.bf16 %v6339_v30, %v6336_v21  ;;  %s6732_s15 = sld [smem:[#allocation5 + %s2814_s29]] }
  0xb6   : > { %1490 = vperm.xlu0 %5152, %v6343_v52   ;;  %v2196_v24 = vadd.f32 %v2194_v54, %v6625_v10  ;;  %v2195_v52 = vmul.f32 %v6589_v41, %v5795_v28  ;;  %v2147_v41 = vmax.f32 %v2137_v53, 0.0  ;;  %vm2139_vm15 = vcmp.ge.f32.partialorder %v2137_v53, -1.0  ;;  %s6784_s26 = sld [smem:[#allocation5 + %s2818_s0]] }
  0xb7   : > { %5219 = vperm.xlu1 %5141, %v9461_v42   ;;  %vm2141_vm0 = vcmp.le.f32.partialorder %v2137_v53, 16.0  ;;  %v2296_v42 = vadd.f32 %v6709_v50, %v2293_v27  ;;  %v6721_v34 = vmin.f32 %v2146_v20, 15.0  ;;  %v9466_v46 = vmov 0.0  }
  0xb8   : > { %v2206_v54 = vmax.f32 %v2196_v24, 0.0  ;;  %vm2143_vm1 = vmand %vm2139_vm15, %vm2141_vm0  ;;  %v2197_v56 = vadd.f32 %v2195_v52, %v6625_v10  ;;  %vm2198_vm2 = vcmp.ge.f32.partialorder %v2196_v24, -1.0  ;;  %vm2200_vm3 = vcmp.le.f32.partialorder %v2196_v24, 16.0 }
  0xb9   : > { %v6723_v53 = vmin.f32 %v2147_v41, 15.0  ;;  %v6728_v21 = vsel %vm6701_vm14, 0.5, %v9466_v46  ;;  %vm2202_vm4 = vmand %vm2198_vm2, %vm2200_vm3  ;;  %v2294_v24 = vmul.f32 %v6694_v35, %v5720_v6  ;;  %v6736_v30 = vsel %vm2143_vm1, 0.5, %v9466_v46 }
  0xba   : > { %5224 = vperm.xlu0 %5152, %v9464_v12   ;;  %vm2199_vm5 = vcmp.ge.f32.partialorder %v2197_v56, -1.0  ;;  %vm2201_vm6 = vcmp.le.f32.partialorder %v2197_v56, 16.0  ;;  %v6739_v10 = vsel %vm2202_vm4, 0.5, %v9466_v46  ;;  %v2306_v20 = vmax.f32 %v2296_v42, 0.0 }
  0xbb   : > { %1495 = vperm.xlu1 %5141, %v6351_v61   ;;  %9465 = vst [vmem:[#allocation28_spill] sm:$0xff] %v6723_v53  ;;  %v2207_v61 = vmax.f32 %v2197_v56, 0.0  ;;  %vm2203_vm7 = vmand %vm2199_vm5, %vm2201_vm6  ;;  %v2297_v52 = vadd.f32 %v6709_v50, %v2294_v24  ;;  %vm2298_vm8 = vcmp.ge.f32.partialorder %v2296_v42, -1.0  ;;  %v6750_v25 = vmin.f32 %v2206_v54, 15.0  ;;  %s2816_s30 = scvt.s32.f32 %s6732_s15 }
  0xbc   : > { %9467 = vst [vmem:[#allocation29_spill] sm:$0xff] %v6739_v10  ;;  %v6753_v27 = vsel %vm2203_vm7, 0.5, %v9466_v46  ;;  %vm2300_vm9 = vcmp.le.f32.partialorder %v2296_v42, 16.0  ;;  %v2350_v41 = vstv %s2288_s9  ;;  %v6772_v54 = vmin.f32 %v2306_v20, 15.0  ;;  %s2565_s9 = smul.f32 0.25, %s6796_s1  ;;  %s2820_s15 = scvt.s32.f32 %s6784_s26 }
  0xbd   : > { %9468 = vst [vmem:[#allocation30_spill] sm:$0xff] %v6750_v25  ;;  %9469 = vst [vmem:[#allocation31_spill] sm:$0xff] %v6753_v27  ;;  %v6763_v56 = vmin.f32 %v2207_v61, 15.0  ;;  %vm2299_vm10 = vcmp.ge.f32.partialorder %v2297_v52, -1.0  ;;  %vm2301_vm12 = vcmp.le.f32.partialorder %v2297_v52, 16.0  ;;  %v2353_v24 = vstv %s2278_s18  ;;  %s6805_s18 = smax.f32 %s9454_s14, %s2555_s24  ;;  %s6827_s29 = smul.f32 0.25, %s2816_s30 }
  0xbe   : > { %1553 = vperm.xlu0 %5152, %v6411_v60   ;;  %vm2302_vm11 = vmand %vm2298_vm8, %vm2300_vm9  ;;  %9471 = vst [vmem:[#allocation33_spill] sm:$0xff] %v6772_v54  ;;  %v2307_v61 = vmax.f32 %v2297_v52, 0.0  ;;  %v2352_v60 = vmul.f32 %v2350_v41, %v5763_v22  ;;  %v2408_v42 = vmul.f32 %v6694_v35, %v5714_v3  ;;  %v2409_v20 = vmul.f32 %v6694_v35, %v5716_v4  ;;  %s2562_s16 = smul.f32 0.25, %s6805_s18  ;;  %s3088_s18 = sadd.s32 41, %s5678_s23 }
  0xbf   : > { %1548 = vperm.xlu1 %5141, %v6366_v2   ;;  %9470 = vst [vmem:[#allocation32_spill] sm:$0xff] %v6763_v56  ;;  %v2351_v2 = vmul.f32 %v2350_v41, %v5743_v15  ;;  %vm2303_vm13 = vmand %vm2299_vm10, %vm2301_vm12  ;;  %v6788_v12 = vsel %vm2302_vm11, 0.5, %v9466_v46  ;;  %v2468_v27 = vmul.f32 %v2350_v41, %v5765_v23  ;;  %v9472_v54 = vpack.i.bf16 %v6397_v0, %v6375_v31  ;;  %s2827_s25 = smul.f32 0.25, %s6827_s29  ;;  %s3096_s30 = sadd.s32 43, %s5678_s23 }
  0xc0   : > { %v6791_v10 = vsel %vm2303_vm13, 0.5, %v9466_v46  ;;  %v2355_v35 = vadd.f32 %v2353_v24, %v2352_v60  ;;  %v2411_v25 = vadd.f32 %v2409_v20, %v6709_v50  ;;  %v2469_v56 = vmul.f32 %v2350_v41, %v5795_v28  ;;  %s6869_s11 = smul.f32 0.25, %s2820_s15 }
  0xc1   : > { %v2354_v52 = vadd.f32 %v2353_v24, %v2351_v2  ;;  %v2470_v53 = vadd.f32 %v2468_v27, %v2353_v24  ;;  %v6812_v41 = vmin.f32 %v2307_v61, 15.0  ;;  %v9480_v60 = vpack.i.bf16 %v6450_v36, %v6447_v48 }
  0xc2   : > { %1604 = vperm.xlu0 %5152, %v6381_v17   ;;  %v2410_v17 = vadd.f32 %v2408_v42, %v6709_v50  ;;  %v2365_v31 = vmax.f32 %v2355_v35, 0.0  ;;  %vm2357_vm0 = vcmp.ge.f32.partialorder %v2355_v35, -1.0  ;;  %vm2359_vm1 = vcmp.le.f32.partialorder %v2355_v35, 16.0 }
  0xc3   : > { %5229 = vperm.xlu1 %5141, %v9472_v54   ;;  %v2364_v2 = vmax.f32 %v2354_v52, 0.0  ;;  %vm2356_vm14 = vcmp.ge.f32.partialorder %v2354_v52, -1.0  ;;  %vm2358_vm15 = vcmp.le.f32.partialorder %v2354_v52, 16.0  ;;  %v9473_v50 = vpack.i.bf16 %v6414_v8, %v6384_v29  ;;  %vm2361_vm3 = vmand %vm2357_vm0, %vm2359_vm1 }
  0xc4   : > { %vm2360_vm2 = vmand %vm2356_vm14, %vm2358_vm15  ;;  %v2420_v0 = vmax.f32 %v2410_v17, 0.0  ;;  %vm2412_vm4 = vcmp.ge.f32.partialorder %v2410_v17, -1.0  ;;  %v6825_v29 = vsel %vm2361_vm3, 0.5, %v9466_v46  ;;  %v2421_v8 = vmax.f32 %v2411_v25, 0.0 }
  0xc5   : > { %v6816_v54 = vmin.f32 %v2364_v2, 15.0  ;;  %v6822_v27 = vsel %vm2360_vm2, 0.5, %v9466_v46  ;;  %vm2413_vm5 = vcmp.ge.f32.partialorder %v2411_v25, -1.0  ;;  %v6829_v61 = vmin.f32 %v2365_v31, 15.0 }
  0xc6   : > { %5234 = vperm.xlu0 %5152, %v9473_v50   ;;  %9474 = vst [vmem:[#allocation34_spill] sm:$0xff] %v6822_v27  ;;  %v6831_v42 = vmin.f32 %v2420_v0, 15.0  ;;  %vm2414_vm6 = vcmp.le.f32.partialorder %v2410_v17, 16.0  ;;  %vm2415_vm7 = vcmp.le.f32.partialorder %v2411_v25, 16.0  ;;  %v2471_v20 = vadd.f32 %v2469_v56, %v2353_v24 }
  0xc7   : > { %1609 = vperm.xlu1 %5141, %v6436_v1   ;;  %vm2416_vm8 = vmand %vm2412_vm4, %vm2414_vm6  ;;  %v2480_v1 = vmax.f32 %v2470_v53, 0.0  ;;  %vm2472_vm9 = vcmp.ge.f32.partialorder %v2470_v53, -1.0  ;;  %vm2474_vm10 = vcmp.le.f32.partialorder %v2470_v53, 16.0  ;;  %v2566_v17 = vstv %s2565_s9  ;;  %s7450_s9 = sld [smem:[#allocation5 + %s3088_s18]] }
  0xc8   : > { %vm2417_vm11 = vmand %vm2413_vm5, %vm2415_vm7  ;;  %v6840_v35 = vsel %vm2416_vm8, 0.5, %v9466_v46  ;;  %v6842_v2 = vstv %s2562_s16  ;;  %v6847_v53 = vmin.f32 %v2421_v8, 15.0  ;;  %vm2473_vm12 = vcmp.ge.f32.partialorder %v2471_v20, -1.0  ;;  %s7456_s16 = sld [smem:[#allocation5 + %s3096_s30]] }
  0xc9   : > { %9475 = vst [vmem:[#allocation35_spill] sm:$0xff] %v6840_v35  ;;  %vm2476_vm13 = vmand %vm2472_vm9, %vm2474_vm10  ;;  %v2569_v25 = vstv %s2553_s27  ;;  %v6855_v56 = vmin.f32 %v2480_v1, 15.0  ;;  %v2481_v24 = vmax.f32 %v2471_v20, 0.0  ;;  %vm2475_vm14 = vcmp.le.f32.partialorder %v2471_v20, 16.0  ;;  %s2831_s27 = smul.f32 0.25, %s6844_s21  ;;  %s7501_s21 = sld [smem:[#allocation5 + %s3084_s7]] }
  0xca   : > { %1669 = vperm.xlu0 %5152, %v6461_v9   ;;  %9476 = vst [vmem:[#allocation36_spill] sm:$0xff] %v6847_v53  ;;  %v6850_v9 = vsel %vm2417_vm11, 0.5, %v9466_v46  ;;  %v2567_v31 = vmul.f32 %v2566_v17, %v5718_v5  ;;  %vm2477_vm15 = vmand %vm2473_vm12, %vm2475_vm14  ;;  %v2568_v0 = vmul.f32 %v2566_v17, %v5720_v6  ;;  %v2625_v50 = vmul.f32 %v6842_v2, %v5743_v15 }
  0xcb   : > { %1664 = vperm.xlu1 %5141, %v6459_v18   ;;  %9477 = vst [vmem:[#allocation37_spill] sm:$0xff] %v6850_v9  ;;  %9478 = vst [vmem:[#allocation38_spill] sm:$0xff] %v6855_v56  ;;  %v6867_v8 = vstv %s2552_s17  ;;  %v6873_v1 = vsel %vm2476_vm13, 0.5, %v9466_v46  ;;  %v6876_v20 = vsel %vm2477_vm15, 0.5, %v9466_v46  ;;  %v2626_v52 = vmul.f32 %v6842_v2, %v5763_v22  ;;  %s2828_s17 = smul.f32 0.25, %s6869_s11  ;;  %s2832_s20 = ssub.f32 %s2831_s27, %s2827_s25 }
  0xcc   : > { %9479 = vst [vmem:[#allocation39_spill] sm:$0xff] %v6873_v1  ;;  %v2570_v18 = vadd.f32 %v2569_v25, %v2567_v31  ;;  %v2571_v56 = vadd.f32 %v2569_v25, %v2568_v0  ;;  %v2628_v53 = vadd.f32 %v6867_v8, %v2625_v50  ;;  %v2683_v35 = vmul.f32 %v2566_v17, %v5716_v4 }
  0xcd   : > { %v2629_v31 = vadd.f32 %v6867_v8, %v2626_v52  ;;  %v9481_v36 = vpack.i.bf16 %v6494_v13, %v6475_v14  ;;  %s2829_s0 = ssub.f32 %s2828_s17, %s2826_s8  ;;  %s6930_s24 = smax.f32 %s9454_s14, %s2832_s20 }
  0xce   : > { %1764 = vperm.xlu0 %5152, %v6472_v57   ;;  %v2682_v57 = vmul.f32 %v2566_v17, %v5714_v3  ;;  %v2580_v9 = vmax.f32 %v2570_v18, 0.0  ;;  %vm2572_vm0 = vcmp.ge.f32.partialorder %v2570_v18, -1.0  ;;  %vm2574_vm1 = vcmp.le.f32.partialorder %v2570_v18, 16.0  ;;  %s2839_s22 = smul.f32 0.25, %s6930_s24  ;;  %s3090_s29 = scvt.s32.f32 %s7450_s9 }
  0xcf   : > { %5239 = vperm.xlu1 %5141, %v9480_v60   ;;  %v2581_v27 = vmax.f32 %v2571_v56, 0.0  ;;  %vm2573_vm2 = vcmp.ge.f32.partialorder %v2571_v56, -1.0  ;;  %vm2575_vm3 = vcmp.le.f32.partialorder %v2571_v56, 16.0  ;;  %vm2576_vm4 = vmand %vm2572_vm0, %vm2574_vm1  ;;  %v2638_v48 = vmax.f32 %v2628_v53, 0.0  ;;  %s6949_s26 = smax.f32 %s9454_s14, %s2829_s0  ;;  %s3098_s15 = scvt.s32.f32 %s7456_s16 }
  0xd0   : > { %v6893_v60 = vmin.f32 %v2481_v24, 15.0  ;;  %v6897_v0 = vmin.f32 %v2580_v9, 15.0  ;;  %vm2577_vm5 = vmand %vm2573_vm2, %vm2575_vm3  ;;  %v2639_v52 = vmax.f32 %v2629_v31, 0.0  ;;  %v6907_v14 = vsel %vm2576_vm4, 0.5, %v9466_v46  ;;  %s2836_s1 = smul.f32 0.25, %s6949_s26  ;;  %s3086_s17 = scvt.s32.f32 %s7501_s21 }
  0xd1   : > { %v6904_v18 = vmin.f32 %v2581_v27, 15.0  ;;  %9483 = vst [vmem:[#allocation41_spill] sm:$0xff] %v6907_v14  ;;  %v6910_v13 = vsel %vm2577_vm5, 0.5, %v9466_v46  ;;  %vm2630_vm6 = vcmp.ge.f32.partialorder %v2628_v53, -1.0  ;;  %v6914_v50 = vmin.f32 %v2638_v48, 15.0  ;;  %s7512_s13 = smul.f32 0.25, %s3090_s29 }
  0xd2   : > { %5244 = vperm.xlu0 %5152, %v9481_v36   ;;  %9484 = vst [vmem:[#allocation42_spill] sm:$0xff] %v6910_v13  ;;  %vm2631_vm7 = vcmp.ge.f32.partialorder %v2629_v31, -1.0  ;;  %vm2632_vm8 = vcmp.le.f32.partialorder %v2628_v53, 16.0  ;;  %vm2633_vm9 = vcmp.le.f32.partialorder %v2629_v31, 16.0  ;;  %v2685_v36 = vadd.f32 %v2683_v35, %v2569_v25  ;;  %s7520_s11 = smul.f32 0.25, %s3098_s15  ;;  %s3362_s29 = sadd.s32 45, %s5678_s23 }
  0xd3   : > { %1769 = vperm.xlu1 %5141, %v6485_v59   ;;  %v6902_v56 = vpop.permute.xlu0 %5154  ;;  %9482 = vst [vmem:[#allocation40_spill] sm:$0xff] %v6904_v18  ;;  %9485 = vst [vmem:[#allocation43_spill] sm:$0xff] %v6914_v50  ;;  %v2684_v59 = vadd.f32 %v2682_v57, %v2569_v25  ;;  %v6923_v4 = vmin.f32 %v2639_v52, 15.0  ;;  %v2742_v48 = vmul.f32 %v6842_v2, %v5765_v23  ;;  %s3101_s27 = smul.f32 0.25, %s7512_s13  ;;  %s7657_s15 = sld [smem:[#allocation5 + %s3362_s29]] }
  0xd4   : > { %vm2634_vm10 = vmand %vm2630_vm6, %vm2632_vm8  ;;  %v2743_v53 = vmul.f32 %v6842_v2, %v5795_v28  ;;  %v2695_v25 = vmax.f32 %v2685_v36, 0.0  ;;  %vm2687_vm13 = vcmp.ge.f32.partialorder %v2685_v36, -1.0  ;;  %vm2689_vm15 = vcmp.le.f32.partialorder %v2685_v36, 16.0  ;;  %s7566_s24 = smul.f32 0.25, %s3086_s17  ;;  %s3366_s13 = sadd.s32 46, %s5678_s23 }
  0xd5   : > { %v6918_v27 = vpop.permute.xlu1 %5143  ;;  %9486 = vst [vmem:[#allocation44_spill] sm:$0xff] %v6923_v4  ;;  %vm2635_vm11 = vmand %vm2631_vm7, %vm2633_vm9  ;;  %v2694_v35 = vmax.f32 %v2684_v59, 0.0  ;;  %vm2686_vm12 = vcmp.ge.f32.partialorder %v2684_v59, -1.0  ;;  %vm2688_vm14 = vcmp.le.f32.partialorder %v2684_v59, 16.0  ;;  %v2744_v17 = vadd.f32 %v2742_v48, %v6867_v8 }
  0xd6   : > { %1827 = vperm.xlu0 %5152, %v6536_v11   ;;  %v6935_v11 = vsel %vm2634_vm10, 0.5, %v9466_v46  ;;  %v6938_v57 = vsel %vm2635_vm11, 0.5, %v9466_v46  ;;  %vm2690_vm0 = vmand %vm2686_vm12, %vm2688_vm14  ;;  %v6954_v36 = vmin.f32 %v2695_v25, 15.0  ;;  %v2745_v31 = vadd.f32 %v2743_v53, %v6867_v8 }
  0xd7   : > { %1822 = vperm.xlu1 %5141, %v6534_v49   ;;  %9487 = vst [vmem:[#allocation45_spill] sm:$0xff] %v6935_v11  ;;  %9488 = vst [vmem:[#allocation46_spill] sm:$0xff] %v6938_v57  ;;  %v6952_v59 = vmin.f32 %v2694_v35, 15.0  ;;  %v6957_v9 = vsel %vm2690_vm0, 0.5, %v9466_v46  ;;  %v9492_v48 = vpack.i.bf16 %v6525_v43, %v6516_v33  ;;  %v2754_v2 = vmax.f32 %v2744_v17, 0.0 }
  0xd8   : > { %9490 = vst [vmem:[#allocation48_spill] sm:$0xff] %v6954_v36  ;;  %vm2691_vm1 = vmand %vm2687_vm13, %vm2689_vm15  ;;  %vm2746_vm2 = vcmp.ge.f32.partialorder %v2744_v17, -1.0  ;;  %vm2748_vm3 = vcmp.le.f32.partialorder %v2744_v17, 16.0  ;;  %v2755_v35 = vmax.f32 %v2745_v31, 0.0  ;;  %vm2747_vm4 = vcmp.ge.f32.partialorder %v2745_v31, -1.0 }
  0xd9   : > { %v6942_v49 = vpop.permute.xlu0 %5164  ;;  %9489 = vst [vmem:[#allocation47_spill] sm:$0xff] %v6952_v59  ;;  %9491 = vst [vmem:[#allocation49_spill] sm:$0xff] %v6957_v9  ;;  %v6964_v24 = vsel %vm2691_vm1, 0.5, %v9466_v46  ;;  %vm2749_vm5 = vcmp.le.f32.partialorder %v2745_v31, 16.0  ;;  %v6974_v25 = vstv %s2839_s22  ;;  %v6988_v33 = vstv %s2827_s25  ;;  %v9525_v59 = vld [vmem:[#allocation32_spill] sm:$0xff]  ;;  %s7506_s25 = sld [smem:[#allocation5 + %s3092_s28]] }
  0xda   : > { %1878 = vperm.xlu0 %5152, %v6540_v19   ;;  %9493 = vst [vmem:[#allocation50_spill] sm:$0xff] %v6964_v24  ;;  %vm2750_vm6 = vmand %vm2746_vm2, %vm2748_vm3  ;;  %v9496_v19 = vpack.i.bf16 %v6584_v51, %v6567_v47  ;;  %v6992_v28 = vmin.f32 %v2754_v2, 15.0  ;;  %v6994_v23 = vmin.f32 %v2755_v35, 15.0  ;;  %v2842_v51 = vmul.f32 %v6974_v25, %v5720_v6  ;;  %s3370_s28 = sadd.s32 47, %s5678_s23 }
  0xdb   : > { %5249 = vperm.xlu1 %5141, %v9492_v48   ;;  %vm2751_vm7 = vmand %vm2747_vm4, %vm2749_vm5  ;;  %v6972_v43 = vsel %vm2750_vm6, 0.5, %v9466_v46  ;;  %9495 = vst [vmem:[#allocation52_spill] sm:$0xff] %v6974_v25  ;;  %s7664_s21 = sld [smem:[#allocation5 + %s3370_s28]] }
  0xdc   : > { %9494 = vst [vmem:[#allocation51_spill] sm:$0xff] %v6972_v43  ;;  %v6984_v8 = vsel %vm2751_vm7, 0.5, %v9466_v46  ;;  %9498 = vst [vmem:[#allocation54_spill] sm:$0xff] %v6988_v33  ;;  %v7022_v46 = vstv %s2826_s8  ;;  %s3105_s8 = smul.f32 0.25, %s7520_s11 }
  0xdd   : > { %v367_v53 = vpop.permute.xlu0 %366  ;;  %9497 = vst [vmem:[#allocation53_spill] sm:$0xff] %v6984_v8  ;;  %9499 = vst [vmem:[#allocation55_spill] sm:$0xff] %v6992_v28 }
  0xde   : > { %v6976_v17 = vpop.permute.xlu1 %5148  ;;  %v385_v48 = vsub.f32 %v367_v53, %v6551_v40  ;;  %v386_v31 = vsub.f32 %v367_v53, %v6553_v16  ;;  %5254 = vperm.xlu0 %5152, %v9496_v19   ;;  %9500 = vst [vmem:[#allocation56_spill] sm:$0xff] %v6994_v23  ;;  %v2841_v53 = vmul.f32 %v6974_v25, %v5718_v5  ;;  %v7000_v19 = vstv %s2836_s1  ;;  %s3106_s0 = ssub.f32 %s3105_s8, %s3101_s27  ;;  %s3100_s1 = smul.f32 0.25, %s7566_s24 }
  0xdf   : > { %1883 = vperm.xlu1 %5141, %v6546_v32   ;;  %9501 = vst [vmem:[#allocation57_spill] sm:$0xff] %v7000_v19  ;;  %v2899_v35 = vmul.f32 %v7000_v19, %v5743_v15  ;;  %9504 = vst [vmem:[#allocation60_spill] sm:$0xff] %v7022_v46  ;;  %s3094_s20 = scvt.s32.f32 %s7506_s25  ;;  %s3358_s25 = sadd.s32 44, %s5678_s23 }
  0xe0   : > { %v389_v3 = vand.u32 2147483647, %v385_v48  ;;  %v390_v47 = vand.u32 2147483647, %v386_v31  ;;  %v7006_v2 = vadd.f32 %v6988_v33, %v2841_v53  ;;  %v7018_v53 = vadd.f32 %v6988_v33, %v2842_v51  ;;  %s7580_s26 = smax.f32 %s9454_s14, %s3106_s0  ;;  %s7694_s11 = sld [smem:[#allocation5 + %s3358_s25]] }
  0xe1   : > { %v372_v52 = vpop.permute.xlu0 %371  ;;  %v9507_v33 = vunpack.i.l.bf16 %v6918_v27  ;;  %s7571_s22 = smul.f32 0.25, %s3094_s20  ;;  %s7701_s8 = sld [smem:[#allocation5 + %s3366_s13]] }
  0xe2   : > { %9502 = vst [vmem:[#allocation58_spill] sm:$0xff] %v7006_v2  ;;  %v393_v48 = vsub.f32 1.0, %v389_v3  ;;  %v394_v31 = vsub.f32 1.0, %v390_v47  ;;  %v7010_v5 = vpop.permute.xlu1 %5159  ;;  %v387_v6 = vsub.f32 %v372_v52, %v6551_v40  ;;  %v388_v25 = vsub.f32 %v372_v52, %v6553_v16  ;;  %1943 = vperm.xlu0 %5152, %v6636_v62   ;;  %9503 = vst [vmem:[#allocation59_spill] sm:$0xff] %v7018_v53  ;;  %s3113_s30 = smul.f32 0.25, %s7580_s26  ;;  %s3372_s17 = scvt.s32.f32 %s7664_s21 }
  0xe3   : > { %1938 = vperm.xlu1 %5141, %v6631_v39   ;;  %v2854_v32 = vmax.f32 %v7006_v2, 0.0  ;;  %v7026_v3 = vmul.f32 %v7000_v19, %v5763_v22  ;;  %v2855_v51 = vmax.f32 %v7018_v53, 0.0  ;;  %s3102_s18 = smul.f32 0.25, %s7571_s22  ;;  %s3636_s13 = sadd.s32 49, %s5678_s23 }
  0xe4   : > { %v397_v47 = vmax.f32 %v393_v48, 0.0  ;;  %v398_v15 = vmax.f32 %v394_v31, 0.0  ;;  %v391_v43 = vand.u32 2147483647, %v387_v6  ;;  %v392_v52 = vand.u32 2147483647, %v388_v25 }
  0xe5   : > { %9505 = vst [vmem:[#allocation61_spill] sm:$0xff] %v7026_v3  ;;  %v443_v8 = vpop.permute.xlu0 %442  ;;  %v7030_v2 = vmin.f32 %v2854_v32, 15.0  ;;  %v9508_v32 = vpack.i.bf16 %v6621_v7, %v6618_v63  ;;  %v7051_v39 = vmin.f32 %v2855_v51, 15.0  ;;  %v9511_v63 = vunpack.i.h.bf16 %v6918_v27  ;;  %s3103_s9 = ssub.f32 %s3102_s18, %s3100_s1  ;;  %s7724_s0 = smul.f32 0.25, %s3372_s17 }
  0xe6   : > { %v7035_v28 = vmul.f32 %v9507_v33, %v397_v47  ;;  %v395_v23 = vsub.f32 1.0, %v391_v43  ;;  %v396_v22 = vsub.f32 1.0, %v392_v52  ;;  %v438_v19 = vpop.permute.xlu1 %437  ;;  %v458_v48 = vsub.f32 %v443_v8, %v6569_v45  ;;  %2038 = vperm.xlu0 %5152, %v6655_v26   ;;  %s3360_s24 = scvt.s32.f32 %s7694_s11  ;;  %s3644_s11 = sadd.s32 51, %s5678_s23 }
  0xe7   : > { %9506 = vst [vmem:[#allocation62_spill] sm:$0xff] %v7030_v2  ;;  %v456_v6 = vsub.f32 %v438_v19, %v6569_v45  ;;  %v457_v25 = vsub.f32 %v438_v19, %v6602_v58  ;;  %5259 = vperm.xlu1 %5141, %v9508_v32   ;;  %v459_v31 = vsub.f32 %v443_v8, %v6602_v58  ;;  %9509 = vst [vmem:[#allocation63_spill] sm:$0xff] %v7051_v39  ;;  %v9513_v32 = vld [vmem:[#allocation25_spill] sm:$0xff]  ;;  %s7631_s16 = smax.f32 %s9454_s14, %s3103_s9  ;;  %s3368_s26 = scvt.s32.f32 %s7701_s8 }
  0xe8   : > { %v7047_v47 = vmul.f32 %v9507_v33, %v398_v15  ;;  %v399_v43 = vmax.f32 %v395_v23, 0.0  ;;  %v7049_v52 = vmax.f32 %v396_v22, 0.0  ;;  %v462_v62 = vand.u32 2147483647, %v458_v48  ;;  %s3110_s7 = smul.f32 0.25, %s7631_s16  ;;  %s7889_s8 = sld [smem:[#allocation5 + %s3644_s11]] }
  0xe9   : > { %v460_v26 = vand.u32 2147483647, %v456_v6  ;;  %v461_v3 = vand.u32 2147483647, %v457_v25  ;;  %v463_v53 = vand.u32 2147483647, %v459_v31  ;;  %v507_v19 = vpop.permute.xlu0 %506  ;;  %v7054_v2 = vadd.f32 %v7022_v46, %v2899_v35 }
  0xea   : > { %v7058_v7 = vmul.f32 %v9511_v63, %v399_v43  ;;  %v466_v8 = vsub.f32 1.0, %v462_v62  ;;  %v512_v15 = vpop.permute.xlu1 %511  ;;  %v514_v23 = vsub.f32 %v507_v19, %v6551_v40  ;;  %v515_v22 = vsub.f32 %v507_v19, %v6553_v16  ;;  %s7754_s18 = smul.f32 0.25, %s3360_s24  ;;  %s3632_s17 = sadd.s32 48, %s5678_s23 }
  0xeb   : > { %9510 = vst [vmem:[#allocation64_spill] sm:$0xff] %v7054_v2  ;;  %v9512_v51 = vpack.i.bf16 %v6658_v38, %v6649_v37  ;;  %v464_v48 = vsub.f32 1.0, %v460_v26  ;;  %v465_v6 = vsub.f32 1.0, %v461_v3  ;;  %v467_v25 = vsub.f32 1.0, %v463_v53  ;;  %2043 = vperm.xlu1 %5141, %v9513_v32  }
  0xec   : > { %v516_v35 = vsub.f32 %v512_v15, %v6551_v40  ;;  %v470_v31 = vmax.f32 %v466_v8, 0.0  ;;  %v517_v33 = vsub.f32 %v512_v15, %v6553_v16  ;;  %v518_v62 = vand.u32 2147483647, %v514_v23  ;;  %s3374_s16 = smul.f32 0.25, %s7754_s18 }
  0xed   : > { %5264 = vperm.xlu0 %5152, %v9512_v51   ;;  %v519_v43 = vand.u32 2147483647, %v515_v22  ;;  %v468_v63 = vmax.f32 %v464_v48, 0.0  ;;  %v7068_v46 = vmax.f32 %v465_v6, 0.0  ;;  %v7070_v19 = vmax.f32 %v467_v25, 0.0  ;;  %v574_v37 = vpop.permute.xlu0 %573  ;;  %v9516_v6 = vld [vmem:[#allocation27_spill] sm:$0xff] }
  0xee   : > { %v520_v2 = vand.u32 2147483647, %v516_v35  ;;  %v9514_v38 = vunpack.i.h.bf16 %v6976_v17  ;;  %v521_v53 = vand.u32 2147483647, %v517_v33  ;;  %v522_v26 = vsub.f32 1.0, %v518_v62  ;;  %v569_v32 = vpop.permute.xlu1 %568 }
  0xef   : > { %v523_v51 = vsub.f32 1.0, %v519_v43  ;;  %v9515_v8 = vunpack.i.l.bf16 %v6976_v17  ;;  %v576_v22 = vsub.f32 %v569_v32, %v6569_v45  ;;  %v577_v48 = vsub.f32 %v569_v32, %v6602_v58  ;;  %2096 = vperm.xlu1 %5141, %v9516_v6  }
  0xf0   : > { %v7074_v3 = vmul.f32 %v9514_v38, %v470_v31  ;;  %v524_v23 = vsub.f32 1.0, %v520_v2  ;;  %v525_v25 = vsub.f32 1.0, %v521_v53  ;;  %v526_v35 = vmax.f32 %v522_v26, 0.0 }
  0xf1   : > { %2101 = vperm.xlu0 %5152, %v6697_v44   ;;  %v7079_v15 = vmul.f32 %v9515_v8, %v468_v63  ;;  %v7084_v31 = vmax.f32 %v523_v51, 0.0  ;;  %v578_v33 = vsub.f32 %v574_v37, %v6569_v45  ;;  %v580_v43 = vand.u32 2147483647, %v576_v22  ;;  %v669_v63 = vpop.permute.xlu0 %668 }
  0xf2   : > { %v528_v62 = vmax.f32 %v524_v23, 0.0  ;;  %v581_v44 = vand.u32 2147483647, %v577_v48  ;;  %v579_v38 = vsub.f32 %v574_v37, %v6602_v58  ;;  %v7088_v8 = vmax.f32 %v525_v25, 0.0  ;;  %v674_v6 = vpop.permute.xlu1 %673  ;;  %v9519_v48 = vld [vmem:[#allocation26_spill] sm:$0xff] }
  0xf3   : > { %v9517_v2 = vunpack.i.l.bf16 %v6902_v56  ;;  %v582_v32 = vand.u32 2147483647, %v578_v33  ;;  %v676_v53 = vsub.f32 %v669_v63, %v6551_v40  ;;  %v9518_v26 = vunpack.i.h.bf16 %v6902_v56 }
  0xf4   : > { %v584_v23 = vsub.f32 1.0, %v580_v43  ;;  %v585_v22 = vsub.f32 1.0, %v581_v44  ;;  %v583_v37 = vand.u32 2147483647, %v579_v38  ;;  %v9520_v25 = vpack.i.bf16 %v6672_v55, %v9519_v48 }
  0xf5   : > { %v7092_v39 = vmul.f32 %v9517_v2, %v526_v35  ;;  %2152 = vperm.xlu0 %5152, %v6721_v34   ;;  %v7098_v51 = vmul.f32 %v9518_v26, %v528_v62  ;;  %v586_v36 = vsub.f32 1.0, %v582_v32  ;;  %v678_v35 = vsub.f32 %v674_v6, %v6551_v40  ;;  %v732_v26 = vpop.permute.xlu0 %731 }
  0xf6   : > { %5269 = vperm.xlu1 %5141, %v9520_v25   ;;  %v679_v33 = vsub.f32 %v674_v6, %v6553_v16  ;;  %v677_v2 = vsub.f32 %v669_v63, %v6553_v16  ;;  %v588_v9 = vmax.f32 %v584_v23, 0.0  ;;  %v7106_v34 = vmax.f32 %v585_v22, 0.0  ;;  %v727_v11 = vpop.permute.xlu1 %726 }
  0xf7   : > { %v587_v24 = vsub.f32 1.0, %v583_v37  ;;  %v680_v62 = vand.u32 2147483647, %v676_v53  ;;  %v590_v43 = vmax.f32 %v586_v36, 0.0  ;;  %v682_v44 = vand.u32 2147483647, %v678_v35 }
  0xf8   : > { %v683_v38 = vand.u32 2147483647, %v679_v33  ;;  %v736_v55 = vsub.f32 %v732_v26, %v6569_v45  ;;  %v9521_v32 = vpack.i.bf16 %v6736_v30, %v6728_v21  ;;  %v9522_v6 = vunpack.i.l.bf16 %v7010_v5  ;;  %v9523_v53 = vld [vmem:[#allocation28_spill] sm:$0xff] }
  0xf9   : > { %v7116_v63 = vmax.f32 %v587_v24, 0.0  ;;  %v681_v23 = vand.u32 2147483647, %v677_v2  ;;  %v684_v22 = vsub.f32 1.0, %v680_v62  ;;  %v9524_v36 = vunpack.i.h.bf16 %v7010_v5  ;;  %v783_v24 = vpop.permute.xlu0 %782 }
  0xfa   : > { %5274 = vperm.xlu0 %5152, %v9521_v32   ;;  %v7114_v48 = vmul.f32 %v9522_v6, %v588_v9  ;;  %2157 = vperm.xlu1 %5141, %v9523_v53   ;;  %v686_v25 = vsub.f32 1.0, %v682_v44  ;;  %v687_v35 = vsub.f32 1.0, %v683_v38  ;;  %v734_v33 = vsub.f32 %v727_v11, %v6569_v45  ;;  %v5170_v53 = vpop.permute.xlu1 %5169 }
  0xfb   : > { %v7121_v37 = vmul.f32 %v9524_v36, %v590_v43  ;;  %v685_v21 = vsub.f32 1.0, %v681_v23  ;;  %v688_v30 = vmax.f32 %v684_v22, 0.0  ;;  %v735_v32 = vsub.f32 %v727_v11, %v6602_v58  ;;  %v9527_v22 = vld [vmem:[#allocation30_spill] sm:$0xff] }
  0xfc   : > { %v737_v9 = vsub.f32 %v732_v26, %v6602_v58  ;;  %v690_v6 = vmax.f32 %v686_v25, 0.0  ;;  %v691_v2 = vmax.f32 %v687_v35, 0.0  ;;  %v738_v62 = vand.u32 2147483647, %v734_v33 }
  0xfd   : > { %v740_v57 = vand.u32 2147483647, %v736_v55  ;;  %v689_v43 = vmax.f32 %v685_v21, 0.0  ;;  %v9526_v44 = vunpack.i.l.bf16 %v6942_v49  ;;  %v739_v36 = vand.u32 2147483647, %v735_v32  ;;  %v5175_v32 = vpop.permute.xlu0 %5174 }
  0xfe   : > { %2217 = vperm.xlu0 %5152, %v9525_v59   ;;  %v741_v23 = vand.u32 2147483647, %v737_v9  ;;  %2212 = vperm.xlu1 %5141, %v9527_v22   ;;  %v9528_v11 = vunpack.i.h.bf16 %v6942_v49  ;;  %v742_v55 = vsub.f32 1.0, %v738_v62  ;;  %v5171_v22 = vunpack.i.l.bf16 %v5170_v53  ;;  %v9532_v49 = vld [vmem:[#allocation31_spill] sm:$0xff] }
  0xff   : > { %v7129_v38 = vmul.f32 %v9526_v44, %v688_v30  ;;  %v744_v33 = vsub.f32 1.0, %v740_v57  ;;  %v9530_v59 = vmov %v9526_v44  ;;  %v743_v50 = vsub.f32 1.0, %v739_v36 }
 0x100   : > { %v7134_v26 = vmul.f32 %v9528_v11, %v690_v6  ;;  %v9529_v25 = vmov %v9528_v11  ;;  %v703_v21 = vmul.f32 %v9530_v59, %v689_v43  ;;  %v745_v30 = vsub.f32 1.0, %v741_v23  ;;  %v788_v6 = vpop.permute.xlu1 %787  ;;  %v9531_v11 = vld [vmem:[#allocation33_spill] sm:$0xff] }
 0x101   : > { %v7138_v35 = vmul.f32 %v9529_v25, %v691_v2  ;;  %v5172_v44 = vunpack.i.h.bf16 %v5170_v53  ;;  %v746_v9 = vmax.f32 %v742_v55, 0.0  ;;  %v748_v4 = vmax.f32 %v744_v33, 0.0  ;;  %v9533_v43 = vld [vmem:[#allocation29_spill] sm:$0xff] }
 0x102   : > { %v790_v18 = vsub.f32 %v783_v24, %v6551_v40  ;;  %2312 = vperm.xlu0 %5152, %v9531_v11   ;;  %v747_v14 = vmax.f32 %v743_v50, 0.0  ;;  %v749_v2 = vmax.f32 %v745_v30, 0.0  ;;  %v791_v62 = vsub.f32 %v783_v24, %v6553_v16  ;;  %v7158_v24 = vpop.permute.xlu0 %847 }
 0x103   : > { %v792_v57 = vsub.f32 %v788_v6, %v6551_v40  ;;  %v9534_v36 = vpack.i.bf16 %v9532_v49, %v9533_v43  ;;  %v7149_v23 = vmul.f32 %v5171_v22, %v746_v9  ;;  %v7151_v25 = vmul.f32 %v5172_v44, %v748_v4 }
 0x104   : > { %v794_v53 = vand.u32 2147483647, %v790_v18  ;;  %v793_v55 = vsub.f32 %v788_v6, %v6553_v16  ;;  %v7154_v33 = vmul.f32 %v5171_v22, %v747_v14  ;;  %v7156_v59 = vmul.f32 %v5172_v44, %v749_v2  ;;  %v843_v43 = vpop.permute.xlu1 %842 }
 0x105   : > { %5279 = vperm.xlu1 %5141, %v9534_v36   ;;  %v795_v50 = vand.u32 2147483647, %v791_v62  ;;  %v796_v30 = vand.u32 2147483647, %v792_v57  ;;  %v5177_v1 = vunpack.i.h.bf16 %v5175_v32  ;;  %v5176_v49 = vunpack.i.l.bf16 %v5175_v32 }
 0x106   : > { %v798_v11 = vsub.f32 1.0, %v794_v53  ;;  %v797_v13 = vand.u32 2147483647, %v793_v55  ;;  %v9535_v4 = vpack.i.bf16 %v6791_v10, %v6788_v12  ;;  %v850_v14 = vsub.f32 %v843_v43, %v6569_v45  ;;  %v7172_v55 = vpop.permute.xlu0 %942 }
 0x107   : > { %v799_v18 = vsub.f32 1.0, %v795_v50  ;;  %v800_v9 = vsub.f32 1.0, %v796_v30  ;;  %v851_v44 = vsub.f32 %v843_v43, %v6602_v58  ;;  %v9536_v2 = vunpack.i.h.bf16 %v6918_v27 }
 0x108   : > { %5284 = vperm.xlu0 %5152, %v9535_v4   ;;  %v802_v22 = vmax.f32 %v798_v11, 0.0  ;;  %v801_v6 = vsub.f32 1.0, %v797_v13  ;;  %v9537_v32 = vunpack.i.l.bf16 %v6976_v17  ;;  %v854_v36 = vand.u32 2147483647, %v850_v14  ;;  %v7180_v11 = vpop.permute.xlu1 %5179 }
 0x109   : > { %2317 = vperm.xlu1 %5141, %v6812_v41   ;;  %v414_v62 = vmul.f32 %v9536_v2, %v7049_v52  ;;  %v803_v10 = vmax.f32 %v799_v18, 0.0  ;;  %v804_v12 = vmax.f32 %v800_v9, 0.0  ;;  %v855_v53 = vand.u32 2147483647, %v851_v44 }
 0x10a   : > { %v483_v57 = vmul.f32 %v9537_v32, %v7068_v46  ;;  %v805_v50 = vmax.f32 %v801_v6, 0.0  ;;  %v816_v30 = vmul.f32 %v5176_v49, %v802_v22  ;;  %v9538_v41 = vunpack.i.h.bf16 %v6976_v17  ;;  %v7196_v6 = vpop.permute.xlu0 %5184 }
 0x10b   : > { %v9539_v27 = vunpack.i.l.bf16 %v6902_v56  ;;  %v817_v46 = vmul.f32 %v5176_v49, %v803_v10  ;;  %v818_v43 = vmul.f32 %v5177_v1, %v804_v12  ;;  %v858_v4 = vsub.f32 1.0, %v854_v36  ;;  %v9545_v12 = vld [vmem:[#allocation37_spill] sm:$0xff]  ;;  %v9546_v36 = vld [vmem:[#allocation35_spill] sm:$0xff] }
 0x10c   : > { %v485_v13 = vmul.f32 %v9538_v41, %v7070_v19  ;;  %2375 = vperm.xlu0 %5152, %v6829_v61   ;;  %v859_v18 = vsub.f32 1.0, %v855_v53  ;;  %v819_v9 = vmul.f32 %v5177_v1, %v805_v50  ;;  %v7185_v14 = vadd.f32 %v816_v30, %v7129_v38 }
 0x10d   : > { %v541_v52 = vmul.f32 %v9539_v27, %v7084_v31  ;;  %2370 = vperm.xlu1 %5141, %v6816_v54   ;;  %v9540_v17 = vunpack.i.h.bf16 %v6902_v56  ;;  %v7191_v44 = vadd.f32 %v817_v46, %v703_v21  ;;  %v7194_v61 = vadd.f32 %v818_v43, %v7134_v26  ;;  %v948_v21 = vpop.permute.xlu1 %947 }
 0x10e   : > { %v862_v49 = vmax.f32 %v858_v4, 0.0  ;;  %v863_v22 = vmax.f32 %v859_v18, 0.0  ;;  %v7199_v54 = vadd.f32 %v819_v9, %v7138_v35  ;;  %v9541_v38 = vunpack.i.l.bf16 %v7010_v5 }
 0x10f   : > { %v543_v19 = vmul.f32 %v9540_v17, %v7088_v8  ;;  %v545_v31 = vadd.f32 %v541_v52, %v7047_v47  ;;  %v9542_v47 = vunpack.i.h.bf16 %v7010_v5  ;;  %v544_v26 = vadd.f32 %v7092_v39, %v7035_v28 }
 0x110   : > { %v603_v56 = vmul.f32 %v9541_v38, %v7106_v34  ;;  %2426 = vperm.xlu0 %5152, %v6831_v42   ;;  %v546_v2 = vadd.f32 %v7098_v51, %v7058_v7  ;;  %v606_v35 = vadd.f32 %v7114_v48, %v7079_v15  ;;  %v9543_v34 = vld [vmem:[#allocation34_spill] sm:$0xff]  ;;  %v852_v42 = vsub.f32 %v7158_v24, %v6569_v45  ;;  %v7225_v48 = vpop.permute.xlu0 %1005 }
 0x111   : > { %v547_v1 = vadd.f32 %v543_v19, %v414_v62  ;;  %v605_v8 = vmul.f32 %v9542_v47, %v7116_v63  ;;  %v608_v62 = vadd.f32 %v7121_v37, %v7074_v3  ;;  %v9544_v32 = vpack.i.bf16 %v6825_v29, %v9543_v34 }
 0x112   : > { %v607_v5 = vadd.f32 %v603_v56, %v483_v57  ;;  %v853_v28 = vsub.f32 %v7158_v24, %v6602_v58  ;;  %v610_v39 = vmul.f32 %v606_v35, %v544_v26  ;;  %v5182_v51 = vunpack.i.h.bf16 %v7180_v11  ;;  %v1001_v57 = vpop.permute.xlu1 %1000  ;;  %v9549_v56 = vld [vmem:[#allocation38_spill] sm:$0xff] }
 0x113   : > { %5289 = vperm.xlu1 %5141, %v9544_v32   ;;  %v609_v63 = vadd.f32 %v605_v8, %v485_v13  ;;  %v612_v7 = vmul.f32 %v608_v62, %v546_v2  ;;  %v5181_v15 = vunpack.i.l.bf16 %v7180_v11  ;;  %v856_v29 = vand.u32 2147483647, %v852_v42  ;;  %v9548_v13 = vld [vmem:[#allocation36_spill] sm:$0xff] }
 0x114   : > { %v611_v3 = vmul.f32 %v607_v5, %v545_v31  ;;  %v857_v10 = vand.u32 2147483647, %v853_v28  ;;  %v9547_v53 = vpack.i.bf16 %v9545_v12, %v9546_v36  ;;  %v950_v41 = vsub.f32 %v7172_v55, %v6551_v40  ;;  %v1057_v17 = vpop.permute.xlu0 %1056 }
 0x115   : > { %v613_v37 = vmul.f32 %v609_v63, %v547_v1  ;;  %v5019_v50 = vpack.c.bf16 %v612_v7, %v610_v39  ;;  %v876_v30 = vmul.f32 %v5181_v15, %v862_v49  ;;  %v877_v24 = vmul.f32 %v5181_v15, %v863_v22  ;;  %v9550_v15 = vld [vmem:[#allocation39_spill] sm:$0xff] }
 0x116   : > { %5294 = vperm.xlu0 %5152, %v9547_v53   ;;  %v860_v52 = vsub.f32 1.0, %v856_v29  ;;  %v861_v11 = vsub.f32 1.0, %v857_v10  ;;  %v951_v46 = vsub.f32 %v7172_v55, %v6553_v16  ;;  %v954_v18 = vand.u32 2147483647, %v950_v41  ;;  %v7243_v1 = vpop.permute.xlu1 %5189  ;;  %v9552_v41 = vld [vmem:[#allocation42_spill] sm:$0xff] }
 0x117   : > { %2431 = vperm.xlu1 %5141, %v9548_v13   ;;  %v5017_v27 = vpack.c.bf16 %v613_v37, %v611_v3  ;;  %v7236_v43 = vadd.f32 %v876_v30, %v7149_v23  ;;  %v7239_v4 = vadd.f32 %v877_v24, %v7154_v33  ;;  %v952_v9 = vsub.f32 %v948_v21, %v6551_v40  ;;  %v9553_v13 = vld [vmem:[#allocation41_spill] sm:$0xff] }
 0x118   : > { %v864_v19 = vmax.f32 %v860_v52, 0.0  ;;  %v865_v31 = vmax.f32 %v861_v11, 0.0  ;;  %v955_v49 = vand.u32 2147483647, %v951_v46  ;;  %v953_v22 = vsub.f32 %v948_v21, %v6553_v16 }
 0x119   : > { %5018 = vmatprep.subr.bf16.mxu0 %v5017_v27  ;;  %v958_v23 = vsub.f32 1.0, %v954_v18  ;;  %v956_v55 = vand.u32 2147483647, %v952_v9  ;;  %v5187_v33 = vunpack.i.h.bf16 %v7196_v6  ;;  %v5186_v38 = vunpack.i.l.bf16 %v7196_v6  ;;  %v9555_v18 = vld [vmem:[#allocation40_spill] sm:$0xff] }
 0x11a   : > { %2491 = vperm.xlu0 %5152, %v6893_v60   ;;  %5020 = vmatpush1.bf16.xpose.msra.mxu0 %v5019_v50  ;;  %v878_v47 = vmul.f32 %v5182_v51, %v864_v19  ;;  %v879_v8 = vmul.f32 %v5182_v51, %v865_v31  ;;  %v959_v26 = vsub.f32 1.0, %v955_v49  ;;  %v957_v2 = vand.u32 2147483647, %v953_v22  ;;  %v7251_v60 = vpop.permute.xlu0 %5194  ;;  %v1062_v42 = vpop.permute.xlu1 %1061 }
 0x11b   : > { %2486 = vperm.xlu1 %5141, %v9549_v56   ;;  %v962_v35 = vmax.f32 %v958_v23, 0.0  ;;  %v960_v62 = vsub.f32 1.0, %v956_v55  ;;  %v1008_v21 = vsub.f32 %v1001_v57, %v6569_v45  ;;  %v1009_v34 = vsub.f32 %v1001_v57, %v6602_v58 }
 0x11c   : > { %v882_v32 = vadd.f32 %v878_v47, %v7151_v25  ;;  %v883_v5 = vadd.f32 %v879_v8, %v7156_v59  ;;  %v963_v63 = vmax.f32 %v959_v26, 0.0  ;;  %v961_v6 = vsub.f32 1.0, %v957_v2  ;;  %v9556_v26 = vld [vmem:[#allocation44_spill] sm:$0xff] }
 0x11d   : > { %v964_v28 = vmax.f32 %v960_v62, 0.0  ;;  %v7256_v39 = vmul.f32 %v5186_v38, %v962_v35  ;;  %v1012_v7 = vand.u32 2147483647, %v1008_v21  ;;  %v1013_v51 = vand.u32 2147483647, %v1009_v34  ;;  %v9557_v34 = vld [vmem:[#allocation43_spill] sm:$0xff] }
 0x11e   : > { %2586 = vperm.xlu0 %5152, %v6897_v0   ;;  %v9551_v3 = vpack.i.bf16 %v6876_v20, %v9550_v15  ;;  %v965_v37 = vmax.f32 %v961_v6, 0.0  ;;  %v7261_v29 = vmul.f32 %v5186_v38, %v963_v63  ;;  %v1010_v25 = vsub.f32 %v7225_v48, %v6569_v45  ;;  %v7270_v36 = vpop.permute.xlu0 %1121  ;;  %v1117_v24 = vpop.permute.xlu1 %1116 }
 0x11f   : > { %v1011_v59 = vsub.f32 %v7225_v48, %v6602_v58  ;;  %v7267_v10 = vmul.f32 %v5187_v33, %v964_v28  ;;  %v1016_v0 = vsub.f32 1.0, %v1012_v7  ;;  %v1017_v57 = vsub.f32 1.0, %v1013_v51 }
 0x120   : > { %5299 = vperm.xlu1 %5141, %v9551_v3   ;;  %v5192_v12 = vunpack.i.h.bf16 %v7243_v1  ;;  %v7272_v53 = vmul.f32 %v5187_v33, %v965_v37  ;;  %v1014_v20 = vand.u32 2147483647, %v1010_v25  ;;  %v5191_v30 = vunpack.i.l.bf16 %v7243_v1 }
 0x121   : > { %v1015_v50 = vand.u32 2147483647, %v1011_v59  ;;  %v9554_v27 = vpack.i.bf16 %v9552_v41, %v9553_v13  ;;  %v1020_v48 = vmax.f32 %v1016_v0, 0.0  ;;  %v1021_v52 = vmax.f32 %v1017_v57, 0.0  ;;  %v9558_v59 = vld [vmem:[#allocation47_spill] sm:$0xff] }
 0x122   : > { %v1064_v11 = vsub.f32 %v1057_v17, %v6551_v40  ;;  %v1065_v46 = vsub.f32 %v1057_v17, %v6553_v16  ;;  %v1018_v9 = vsub.f32 1.0, %v1014_v20  ;;  %v1066_v31 = vsub.f32 %v1062_v42, %v6551_v40  ;;  %v7287_v33 = vpop.permute.xlu0 %1216  ;;  %v7289_v8 = vpop.permute.xlu1 %5199  ;;  %v9560_v20 = vld [vmem:[#allocation45_spill] sm:$0xff] }
 0x123   : > { %5304 = vperm.xlu0 %5152, %v9554_v27   ;;  %v1019_v19 = vsub.f32 1.0, %v1015_v50  ;;  %v1067_v49 = vsub.f32 %v1062_v42, %v6553_v16  ;;  %v7283_v22 = vmul.f32 %v5191_v30, %v1020_v48  ;;  %v7285_v1 = vmul.f32 %v5191_v30, %v1021_v52 }
 0x124   : > { %2591 = vperm.xlu1 %5141, %v9555_v18   ;;  %v1068_v23 = vand.u32 2147483647, %v1064_v11  ;;  %v1069_v55 = vand.u32 2147483647, %v1065_v46  ;;  %v1022_v38 = vmax.f32 %v1018_v9, 0.0  ;;  %v885_v62 = vmul.f32 %v7239_v4, %v7191_v44 }
 0x125   : > { %v1023_v56 = vmax.f32 %v1019_v19, 0.0  ;;  %v1070_v47 = vand.u32 2147483647, %v1066_v31  ;;  %v1071_v17 = vand.u32 2147483647, %v1067_v49  ;;  %v887_v21 = vmul.f32 %v883_v5, %v7199_v54  ;;  %v9562_v19 = vld [vmem:[#allocation50_spill] sm:$0xff] }
 0x126   : > { %v1072_v2 = vsub.f32 1.0, %v1068_v23  ;;  %v1073_v35 = vsub.f32 1.0, %v1069_v55  ;;  %v7296_v63 = vmul.f32 %v5192_v12, %v1022_v38  ;;  %v884_v3 = vmul.f32 %v7236_v43, %v7185_v14  ;;  %v7302_v37 = vpop.permute.xlu0 %5204  ;;  %v1222_v5 = vpop.permute.xlu1 %1221  ;;  %v9559_v43 = vld [vmem:[#allocation46_spill] sm:$0xff]  ;;  %v9563_v31 = vld [vmem:[#allocation49_spill] sm:$0xff] }
 0x127   : > { %2649 = vperm.xlu0 %5152, %v9556_v26   ;;  %v7298_v6 = vmul.f32 %v5192_v12, %v1023_v56  ;;  %v1074_v42 = vsub.f32 1.0, %v1070_v47  ;;  %v1075_v28 = vsub.f32 1.0, %v1071_v17  ;;  %v5021_v15 = vpack.c.bf16 %v887_v21, %v885_v62 }
 0x128   : > { %2644 = vperm.xlu1 %5141, %v9557_v34   ;;  %v1076_v7 = vmax.f32 %v1072_v2, 0.0  ;;  %v1077_v51 = vmax.f32 %v1073_v35, 0.0  ;;  %v886_v54 = vmul.f32 %v882_v32, %v7194_v61  ;;  %v5197_v4 = vunpack.i.h.bf16 %v7251_v60 }
 0x129   : > { %v1078_v25 = vmax.f32 %v1074_v42, 0.0  ;;  %v1079_v44 = vmax.f32 %v1075_v28, 0.0  ;;  %5022 = vmatprep.subr.bf16.mxu0 %v5021_v15  ;;  %v5196_v0 = vunpack.i.l.bf16 %v7251_v60  ;;  %v1124_v57 = vsub.f32 %v1117_v24, %v6569_v45 }
 0x12a   : > { %v1125_v12 = vsub.f32 %v1117_v24, %v6602_v58  ;;  %v1126_v14 = vsub.f32 %v7270_v36, %v6569_v45  ;;  %v9561_v50 = vpack.i.bf16 %v9559_v43, %v9560_v20  ;;  %v5023_v61 = vpack.c.bf16 %v886_v54, %v884_v3  ;;  %v7317_v52 = vpop.permute.xlu0 %1279  ;;  %v1275_v9 = vpop.permute.xlu1 %1274 }
 0x12b   : > { %2700 = vperm.xlu0 %5152, %v9558_v59   ;;  %v1092_v32 = vmul.f32 %v5197_v4, %v1078_v25  ;;  %v1093_v30 = vmul.f32 %v5197_v4, %v1079_v44  ;;  %v1127_v41 = vsub.f32 %v7270_v36, %v6602_v58  ;;  %v1090_v13 = vmul.f32 %v5196_v0, %v1076_v7  ;;  %v9566_v7 = vld [vmem:[#allocation56_spill] sm:$0xff]  ;;  %v9567_v25 = vld [vmem:[#allocation55_spill] sm:$0xff] }
 0x12c   : > { %5309 = vperm.xlu1 %5141, %v9561_v50   ;;  %v1091_v27 = vmul.f32 %v5196_v0, %v1077_v51  ;;  %v1128_v60 = vand.u32 2147483647, %v1124_v57  ;;  %v1129_v48 = vand.u32 2147483647, %v1125_v12  ;;  %5024 = vmatpush1.bf16.xpose.msra.mxu0 %v5023_v61  ;;  %v1130_v46 = vand.u32 2147483647, %v1126_v14 }
 0x12d   : > { %v7320_v24 = vadd.f32 %v1092_v32, %v7267_v10  ;;  %v7323_v11 = vadd.f32 %v1093_v30, %v7272_v53  ;;  %v1131_v18 = vand.u32 2147483647, %v1127_v41  ;;  %v9564_v49 = vpack.i.bf16 %v9562_v19, %v9563_v31  ;;  %v9565_v10 = vld [vmem:[#allocation48_spill] sm:$0xff]  ;;  %v9568_v32 = vld [vmem:[#allocation62_spill] sm:$0xff] }
 0x12e   : > { %v7329_v36 = vadd.f32 %v1090_v13, %v7256_v39  ;;  %v7332_v23 = vadd.f32 %v1091_v27, %v7261_v29  ;;  %v1132_v55 = vsub.f32 1.0, %v1128_v60  ;;  %v1133_v38 = vsub.f32 1.0, %v1129_v48  ;;  %v7341_v29 = vpop.permute.xlu0 %1330  ;;  %v7345_v28 = vpop.permute.xlu1 %5209  ;;  %v9569_v13 = vld [vmem:[#allocation53_spill] sm:$0xff]  ;;  %v9570_v27 = vld [vmem:[#allocation51_spill] sm:$0xff] }
 0x12f   : > { %5314 = vperm.xlu0 %5152, %v9564_v49   ;;  %v1134_v56 = vsub.f32 1.0, %v1130_v46  ;;  %v1135_v53 = vsub.f32 1.0, %v1131_v18  ;;  %v5202_v47 = vunpack.i.h.bf16 %v7289_v8  ;;  %v5201_v17 = vunpack.i.l.bf16 %v7289_v8 }
 0x130   : > { %2705 = vperm.xlu1 %5141, %v9565_v10   ;;  %v1136_v26 = vmax.f32 %v1132_v55, 0.0  ;;  %v1137_v2 = vmax.f32 %v1133_v38, 0.0  ;;  %v1224_v35 = vsub.f32 %v7287_v33, %v6551_v40  ;;  %v1225_v39 = vsub.f32 %v7287_v33, %v6553_v16 }
 0x131   : > { %v1138_v62 = vmax.f32 %v1134_v56, 0.0  ;;  %v1139_v21 = vmax.f32 %v1135_v53, 0.0  ;;  %v1226_v34 = vsub.f32 %v1222_v5, %v6551_v40  ;;  %v1227_v42 = vsub.f32 %v1222_v5, %v6553_v16 }
 0x132   : > { %v1150_v8 = vmul.f32 %v5201_v17, %v1136_v26  ;;  %v1151_v51 = vmul.f32 %v5201_v17, %v1137_v2  ;;  %v1228_v15 = vand.u32 2147483647, %v1224_v35  ;;  %v1229_v3 = vand.u32 2147483647, %v1225_v39  ;;  %v7355_v12 = vpop.permute.xlu0 %5214  ;;  %v1336_v61 = vpop.permute.xlu1 %1335  ;;  %v9572_v2 = vld [vmem:[#allocation63_spill] sm:$0xff] }
 0x133   : > { %2765 = vperm.xlu0 %5152, %v9566_v7   ;;  %v1152_v44 = vmul.f32 %v5202_v47, %v1138_v62  ;;  %v1153_v33 = vmul.f32 %v5202_v47, %v1139_v21  ;;  %v1230_v54 = vand.u32 2147483647, %v1226_v34  ;;  %v1231_v4 = vand.u32 2147483647, %v1227_v42 }
 0x134   : > { %2760 = vperm.xlu1 %5141, %v9567_v25   ;;  %v7350_v59 = vadd.f32 %v1150_v8, %v7283_v22  ;;  %v7353_v0 = vadd.f32 %v1151_v51, %v7285_v1  ;;  %v1232_v5 = vsub.f32 1.0, %v1228_v15  ;;  %v1233_v57 = vsub.f32 1.0, %v1229_v3 }
 0x135   : > { %v7358_v14 = vadd.f32 %v1152_v44, %v7296_v63  ;;  %v1157_v43 = vadd.f32 %v1153_v33, %v7298_v6  ;;  %v1234_v20 = vsub.f32 1.0, %v1230_v54  ;;  %v1235_v50 = vsub.f32 1.0, %v1231_v4 }
 0x136   : > { %v1236_v30 = vmax.f32 %v1232_v5, 0.0  ;;  %v1237_v22 = vmax.f32 %v1233_v57, 0.0  ;;  %v5207_v41 = vunpack.i.h.bf16 %v7302_v37  ;;  %v5206_v1 = vunpack.i.l.bf16 %v7302_v37  ;;  %v7377_v49 = vpop.permute.xlu0 %1395  ;;  %v1391_v53 = vpop.permute.xlu1 %1390 }
 0x137   : > { %2860 = vperm.xlu0 %5152, %v9568_v32   ;;  %v9571_v60 = vpack.i.bf16 %v9569_v13, %v9570_v27  ;;  %v1238_v48 = vmax.f32 %v1234_v20, 0.0  ;;  %v1239_v63 = vmax.f32 %v1235_v50, 0.0  ;;  %v1282_v46 = vsub.f32 %v1275_v9, %v6569_v45  ;;  %v9573_v50 = vld [vmem:[#allocation58_spill] sm:$0xff] }
 0x138   : > { %v1283_v6 = vsub.f32 %v1275_v9, %v6602_v58  ;;  %v7369_v18 = vmul.f32 %v5206_v1, %v1236_v30  ;;  %v7371_v19 = vmul.f32 %v5206_v1, %v1237_v22  ;;  %v1284_v31 = vsub.f32 %v7317_v52, %v6569_v45 }
 0x139   : > { %5319 = vperm.xlu1 %5141, %v9571_v60   ;;  %v1285_v37 = vsub.f32 %v7317_v52, %v6602_v58  ;;  %v7379_v55 = vmul.f32 %v5207_v41, %v1238_v48  ;;  %v7381_v38 = vmul.f32 %v5207_v41, %v1239_v63  ;;  %v1286_v10 = vand.u32 2147483647, %v1282_v46  ;;  %v9574_v41 = vld [vmem:[#allocation59_spill] sm:$0xff] }
 0x13a   : > { %v1287_v56 = vand.u32 2147483647, %v1283_v6  ;;  %v1288_v9 = vand.u32 2147483647, %v1284_v31  ;;  %v5212_v17 = vunpack.i.h.bf16 %v7345_v28  ;;  %v5211_v26 = vunpack.i.l.bf16 %v7345_v28  ;;  %v7392_v8 = vpop.permute.xlu0 %1490  ;;  %v7394_v25 = vpop.permute.xlu1 %5219 }
 0x13b   : > { %v1289_v47 = vand.u32 2147483647, %v1285_v37  ;;  %v1290_v35 = vsub.f32 1.0, %v1286_v10  ;;  %v1338_v52 = vsub.f32 %v7341_v29, %v6551_v40  ;;  %v1339_v62 = vsub.f32 %v7341_v29, %v6553_v16 }
 0x13c   : > { %v1291_v39 = vsub.f32 1.0, %v1287_v56  ;;  %v1292_v21 = vsub.f32 1.0, %v1288_v9  ;;  %v1340_v42 = vsub.f32 %v1336_v61, %v6551_v40  ;;  %v1341_v7 = vsub.f32 %v1336_v61, %v6553_v16 }
 0x13d   : > { %2865 = vperm.xlu1 %5141, %v9572_v2   ;;  %v1293_v34 = vsub.f32 1.0, %v1289_v47  ;;  %v1294_v51 = vmax.f32 %v1290_v35, 0.0  ;;  %v1342_v15 = vand.u32 2147483647, %v1338_v52  ;;  %v1343_v3 = vand.u32 2147483647, %v1339_v62 }
 0x13e   : > { %v1295_v28 = vmax.f32 %v1291_v39, 0.0  ;;  %v1296_v44 = vmax.f32 %v1292_v21, 0.0  ;;  %v1344_v54 = vand.u32 2147483647, %v1340_v42  ;;  %v1345_v4 = vand.u32 2147483647, %v1341_v7  ;;  %v7406_v1 = vpop.permute.xlu0 %5224  ;;  %v7411_v63 = vpop.permute.xlu1 %1495 }
 0x13f   : > { %v1297_v33 = vmax.f32 %v1293_v34, 0.0  ;;  %v7396_v5 = vmul.f32 %v5211_v26, %v1294_v51  ;;  %v1346_v57 = vsub.f32 1.0, %v1342_v15  ;;  %v1347_v20 = vsub.f32 1.0, %v1343_v3 }
 0x140   : > { %v7398_v29 = vmul.f32 %v5211_v26, %v1295_v28  ;;  %vm2846_vm8 = vcmp.ge.f32.partialorder %v9573_v50, -1.0  ;;  %v7401_v61 = vmul.f32 %v5212_v17, %v1296_v44  ;;  %v1348_v30 = vsub.f32 1.0, %v1344_v54 }
 0x141   : > { %v7403_v32 = vmul.f32 %v5212_v17, %v1297_v33  ;;  %v1349_v22 = vsub.f32 1.0, %v1345_v4  ;;  %vm2847_vm9 = vcmp.ge.f32.partialorder %v9574_v41, -1.0  ;;  %v1350_v13 = vmax.f32 %v1346_v57, 0.0 }
 0x142   : > { %v1351_v27 = vmax.f32 %v1347_v20, 0.0  ;;  %v1159_v60 = vmul.f32 %v7353_v0, %v7332_v23  ;;  %v1161_v48 = vmul.f32 %v1157_v43, %v7323_v11  ;;  %v1352_v46 = vmax.f32 %v1348_v30, 0.0 }
 0x143   : > { %v1353_v6 = vmax.f32 %v1349_v22, 0.0  ;;  %v1158_v31 = vmul.f32 %v7350_v59, %v7329_v36  ;;  %v1160_v37 = vmul.f32 %v7358_v14, %v7320_v24  ;;  %v5217_v56 = vunpack.i.h.bf16 %v7355_v12  ;;  %v7425_v59 = vpop.permute.xlu0 %1553 }
 0x144   : > { %v5025_v10 = vpack.c.bf16 %v1161_v48, %v1159_v60  ;;  %v5216_v9 = vunpack.i.l.bf16 %v7355_v12  ;;  %v1398_v23 = vsub.f32 %v1391_v53, %v6569_v45  ;;  %v1399_v11 = vsub.f32 %v1391_v53, %v6602_v58  ;;  %v7427_v12 = vpop.permute.xlu1 %1548 }
 0x145   : > { %v5027_v0 = vpack.c.bf16 %v1160_v37, %v1158_v31  ;;  %v1400_v43 = vsub.f32 %v7377_v49, %v6569_v45  ;;  %v1401_v36 = vsub.f32 %v7377_v49, %v6602_v58  ;;  %v1366_v47 = vmul.f32 %v5217_v56, %v1352_v46 }
 0x146   : > { %5026 = vmatprep.subr.bf16.mxu0 %v5025_v10  ;;  %v1364_v24 = vmul.f32 %v5216_v9, %v1350_v13  ;;  %v1365_v14 = vmul.f32 %v5216_v9, %v1351_v27  ;;  %v1367_v17 = vmul.f32 %v5217_v56, %v1353_v6  ;;  %v1402_v26 = vand.u32 2147483647, %v1398_v23 }
 0x147   : > { %5028 = vmatpush1.bf16.xpose.msra.mxu0 %v5027_v0  ;;  %v1403_v53 = vand.u32 2147483647, %v1399_v11  ;;  %v1404_v2 = vand.u32 2147483647, %v1400_v43  ;;  %v5222_v35 = vunpack.i.h.bf16 %v7394_v25  ;;  %v7438_v52 = vadd.f32 %v1366_v47, %v7379_v55  ;;  %v7454_v44 = vpop.permute.xlu0 %1604  ;;  %v9578_v11 = vld [vmem:[#allocation60_spill] sm:$0xff] }
 0x148   : > { %v7432_v39 = vadd.f32 %v1364_v24, %v7369_v18  ;;  %v7435_v49 = vadd.f32 %v1365_v14, %v7371_v19  ;;  %v7441_v62 = vadd.f32 %v1367_v17, %v7381_v38  ;;  %v1406_v21 = vsub.f32 1.0, %v1402_v26  ;;  %v9575_v18 = vld [vmem:[#allocation64_spill] sm:$0xff]  ;;  %v7448_v28 = vpop.permute.xlu1 %5229 }
 0x149   : > { %v1407_v34 = vsub.f32 1.0, %v1403_v53  ;;  %v1405_v42 = vand.u32 2147483647, %v1401_v36  ;;  %v1408_v7 = vsub.f32 1.0, %v1404_v2  ;;  %v5221_v51 = vunpack.i.l.bf16 %v7394_v25 }
 0x14a   : > { %vm2848_vm10 = vcmp.le.f32.partialorder %v9573_v50, 16.0  ;;  %vm2849_vm11 = vcmp.le.f32.partialorder %v9574_v41, 16.0  ;;  %v2912_v19 = vmax.f32 %v9575_v18, 0.0  ;;  %v1410_v55 = vmax.f32 %v1406_v21, 0.0 }
 0x14b   : > { %v1411_v38 = vmax.f32 %v1407_v34, 0.0  ;;  %v1409_v15 = vsub.f32 1.0, %v1405_v42  ;;  %v1412_v3 = vmax.f32 %v1408_v7, 0.0  ;;  %vm2850_vm12 = vmand %vm2846_vm8, %vm2848_vm10  ;;  %v9576_v25 = vmov 0.0  }
 0x14c   : > { %vm2851_vm13 = vmand %vm2847_vm9, %vm2849_vm11  ;;  %v2852_v33 = vsel %vm2850_vm12, 0.5, %v9576_v25  ;;  %v2914_v54 = vmin.f32 %v2912_v19, 15.0  ;;  %v1498_v4 = vsub.f32 %v7392_v8, %v6551_v40  ;;  %v1499_v57 = vsub.f32 %v7392_v8, %v6553_v16  ;;  %v7468_v48 = vpop.permute.xlu1 %1609 }
 0x14d   : > { %v1413_v20 = vmax.f32 %v1409_v15, 0.0  ;;  %v1424_v30 = vmul.f32 %v5221_v51, %v1410_v55  ;;  %v1425_v50 = vmul.f32 %v5221_v51, %v1411_v38  ;;  %v1426_v22 = vmul.f32 %v5222_v35, %v1412_v3  ;;  %v9579_v38 = vld [vmem:[#allocation17_spill] sm:$0xff]  ;;  %v9580_v15 = vld [vmem:[#allocation52_spill] sm:$0xff] }
 0x14e   : > { %v2853_v13 = vsel %vm2851_vm13, 0.5, %v9576_v25  ;;  %2918 = vperm.xlu1 %5141, %v2914_v54   ;;  %v1502_v27 = vand.u32 2147483647, %v1498_v4  ;;  %v1503_v60 = vand.u32 2147483647, %v1499_v57  ;;  %v1500_v41 = vsub.f32 %v7411_v63, %v6551_v40  ;;  %v9581_v4 = vld [vmem:[#allocation18_spill] sm:$0xff] }
 0x14f   : > { %v1427_v46 = vmul.f32 %v5222_v35, %v1413_v20  ;;  %v7471_v6 = vadd.f32 %v1424_v30, %v7396_v5  ;;  %v7474_v8 = vadd.f32 %v1425_v50, %v7398_v29  ;;  %v7477_v31 = vadd.f32 %v1426_v22, %v7401_v61  ;;  %v9577_v5 = vld [vmem:[#allocation61_spill] sm:$0xff]  ;;  %v7487_v29 = vpop.permute.xlu0 %5234 }
 0x150   : > { %v5323_v37 = vpack.i.bf16 %v2853_v13, %v2852_v33  ;;  %v1506_v10 = vsub.f32 1.0, %v1502_v27  ;;  %v1507_v56 = vsub.f32 1.0, %v1503_v60  ;;  %v1501_v9 = vsub.f32 %v7411_v63, %v6553_v16  ;;  %v7491_v63 = vpop.permute.xlu1 %1664  ;;  %v9582_v13 = vld [vmem:[#allocation54_spill] sm:$0xff] }
 0x151   : > { %v7482_v23 = vadd.f32 %v1427_v46, %v7403_v32  ;;  %v1504_v0 = vand.u32 2147483647, %v1500_v41  ;;  %v2903_v43 = vadd.f32 %v9578_v11, %v9577_v5  ;;  %vm2904_vm14 = vcmp.ge.f32.partialorder %v9575_v18, -1.0 }
 0x152   : > { %5324 = vperm.xlu0 %5152, %v5323_v37   ;;  %v1510_v61 = vmax.f32 %v1506_v10, 0.0  ;;  %v1511_v36 = vmax.f32 %v1507_v56, 0.0  ;;  %v1505_v24 = vand.u32 2147483647, %v1501_v9  ;;  %vm2906_vm15 = vcmp.le.f32.partialorder %v9575_v18, 16.0 }
 0x153   : > { %v1508_v32 = vsub.f32 1.0, %v1504_v0  ;;  %v2913_v14 = vmax.f32 %v2903_v43, 0.0  ;;  %vm2905_vm0 = vcmp.ge.f32.partialorder %v2903_v43, -1.0  ;;  %vm2907_vm1 = vcmp.le.f32.partialorder %v2903_v43, 16.0  ;;  %vm2908_vm2 = vmand %vm2904_vm14, %vm2906_vm15  ;;  %v7522_v33 = vpop.permute.xlu0 %1669 }
 0x154   : > { %v1509_v47 = vsub.f32 1.0, %v1505_v24  ;;  %vm2909_vm3 = vmand %vm2905_vm0, %vm2907_vm1  ;;  %v2910_v17 = vsel %vm2908_vm2, 0.5, %v9576_v25  ;;  %v5227_v26 = vunpack.i.h.bf16 %v7406_v1  ;;  %v5226_v53 = vunpack.i.l.bf16 %v7406_v1  ;;  %v7532_v30 = vpop.permute.xlu1 %5239 }
 0x155   : > { %v1512_v2 = vmax.f32 %v1508_v32, 0.0  ;;  %v2915_v35 = vmin.f32 %v2913_v14, 15.0  ;;  %v2911_v21 = vsel %vm2909_vm3, 0.5, %v9576_v25  ;;  %v1556_v34 = vsub.f32 %v7427_v12, %v6569_v45 }
 0x156   : > { %v1513_v42 = vmax.f32 %v1509_v47, 0.0  ;;  %v5328_v7 = vpack.i.bf16 %v2911_v21, %v2910_v17  ;;  %v7508_v51 = vmul.f32 %v5226_v53, %v1510_v61  ;;  %v7510_v18 = vmul.f32 %v5226_v53, %v1511_v36 }
 0x157   : > { %2923 = vperm.xlu0 %5152, %v2915_v35   ;;  %v7514_v1 = vmul.f32 %v5227_v26, %v1512_v2  ;;  %v1557_v19 = vsub.f32 %v7427_v12, %v6602_v58  ;;  %v1560_v55 = vand.u32 2147483647, %v1556_v34  ;;  %v2956_v3 = vmul.f32 %v9580_v15, %v9579_v38  ;;  %v9583_v2 = vld [vmem:[#allocation23_spill] sm:$0xff]  ;;  %v9584_v35 = vld [vmem:[#allocation57_spill] sm:$0xff] }
 0x158   : > { %5329 = vperm.xlu1 %5141, %v5328_v7   ;;  %v7524_v54 = vmul.f32 %v5227_v26, %v1513_v42  ;;  %v2957_v57 = vmul.f32 %v9580_v15, %v9581_v4  ;;  %v1558_v20 = vsub.f32 %v7425_v59, %v6569_v45  ;;  %v1559_v12 = vsub.f32 %v7425_v59, %v6602_v58  ;;  %v7547_v17 = vpop.permute.xlu1 %1769 }
 0x159   : > { %v1561_v50 = vand.u32 2147483647, %v1557_v19  ;;  %v1564_v22 = vsub.f32 1.0, %v1560_v55  ;;  %v2958_v27 = vadd.f32 %v2956_v3, %v9582_v13  ;;  %v5232_v60 = vunpack.i.h.bf16 %v7448_v28 }
 0x15a   : > { %v2959_v41 = vadd.f32 %v2957_v57, %v9582_v13  ;;  %v1562_v46 = vand.u32 2147483647, %v1558_v20  ;;  %v1563_v37 = vand.u32 2147483647, %v1559_v12  ;;  %v5231_v10 = vunpack.i.l.bf16 %v7448_v28  ;;  %v7544_v28 = vpop.permute.xlu0 %1764 }
 0x15b   : > { %v1565_v56 = vsub.f32 1.0, %v1561_v50  ;;  %v1568_v9 = vmax.f32 %v1564_v22, 0.0  ;;  %v2968_v59 = vmax.f32 %v2958_v27, 0.0  ;;  %vm2960_vm4 = vcmp.ge.f32.partialorder %v2958_v27, -1.0  ;;  %v9585_v22 = vld [vmem:[#allocation24_spill] sm:$0xff] }
 0x15c   : > { %v2969_v0 = vmax.f32 %v2959_v41, 0.0  ;;  %v1566_v5 = vsub.f32 1.0, %v1562_v46  ;;  %v1567_v43 = vsub.f32 1.0, %v1563_v37  ;;  %vm2961_vm5 = vcmp.ge.f32.partialorder %v2959_v41, -1.0 }
 0x15d   : > { %v1569_v61 = vmax.f32 %v1565_v56, 0.0  ;;  %v2970_v36 = vmin.f32 %v2968_v59, 15.0  ;;  %v7541_v24 = vmul.f32 %v5231_v10, %v1568_v9  ;;  %vm2962_vm6 = vcmp.le.f32.partialorder %v2958_v27, 16.0  ;;  %v7586_v56 = vpop.permute.xlu1 %1822 }
 0x15e   : > { %v2971_v32 = vmin.f32 %v2969_v0, 15.0  ;;  %v1570_v14 = vmax.f32 %v1566_v5, 0.0  ;;  %v1571_v47 = vmax.f32 %v1567_v43, 0.0  ;;  %vm2963_vm7 = vcmp.le.f32.partialorder %v2959_v41, 16.0  ;;  %vm2964_vm8 = vmand %vm2960_vm4, %vm2962_vm6  ;;  %v7582_v46 = vpop.permute.xlu0 %5244 }
 0x15f   : > { %2974 = vperm.xlu0 %5152, %v2970_v36   ;;  %v7549_v26 = vmul.f32 %v5231_v10, %v1569_v61  ;;  %vm2965_vm9 = vmand %vm2961_vm5, %vm2963_vm7  ;;  %v2966_v53 = vsel %vm2964_vm8, 0.5, %v9576_v25  ;;  %v3016_v21 = vmul.f32 %v9584_v35, %v9583_v2  ;;  %v1612_v34 = vsub.f32 %v7454_v44, %v6551_v40 }
 0x160   : > { %2979 = vperm.xlu1 %5141, %v2971_v32   ;;  %v7559_v42 = vmul.f32 %v5232_v60, %v1570_v14  ;;  %v7561_v7 = vmul.f32 %v5232_v60, %v1571_v47  ;;  %v2967_v19 = vsel %vm2965_vm9, 0.5, %v9576_v25  ;;  %v1613_v55 = vsub.f32 %v7454_v44, %v6553_v16 }
 0x161   : > { %v5333_v15 = vpack.i.bf16 %v2967_v19, %v2966_v53  ;;  %v3018_v3 = vadd.f32 %v3016_v21, %v9578_v11  ;;  %v1616_v57 = vand.u32 2147483647, %v1612_v34  ;;  %v1614_v20 = vsub.f32 %v7468_v48, %v6551_v40  ;;  %v7610_v19 = vpop.permute.xlu1 %5249 }
 0x162   : > { %v1617_v12 = vand.u32 2147483647, %v1613_v55  ;;  %v1615_v50 = vsub.f32 %v7468_v48, %v6553_v16  ;;  %v3017_v13 = vmul.f32 %v9584_v35, %v9585_v22  ;;  %v1433_v44 = vmul.f32 %v7474_v8, %v7435_v49  ;;  %v7604_v34 = vpop.permute.xlu0 %1827 }
 0x163   : > { %5334 = vperm.xlu0 %5152, %v5333_v15   ;;  %v3028_v27 = vmax.f32 %v3018_v3, 0.0  ;;  %v1620_v60 = vsub.f32 1.0, %v1616_v57  ;;  %v1618_v41 = vand.u32 2147483647, %v1614_v20  ;;  %vm3020_vm10 = vcmp.ge.f32.partialorder %v3018_v3, -1.0 }
 0x164   : > { %v1621_v37 = vsub.f32 1.0, %v1617_v12  ;;  %v1619_v48 = vand.u32 2147483647, %v1615_v50  ;;  %v3019_v10 = vadd.f32 %v3017_v13, %v9578_v11  ;;  %vm3022_vm11 = vcmp.le.f32.partialorder %v3018_v3, 16.0  ;;  %v9586_v12 = vld [vmem:[#allocation19_spill] sm:$0xff] }
 0x165   : > { %v3030_v49 = vmin.f32 %v3028_v27, 15.0  ;;  %v1624_v8 = vmax.f32 %v1620_v60, 0.0  ;;  %v1622_v9 = vsub.f32 1.0, %v1618_v41  ;;  %vm3024_vm12 = vmand %vm3020_vm10, %vm3022_vm11  ;;  %v1435_v59 = vmul.f32 %v7482_v23, %v7441_v62 }
 0x166   : > { %v1625_v0 = vmax.f32 %v1621_v37, 0.0  ;;  %v1623_v5 = vsub.f32 1.0, %v1619_v48  ;;  %v3029_v43 = vmax.f32 %v3019_v10, 0.0  ;;  %vm3021_vm13 = vcmp.ge.f32.partialorder %v3019_v10, -1.0 }
 0x167   : > { %3034 = vperm.xlu1 %5141, %v3030_v49   ;;  %v1626_v11 = vmax.f32 %v1622_v9, 0.0  ;;  %vm3023_vm14 = vcmp.le.f32.partialorder %v3019_v10, 16.0  ;;  %v3026_v61 = vsel %vm3024_vm12, 0.5, %v9576_v25  ;;  %v5029_v36 = vpack.c.bf16 %v1435_v59, %v1433_v44 }
 0x168   : > { %v1627_v32 = vmax.f32 %v1623_v5, 0.0  ;;  %v3031_v14 = vmin.f32 %v3029_v43, 15.0  ;;  %vm3025_vm15 = vmand %vm3021_vm13, %vm3023_vm14  ;;  %v1432_v47 = vmul.f32 %v7471_v6, %v7432_v39  ;;  %v1434_v62 = vmul.f32 %v7477_v31, %v7438_v52  ;;  %v7646_v43 = vpop.permute.xlu1 %1883 }
 0x169   : > { %v3027_v23 = vsel %vm3025_vm15, 0.5, %v9576_v25  ;;  %5030 = vmatprep.subr.bf16.mxu0 %v5029_v36  ;;  %v5237_v53 = vunpack.i.h.bf16 %v7487_v29  ;;  %v5236_v35 = vunpack.i.l.bf16 %v7487_v29  ;;  %v1672_v21 = vsub.f32 %v7491_v63, %v6569_v45 }
 0x16a   : > { %3039 = vperm.xlu0 %5152, %v3031_v14   ;;  %v5338_v39 = vpack.i.bf16 %v3027_v23, %v3026_v61  ;;  %v5031_v6 = vpack.c.bf16 %v1434_v62, %v1432_v47  ;;  %v1673_v52 = vsub.f32 %v7491_v63, %v6602_v58  ;;  %v7608_v31 = vstv %s3113_s30  ;;  %s7766_s30 = smul.f32 0.25, %s3368_s26  ;;  %s3646_s26 = scvt.s32.f32 %s7889_s8 }
 0x16b   : > { %v1638_v55 = vmul.f32 %v5236_v35, %v1624_v8  ;;  %v1639_v29 = vmul.f32 %v5236_v35, %v1625_v0  ;;  %v1640_v15 = vmul.f32 %v5237_v53, %v1626_v11  ;;  %v1641_v3 = vmul.f32 %v5237_v53, %v1627_v32  ;;  %v7642_v8 = vpop.permute.xlu0 %1878 }
 0x16c   : > { %5339 = vperm.xlu1 %5141, %v5338_v39   ;;  %5032 = vmatpush1.bf16.xpose.msra.mxu0 %v5031_v6  ;;  %v1676_v57 = vand.u32 2147483647, %v1672_v21  ;;  %v1677_v20 = vand.u32 2147483647, %v1673_v52  ;;  %v3115_v50 = vmul.f32 %v7608_v31, %v9586_v12  ;;  %v7616_v13 = vstv %s3101_s27  ;;  %s3364_s27 = scvt.s32.f32 %s7657_s15  ;;  %s7963_s18 = smul.f32 0.25, %s3646_s26 }
 0x16d   : > { %v7619_v63 = vadd.f32 %v1638_v55, %v7508_v51  ;;  %v7622_v44 = vadd.f32 %v1639_v29, %v7510_v18  ;;  %v7625_v27 = vadd.f32 %v1640_v15, %v7514_v1  ;;  %v7628_v60 = vadd.f32 %v1641_v3, %v7524_v54  ;;  %v9587_v51 = vld [vmem:[#allocation20_spill] sm:$0xff]  ;;  %s3906_s26 = sadd.s32 52, %s5678_s23 }
 0x16e   : > { %v1680_v41 = vsub.f32 1.0, %v1676_v57  ;;  %v1681_v37 = vsub.f32 1.0, %v1677_v20  ;;  %v3118_v48 = vadd.f32 %v7616_v13, %v3115_v50  ;;  %v3116_v10 = vmul.f32 %v7608_v31, %v9587_v51  ;;  %v7674_v57 = vpop.permute.xlu1 %1938  ;;  %s7718_s20 = smul.f32 0.25, %s3364_s27  ;;  %s7885_s27 = sld [smem:[#allocation5 + %s3636_s13]] }
 0x16f   : > { %v1674_v18 = vsub.f32 %v7522_v33, %v6569_v45  ;;  %v1675_v1 = vsub.f32 %v7522_v33, %v6602_v58  ;;  %v5242_v54 = vunpack.i.h.bf16 %v7532_v30  ;;  %v5241_v49 = vunpack.i.l.bf16 %v7532_v30  ;;  %v7662_v55 = vpop.permute.xlu0 %5254 }
 0x170   : > { %v1684_v9 = vmax.f32 %v1680_v41, 0.0  ;;  %v1685_v59 = vmax.f32 %v1681_v37, 0.0  ;;  %v3128_v0 = vmax.f32 %v3118_v48, 0.0  ;;  %v3119_v5 = vadd.f32 %v7616_v13, %v3116_v10  ;;  %s3375_s22 = smul.f32 0.25, %s7718_s20  ;;  %s3640_s20 = sadd.s32 50, %s5678_s23 }
 0x171   : > { %v1678_v11 = vand.u32 2147483647, %v1674_v18  ;;  %v1679_v61 = vand.u32 2147483647, %v1675_v1  ;;  %vm3120_vm0 = vcmp.ge.f32.partialorder %v3118_v48, -1.0  ;;  %vm3122_vm1 = vcmp.le.f32.partialorder %v3118_v48, 16.0 }
 0x172   : > { %v3130_v33 = vmin.f32 %v3128_v0, 15.0  ;;  %v3129_v36 = vmax.f32 %v3119_v5, 0.0  ;;  %v1698_v32 = vmul.f32 %v5241_v49, %v1684_v9  ;;  %v1699_v30 = vmul.f32 %v5241_v49, %v1685_v59  ;;  %vm3124_vm2 = vmand %vm3120_vm0, %vm3122_vm1  ;;  %v9589_v1 = vld [vmem:[#allocation22_spill] sm:$0xff]  ;;  %s7923_s24 = sld [smem:[#allocation5 + %s3640_s20]]  ;;  %s3910_s20 = sadd.s32 53, %s5678_s23 }
 0x173   : > { %v1682_v14 = vsub.f32 1.0, %v1678_v11  ;;  %v1683_v47 = vsub.f32 1.0, %v1679_v61  ;;  %vm3121_vm3 = vcmp.ge.f32.partialorder %v3119_v5, -1.0  ;;  %vm3123_vm4 = vcmp.le.f32.partialorder %v3119_v5, 16.0 }
 0x174   : > { %3134 = vperm.xlu0 %5152, %v3130_v33   ;;  %v3131_v62 = vmin.f32 %v3129_v36, 15.0  ;;  %v7651_v23 = vadd.f32 %v1698_v32, %v7541_v24  ;;  %v7654_v53 = vadd.f32 %v1699_v30, %v7549_v26  ;;  %vm3125_vm5 = vmand %vm3121_vm3, %vm3123_vm4  ;;  %v3126_v35 = vsel %vm3124_vm2, 0.5, %v9576_v25  ;;  %v9588_v26 = vld [vmem:[#allocation21_spill] sm:$0xff] }
 0x175   : > { %v1686_v21 = vmax.f32 %v1682_v14, 0.0  ;;  %v1687_v39 = vmax.f32 %v1683_v47, 0.0  ;;  %v3127_v6 = vsel %vm3125_vm5, 0.5, %v9576_v25  ;;  %v7660_v52 = vstv %s3110_s7  ;;  %v7699_v14 = vpop.permute.xlu1 %5259  ;;  %s3376_s7 = smul.f32 0.25, %s7766_s30 }
 0x176   : > { %3139 = vperm.xlu1 %5141, %v3131_v62   ;;  %v5343_v24 = vpack.i.bf16 %v3127_v6, %v3126_v35  ;;  %v3173_v29 = vmul.f32 %v7660_v52, %v9588_v26  ;;  %v7670_v15 = vstv %s3100_s1  ;;  %v1772_v3 = vsub.f32 %v7544_v28, %v6551_v40  ;;  %s3379_s1 = smul.f32 0.25, %s7724_s0  ;;  %s7917_s0 = sld [smem:[#allocation5 + %s3632_s17]] }
 0x177   : > { %v1700_v20 = vmul.f32 %v5242_v54, %v1686_v21  ;;  %v1701_v50 = vmul.f32 %v5242_v54, %v1687_v39  ;;  %v1773_v41 = vsub.f32 %v7544_v28, %v6553_v16  ;;  %v1774_v37 = vsub.f32 %v7547_v17, %v6551_v40  ;;  %s3377_s28 = ssub.f32 %s3376_s7, %s3374_s16  ;;  %s3653_s7 = smul.f32 0.25, %s7963_s18 }
 0x178   : > { %5344 = vperm.xlu0 %5152, %v5343_v24   ;;  %v3176_v48 = vadd.f32 %v7670_v15, %v3173_v29  ;;  %v1776_v10 = vand.u32 2147483647, %v1772_v3  ;;  %v1775_v18 = vsub.f32 %v7547_v17, %v6553_v16  ;;  %v3174_v49 = vmul.f32 %v7660_v52, %v9589_v1  ;;  %s3380_s9 = ssub.f32 %s3379_s1, %s3375_s22  ;;  %s8183_s18 = sld [smem:[#allocation5 + %s3906_s26]] }
 0x179   : > { %v7687_v9 = vadd.f32 %v1700_v20, %v7559_v42  ;;  %v7690_v54 = vadd.f32 %v1701_v50, %v7561_v7  ;;  %v1777_v28 = vand.u32 2147483647, %v1773_v41  ;;  %v1778_v59 = vand.u32 2147483647, %v1774_v37  ;;  %v7696_v42 = vpop.permute.xlu0 %1943  ;;  %s7822_s21 = smax.f32 %s9454_s14, %s3377_s28 }
 0x17a   : > { %v3186_v0 = vmax.f32 %v3176_v48, 0.0  ;;  %v1780_v5 = vsub.f32 1.0, %v1776_v10  ;;  %v1779_v11 = vand.u32 2147483647, %v1775_v18  ;;  %v3177_v61 = vadd.f32 %v7670_v15, %v3174_v49  ;;  %s7791_s29 = smax.f32 %s9454_s14, %s3380_s9  ;;  %s3384_s25 = smul.f32 0.25, %s7822_s21 }
 0x17b   : > { %v1781_v17 = vsub.f32 1.0, %v1777_v28  ;;  %v1782_v33 = vsub.f32 1.0, %v1778_v59  ;;  %vm3178_vm6 = vcmp.ge.f32.partialorder %v3176_v48, -1.0  ;;  %vm3180_vm7 = vcmp.le.f32.partialorder %v3176_v48, 16.0  ;;  %s3387_s15 = smul.f32 0.25, %s7791_s29  ;;  %s3642_s9 = scvt.s32.f32 %s7923_s24 }
 0x17c   : > { %v3188_v7 = vmin.f32 %v3186_v0, 15.0  ;;  %v1784_v36 = vmax.f32 %v1780_v5, 0.0  ;;  %v1783_v32 = vsub.f32 1.0, %v1779_v11  ;;  %v3187_v30 = vmax.f32 %v3177_v61, 0.0  ;;  %vm3182_vm8 = vmand %vm3178_vm6, %vm3180_vm7  ;;  %v7738_v11 = vpop.permute.xlu1 %2043  ;;  %s3634_s30 = scvt.s32.f32 %s7917_s0  ;;  %s3918_s0 = sadd.s32 55, %s5678_s23 }
 0x17d   : > { %v1785_v47 = vmax.f32 %v1781_v17, 0.0  ;;  %v1786_v62 = vmax.f32 %v1782_v33, 0.0  ;;  %vm3179_vm9 = vcmp.ge.f32.partialorder %v3177_v61, -1.0  ;;  %vm3181_vm10 = vcmp.le.f32.partialorder %v3177_v61, 16.0  ;;  %s7994_s28 = smul.f32 0.25, %s3642_s9  ;;  %s8151_s24 = sld [smem:[#allocation5 + %s3910_s20]] }
 0x17e   : > { %3192 = vperm.xlu1 %5141, %v3188_v7   ;;  %v1787_v35 = vmax.f32 %v1783_v32, 0.0  ;;  %v3189_v21 = vmin.f32 %v3187_v30, 15.0  ;;  %vm3183_vm11 = vmand %vm3179_vm9, %vm3181_vm10  ;;  %v3184_v39 = vsel %vm3182_vm8, 0.5, %v9576_v25  ;;  %v5247_v6 = vunpack.i.h.bf16 %v7582_v46  ;;  %s7989_s29 = smul.f32 0.25, %s3634_s30 }
 0x17f   : > { %v3185_v24 = vsel %vm3183_vm11, 0.5, %v9576_v25  ;;  %v5246_v29 = vunpack.i.l.bf16 %v7582_v46  ;;  %v1830_v3 = vsub.f32 %v7586_v56, %v6569_v45  ;;  %v1831_v20 = vsub.f32 %v7586_v56, %v6602_v58  ;;  %v7726_v56 = vpop.permute.xlu0 %2038 }
 0x180   : > { %3197 = vperm.xlu0 %5152, %v3189_v21   ;;  %v5348_v50 = vpack.i.bf16 %v3185_v24, %v3184_v39  ;;  %v7712_v41 = vmul.f32 %v5247_v6, %v1786_v62  ;;  %v7714_v37 = vmul.f32 %v5247_v6, %v1787_v35  ;;  %v3230_v48 = vmul.f32 %v7608_v31, %v9579_v38 }
 0x181   : > { %v7720_v10 = vmul.f32 %v5246_v29, %v1784_v36  ;;  %v7722_v46 = vmul.f32 %v5246_v29, %v1785_v47  ;;  %v1834_v18 = vand.u32 2147483647, %v1830_v3  ;;  %v1835_v49 = vand.u32 2147483647, %v1831_v20 }
 0x182   : > { %5349 = vperm.xlu1 %5141, %v5348_v50   ;;  %v7729_v28 = vadd.f32 %v3230_v48, %v7616_v13  ;;  %v3231_v59 = vmul.f32 %v7608_v31, %v9581_v4  ;;  %v1832_v0 = vsub.f32 %v7604_v34, %v6569_v45  ;;  %v1833_v5 = vsub.f32 %v7604_v34, %v6602_v58 }
 0x183   : > { %v1838_v61 = vsub.f32 1.0, %v1834_v18  ;;  %v1839_v17 = vsub.f32 1.0, %v1835_v49  ;;  %v5252_v33 = vunpack.i.h.bf16 %v7610_v19  ;;  %v5251_v7 = vunpack.i.l.bf16 %v7610_v19  ;;  %v7762_v20 = vpop.permute.xlu0 %5264  ;;  %v7768_v49 = vpop.permute.xlu1 %2096  ;;  %s3912_s9 = scvt.s32.f32 %s8151_s24 }
 0x184   : > { %v3242_v36 = vmax.f32 %v7729_v28, 0.0  ;;  %v7744_v31 = vadd.f32 %v3231_v59, %v7616_v13  ;;  %v1836_v32 = vand.u32 2147483647, %v1832_v0  ;;  %v1837_v30 = vand.u32 2147483647, %v1833_v5 }
 0x185   : > { %v1842_v34 = vmax.f32 %v1838_v61, 0.0  ;;  %v1843_v47 = vmax.f32 %v1839_v17, 0.0  ;;  %v3290_v62 = vmul.f32 %v7660_v52, %v9583_v2  ;;  %v3291_v35 = vmul.f32 %v7660_v52, %v9585_v22 }
 0x186   : > { %v3244_v21 = vmin.f32 %v3242_v36, 15.0  ;;  %v3243_v19 = vmax.f32 %v7744_v31, 0.0  ;;  %v1840_v39 = vsub.f32 1.0, %v1836_v32  ;;  %v1841_v6 = vsub.f32 1.0, %v1837_v30 }
 0x187   : > { %v7756_v13 = vmul.f32 %v5251_v7, %v1842_v34  ;;  %v7758_v24 = vmul.f32 %v5251_v7, %v1843_v47  ;;  %v3292_v29 = vadd.f32 %v3290_v62, %v7670_v15  ;;  %v3293_v3 = vadd.f32 %v3291_v35, %v7670_v15 }
 0x188   : > { %3248 = vperm.xlu0 %5152, %v3244_v21   ;;  %v3245_v52 = vmin.f32 %v3243_v19, 15.0  ;;  %v1844_v50 = vmax.f32 %v1840_v39, 0.0  ;;  %v1845_v48 = vmax.f32 %v1841_v6, 0.0  ;;  %v1886_v18 = vsub.f32 %v7642_v8, %v6551_v40  ;;  %v7793_v39 = vpop.permute.xlu1 %5269 }
 0x189   : > { %v3302_v59 = vmax.f32 %v3292_v29, 0.0  ;;  %v3303_v0 = vmax.f32 %v3293_v3, 0.0  ;;  %v1887_v15 = vsub.f32 %v7642_v8, %v6553_v16  ;;  %v1888_v5 = vsub.f32 %v7646_v43, %v6551_v40 }
 0x18a   : > { %3253 = vperm.xlu1 %5141, %v3245_v52   ;;  %v7774_v61 = vmul.f32 %v5252_v33, %v1844_v50  ;;  %v7776_v17 = vmul.f32 %v5252_v33, %v1845_v48  ;;  %v1890_v7 = vand.u32 2147483647, %v1886_v18  ;;  %v1889_v36 = vsub.f32 %v7646_v43, %v6553_v16  ;;  %v7788_v43 = vpop.permute.xlu0 %2101 }
 0x18b   : > { %v3304_v32 = vmin.f32 %v3302_v59, 15.0  ;;  %v3305_v30 = vmin.f32 %v3303_v0, 15.0  ;;  %v1891_v34 = vand.u32 2147483647, %v1887_v15  ;;  %v1892_v8 = vand.u32 2147483647, %v1888_v5 }
 0x18c   : > { %v1894_v47 = vsub.f32 1.0, %v1890_v7  ;;  %v1893_v62 = vand.u32 2147483647, %v1889_v36  ;;  %vm3234_vm12 = vcmp.ge.f32.partialorder %v7729_v28, -1.0  ;;  %vm3235_vm13 = vcmp.ge.f32.partialorder %v7744_v31, -1.0 }
 0x18d   : > { %3308 = vperm.xlu0 %5152, %v3304_v32   ;;  %v1895_v33 = vsub.f32 1.0, %v1891_v34  ;;  %v1896_v35 = vsub.f32 1.0, %v1892_v8  ;;  %vm3236_vm14 = vcmp.le.f32.partialorder %v7729_v28, 16.0  ;;  %vm3237_vm15 = vcmp.le.f32.partialorder %v7744_v31, 16.0 }
 0x18e   : > { %3313 = vperm.xlu1 %5141, %v3305_v30   ;;  %v1898_v21 = vmax.f32 %v1894_v47, 0.0  ;;  %v1897_v19 = vsub.f32 1.0, %v1893_v62  ;;  %vm3238_vm0 = vmand %vm3234_vm12, %vm3236_vm14  ;;  %vm3294_vm1 = vcmp.ge.f32.partialorder %v3292_v29, -1.0  ;;  %vm3295_vm2 = vcmp.ge.f32.partialorder %v3293_v3, -1.0 }
 0x18f   : > { %v1899_v6 = vmax.f32 %v1895_v33, 0.0  ;;  %v1900_v52 = vmax.f32 %v1896_v35, 0.0  ;;  %vm3239_vm3 = vmand %vm3235_vm13, %vm3237_vm15  ;;  %v3240_v28 = vsel %vm3238_vm0, 0.5, %v9576_v25  ;;  %vm3296_vm4 = vcmp.le.f32.partialorder %v3292_v29, 16.0 }
 0x190   : > { %v1901_v50 = vmax.f32 %v1897_v19, 0.0  ;;  %v3241_v48 = vsel %vm3239_vm3, 0.5, %v9576_v25  ;;  %vm3297_vm5 = vcmp.le.f32.partialorder %v3293_v3, 16.0  ;;  %vm3298_vm6 = vmand %vm3294_vm1, %vm3296_vm4  ;;  %v1707_v18 = vmul.f32 %v7654_v53, %v7622_v44 }
 0x191   : > { %v5353_v59 = vpack.i.bf16 %v3241_v48, %v3240_v28  ;;  %vm3299_vm7 = vmand %vm3295_vm2, %vm3297_vm5  ;;  %v3300_v0 = vsel %vm3298_vm6, 0.5, %v9576_v25  ;;  %v1709_v31 = vmul.f32 %v7690_v54, %v7628_v60  ;;  %v1706_v29 = vmul.f32 %v7651_v23, %v7619_v63  ;;  %v7819_v63 = vpop.permute.xlu0 %2152 }
 0x192   : > { %v3301_v15 = vsel %vm3299_vm7, 0.5, %v9576_v25  ;;  %v1708_v5 = vmul.f32 %v7687_v9, %v7625_v27  ;;  %v5257_v44 = vunpack.i.h.bf16 %v7662_v55  ;;  %v5256_v53 = vunpack.i.l.bf16 %v7662_v55  ;;  %v7824_v27 = vpop.permute.xlu1 %2157 }
 0x193   : > { %5354 = vperm.xlu0 %5152, %v5353_v59   ;;  %v5358_v3 = vpack.i.bf16 %v3301_v15, %v3300_v0  ;;  %v5033_v7 = vpack.c.bf16 %v1709_v31, %v1707_v18  ;;  %v1946_v36 = vsub.f32 %v7674_v57, %v6569_v45  ;;  %v1947_v60 = vsub.f32 %v7674_v57, %v6602_v58 }
 0x194   : > { %v5035_v23 = vpack.c.bf16 %v1708_v5, %v1706_v29  ;;  %v1912_v54 = vmul.f32 %v5256_v53, %v1898_v21  ;;  %v1913_v32 = vmul.f32 %v5256_v53, %v1899_v6  ;;  %v1914_v30 = vmul.f32 %v5257_v44, %v1900_v52 }
 0x195   : > { %5359 = vperm.xlu1 %5141, %v5358_v3   ;;  %5034 = vmatprep.subr.bf16.mxu0 %v5033_v7  ;;  %v1915_v55 = vmul.f32 %v5257_v44, %v1901_v50  ;;  %v1950_v9 = vand.u32 2147483647, %v1946_v36  ;;  %v1951_v34 = vand.u32 2147483647, %v1947_v60  ;;  %v7826_v8 = vstv %s3387_s15  ;;  %v7858_v18 = vpop.permute.xlu0 %5274  ;;  %s3648_s15 = smul.f32 0.25, %s7989_s29 }
 0x196   : > { %5036 = vmatpush1.bf16.xpose.msra.mxu0 %v5035_v23  ;;  %v7829_v57 = vadd.f32 %v1912_v54, %v7720_v10  ;;  %v7832_v47 = vadd.f32 %v1913_v32, %v7722_v46  ;;  %v7835_v62 = vadd.f32 %v1914_v30, %v7712_v41  ;;  %v3389_v33 = vmul.f32 %v7826_v8, %v9586_v12  ;;  %v7864_v15 = vpop.permute.xlu1 %2212 }
 0x197   : > { %v7840_v35 = vadd.f32 %v1915_v55, %v7714_v37  ;;  %v1954_v21 = vsub.f32 1.0, %v1950_v9  ;;  %v1955_v19 = vsub.f32 1.0, %v1951_v34  ;;  %v7844_v6 = vstv %s3375_s22  ;;  %s3638_s22 = scvt.s32.f32 %s7885_s27 }
 0x198   : > { %v7848_v10 = vadd.f32 %v7844_v6, %v3389_v33  ;;  %v3390_v41 = vmul.f32 %v7826_v8, %v9587_v51  ;;  %v1948_v46 = vsub.f32 %v7696_v42, %v6569_v45  ;;  %v1949_v37 = vsub.f32 %v7696_v42, %v6602_v58 }
 0x199   : > { %v1958_v52 = vmax.f32 %v1954_v21, 0.0  ;;  %v1959_v28 = vmax.f32 %v1955_v19, 0.0  ;;  %v5262_v50 = vunpack.i.h.bf16 %v7699_v14  ;;  %v5261_v48 = vunpack.i.l.bf16 %v7699_v14  ;;  %v7901_v19 = vpop.permute.xlu0 %2217  ;;  %s7959_s1 = smul.f32 0.25, %s3638_s22  ;;  %s8156_s22 = sld [smem:[#allocation5 + %s3918_s0]] }
 0x19a   : > { %v3402_v59 = vmax.f32 %v7848_v10, 0.0  ;;  %v7862_v0 = vadd.f32 %v7844_v6, %v3390_v41  ;;  %v1952_v31 = vand.u32 2147483647, %v1948_v46  ;;  %v1953_v29 = vand.u32 2147483647, %v1949_v37 }
 0x19b   : > { %v1972_v42 = vmul.f32 %v5261_v48, %v1958_v52  ;;  %v1973_v5 = vmul.f32 %v5261_v48, %v1959_v28  ;;  %v7867_v44 = vstv %s3384_s25  ;;  %v7871_v53 = vstv %s3374_s16  ;;  %v7905_v28 = vpop.permute.xlu1 %5279  ;;  %s3649_s16 = smul.f32 0.25, %s7959_s1  ;;  %s3914_s1 = sadd.s32 54, %s5678_s23 }
 0x19c   : > { %v3404_v14 = vmin.f32 %v3402_v59, 15.0  ;;  %v3403_v3 = vmax.f32 %v7862_v0, 0.0  ;;  %v1956_v7 = vsub.f32 1.0, %v1952_v31  ;;  %v1957_v36 = vsub.f32 1.0, %v1953_v29  ;;  %s3650_s25 = smul.f32 0.25, %s7994_s28  ;;  %s8191_s30 = sld [smem:[#allocation5 + %s3914_s1]] }
 0x19d   : > { %v7876_v60 = vadd.f32 %v1972_v42, %v7756_v13  ;;  %v7879_v23 = vadd.f32 %v1973_v5, %v7758_v24  ;;  %v3447_v54 = vmul.f32 %v7867_v44, %v9588_v26  ;;  %v3448_v32 = vmul.f32 %v7867_v44, %v9589_v1  ;;  %s3654_s21 = ssub.f32 %s3653_s7, %s3649_s16  ;;  %s8220_s7 = smul.f32 0.25, %s3912_s9 }
 0x19e   : > { %3408 = vperm.xlu0 %5152, %v3404_v14   ;;  %v3405_v30 = vmin.f32 %v3403_v3, 15.0  ;;  %v1960_v55 = vmax.f32 %v1956_v7, 0.0  ;;  %v1961_v9 = vmax.f32 %v1957_v36, 0.0  ;;  %v2046_v13 = vsub.f32 %v7726_v56, %v6551_v40  ;;  %s3651_s11 = ssub.f32 %s3650_s25, %s3648_s15  ;;  %s3908_s28 = scvt.s32.f32 %s8183_s18 }
 0x19f   : > { %v7892_v24 = vadd.f32 %v7871_v53, %v3447_v54  ;;  %v7895_v34 = vadd.f32 %v7871_v53, %v3448_v32  ;;  %v2047_v33 = vsub.f32 %v7726_v56, %v6553_v16  ;;  %v2048_v21 = vsub.f32 %v7738_v11, %v6551_v40  ;;  %s8049_s13 = smax.f32 %s9454_s14, %s3654_s21  ;;  %s3923_s21 = smul.f32 0.25, %s8220_s7 }
 0x1a0   : > { %3413 = vperm.xlu1 %5141, %v3405_v30   ;;  %v1974_v41 = vmul.f32 %v5262_v50, %v1960_v55  ;;  %v1975_v46 = vmul.f32 %v5262_v50, %v1961_v9  ;;  %v2050_v37 = vand.u32 2147483647, %v2046_v13  ;;  %v2049_v52 = vsub.f32 %v7738_v11, %v6553_v16  ;;  %v7928_v13 = vpop.permute.xlu0 %2312  ;;  %s3661_s27 = smul.f32 0.25, %s8049_s13  ;;  %s8076_s8 = smax.f32 %s9454_s14, %s3651_s11 }
 0x1a1   : > { %v3460_v48 = vmax.f32 %v7892_v24, 0.0  ;;  %v3461_v56 = vmax.f32 %v7895_v34, 0.0  ;;  %v2051_v59 = vand.u32 2147483647, %v2047_v33  ;;  %v2052_v31 = vand.u32 2147483647, %v2048_v21 }
 0x1a2   : > { %v7912_v29 = vadd.f32 %v1974_v41, %v7774_v61  ;;  %v7915_v42 = vadd.f32 %v1975_v46, %v7776_v17  ;;  %v2054_v50 = vsub.f32 1.0, %v2050_v37  ;;  %v2053_v5 = vand.u32 2147483647, %v2049_v52  ;;  %v7939_v46 = vpop.permute.xlu1 %2317  ;;  %s3658_s17 = smul.f32 0.25, %s8076_s8  ;;  %s4184_s1 = sadd.s32 57, %s5678_s23 }
 0x1a3   : > { %v3462_v14 = vmin.f32 %v3460_v48, 15.0  ;;  %v3463_v11 = vmin.f32 %v3461_v56, 15.0  ;;  %v2055_v3 = vsub.f32 1.0, %v2051_v59  ;;  %v2056_v7 = vsub.f32 1.0, %v2052_v31  ;;  %s8257_s13 = smul.f32 0.25, %s3908_s28  ;;  %s4192_s18 = sadd.s32 59, %s5678_s23 }
 0x1a4   : > { %v2058_v36 = vmax.f32 %v2054_v50, 0.0  ;;  %v2057_v54 = vsub.f32 1.0, %v2053_v5  ;;  %v3504_v32 = vmul.f32 %v7826_v8, %v9579_v38  ;;  %v3505_v61 = vmul.f32 %v7826_v8, %v9581_v4  ;;  %s8395_s9 = sld [smem:[#allocation5 + %s4192_s18]]  ;;  %s4188_s7 = sadd.s32 58, %s5678_s23 }
 0x1a5   : > { %3466 = vperm.xlu0 %5152, %v3462_v14   ;;  %3471 = vperm.xlu1 %5141, %v3463_v11   ;;  %v2059_v17 = vmax.f32 %v2055_v3, 0.0  ;;  %v2060_v30 = vmax.f32 %v2056_v7, 0.0  ;;  %v5267_v55 = vunpack.i.h.bf16 %v7762_v20  ;;  %v5266_v9 = vunpack.i.l.bf16 %v7762_v20  ;;  %s3922_s8 = smul.f32 0.25, %s8257_s13  ;;  %s8429_s28 = sld [smem:[#allocation5 + %s4188_s7]] }
 0x1a6   : > { %v2061_v33 = vmax.f32 %v2057_v54, 0.0  ;;  %v7931_v21 = vadd.f32 %v3504_v32, %v7844_v6  ;;  %v7934_v41 = vadd.f32 %v3505_v61, %v7844_v6  ;;  %v2104_v8 = vsub.f32 %v7768_v49, %v6569_v45  ;;  %s4458_s7 = sadd.s32 61, %s5678_s23 }
 0x1a7   : > { %v7941_v37 = vmul.f32 %v5266_v9, %v2058_v36  ;;  %v7943_v52 = vmul.f32 %v5266_v9, %v2059_v17  ;;  %v7945_v20 = vmul.f32 %v5267_v55, %v2060_v30  ;;  %v2105_v48 = vsub.f32 %v7768_v49, %v6602_v58  ;;  %v7972_v17 = vpop.permute.xlu0 %5284 }
 0x1a8   : > { %v3516_v56 = vmax.f32 %v7931_v21, 0.0  ;;  %v3517_v6 = vmax.f32 %v7934_v41, 0.0  ;;  %v7951_v59 = vmul.f32 %v5267_v55, %v2061_v33  ;;  %v2108_v31 = vand.u32 2147483647, %v2104_v8  ;;  %v7977_v33 = vpop.permute.xlu1 %2370 }
 0x1a9   : > { %v2109_v50 = vand.u32 2147483647, %v2105_v48  ;;  %v3564_v5 = vmul.f32 %v7867_v44, %v9583_v2  ;;  %v3565_v14 = vmul.f32 %v7867_v44, %v9585_v22  ;;  %v2106_v11 = vsub.f32 %v7788_v43, %v6569_v45 }
 0x1aa   : > { %v3518_v49 = vmin.f32 %v3516_v56, 15.0  ;;  %v3519_v3 = vmin.f32 %v3517_v6, 15.0  ;;  %v2112_v7 = vsub.f32 1.0, %v2108_v31  ;;  %v2107_v36 = vsub.f32 %v7788_v43, %v6602_v58 }
 0x1ab   : > { %v2113_v54 = vsub.f32 1.0, %v2109_v50  ;;  %v7966_v32 = vadd.f32 %v3564_v5, %v7871_v53  ;;  %v7969_v44 = vadd.f32 %v3565_v14, %v7871_v53  ;;  %v2110_v61 = vand.u32 2147483647, %v2106_v11 }
 0x1ac   : > { %3522 = vperm.xlu0 %5152, %v3518_v49   ;;  %3527 = vperm.xlu1 %5141, %v3519_v3   ;;  %v2116_v30 = vmax.f32 %v2112_v7, 0.0  ;;  %v2111_v55 = vand.u32 2147483647, %v2107_v36  ;;  %v5272_v43 = vunpack.i.h.bf16 %v7793_v39  ;;  %v5271_v9 = vunpack.i.l.bf16 %v7793_v39  ;;  %v8003_v3 = vpop.permute.xlu0 %2375 }
 0x1ad   : > { %v2117_v8 = vmax.f32 %v2113_v54, 0.0  ;;  %v3576_v53 = vmax.f32 %v7966_v32, 0.0  ;;  %v3577_v48 = vmax.f32 %v7969_v44, 0.0  ;;  %v2114_v56 = vsub.f32 1.0, %v2110_v61  ;;  %v8014_v61 = vpop.permute.xlu1 %5289 }
 0x1ae   : > { %v2115_v6 = vsub.f32 1.0, %v2111_v55  ;;  %v7982_v31 = vmul.f32 %v5271_v9, %v2116_v30  ;;  %vm3394_vm8 = vcmp.ge.f32.partialorder %v7848_v10, -1.0  ;;  %vm3395_vm9 = vcmp.ge.f32.partialorder %v7862_v0, -1.0 }
 0x1af   : > { %v3578_v50 = vmin.f32 %v3576_v53, 15.0  ;;  %v3579_v39 = vmin.f32 %v3577_v48, 15.0  ;;  %v2118_v5 = vmax.f32 %v2114_v56, 0.0  ;;  %v7987_v14 = vmul.f32 %v5271_v9, %v2117_v8 }
 0x1b0   : > { %v2119_v11 = vmax.f32 %v2115_v6, 0.0  ;;  %vm3396_vm10 = vcmp.le.f32.partialorder %v7848_v10, 16.0  ;;  %vm3397_vm11 = vcmp.le.f32.partialorder %v7862_v0, 16.0  ;;  %vm3452_vm12 = vcmp.ge.f32.partialorder %v7892_v24, -1.0 }
 0x1b1   : > { %3582 = vperm.xlu0 %5152, %v3578_v50   ;;  %3587 = vperm.xlu1 %5141, %v3579_v39   ;;  %v7996_v49 = vmul.f32 %v5272_v43, %v2118_v5  ;;  %vm3398_vm13 = vmand %vm3394_vm8, %vm3396_vm10  ;;  %vm3453_vm14 = vcmp.ge.f32.partialorder %v7895_v34, -1.0  ;;  %vm3454_vm15 = vcmp.le.f32.partialorder %v7892_v24, 16.0  ;;  %vm3455_vm0 = vcmp.le.f32.partialorder %v7895_v34, 16.0  ;;  %v8042_v39 = vpop.permute.xlu0 %2426 }
 0x1b2   : > { %v8005_v7 = vmul.f32 %v5272_v43, %v2119_v11  ;;  %vm3399_vm1 = vmand %vm3395_vm9, %vm3397_vm11  ;;  %v3400_v36 = vsel %vm3398_vm13, 0.5, %v9576_v25  ;;  %v2160_v10 = vsub.f32 %v7819_v63, %v6551_v40  ;;  %v2161_v54 = vsub.f32 %v7819_v63, %v6553_v16 }
 0x1b3   : > { %v3401_v30 = vsel %vm3399_vm1, 0.5, %v9576_v25  ;;  %vm3456_vm2 = vmand %vm3452_vm12, %vm3454_vm15  ;;  %v2162_v0 = vsub.f32 %v7824_v27, %v6551_v40  ;;  %v2163_v55 = vsub.f32 %v7824_v27, %v6553_v16  ;;  %vm3508_vm3 = vcmp.ge.f32.partialorder %v7931_v21, -1.0 }
 0x1b4   : > { %v5363_v43 = vpack.i.bf16 %v3401_v30, %v3400_v36  ;;  %vm3457_vm4 = vmand %vm3453_vm14, %vm3455_vm0  ;;  %v3458_v63 = vsel %vm3456_vm2, 0.5, %v9576_v25  ;;  %v2164_v9 = vand.u32 2147483647, %v2160_v10  ;;  %v2165_v24 = vand.u32 2147483647, %v2161_v54 }
 0x1b5   : > { %v3459_v8 = vsel %vm3457_vm4, 0.5, %v9576_v25  ;;  %v2166_v27 = vand.u32 2147483647, %v2162_v0  ;;  %v2167_v53 = vand.u32 2147483647, %v2163_v55  ;;  %vm3509_vm5 = vcmp.ge.f32.partialorder %v7934_v41, -1.0 }
 0x1b6   : > { %5364 = vperm.xlu0 %5152, %v5363_v43   ;;  %v5368_v48 = vpack.i.bf16 %v3459_v8, %v3458_v63  ;;  %v2168_v56 = vsub.f32 1.0, %v2164_v9  ;;  %v2169_v6 = vsub.f32 1.0, %v2165_v24  ;;  %vm3510_vm6 = vcmp.le.f32.partialorder %v7931_v21, 16.0  ;;  %v8051_v21 = vpop.permute.xlu1 %2431 }
 0x1b7   : > { %v2170_v34 = vsub.f32 1.0, %v2166_v27  ;;  %v2171_v50 = vsub.f32 1.0, %v2167_v53  ;;  %vm3511_vm7 = vcmp.le.f32.partialorder %v7934_v41, 16.0  ;;  %vm3512_vm8 = vmand %vm3508_vm3, %vm3510_vm6  ;;  %vm3568_vm9 = vcmp.ge.f32.partialorder %v7966_v32, -1.0 }
 0x1b8   : > { %5369 = vperm.xlu1 %5141, %v5368_v48   ;;  %v2172_v5 = vmax.f32 %v2168_v56, 0.0  ;;  %v2173_v11 = vmax.f32 %v2169_v6, 0.0  ;;  %vm3513_vm10 = vmand %vm3509_vm5, %vm3511_vm7  ;;  %v3514_v36 = vsel %vm3512_vm8, 0.5, %v9576_v25  ;;  %vm3569_vm11 = vcmp.ge.f32.partialorder %v7969_v44, -1.0 }
 0x1b9   : > { %v2174_v10 = vmax.f32 %v2170_v34, 0.0  ;;  %v2175_v54 = vmax.f32 %v2171_v50, 0.0  ;;  %v3515_v30 = vsel %vm3513_vm10, 0.5, %v9576_v25  ;;  %vm3570_vm12 = vcmp.le.f32.partialorder %v7966_v32, 16.0 }
 0x1ba   : > { %v5373_v41 = vpack.i.bf16 %v3515_v30, %v3514_v36  ;;  %vm3571_vm13 = vcmp.le.f32.partialorder %v7969_v44, 16.0  ;;  %vm3572_vm14 = vmand %vm3568_vm9, %vm3570_vm12  ;;  %v1981_v0 = vmul.f32 %v7879_v23, %v7832_v47  ;;  %v1983_v55 = vmul.f32 %v7915_v42, %v7840_v35  ;;  %v8082_v53 = vpop.permute.xlu1 %2486 }
 0x1bb   : > { %vm3573_vm15 = vmand %vm3569_vm11, %vm3571_vm13  ;;  %v3574_v43 = vsel %vm3572_vm14, 0.5, %v9576_v25  ;;  %v1980_v63 = vmul.f32 %v7876_v60, %v7829_v57  ;;  %v1982_v9 = vmul.f32 %v7912_v29, %v7835_v62  ;;  %v5277_v44 = vunpack.i.h.bf16 %v7858_v18  ;;  %v8078_v62 = vpop.permute.xlu0 %5294 }
 0x1bc   : > { %5374 = vperm.xlu0 %5152, %v5373_v41   ;;  %v3575_v32 = vsel %vm3573_vm15, 0.5, %v9576_v25  ;;  %v5037_v24 = vpack.c.bf16 %v1983_v55, %v1981_v0  ;;  %v5276_v47 = vunpack.i.l.bf16 %v7858_v18  ;;  %v2220_v35 = vsub.f32 %v7864_v15, %v6569_v45 }
 0x1bd   : > { %v5378_v23 = vpack.i.bf16 %v3575_v32, %v3574_v43  ;;  %v5039_v42 = vpack.c.bf16 %v1982_v9, %v1980_v63  ;;  %v2188_v8 = vmul.f32 %v5277_v44, %v2174_v10  ;;  %v2189_v57 = vmul.f32 %v5277_v44, %v2175_v54 }
 0x1be   : > { %5038 = vmatprep.subr.bf16.mxu0 %v5037_v24  ;;  %v2186_v60 = vmul.f32 %v5276_v47, %v2172_v5  ;;  %v2187_v29 = vmul.f32 %v5276_v47, %v2173_v11  ;;  %v2221_v18 = vsub.f32 %v7864_v15, %v6602_v58  ;;  %v2224_v27 = vand.u32 2147483647, %v2220_v35  ;;  %v8127_v24 = vpop.permute.xlu1 %5299 }
 0x1bf   : > { %5379 = vperm.xlu1 %5141, %v5378_v23   ;;  %5040 = vmatpush1.bf16.xpose.msra.mxu0 %v5039_v42  ;;  %v8085_v48 = vadd.f32 %v2188_v8, %v7945_v20  ;;  %v8088_v56 = vadd.f32 %v2189_v57, %v7951_v59  ;;  %v8090_v6 = vstv %s3661_s27  ;;  %v8094_v34 = vstv %s3649_s16  ;;  %v8119_v63 = vpop.permute.xlu0 %2491  ;;  %s3920_s16 = scvt.s32.f32 %s8156_s22 }
 0x1c0   : > { %v8097_v50 = vadd.f32 %v2186_v60, %v7941_v37  ;;  %v8100_v15 = vadd.f32 %v2187_v29, %v7943_v52  ;;  %v2225_v5 = vand.u32 2147483647, %v2221_v18  ;;  %v2228_v11 = vsub.f32 1.0, %v2224_v27 }
 0x1c1   : > { %v3663_v20 = vmul.f32 %v8090_v6, %v9586_v12  ;;  %v3664_v59 = vmul.f32 %v8090_v6, %v9587_v51  ;;  %v2222_v36 = vsub.f32 %v7901_v19, %v6569_v45  ;;  %v2223_v37 = vsub.f32 %v7901_v19, %v6602_v58  ;;  %s8229_s29 = smul.f32 0.25, %s3920_s16  ;;  %s4180_s16 = sadd.s32 56, %s5678_s23 }
 0x1c2   : > { %v2229_v10 = vsub.f32 1.0, %v2225_v5  ;;  %v2232_v54 = vmax.f32 %v2228_v11, 0.0  ;;  %v5282_v52 = vunpack.i.h.bf16 %v7905_v28  ;;  %v5281_v30 = vunpack.i.l.bf16 %v7905_v28 }
 0x1c3   : > { %v8114_v41 = vadd.f32 %v8094_v34, %v3663_v20  ;;  %v8117_v0 = vadd.f32 %v8094_v34, %v3664_v59  ;;  %v2226_v55 = vand.u32 2147483647, %v2222_v36  ;;  %v2227_v43 = vand.u32 2147483647, %v2223_v37  ;;  %s3927_s25 = smul.f32 0.25, %s8229_s29  ;;  %s8423_s29 = sld [smem:[#allocation5 + %s4180_s16]] }
 0x1c4   : > { %v2233_v9 = vmax.f32 %v2229_v10, 0.0  ;;  %v2246_v19 = vmul.f32 %v5281_v30, %v2232_v54  ;;  %v8121_v44 = vstv %s3658_s17  ;;  %v8125_v32 = vstv %s3648_s15  ;;  %v8158_v54 = vpop.permute.xlu0 %2586  ;;  %s3916_s15 = scvt.s32.f32 %s8191_s30  ;;  %s8391_s30 = sld [smem:[#allocation5 + %s4184_s1]] }
 0x1c5   : > { %v3676_v28 = vmax.f32 %v8114_v41, 0.0  ;;  %v3677_v47 = vmax.f32 %v8117_v0, 0.0  ;;  %v2230_v35 = vsub.f32 1.0, %v2226_v55  ;;  %v2231_v23 = vsub.f32 1.0, %v2227_v43  ;;  %s3928_s27 = ssub.f32 %s3927_s25, %s3923_s21 }
 0x1c6   : > { %v2247_v42 = vmul.f32 %v5281_v30, %v2233_v9  ;;  %v8133_v8 = vadd.f32 %v2246_v19, %v7982_v31  ;;  %v3721_v57 = vmul.f32 %v8121_v44, %v9588_v26  ;;  %v3722_v60 = vmul.f32 %v8121_v44, %v9589_v1  ;;  %v8164_v19 = vpop.permute.xlu1 %2591  ;;  %s8263_s11 = smul.f32 0.25, %s3916_s15 }
 0x1c7   : > { %v3678_v29 = vmin.f32 %v3676_v28, 15.0  ;;  %v3679_v18 = vmin.f32 %v3677_v47, 15.0  ;;  %v2234_v27 = vmax.f32 %v2230_v35, 0.0  ;;  %v2235_v5 = vmax.f32 %v2231_v23, 0.0  ;;  %s8293_s20 = smax.f32 %s9454_s14, %s3928_s27  ;;  %s4190_s27 = scvt.s32.f32 %s8429_s28 }
 0x1c8   : > { %v8141_v11 = vadd.f32 %v2247_v42, %v7987_v14  ;;  %v8144_v20 = vadd.f32 %v8125_v32, %v3721_v57  ;;  %v8147_v31 = vadd.f32 %v8125_v32, %v3722_v60  ;;  %v2320_v59 = vsub.f32 %v7928_v13, %v6551_v40  ;;  %s3924_s17 = smul.f32 0.25, %s8263_s11  ;;  %s8655_s28 = sld [smem:[#allocation5 + %s4458_s7]] }
 0x1c9   : > { %3682 = vperm.xlu0 %5152, %v3678_v29   ;;  %3687 = vperm.xlu1 %5141, %v3679_v18   ;;  %v2248_v36 = vmul.f32 %v5282_v52, %v2234_v27  ;;  %v2249_v37 = vmul.f32 %v5282_v52, %v2235_v5  ;;  %v2321_v14 = vsub.f32 %v7928_v13, %v6553_v16  ;;  %v5287_v10 = vunpack.i.h.bf16 %v7972_v17  ;;  %s3935_s24 = smul.f32 0.25, %s8293_s20  ;;  %s4182_s11 = scvt.s32.f32 %s8423_s29 }
 0x1ca   : > { %v3734_v30 = vmax.f32 %v8144_v20, 0.0  ;;  %v3735_v55 = vmax.f32 %v8147_v31, 0.0  ;;  %v2324_v43 = vand.u32 2147483647, %v2320_v59  ;;  %v2322_v9 = vsub.f32 %v7939_v46, %v6551_v40  ;;  %s3925_s0 = ssub.f32 %s3924_s17, %s3922_s8  ;;  %s4186_s15 = scvt.s32.f32 %s8391_s30 }
 0x1cb   : > { %v8167_v52 = vadd.f32 %v2248_v36, %v7996_v49  ;;  %v8170_v13 = vadd.f32 %v2249_v37, %v8005_v7  ;;  %v2325_v28 = vand.u32 2147483647, %v2321_v14  ;;  %v2323_v47 = vsub.f32 %v7939_v46, %v6553_v16  ;;  %v8193_v14 = vpop.permute.xlu0 %5304  ;;  %s8495_s20 = smul.f32 0.25, %s4182_s11  ;;  %s4466_s29 = sadd.s32 63, %s5678_s23 }
 0x1cc   : > { %v3736_v35 = vmin.f32 %v3734_v30, 15.0  ;;  %v3737_v23 = vmin.f32 %v3735_v55, 15.0  ;;  %v2328_v42 = vsub.f32 1.0, %v2324_v43  ;;  %v2326_v57 = vand.u32 2147483647, %v2322_v9  ;;  %v8200_v9 = vpop.permute.xlu1 %2644  ;;  %s8326_s22 = smax.f32 %s9454_s14, %s3925_s0  ;;  %s8465_s25 = smul.f32 0.25, %s4186_s15 }
 0x1cd   : > { %v2329_v60 = vsub.f32 1.0, %v2325_v28  ;;  %v2327_v29 = vand.u32 2147483647, %v2323_v47  ;;  %v3778_v18 = vmul.f32 %v8090_v6, %v9579_v38  ;;  %v3779_v49 = vmul.f32 %v8090_v6, %v9581_v4  ;;  %s3932_s26 = smul.f32 0.25, %s8326_s22  ;;  %s8660_s15 = sld [smem:[#allocation5 + %s4466_s29]] }
 0x1ce   : > { %3740 = vperm.xlu0 %5152, %v3736_v35   ;;  %3745 = vperm.xlu1 %5141, %v3737_v23   ;;  %v2332_v7 = vmax.f32 %v2328_v42, 0.0  ;;  %v2330_v27 = vsub.f32 1.0, %v2326_v57  ;;  %v5286_v46 = vunpack.i.l.bf16 %v7972_v17  ;;  %v2378_v5 = vsub.f32 %v7977_v33, %v6569_v45  ;;  %s8500_s0 = smul.f32 0.25, %s4190_s27  ;;  %s4460_s11 = scvt.s32.f32 %s8655_s28 }
 0x1cf   : > { %v2333_v59 = vmax.f32 %v2329_v60, 0.0  ;;  %v2331_v36 = vsub.f32 1.0, %v2327_v29  ;;  %v8186_v37 = vadd.f32 %v3778_v18, %v8094_v34  ;;  %v8189_v6 = vadd.f32 %v3779_v49, %v8094_v34 }
 0x1d0   : > { %v2334_v30 = vmax.f32 %v2330_v27, 0.0  ;;  %v8195_v17 = vmul.f32 %v5286_v46, %v2332_v7  ;;  %v2379_v55 = vsub.f32 %v7977_v33, %v6602_v58  ;;  %v2382_v43 = vand.u32 2147483647, %v2378_v5 }
 0x1d1   : > { %v2335_v28 = vmax.f32 %v2331_v36, 0.0  ;;  %v3790_v47 = vmax.f32 %v8186_v37, 0.0  ;;  %v3791_v34 = vmax.f32 %v8189_v6, 0.0  ;;  %v8204_v35 = vmul.f32 %v5286_v46, %v2333_v59 }
 0x1d2   : > { %v8207_v23 = vmul.f32 %v5287_v10, %v2334_v30  ;;  %v2383_v42 = vand.u32 2147483647, %v2379_v55  ;;  %v2386_v57 = vsub.f32 1.0, %v2382_v43  ;;  %v3838_v60 = vmul.f32 %v8121_v44, %v9583_v2  ;;  %v8231_v30 = vpop.permute.xlu0 %2649 }
 0x1d3   : > { %v3792_v33 = vmin.f32 %v3790_v47, 15.0  ;;  %v3793_v29 = vmin.f32 %v3791_v34, 15.0  ;;  %v8211_v18 = vmul.f32 %v5287_v10, %v2335_v28  ;;  %v3839_v49 = vmul.f32 %v8121_v44, %v9585_v22  ;;  %s4468_s27 = scvt.s32.f32 %s8660_s15  ;;  %s9284_s15 = sld [smem:[#allocation4 + %s5560_s12]] }
 0x1d4   : > { %v2387_v7 = vsub.f32 1.0, %v2383_v42  ;;  %v2390_v27 = vmax.f32 %v2386_v57, 0.0  ;;  %v8216_v46 = vadd.f32 %v3838_v60, %v8125_v32  ;;  %v2380_v5 = vsub.f32 %v8003_v3, %v6569_v45 }
 0x1d5   : > { %3796 = vperm.xlu0 %5152, %v3792_v33   ;;  %3801 = vperm.xlu1 %5141, %v3793_v29   ;;  %v8223_v59 = vadd.f32 %v3839_v49, %v8125_v32  ;;  %v2381_v44 = vsub.f32 %v8003_v3, %v6602_v58  ;;  %v5292_v10 = vunpack.i.h.bf16 %v8014_v61  ;;  %v5291_v36 = vunpack.i.l.bf16 %v8014_v61  ;;  %v8236_v32 = vpop.permute.xlu1 %5309 }
 0x1d6   : > { %v2391_v55 = vmax.f32 %v2387_v7, 0.0  ;;  %v3850_v43 = vmax.f32 %v8216_v46, 0.0  ;;  %v2384_v28 = vand.u32 2147483647, %v2380_v5  ;;  %vm3668_vm0 = vcmp.ge.f32.partialorder %v8114_v41, -1.0 }
 0x1d7   : > { %v3851_v3 = vmax.f32 %v8223_v59, 0.0  ;;  %v2385_v47 = vand.u32 2147483647, %v2381_v44  ;;  %v8239_v34 = vmul.f32 %v5291_v36, %v2390_v27  ;;  %vm3669_vm1 = vcmp.ge.f32.partialorder %v8117_v0, -1.0  ;;  %v8265_v27 = vpop.permute.xlu0 %2700 }
 0x1d8   : > { %v3852_v61 = vmin.f32 %v3850_v43, 15.0  ;;  %v2388_v42 = vsub.f32 1.0, %v2384_v28  ;;  %v8243_v57 = vmul.f32 %v5291_v36, %v2391_v55  ;;  %vm3670_vm2 = vcmp.le.f32.partialorder %v8114_v41, 16.0 }
 0x1d9   : > { %v3853_v60 = vmin.f32 %v3851_v3, 15.0  ;;  %v2389_v33 = vsub.f32 1.0, %v2385_v47  ;;  %vm3671_vm3 = vcmp.le.f32.partialorder %v8117_v0, 16.0  ;;  %vm3672_vm4 = vmand %vm3668_vm0, %vm3670_vm2  ;;  %vm3726_vm5 = vcmp.ge.f32.partialorder %v8144_v20, -1.0  ;;  %v8272_v55 = vpop.permute.xlu1 %2705  ;;  %p288_p7 = scmp.lt.s32.totalorder %s9284_s15, 1 }
 0x1da   : > { %3856 = vperm.xlu0 %5152, %v3852_v61   ;;  %v2392_v29 = vmax.f32 %v2388_v42, 0.0  ;;  %vm3673_vm6 = vmand %vm3669_vm1, %vm3671_vm3  ;;  %v3674_v49 = vsel %vm3672_vm4, 0.5, %v9576_v25  ;;  %vm3727_vm7 = vcmp.ge.f32.partialorder %v8147_v31, -1.0  ;;  %vm3728_vm8 = vcmp.le.f32.partialorder %v8144_v20, 16.0 }
 0x1db   : > { %3861 = vperm.xlu1 %5141, %v3853_v60   ;;  %v2393_v7 = vmax.f32 %v2389_v33, 0.0  ;;  %v3675_v41 = vsel %vm3673_vm6, 0.5, %v9576_v25  ;;  %vm3729_vm9 = vcmp.le.f32.partialorder %v8147_v31, 16.0  ;;  %vm3730_vm10 = vmand %vm3726_vm5, %vm3728_vm8  ;;  %v2434_v0 = vsub.f32 %v8042_v39, %v6551_v40  ;;  %s9605_s15 = smov (!%p288_p7, %s9284_s15), 1 }
 0x1dc   : > { %v8267_v5 = vmul.f32 %v5292_v10, %v2392_v29  ;;  %v5383_v20 = vpack.i.bf16 %v3675_v41, %v3674_v49  ;;  %vm3731_vm11 = vmand %vm3727_vm7, %vm3729_vm9  ;;  %v3732_v44 = vsel %vm3730_vm10, 0.5, %v9576_v25  ;;  %v2435_v36 = vsub.f32 %v8042_v39, %v6553_v16 }
 0x1dd   : > { %v8274_v31 = vmul.f32 %v5292_v10, %v2393_v7  ;;  %v3733_v43 = vsel %vm3731_vm11, 0.5, %v9576_v25  ;;  %v2438_v28 = vand.u32 2147483647, %v2434_v0  ;;  %v2436_v3 = vsub.f32 %v8051_v21, %v6551_v40  ;;  %v8299_v0 = vpop.permute.xlu1 %2760 }
 0x1de   : > { %5384 = vperm.xlu0 %5152, %v5383_v20   ;;  %v5388_v47 = vpack.i.bf16 %v3733_v43, %v3732_v44  ;;  %v2439_v61 = vand.u32 2147483647, %v2435_v36  ;;  %v2437_v42 = vsub.f32 %v8051_v21, %v6553_v16  ;;  %vm3782_vm12 = vcmp.ge.f32.partialorder %v8186_v37, -1.0 }
 0x1df   : > { %v2442_v39 = vsub.f32 1.0, %v2438_v28  ;;  %v2440_v10 = vand.u32 2147483647, %v2436_v3  ;;  %vm3783_vm13 = vcmp.ge.f32.partialorder %v8189_v6, -1.0  ;;  %vm3784_vm14 = vcmp.le.f32.partialorder %v8186_v37, 16.0  ;;  %v8295_v37 = vpop.permute.xlu0 %5314 }
 0x1e0   : > { %5389 = vperm.xlu1 %5141, %v5388_v47   ;;  %v2443_v60 = vsub.f32 1.0, %v2439_v61  ;;  %v2441_v33 = vand.u32 2147483647, %v2437_v42  ;;  %vm3785_vm15 = vcmp.le.f32.partialorder %v8189_v6, 16.0  ;;  %vm3786_vm0 = vmand %vm3782_vm12, %vm3784_vm14  ;;  %vm3842_vm1 = vcmp.ge.f32.partialorder %v8216_v46, -1.0 }
 0x1e1   : > { %v2446_v29 = vmax.f32 %v2442_v39, 0.0  ;;  %v2444_v21 = vsub.f32 1.0, %v2440_v10  ;;  %vm3787_vm2 = vmand %vm3783_vm13, %vm3785_vm15  ;;  %v3788_v49 = vsel %vm3786_vm0, 0.5, %v9576_v25  ;;  %vm3843_vm3 = vcmp.ge.f32.partialorder %v8223_v59, -1.0 }
 0x1e2   : > { %v2447_v7 = vmax.f32 %v2443_v60, 0.0  ;;  %v2445_v41 = vsub.f32 1.0, %v2441_v33  ;;  %v3789_v6 = vsel %vm3787_vm2, 0.5, %v9576_v25  ;;  %vm3844_vm4 = vcmp.le.f32.partialorder %v8216_v46, 16.0 }
 0x1e3   : > { %v2448_v20 = vmax.f32 %v2444_v21, 0.0  ;;  %v5393_v44 = vpack.i.bf16 %v3789_v6, %v3788_v49  ;;  %vm3845_vm5 = vcmp.le.f32.partialorder %v8223_v59, 16.0  ;;  %vm3846_vm6 = vmand %vm3842_vm1, %vm3844_vm4  ;;  %v2255_v36 = vmul.f32 %v8141_v11, %v8100_v15  ;;  %v8332_v21 = vpop.permute.xlu1 %5319 }
 0x1e4   : > { %v2449_v43 = vmax.f32 %v2445_v41, 0.0  ;;  %vm3847_vm7 = vmand %vm3843_vm3, %vm3845_vm5  ;;  %v3848_v28 = vsel %vm3846_vm6, 0.5, %v9576_v25  ;;  %v2257_v3 = vmul.f32 %v8170_v13, %v8088_v56  ;;  %v2254_v47 = vmul.f32 %v8133_v8, %v8097_v50 }
 0x1e5   : > { %5394 = vperm.xlu0 %5152, %v5393_v44   ;;  %v3849_v46 = vsel %vm3847_vm7, 0.5, %v9576_v25  ;;  %v2256_v15 = vmul.f32 %v8167_v52, %v8085_v48  ;;  %v5297_v11 = vunpack.i.h.bf16 %v8078_v62  ;;  %v5296_v59 = vunpack.i.l.bf16 %v8078_v62  ;;  %v8328_v48 = vpop.permute.xlu0 %2765 }
 0x1e6   : > { %v5398_v61 = vpack.i.bf16 %v3849_v46, %v3848_v28  ;;  %v5041_v42 = vpack.c.bf16 %v2257_v3, %v2255_v36  ;;  %v2494_v39 = vsub.f32 %v8082_v53, %v6569_v45  ;;  %v2495_v56 = vsub.f32 %v8082_v53, %v6602_v58 }
 0x1e7   : > { %v5043_v50 = vpack.c.bf16 %v2256_v15, %v2254_v47  ;;  %v2460_v8 = vmul.f32 %v5296_v59, %v2446_v29  ;;  %v2461_v13 = vmul.f32 %v5296_v59, %v2447_v7  ;;  %v2462_v10 = vmul.f32 %v5297_v11, %v2448_v20 }
 0x1e8   : > { %5399 = vperm.xlu1 %5141, %v5398_v61   ;;  %5042 = vmatprep.subr.bf16.mxu0 %v5041_v42  ;;  %v2463_v62 = vmul.f32 %v5297_v11, %v2449_v43  ;;  %v2498_v52 = vand.u32 2147483647, %v2494_v39  ;;  %v2499_v60 = vand.u32 2147483647, %v2495_v56  ;;  %v8330_v33 = vstv %s3935_s24  ;;  %v8378_v56 = vpop.permute.xlu1 %2865  ;;  %s4196_s24 = smul.f32 0.25, %s8495_s20 }
 0x1e9   : > { %5044 = vmatpush1.bf16.xpose.msra.mxu0 %v5043_v50  ;;  %v8335_v53 = vadd.f32 %v2460_v8, %v8195_v17  ;;  %v8338_v29 = vadd.f32 %v2461_v13, %v8204_v35  ;;  %v8341_v49 = vadd.f32 %v2462_v10, %v8207_v23  ;;  %v3937_v7 = vmul.f32 %v8330_v33, %v9586_v12  ;;  %v8369_v59 = vpop.permute.xlu0 %2860 }
 0x1ea   : > { %v8346_v41 = vadd.f32 %v2463_v62, %v8211_v18  ;;  %v2502_v6 = vsub.f32 1.0, %v2498_v52  ;;  %v2503_v20 = vsub.f32 1.0, %v2499_v60  ;;  %v8350_v44 = vstv %s3923_s21  ;;  %s4194_s21 = scvt.s32.f32 %s8395_s9 }
 0x1eb   : > { %v8354_v17 = vadd.f32 %v8350_v44, %v3937_v7  ;;  %v3938_v35 = vmul.f32 %v8330_v33, %v9587_v51  ;;  %v2496_v23 = vsub.f32 %v8119_v63, %v6569_v45  ;;  %v2497_v18 = vsub.f32 %v8119_v63, %v6602_v58 }
 0x1ec   : > { %v2506_v36 = vmax.f32 %v2502_v6, 0.0  ;;  %v2507_v43 = vmax.f32 %v2503_v20, 0.0  ;;  %v5302_v28 = vunpack.i.h.bf16 %v8127_v24  ;;  %v5301_v3 = vunpack.i.l.bf16 %v8127_v24  ;;  %s8469_s13 = smul.f32 0.25, %s4194_s21  ;;  %s4454_s21 = sadd.s32 60, %s5678_s23 }
 0x1ed   : > { %v3950_v47 = vmax.f32 %v8354_v17, 0.0  ;;  %v8366_v46 = vadd.f32 %v8350_v44, %v3938_v35  ;;  %v2500_v15 = vand.u32 2147483647, %v2496_v23  ;;  %v2501_v11 = vand.u32 2147483647, %v2497_v18 }
 0x1ee   : > { %v2520_v61 = vmul.f32 %v5301_v3, %v2506_v36  ;;  %v2521_v42 = vmul.f32 %v5301_v3, %v2507_v43  ;;  %v8371_v39 = vstv %s3932_s26  ;;  %v8375_v63 = vstv %s3922_s8  ;;  %s4197_s8 = smul.f32 0.25, %s8465_s25  ;;  %s4462_s25 = sadd.s32 62, %s5678_s23 }
 0x1ef   : > { %v3952_v24 = vmin.f32 %v3950_v47, 15.0  ;;  %v3951_v50 = vmax.f32 %v8366_v46, 0.0  ;;  %v2504_v8 = vsub.f32 1.0, %v2500_v15  ;;  %v2505_v13 = vsub.f32 1.0, %v2501_v11  ;;  %v8411_v15 = vpop.permute.xlu0 %5324  ;;  %s4201_s17 = smul.f32 0.25, %s8469_s13  ;;  %s8687_s13 = sld [smem:[#allocation5 + %s4454_s21]] }
 0x1f0   : > { %v8382_v10 = vadd.f32 %v2520_v61, %v8239_v34  ;;  %v8385_v62 = vadd.f32 %v2521_v42, %v8243_v57  ;;  %v3995_v52 = vmul.f32 %v8371_v39, %v9588_v26  ;;  %v3996_v60 = vmul.f32 %v8371_v39, %v9589_v1  ;;  %s4198_s26 = smul.f32 0.25, %s8500_s0  ;;  %s8695_s23 = sld [smem:[#allocation5 + %s4462_s25]] }
 0x1f1   : > { %3956 = vperm.xlu0 %5152, %v3952_v24   ;;  %v3953_v7 = vmin.f32 %v3951_v50, 15.0  ;;  %v2508_v6 = vmax.f32 %v2504_v8, 0.0  ;;  %v2509_v20 = vmax.f32 %v2505_v13, 0.0  ;;  %v2594_v34 = vsub.f32 %v8158_v54, %v6551_v40  ;;  %v8415_v24 = vpop.permute.xlu1 %2918  ;;  %s4202_s22 = ssub.f32 %s4201_s17, %s4197_s8  ;;  %s8733_s17 = smul.f32 0.25, %s4468_s27 }
 0x1f2   : > { %v8398_v57 = vadd.f32 %v8375_v63, %v3995_v52  ;;  %v8401_v35 = vadd.f32 %v8375_v63, %v3996_v60  ;;  %v2595_v23 = vsub.f32 %v8158_v54, %v6553_v16  ;;  %v2596_v18 = vsub.f32 %v8164_v19, %v6551_v40  ;;  %s4199_s18 = ssub.f32 %s4198_s26, %s4196_s24  ;;  %s5015_s21 = sshll.u32 %s9605_s15, 3 }
 0x1f3   : > { %3961 = vperm.xlu1 %5141, %v3953_v7   ;;  %v2522_v36 = vmul.f32 %v5302_v28, %v2508_v6  ;;  %v2523_v43 = vmul.f32 %v5302_v28, %v2509_v20  ;;  %v2598_v3 = vand.u32 2147483647, %v2594_v34  ;;  %v2597_v47 = vsub.f32 %v8164_v19, %v6553_v16  ;;  %s8551_s1 = smax.f32 %s9454_s14, %s4202_s22  ;;  %s4475_s22 = smul.f32 0.25, %s8733_s17 }
 0x1f4   : > { %v4008_v11 = vmax.f32 %v8398_v57, 0.0  ;;  %v4009_v61 = vmax.f32 %v8401_v35, 0.0  ;;  %v2599_v42 = vand.u32 2147483647, %v2595_v23  ;;  %v2600_v54 = vand.u32 2147483647, %v2596_v18  ;;  %s8580_s9 = smax.f32 %s9454_s14, %s4199_s18 }
 0x1f5   : > { %v8418_v50 = vadd.f32 %v2522_v36, %v8267_v5  ;;  %v8421_v28 = vadd.f32 %v2523_v43, %v8274_v31  ;;  %v2602_v8 = vsub.f32 1.0, %v2598_v3  ;;  %v2601_v19 = vand.u32 2147483647, %v2597_v47  ;;  %s4209_s30 = smul.f32 0.25, %s8551_s1  ;;  %s4456_s20 = scvt.s32.f32 %s8687_s13 }
 0x1f6   : > { %v4010_v13 = vmin.f32 %v4008_v11, 15.0  ;;  %v4011_v52 = vmin.f32 %v4009_v61, 15.0  ;;  %v2603_v60 = vsub.f32 1.0, %v2599_v42  ;;  %v2604_v7 = vsub.f32 1.0, %v2600_v54  ;;  %v8443_v11 = vpop.permute.xlu0 %2923  ;;  %s4206_s16 = smul.f32 0.25, %s8580_s9  ;;  %s4464_s0 = scvt.s32.f32 %s8695_s23 }
 0x1f7   : > { %v2606_v6 = vmax.f32 %v2602_v8, 0.0  ;;  %v2605_v20 = vsub.f32 1.0, %v2601_v19  ;;  %v4052_v34 = vmul.f32 %v8330_v33, %v9579_v38  ;;  %v4053_v5 = vmul.f32 %v8330_v33, %v9581_v4  ;;  %v8453_v8 = vpop.permute.xlu1 %5329  ;;  %s8761_s26 = smul.f32 0.25, %s4456_s20  ;;  %s295_s23 = scalar_lea.vmem %s9368_s2, %s5015_s21 }
 0x1f8   : > { %4014 = vperm.xlu0 %5152, %v4010_v13   ;;  %4019 = vperm.xlu1 %5141, %v4011_v52   ;;  %v2607_v31 = vmax.f32 %v2603_v60, 0.0  ;;  %v2608_v23 = vmax.f32 %v2604_v7, 0.0  ;;  %v5307_v18 = vunpack.i.h.bf16 %v8193_v14  ;;  %v5306_v36 = vunpack.i.l.bf16 %v8193_v14  ;;  %s8767_s1 = smul.f32 0.25, %s4464_s0 }
 0x1f9   : > { %v2609_v43 = vmax.f32 %v2605_v20, 0.0  ;;  %v8435_v3 = vadd.f32 %v4052_v34, %v8350_v44  ;;  %v8438_v47 = vadd.f32 %v4053_v5, %v8350_v44  ;;  %v2652_v33 = vsub.f32 %v8200_v9, %v6569_v45 }
 0x1fa   : > { %v8445_v61 = vmul.f32 %v5306_v36, %v2606_v6  ;;  %v8447_v42 = vmul.f32 %v5306_v36, %v2607_v31  ;;  %v8449_v54 = vmul.f32 %v5307_v18, %v2608_v23  ;;  %v2653_v14 = vsub.f32 %v8200_v9, %v6602_v58  ;;  %s4472_s9 = smul.f32 0.25, %s8767_s1 }
 0x1fb   : > { %v4064_v44 = vmax.f32 %v8435_v3, 0.0  ;;  %v4065_v19 = vmax.f32 %v8438_v47, 0.0  ;;  %v8457_v13 = vmul.f32 %v5307_v18, %v2609_v43  ;;  %v2656_v52 = vand.u32 2147483647, %v2652_v33 }
 0x1fc   : > { %v2657_v60 = vand.u32 2147483647, %v2653_v14  ;;  %v4112_v7 = vmul.f32 %v8371_v39, %v9583_v2  ;;  %v4113_v6 = vmul.f32 %v8371_v39, %v9585_v22  ;;  %v2654_v9 = vsub.f32 %v8231_v30, %v6569_v45 }
 0x1fd   : > { %v4066_v20 = vmin.f32 %v4064_v44, 15.0  ;;  %v4067_v34 = vmin.f32 %v4065_v19, 15.0  ;;  %v2660_v5 = vsub.f32 1.0, %v2656_v52  ;;  %v2655_v31 = vsub.f32 %v8231_v30, %v6602_v58  ;;  %v8481_v44 = vpop.permute.xlu0 %2974 }
 0x1fe   : > { %v2661_v23 = vsub.f32 1.0, %v2657_v60  ;;  %v8472_v18 = vadd.f32 %v4112_v7, %v8375_v63  ;;  %v8475_v39 = vadd.f32 %v4113_v6, %v8375_v63  ;;  %v2658_v36 = vand.u32 2147483647, %v2654_v9  ;;  %v8486_v7 = vpop.permute.xlu1 %2979 }
 0x1ff   : > { %4070 = vperm.xlu0 %5152, %v4066_v20   ;;  %4075 = vperm.xlu1 %5141, %v4067_v34   ;;  %v2664_v43 = vmax.f32 %v2660_v5, 0.0  ;;  %v2659_v33 = vand.u32 2147483647, %v2655_v31  ;;  %v5312_v14 = vunpack.i.h.bf16 %v8236_v32  ;;  %v5311_v30 = vunpack.i.l.bf16 %v8236_v32 }
 0x200   : > { %v2665_v19 = vmax.f32 %v2661_v23, 0.0  ;;  %v4124_v52 = vmax.f32 %v8472_v18, 0.0  ;;  %v4125_v63 = vmax.f32 %v8475_v39, 0.0  ;;  %v2662_v60 = vsub.f32 1.0, %v2658_v36 }
 0x201   : > { %v2663_v6 = vsub.f32 1.0, %v2659_v33  ;;  %v8488_v9 = vmul.f32 %v5311_v30, %v2664_v43  ;;  %vm3942_vm8 = vcmp.ge.f32.partialorder %v8354_v17, -1.0  ;;  %vm3943_vm9 = vcmp.ge.f32.partialorder %v8366_v46, -1.0 }
 0x202   : > { %v4126_v32 = vmin.f32 %v4124_v52, 15.0  ;;  %v4127_v20 = vmin.f32 %v4125_v63, 15.0  ;;  %v2666_v34 = vmax.f32 %v2662_v60, 0.0  ;;  %v8493_v5 = vmul.f32 %v5311_v30, %v2665_v19  ;;  %v8518_v30 = vpop.permute.xlu0 %5334  ;;  %v8529_v52 = vpop.permute.xlu1 %3034 }
 0x203   : > { %v2667_v31 = vmax.f32 %v2663_v6, 0.0  ;;  %vm3944_vm10 = vcmp.le.f32.partialorder %v8354_v17, 16.0  ;;  %vm3945_vm11 = vcmp.le.f32.partialorder %v8366_v46, 16.0  ;;  %vm4000_vm12 = vcmp.ge.f32.partialorder %v8398_v57, -1.0 }
 0x204   : > { %4130 = vperm.xlu0 %5152, %v4126_v32   ;;  %4135 = vperm.xlu1 %5141, %v4127_v20   ;;  %v8502_v23 = vmul.f32 %v5312_v14, %v2666_v34  ;;  %vm3946_vm13 = vmand %vm3942_vm8, %vm3944_vm10  ;;  %vm4001_vm14 = vcmp.ge.f32.partialorder %v8401_v35, -1.0  ;;  %vm4002_vm15 = vcmp.le.f32.partialorder %v8398_v57, 16.0  ;;  %vm4003_vm0 = vcmp.le.f32.partialorder %v8401_v35, 16.0 }
 0x205   : > { %v8509_v36 = vmul.f32 %v5312_v14, %v2667_v31  ;;  %vm3947_vm1 = vmand %vm3943_vm9, %vm3945_vm11  ;;  %v3948_v43 = vsel %vm3946_vm13, 0.5, %v9576_v25  ;;  %v2708_v17 = vsub.f32 %v8265_v27, %v6551_v40  ;;  %v2709_v33 = vsub.f32 %v8265_v27, %v6553_v16 }
 0x206   : > { %v3949_v19 = vsel %vm3947_vm1, 0.5, %v9576_v25  ;;  %vm4004_vm2 = vmand %vm4000_vm12, %vm4002_vm15  ;;  %v2710_v46 = vsub.f32 %v8272_v55, %v6551_v40  ;;  %v2711_v14 = vsub.f32 %v8272_v55, %v6553_v16  ;;  %vm4056_vm3 = vcmp.ge.f32.partialorder %v8435_v3, -1.0 }
 0x207   : > { %v5403_v63 = vpack.i.bf16 %v3949_v19, %v3948_v43  ;;  %vm4005_vm4 = vmand %vm4001_vm14, %vm4003_vm0  ;;  %v4006_v27 = vsel %vm4004_vm2, 0.5, %v9576_v25  ;;  %v2712_v57 = vand.u32 2147483647, %v2708_v17  ;;  %v2713_v60 = vand.u32 2147483647, %v2709_v33 }
 0x208   : > { %v4007_v55 = vsel %vm4005_vm4, 0.5, %v9576_v25  ;;  %v2714_v6 = vand.u32 2147483647, %v2710_v46  ;;  %v2715_v32 = vand.u32 2147483647, %v2711_v14  ;;  %vm4057_vm5 = vcmp.ge.f32.partialorder %v8438_v47, -1.0  ;;  %v8553_v46 = vpop.permute.xlu0 %3039 }
 0x209   : > { %5404 = vperm.xlu0 %5152, %v5403_v63   ;;  %v5408_v20 = vpack.i.bf16 %v4007_v55, %v4006_v27  ;;  %v2716_v34 = vsub.f32 1.0, %v2712_v57  ;;  %v2717_v31 = vsub.f32 1.0, %v2713_v60  ;;  %vm4058_vm6 = vcmp.le.f32.partialorder %v8435_v3, 16.0  ;;  %v8559_v63 = vpop.permute.xlu1 %5339 }
 0x20a   : > { %v2718_v35 = vsub.f32 1.0, %v2714_v6  ;;  %v2719_v43 = vsub.f32 1.0, %v2715_v32  ;;  %vm4059_vm7 = vcmp.le.f32.partialorder %v8438_v47, 16.0  ;;  %vm4060_vm8 = vmand %vm4056_vm3, %vm4058_vm6  ;;  %vm4116_vm9 = vcmp.ge.f32.partialorder %v8472_v18, -1.0 }
 0x20b   : > { %5409 = vperm.xlu1 %5141, %v5408_v20   ;;  %v2720_v17 = vmax.f32 %v2716_v34, 0.0  ;;  %v2721_v33 = vmax.f32 %v2717_v31, 0.0  ;;  %vm4061_vm10 = vmand %vm4057_vm5, %vm4059_vm7  ;;  %v4062_v19 = vsel %vm4060_vm8, 0.5, %v9576_v25  ;;  %vm4117_vm11 = vcmp.ge.f32.partialorder %v8475_v39, -1.0 }
 0x20c   : > { %v2722_v14 = vmax.f32 %v2718_v35, 0.0  ;;  %v2723_v47 = vmax.f32 %v2719_v43, 0.0  ;;  %v4063_v3 = vsel %vm4061_vm10, 0.5, %v9576_v25  ;;  %vm4118_vm12 = vcmp.le.f32.partialorder %v8472_v18, 16.0 }
 0x20d   : > { %v5413_v27 = vpack.i.bf16 %v4063_v3, %v4062_v19  ;;  %vm4119_vm13 = vcmp.le.f32.partialorder %v8475_v39, 16.0  ;;  %vm4120_vm14 = vmand %vm4116_vm9, %vm4118_vm12  ;;  %v2529_v57 = vmul.f32 %v8385_v62, %v8338_v29  ;;  %v2531_v60 = vmul.f32 %v8421_v28, %v8346_v41 }
 0x20e   : > { %vm4121_vm15 = vmand %vm4117_vm11, %vm4119_vm13  ;;  %v4122_v55 = vsel %vm4120_vm14, 0.5, %v9576_v25  ;;  %v2528_v6 = vmul.f32 %v8382_v10, %v8335_v53  ;;  %v2530_v32 = vmul.f32 %v8418_v50, %v8341_v49  ;;  %v5317_v39 = vunpack.i.h.bf16 %v8295_v37 }
 0x20f   : > { %5414 = vperm.xlu0 %5152, %v5413_v27   ;;  %v4123_v18 = vsel %vm4121_vm15, 0.5, %v9576_v25  ;;  %v5045_v20 = vpack.c.bf16 %v2531_v60, %v2529_v57  ;;  %v5316_v29 = vunpack.i.l.bf16 %v8295_v37  ;;  %v2768_v41 = vsub.f32 %v8299_v0, %v6569_v45  ;;  %v8584_v37 = vpop.permute.xlu0 %3134 }
 0x210   : > { %v5418_v62 = vpack.i.bf16 %v4123_v18, %v4122_v55  ;;  %v5047_v28 = vpack.c.bf16 %v2530_v32, %v2528_v6  ;;  %v2736_v34 = vmul.f32 %v5317_v39, %v2722_v14  ;;  %v2737_v53 = vmul.f32 %v5317_v39, %v2723_v47 }
 0x211   : > { %5046 = vmatprep.subr.bf16.mxu0 %v5045_v20  ;;  %v2734_v49 = vmul.f32 %v5316_v29, %v2720_v17  ;;  %v2735_v10 = vmul.f32 %v5316_v29, %v2721_v33  ;;  %v2769_v50 = vsub.f32 %v8299_v0, %v6602_v58  ;;  %v2772_v31 = vand.u32 2147483647, %v2768_v41  ;;  %v8598_v33 = vpop.permute.xlu1 %3139 }
 0x212   : > { %5419 = vperm.xlu1 %5141, %v5418_v62   ;;  %5048 = vmatpush1.bf16.xpose.msra.mxu0 %v5047_v28  ;;  %v8587_v35 = vadd.f32 %v2736_v34, %v8449_v54  ;;  %v8590_v43 = vadd.f32 %v2737_v53, %v8457_v13  ;;  %v8592_v19 = vstv %s4209_s30  ;;  %v8596_v17 = vstv %s4197_s8  ;;  %s8724_s8 = smul.f32 0.25, %s4460_s11  ;;  %s283_s11 = sand.u32 1, %s5552_s10  }
 0x213   : > { %v8601_v0 = vadd.f32 %v2734_v49, %v8445_v61  ;;  %v8604_v14 = vadd.f32 %v2735_v10, %v8447_v42  ;;  %v2773_v47 = vand.u32 2147483647, %v2769_v50  ;;  %v2776_v3 = vsub.f32 1.0, %v2772_v31  ;;  %v8629_v62 = vpop.permute.xlu0 %5344  ;;  %s4470_s30 = smul.f32 0.25, %s8761_s26  ;;  %s5006_s27 = sshll.u32 %s283_s11, 3 }
 0x214   : > { %v4211_v54 = vmul.f32 %v8592_v19, %v9586_v12  ;;  %v4212_v13 = vmul.f32 %v8592_v19, %v9587_v51  ;;  %v2770_v27 = vsub.f32 %v8328_v48, %v6569_v45  ;;  %v2771_v61 = vsub.f32 %v8328_v48, %v6602_v58  ;;  %s285_s17 = scalar_lea.vmem [#allocation6], %s5006_s27  ;;  %s4888_s1 = scalar_lea.sflag [#allocation7], %s283_s11 }
 0x215   : > { %v2777_v57 = vsub.f32 1.0, %v2773_v47  ;;  %v2780_v60 = vmax.f32 %v2776_v3, 0.0  ;;  %v5322_v42 = vunpack.i.h.bf16 %v8332_v21  ;;  %v5321_v55 = vunpack.i.l.bf16 %v8332_v21  ;;  %v8634_v49 = vpop.permute.xlu1 %3192  ;;  %s4473_s7 = ssub.f32 %s4472_s9, %s4470_s30  ;;  %s4902_s20 = sshll.u32 %s285_s17, 4  ;;  %s9322_s20 = int_to_ptr.vmem [resolvable:$true] %s4902_s20 }
 0x216   : > { %v8618_v6 = vadd.f32 %v8596_v17, %v4211_v54  ;;  %v8621_v32 = vadd.f32 %v8596_v17, %v4212_v13  ;;  %v2774_v39 = vand.u32 2147483647, %v2770_v27  ;;  %v2775_v18 = vand.u32 2147483647, %v2771_v61 }
 0x217   : > { %v2781_v20 = vmax.f32 %v2777_v57, 0.0  ;;  %v2794_v29 = vmul.f32 %v5321_v55, %v2780_v60  ;;  %v8623_v41 = vstv %s4206_s16  ;;  %v8627_v48 = vstv %s4196_s24  ;;  %s4471_s24 = smul.f32 0.25, %s8724_s8  ;;  %s8830_s28 = smax.f32 %s9454_s14, %s4473_s7 }
 0x218   : > { %v4224_v21 = vmax.f32 %v8618_v6, 0.0  ;;  %v4225_v28 = vmax.f32 %v8621_v32, 0.0  ;;  %v2778_v34 = vsub.f32 1.0, %v2774_v39  ;;  %v2779_v53 = vsub.f32 1.0, %v2775_v18  ;;  %s5016_s8 = sshll.u32 %s5560_s12, 7  ;;  %s5575_s12 = smov [#allocation6]  }
 0x219   : > { %v2795_v10 = vmul.f32 %v5321_v55, %v2781_v20  ;;  %v8637_v50 = vadd.f32 %v2794_v29, %v8488_v9  ;;  %v4269_v31 = vmul.f32 %v8623_v41, %v9588_v26  ;;  %v4270_v47 = vmul.f32 %v8623_v41, %v9589_v1  ;;  %s4476_s18 = ssub.f32 %s4475_s22, %s4471_s24  ;;  %s9592_s22 = sld [smem:[#allocation65_spill]] }
 0x21a   : > { %v4226_v3 = vmin.f32 %v4224_v21, 15.0  ;;  %v4227_v54 = vmin.f32 %v4225_v28, 15.0  ;;  %v2782_v13 = vmax.f32 %v2778_v34, 0.0  ;;  %v2783_v27 = vmax.f32 %v2779_v53, 0.0  ;;  %v8666_v34 = vpop.permute.xlu0 %3197 }
 0x21b   : > { %v8645_v61 = vadd.f32 %v2795_v10, %v8493_v5  ;;  %v8648_v57 = vadd.f32 %v8627_v48, %v4269_v31  ;;  %v8651_v9 = vadd.f32 %v8627_v48, %v4270_v47  ;;  %v2868_v60 = vsub.f32 %v8369_v59, %v6551_v40  ;;  %v8677_v31 = vpop.permute.xlu1 %5349  ;;  %s8797_s16 = smax.f32 %s9454_s14, %s4476_s18  ;;  %s4480_s14 = smul.f32 0.25, %s8830_s28 }
 0x21c   : > { %4230 = vperm.xlu0 %5152, %v4226_v3   ;;  %4235 = vperm.xlu1 %5141, %v4227_v54   ;;  %v2796_v55 = vmul.f32 %v5322_v42, %v2782_v13  ;;  %v2797_v39 = vmul.f32 %v5322_v42, %v2783_v27  ;;  %v2869_v5 = vsub.f32 %v8369_v59, %v6553_v16  ;;  %v5327_v18 = vunpack.i.h.bf16 %v8411_v15  ;;  %s4483_s29 = smul.f32 0.25, %s8797_s16  ;;  %s5488_s18 = scalar_lea.vmem %s9322_s20, 128 }
 0x21d   : > { %v4282_v20 = vmax.f32 %v8648_v57, 0.0  ;;  %v4283_v29 = vmax.f32 %v8651_v9, 0.0  ;;  %v2872_v21 = vand.u32 2147483647, %v2868_v60  ;;  %v2870_v28 = vsub.f32 %v8378_v56, %v6551_v40  ;;  %p5489_p8 = scmp.ne.s32.totalorder %s9322_s20, %s5488_s18 }
 0x21e   : > { %v8669_v42 = vadd.f32 %v2796_v55, %v8502_v23  ;;  %v8672_v59 = vadd.f32 %v2797_v39, %v8509_v36  ;;  %v2873_v53 = vand.u32 2147483647, %v2869_v5  ;;  %v2871_v10 = vsub.f32 %v8378_v56, %v6553_v16 }
 0x21f   : > { %v4284_v47 = vmin.f32 %v4282_v20, 15.0  ;;  %v4285_v3 = vmin.f32 %v4283_v29, 15.0  ;;  %v2876_v54 = vsub.f32 1.0, %v2872_v21  ;;  %v2874_v13 = vand.u32 2147483647, %v2870_v28  ;;  %s9320_s26 = scalar_lea.hbm %s9592_s22, %s5016_s8  ;;  %p5490_p9 = pnand %p5489_p8, %p5662_p0 }
 0x220   : > { %v2877_v27 = vsub.f32 1.0, %v2873_v53  ;;  %v2875_v60 = vand.u32 2147483647, %v2871_v10  ;;  %v4326_v23 = vmul.f32 %v8592_v19, %v9579_v38  ;;  %v4327_v36 = vmul.f32 %v8592_v19, %v9581_v4 }
 0x221   : > { %4288 = vperm.xlu0 %5152, %v4284_v47   ;;  %4293 = vperm.xlu1 %5141, %v4285_v3   ;;  %v2880_v56 = vmax.f32 %v2876_v54, 0.0  ;;  %v2878_v55 = vsub.f32 1.0, %v2874_v13  ;;  %v5326_v39 = vunpack.i.l.bf16 %v8411_v15  ;;  %v2926_v5 = vsub.f32 %v8415_v24, %v6569_v45  ;;  %v8702_v47 = vpop.permute.xlu0 %3248  ;;  %p5491_p10 = pneg %p5490_p9 }
 0x222   : > { %v2881_v20 = vmax.f32 %v2877_v27, 0.0  ;;  %v2879_v29 = vsub.f32 1.0, %v2875_v60  ;;  %v8690_v21 = vadd.f32 %v4326_v23, %v8596_v17  ;;  %v8693_v19 = vadd.f32 %v4327_v36, %v8596_v17  ;;  %9590 = vst [vmem:[#allocation25_spill] sm:$0xff] %v8702_v47  ;;  %v8709_v17 = vpop.permute.xlu1 %3253 }
 0x223   : > { %v2882_v28 = vmax.f32 %v2878_v55, 0.0  ;;  %v8697_v53 = vmul.f32 %v5326_v39, %v2880_v56  ;;  %v2927_v15 = vsub.f32 %v8415_v24, %v6602_v58  ;;  %v2930_v10 = vand.u32 2147483647, %v2926_v5 }
 0x224   : > { %v2883_v3 = vmax.f32 %v2879_v29, 0.0  ;;  %v4338_v54 = vmax.f32 %v8690_v21, 0.0  ;;  %v4339_v13 = vmax.f32 %v8693_v19, 0.0  ;;  %v8706_v27 = vmul.f32 %v5326_v39, %v2881_v20 }
 0x225   : > { %v8711_v60 = vmul.f32 %v5327_v18, %v2882_v28  ;;  %v2931_v23 = vand.u32 2147483647, %v2927_v15  ;;  %v2934_v36 = vsub.f32 1.0, %v2930_v10  ;;  %v4386_v24 = vmul.f32 %v8623_v41, %v9583_v2 }
 0x226   : > { %v4340_v56 = vmin.f32 %v4338_v54, 15.0  ;;  %v4341_v55 = vmin.f32 %v4339_v13, 15.0  ;;  %v8715_v5 = vmul.f32 %v5327_v18, %v2883_v3  ;;  %v4387_v29 = vmul.f32 %v8623_v41, %v9585_v22 }
 0x227   : > { %v2935_v47 = vsub.f32 1.0, %v2931_v23  ;;  %v2938_v39 = vmax.f32 %v2934_v36, 0.0  ;;  %v8720_v20 = vadd.f32 %v4386_v24, %v8627_v48  ;;  %v2928_v28 = vsub.f32 %v8443_v11, %v6569_v45  ;;  %v8738_v23 = vpop.permute.xlu0 %3308 }
 0x228   : > { %4344 = vperm.xlu0 %5152, %v4340_v56   ;;  %4349 = vperm.xlu1 %5141, %v4341_v55   ;;  %v8727_v18 = vadd.f32 %v4387_v29, %v8627_v48  ;;  %v2929_v41 = vsub.f32 %v8443_v11, %v6602_v58  ;;  %v5332_v15 = vunpack.i.h.bf16 %v8453_v8  ;;  %v5331_v10 = vunpack.i.l.bf16 %v8453_v8  ;;  %v8745_v8 = vpop.permute.xlu1 %3313 }
 0x229   : > { %v2939_v3 = vmax.f32 %v2935_v47, 0.0  ;;  %v4398_v54 = vmax.f32 %v8720_v20, 0.0  ;;  %v2932_v13 = vand.u32 2147483647, %v2928_v28  ;;  %vm4216_vm0 = vcmp.ge.f32.partialorder %v8618_v6, -1.0 }
 0x22a   : > { %v4399_v48 = vmax.f32 %v8727_v18, 0.0  ;;  %v2933_v11 = vand.u32 2147483647, %v2929_v41  ;;  %v8741_v36 = vmul.f32 %v5331_v10, %v2938_v39  ;;  %vm4217_vm1 = vcmp.ge.f32.partialorder %v8621_v32, -1.0 }
 0x22b   : > { %v4400_v47 = vmin.f32 %v4398_v54, 15.0  ;;  %v2936_v24 = vsub.f32 1.0, %v2932_v13  ;;  %v8747_v56 = vmul.f32 %v5331_v10, %v2939_v3  ;;  %vm4218_vm2 = vcmp.le.f32.partialorder %v8618_v6, 16.0  ;;  %v8774_v13 = vpop.permute.xlu0 %5354 }
 0x22c   : > { %v4401_v55 = vmin.f32 %v4399_v48, 15.0  ;;  %v2937_v29 = vsub.f32 1.0, %v2933_v11  ;;  %vm4219_vm3 = vcmp.le.f32.partialorder %v8621_v32, 16.0  ;;  %vm4220_vm4 = vmand %vm4216_vm0, %vm4218_vm2  ;;  %vm4274_vm5 = vcmp.ge.f32.partialorder %v8648_v57, -1.0 }
 0x22d   : > { %4404 = vperm.xlu0 %5152, %v4400_v47   ;;  %v2940_v39 = vmax.f32 %v2936_v24, 0.0  ;;  %vm4221_vm6 = vmand %vm4217_vm1, %vm4219_vm3  ;;  %v4222_v28 = vsel %vm4220_vm4, 0.5, %v9576_v25  ;;  %vm4275_vm7 = vcmp.ge.f32.partialorder %v8651_v9, -1.0  ;;  %vm4276_vm8 = vcmp.le.f32.partialorder %v8648_v57, 16.0  ;;  %v8783_v24 = vpop.permute.xlu1 %5359 }
 0x22e   : > { %4409 = vperm.xlu1 %5141, %v4401_v55   ;;  %v2941_v41 = vmax.f32 %v2937_v29, 0.0  ;;  %v4223_v6 = vsel %vm4221_vm6, 0.5, %v9576_v25  ;;  %vm4277_vm9 = vcmp.le.f32.partialorder %v8651_v9, 16.0  ;;  %vm4278_vm10 = vmand %vm4274_vm5, %vm4276_vm8  ;;  %v2982_v32 = vsub.f32 %v8481_v44, %v6551_v40 }
 0x22f   : > { %v8769_v10 = vmul.f32 %v5332_v15, %v2940_v39  ;;  %v5423_v3 = vpack.i.bf16 %v4223_v6, %v4222_v28  ;;  %vm4279_vm11 = vmand %vm4275_vm7, %vm4277_vm9  ;;  %v4280_v57 = vsel %vm4278_vm10, 0.5, %v9576_v25  ;;  %v2983_v54 = vsub.f32 %v8481_v44, %v6553_v16 }
 0x230   : > { %v8776_v48 = vmul.f32 %v5332_v15, %v2941_v41  ;;  %v4281_v9 = vsel %vm4279_vm11, 0.5, %v9576_v25  ;;  %v2986_v11 = vand.u32 2147483647, %v2982_v32  ;;  %v2984_v47 = vsub.f32 %v8486_v7, %v6551_v40 }
 0x231   : > { %5424 = vperm.xlu0 %5152, %v5423_v3   ;;  %v5428_v55 = vpack.i.bf16 %v4281_v9, %v4280_v57  ;;  %v2987_v29 = vand.u32 2147483647, %v2983_v54  ;;  %v2985_v44 = vsub.f32 %v8486_v7, %v6553_v16  ;;  %vm4330_vm12 = vcmp.ge.f32.partialorder %v8690_v21, -1.0 }
 0x232   : > { %v2990_v15 = vsub.f32 1.0, %v2986_v11  ;;  %v2988_v39 = vand.u32 2147483647, %v2984_v47  ;;  %vm4331_vm13 = vcmp.ge.f32.partialorder %v8693_v19, -1.0  ;;  %vm4332_vm14 = vcmp.le.f32.partialorder %v8690_v21, 16.0  ;;  %v8810_v47 = vpop.permute.xlu1 %3413 }
 0x233   : > { %5429 = vperm.xlu1 %5141, %v5428_v55   ;;  %v2991_v28 = vsub.f32 1.0, %v2987_v29  ;;  %v2989_v41 = vand.u32 2147483647, %v2985_v44  ;;  %vm4333_vm15 = vcmp.le.f32.partialorder %v8693_v19, 16.0  ;;  %vm4334_vm0 = vmand %vm4330_vm12, %vm4332_vm14  ;;  %vm4390_vm1 = vcmp.ge.f32.partialorder %v8720_v20, -1.0  ;;  %v8801_v19 = vpop.permute.xlu0 %3408 }
 0x234   : > { %v2994_v6 = vmax.f32 %v2990_v15, 0.0  ;;  %v2992_v7 = vsub.f32 1.0, %v2988_v39  ;;  %vm4335_vm2 = vmand %vm4331_vm13, %vm4333_vm15  ;;  %v4336_v32 = vsel %vm4334_vm0, 0.5, %v9576_v25  ;;  %vm4391_vm3 = vcmp.ge.f32.partialorder %v8727_v18, -1.0 }
 0x235   : > { %v2995_v21 = vmax.f32 %v2991_v28, 0.0  ;;  %v2993_v3 = vsub.f32 1.0, %v2989_v41  ;;  %v4337_v57 = vsel %vm4335_vm2, 0.5, %v9576_v25  ;;  %vm4392_vm4 = vcmp.le.f32.partialorder %v8720_v20, 16.0 }
 0x236   : > { %v2996_v54 = vmax.f32 %v2992_v7, 0.0  ;;  %v5433_v9 = vpack.i.bf16 %v4337_v57, %v4336_v32  ;;  %vm4393_vm5 = vcmp.le.f32.partialorder %v8727_v18, 16.0  ;;  %vm4394_vm6 = vmand %vm4390_vm1, %vm4392_vm4  ;;  %v2803_v11 = vmul.f32 %v8645_v61, %v8604_v14 }
 0x237   : > { %v2997_v55 = vmax.f32 %v2993_v3, 0.0  ;;  %vm4395_vm7 = vmand %vm4391_vm3, %vm4393_vm5  ;;  %v4396_v29 = vsel %vm4394_vm6, 0.5, %v9576_v25  ;;  %v2805_v44 = vmul.f32 %v8672_v59, %v8590_v43  ;;  %v2802_v20 = vmul.f32 %v8637_v50, %v8601_v0  ;;  %v8834_v3 = vpop.permute.xlu0 %3466 }
 0x238   : > { %5434 = vperm.xlu0 %5152, %v5433_v9   ;;  %v4397_v14 = vsel %vm4395_vm7, 0.5, %v9576_v25  ;;  %v2804_v61 = vmul.f32 %v8669_v42, %v8587_v35  ;;  %v5337_v15 = vunpack.i.h.bf16 %v8518_v30  ;;  %v5336_v18 = vunpack.i.l.bf16 %v8518_v30 }
 0x239   : > { %v5438_v39 = vpack.i.bf16 %v4397_v14, %v4396_v29  ;;  %v5049_v28 = vpack.c.bf16 %v2805_v44, %v2803_v11  ;;  %v3042_v41 = vsub.f32 %v8529_v52, %v6569_v45  ;;  %v3043_v43 = vsub.f32 %v8529_v52, %v6602_v58 }
 0x23a   : > { %v5051_v0 = vpack.c.bf16 %v2804_v61, %v2802_v20  ;;  %v3008_v50 = vmul.f32 %v5336_v18, %v2994_v6  ;;  %v3009_v59 = vmul.f32 %v5336_v18, %v2995_v21  ;;  %v3010_v7 = vmul.f32 %v5337_v15, %v2996_v54  ;;  %v8847_v54 = vpop.permute.xlu1 %3471 }
 0x23b   : > { %5439 = vperm.xlu1 %5141, %v5438_v39   ;;  %5050 = vmatprep.subr.bf16.mxu0 %v5049_v28  ;;  %v3011_v30 = vmul.f32 %v5337_v15, %v2997_v55  ;;  %v3046_v35 = vand.u32 2147483647, %v3042_v41  ;;  %v3047_v42 = vand.u32 2147483647, %v3043_v43  ;;  %v8832_v32 = vstv %s4483_s29 }
 0x23c   : > { %5052 = vmatpush1.bf16.xpose.msra.mxu0 %v5051_v0  ;;  %v8837_v52 = vadd.f32 %v3008_v50, %v8697_v53  ;;  %v8840_v6 = vadd.f32 %v3009_v59, %v8706_v27  ;;  %v8843_v21 = vadd.f32 %v3010_v7, %v8711_v60  ;;  %v4485_v57 = vmul.f32 %v8832_v32, %v9586_v12 }
 0x23d   : > { %v8850_v9 = vadd.f32 %v3011_v30, %v8715_v5  ;;  %v3050_v11 = vsub.f32 1.0, %v3046_v35  ;;  %v3051_v55 = vsub.f32 1.0, %v3047_v42  ;;  %v8854_v29 = vstv %s4471_s24 }
 0x23e   : > { %v8858_v53 = vadd.f32 %v8854_v29, %v4485_v57  ;;  %v4486_v27 = vmul.f32 %v8832_v32, %v9587_v51  ;;  %v3044_v12 = vsub.f32 %v8553_v46, %v6569_v45  ;;  %v3045_v60 = vsub.f32 %v8553_v46, %v6602_v58  ;;  %v8878_v46 = vpop.permute.xlu0 %3522  ;;  %v8881_v7 = vpop.permute.xlu1 %3527 }
 0x23f   : > { %v3054_v5 = vmax.f32 %v3050_v11, 0.0  ;;  %v3055_v44 = vmax.f32 %v3051_v55, 0.0  ;;  %v5342_v20 = vunpack.i.h.bf16 %v8559_v63  ;;  %v5341_v14 = vunpack.i.l.bf16 %v8559_v63 }
 0x240   : > { %v4498_v61 = vmax.f32 %v8858_v53, 0.0  ;;  %v8870_v15 = vadd.f32 %v8854_v29, %v4486_v27  ;;  %v3048_v18 = vand.u32 2147483647, %v3044_v12  ;;  %v3049_v39 = vand.u32 2147483647, %v3045_v60 }
 0x241   : > { %v3068_v51 = vmul.f32 %v5341_v14, %v3054_v5  ;;  %v3069_v28 = vmul.f32 %v5341_v14, %v3055_v44  ;;  %v8872_v41 = vstv %s4480_s14  ;;  %v8876_v43 = vstv %s4470_s30  ;;  %s5492_s30 = sshll.u32 %s5575_s12, 4  ;;  %s5493_s30 = int_to_ptr.vmem [resolvable:$false] %s5492_s30 }
 0x242   : > { %v4500_v0 = vmin.f32 %v4498_v61, 15.0  ;;  %v4499_v50 = vmax.f32 %v8870_v15, 0.0  ;;  %v3052_v63 = vsub.f32 1.0, %v3048_v18  ;;  %v3053_v59 = vsub.f32 1.0, %v3049_v39  ;;  %s5494_s9 = scalar_lea.vmem %s5493_s30, 256  ;;  %p5495_p11 = scmp.lt.s32.totalorder %s9322_s20, %s5493_s30 }
 0x243   : > { %v8884_v30 = vadd.f32 %v3068_v51, %v8741_v36  ;;  %v8887_v35 = vadd.f32 %v3069_v28, %v8747_v56  ;;  %v4543_v42 = vmul.f32 %v8872_v41, %v9588_v26  ;;  %v4544_v57 = vmul.f32 %v8872_v41, %v9589_v1  ;;  %v8909_v28 = vpop.permute.xlu0 %3582  ;;  %p5496_p12 = scmp.lt.s32.totalorder %s5494_s9, %s5488_s18 }
 0x244   : > { %4504 = vperm.xlu0 %5152, %v4500_v0   ;;  %v4501_v11 = vmin.f32 %v4499_v50, 15.0  ;;  %v3056_v55 = vmax.f32 %v3052_v63, 0.0  ;;  %v3057_v27 = vmax.f32 %v3053_v59, 0.0  ;;  %v3142_v12 = vsub.f32 %v8584_v37, %v6551_v40  ;;  %v8917_v63 = vpop.permute.xlu1 %3587 }
 0x245   : > { %v8896_v60 = vadd.f32 %v8876_v43, %v4543_v42  ;;  %v8899_v36 = vadd.f32 %v8876_v43, %v4544_v57  ;;  %v3143_v56 = vsub.f32 %v8584_v37, %v6553_v16  ;;  %v3144_v26 = vsub.f32 %v8598_v33, %v6551_v40  ;;  %p5497_p13 = por %p5496_p12, %p5495_p11 }
 0x246   : > { %4509 = vperm.xlu1 %5141, %v4501_v11   ;;  %v3070_v1 = vmul.f32 %v5342_v20, %v3056_v55  ;;  %v3071_v5 = vmul.f32 %v5342_v20, %v3057_v27  ;;  %v3146_v44 = vand.u32 2147483647, %v3142_v12  ;;  %v3145_v14 = vsub.f32 %v8598_v33, %v6553_v16 }
 0x247   : > { %v4556_v61 = vmax.f32 %v8896_v60, 0.0  ;;  %v4557_v18 = vmax.f32 %v8899_v36, 0.0  ;;  %v3147_v39 = vand.u32 2147483647, %v3143_v56  ;;  %v3148_v51 = vand.u32 2147483647, %v3144_v26  ;;  %p5498_p1 = pnand %p5497_p13, %p5491_p10 }
 0x248   : > { %v8912_v37 = vadd.f32 %v3070_v1, %v8769_v10  ;;  %v8915_v0 = vadd.f32 %v3071_v5, %v8776_v48  ;;  %v3150_v50 = vsub.f32 1.0, %v3146_v44  ;;  %v3149_v20 = vand.u32 2147483647, %v3145_v14 }
 0x249   : > { %v4558_v59 = vmin.f32 %v4556_v61, 15.0  ;;  %v4559_v33 = vmin.f32 %v4557_v18, 15.0  ;;  %v3151_v42 = vsub.f32 1.0, %v3147_v39  ;;  %v3152_v57 = vsub.f32 1.0, %v3148_v51 }
 0x24a   : > { %v3154_v11 = vmax.f32 %v3150_v50, 0.0  ;;  %v3153_v55 = vsub.f32 1.0, %v3149_v20  ;;  %v4600_v27 = vmul.f32 %v8832_v32, %v9579_v38  ;;  %v4601_v10 = vmul.f32 %v8832_v32, %v9581_v4  ;;  %v8947_v50 = vpop.permute.xlu1 %5369 }
 0x24b   : > { %4562 = vperm.xlu0 %5152, %v4558_v59   ;;  %4567 = vperm.xlu1 %5141, %v4559_v33   ;;  %v3155_v48 = vmax.f32 %v3151_v42, 0.0  ;;  %v3156_v12 = vmax.f32 %v3152_v57, 0.0  ;;  %v5347_v56 = vunpack.i.h.bf16 %v8629_v62  ;;  %v5346_v26 = vunpack.i.l.bf16 %v8629_v62  ;;  %v8941_v62 = vpop.permute.xlu0 %5364 }
 0x24c   : > { %v3157_v1 = vmax.f32 %v3153_v55, 0.0  ;;  %v8926_v5 = vadd.f32 %v4600_v27, %v8854_v29  ;;  %v8929_v44 = vadd.f32 %v4601_v10, %v8854_v29  ;;  %v3200_v38 = vsub.f32 %v8634_v49, %v6569_v45 }
 0x24d   : > { %v8933_v14 = vmul.f32 %v5346_v26, %v3154_v11  ;;  %v8935_v4 = vmul.f32 %v5346_v26, %v3155_v48  ;;  %v8937_v32 = vmul.f32 %v5347_v56, %v3156_v12  ;;  %v3201_v61 = vsub.f32 %v8634_v49, %v6602_v58 }
 0x24e   : > { %v4612_v18 = vmax.f32 %v8926_v5, 0.0  ;;  %v4613_v39 = vmax.f32 %v8929_v44, 0.0  ;;  %v8945_v29 = vmul.f32 %v5347_v56, %v3157_v1  ;;  %v3204_v51 = vand.u32 2147483647, %v3200_v38 }
 0x24f   : > { %v3205_v20 = vand.u32 2147483647, %v3201_v61  ;;  %v4660_v59 = vmul.f32 %v8872_v41, %v9583_v2  ;;  %v4661_v33 = vmul.f32 %v8872_v41, %v9585_v22  ;;  %v3202_v49 = vsub.f32 %v8666_v34, %v6569_v45  ;;  %v8967_v61 = vpop.permute.xlu0 %5374 }
 0x250   : > { %v4614_v42 = vmin.f32 %v4612_v18, 15.0  ;;  %v4615_v57 = vmin.f32 %v4613_v39, 15.0  ;;  %v3208_v11 = vsub.f32 1.0, %v3204_v51  ;;  %v3203_v55 = vsub.f32 %v8666_v34, %v6602_v58  ;;  %v8973_v39 = vpop.permute.xlu1 %5379 }
 0x251   : > { %v3209_v27 = vsub.f32 1.0, %v3205_v20  ;;  %v8958_v10 = vadd.f32 %v4660_v59, %v8876_v43  ;;  %v8961_v48 = vadd.f32 %v4661_v33, %v8876_v43  ;;  %v3206_v2 = vand.u32 2147483647, %v3202_v49 }
 0x252   : > { %4618 = vperm.xlu0 %5152, %v4614_v42   ;;  %4623 = vperm.xlu1 %5141, %v4615_v57   ;;  %v3212_v22 = vmax.f32 %v3208_v11, 0.0  ;;  %v3207_v41 = vand.u32 2147483647, %v3203_v55  ;;  %v5352_v12 = vunpack.i.h.bf16 %v8677_v31  ;;  %v5351_v56 = vunpack.i.l.bf16 %v8677_v31  ;;  %v9591_v57 = vld [vmem:[#allocation25_spill] sm:$0xff] }
 0x253   : > { %v3213_v26 = vmax.f32 %v3209_v27, 0.0  ;;  %v4672_v1 = vmax.f32 %v8958_v10, 0.0  ;;  %v4673_v34 = vmax.f32 %v8961_v48, 0.0  ;;  %v3210_v38 = vsub.f32 1.0, %v3206_v2 }
 0x254   : > { %v3211_v18 = vsub.f32 1.0, %v3207_v41  ;;  %v8969_v43 = vmul.f32 %v5351_v56, %v3212_v22  ;;  %vm4490_vm8 = vcmp.ge.f32.partialorder %v8858_v53, -1.0  ;;  %vm4491_vm9 = vcmp.ge.f32.partialorder %v8870_v15, -1.0 }
 0x255   : > { %v4674_v51 = vmin.f32 %v4672_v1, 15.0  ;;  %v4675_v20 = vmin.f32 %v4673_v34, 15.0  ;;  %v3214_v31 = vmax.f32 %v3210_v38, 0.0  ;;  %v8975_v59 = vmul.f32 %v5351_v56, %v3213_v26  ;;  %v9005_v26 = vpop.permute.xlu1 %3687 }
 0x256   : > { %v3215_v33 = vmax.f32 %v3211_v18, 0.0  ;;  %vm4492_vm10 = vcmp.le.f32.partialorder %v8858_v53, 16.0  ;;  %vm4493_vm11 = vcmp.le.f32.partialorder %v8870_v15, 16.0  ;;  %vm4548_vm12 = vcmp.ge.f32.partialorder %v8896_v60, -1.0  ;;  %v9000_v15 = vpop.permute.xlu0 %3682 }
 0x257   : > { %4678 = vperm.xlu0 %5152, %v4674_v51   ;;  %4683 = vperm.xlu1 %5141, %v4675_v20   ;;  %v8980_v49 = vmul.f32 %v5352_v12, %v3214_v31  ;;  %vm4494_vm13 = vmand %vm4490_vm8, %vm4492_vm10  ;;  %vm4549_vm14 = vcmp.ge.f32.partialorder %v8899_v36, -1.0  ;;  %vm4550_vm15 = vcmp.le.f32.partialorder %v8896_v60, 16.0  ;;  %vm4551_vm0 = vcmp.le.f32.partialorder %v8899_v36, 16.0 }
 0x258   : > { %v8985_v42 = vmul.f32 %v5352_v12, %v3215_v33  ;;  %vm4495_vm1 = vmand %vm4491_vm9, %vm4493_vm11  ;;  %v4496_v53 = vsel %vm4494_vm13, 0.5, %v9576_v25  ;;  %v3256_v11 = vsub.f32 %v9591_v57, %v6551_v40  ;;  %v3257_v55 = vsub.f32 %v9591_v57, %v6553_v16 }
 0x259   : > { %v4497_v27 = vsel %vm4495_vm1, 0.5, %v9576_v25  ;;  %vm4552_vm2 = vmand %vm4548_vm12, %vm4550_vm15  ;;  %v3258_v60 = vsub.f32 %v8709_v17, %v6551_v40  ;;  %v3259_v2 = vsub.f32 %v8709_v17, %v6553_v16  ;;  %vm4604_vm3 = vcmp.ge.f32.partialorder %v8926_v5, -1.0 }
 0x25a   : > { %v5443_v22 = vpack.i.bf16 %v4497_v27, %v4496_v53  ;;  %vm4553_vm4 = vmand %vm4549_vm14, %vm4551_vm0  ;;  %v4554_v41 = vsel %vm4552_vm2, 0.5, %v9576_v25  ;;  %v3260_v12 = vand.u32 2147483647, %v3256_v11  ;;  %v3261_v56 = vand.u32 2147483647, %v3257_v55 }
 0x25b   : > { %v4555_v1 = vsel %vm4553_vm4, 0.5, %v9576_v25  ;;  %v3262_v34 = vand.u32 2147483647, %v3258_v60  ;;  %v3263_v38 = vand.u32 2147483647, %v3259_v2  ;;  %vm4605_vm5 = vcmp.ge.f32.partialorder %v8929_v44, -1.0  ;;  %v9025_v2 = vpop.permute.xlu1 %3745 }
 0x25c   : > { %5444 = vperm.xlu0 %5152, %v5443_v22   ;;  %v5448_v17 = vpack.i.bf16 %v4555_v1, %v4554_v41  ;;  %v3264_v18 = vsub.f32 1.0, %v3260_v12  ;;  %v3265_v51 = vsub.f32 1.0, %v3261_v56  ;;  %vm4606_vm6 = vcmp.le.f32.partialorder %v8926_v5, 16.0 }
 0x25d   : > { %v3266_v36 = vsub.f32 1.0, %v3262_v34  ;;  %v3267_v20 = vsub.f32 1.0, %v3263_v38  ;;  %vm4607_vm7 = vcmp.le.f32.partialorder %v8929_v44, 16.0  ;;  %vm4608_vm8 = vmand %vm4604_vm3, %vm4606_vm6  ;;  %vm4664_vm9 = vcmp.ge.f32.partialorder %v8958_v10, -1.0  ;;  %v9018_v44 = vpop.permute.xlu0 %3740 }
 0x25e   : > { %5449 = vperm.xlu1 %5141, %v5448_v17   ;;  %v3268_v31 = vmax.f32 %v3264_v18, 0.0  ;;  %v3269_v33 = vmax.f32 %v3265_v51, 0.0  ;;  %vm4609_vm10 = vmand %vm4605_vm5, %vm4607_vm7  ;;  %v4610_v53 = vsel %vm4608_vm8, 0.5, %v9576_v25  ;;  %vm4665_vm11 = vcmp.ge.f32.partialorder %v8961_v48, -1.0 }
 0x25f   : > { %v3270_v57 = vmax.f32 %v3266_v36, 0.0  ;;  %v3271_v11 = vmax.f32 %v3267_v20, 0.0  ;;  %v4611_v55 = vsel %vm4609_vm10, 0.5, %v9576_v25  ;;  %vm4666_vm12 = vcmp.le.f32.partialorder %v8958_v10, 16.0 }
 0x260   : > { %v5453_v5 = vpack.i.bf16 %v4611_v55, %v4610_v53  ;;  %vm4667_vm13 = vcmp.le.f32.partialorder %v8961_v48, 16.0  ;;  %vm4668_vm14 = vmand %vm4664_vm9, %vm4666_vm12  ;;  %v3077_v27 = vmul.f32 %v8887_v35, %v8840_v6  ;;  %v3079_v60 = vmul.f32 %v8915_v0, %v8850_v9  ;;  %v9047_v53 = vpop.permute.xlu1 %3801 }
 0x261   : > { %vm4669_vm15 = vmand %vm4665_vm11, %vm4667_vm13  ;;  %v4670_v22 = vsel %vm4668_vm14, 0.5, %v9576_v25  ;;  %v3076_v10 = vmul.f32 %v8884_v30, %v8837_v52  ;;  %v3078_v41 = vmul.f32 %v8912_v37, %v8843_v21  ;;  %v3316_v48 = vsub.f32 %v8738_v23, %v6569_v45  ;;  %v9045_v18 = vpop.permute.xlu0 %3796 }
 0x262   : > { %5454 = vperm.xlu0 %5152, %v5453_v5   ;;  %v4671_v6 = vsel %vm4669_vm15, 0.5, %v9576_v25  ;;  %v5053_v35 = vpack.c.bf16 %v3079_v60, %v3077_v27  ;;  %v3317_v9 = vsub.f32 %v8738_v23, %v6602_v58  ;;  %v3318_v0 = vsub.f32 %v8745_v8, %v6569_v45 }
 0x263   : > { %v5458_v12 = vpack.i.bf16 %v4671_v6, %v4670_v22  ;;  %v5055_v56 = vpack.c.bf16 %v3078_v41, %v3076_v10  ;;  %v3320_v1 = vand.u32 2147483647, %v3316_v48  ;;  %v3319_v52 = vsub.f32 %v8745_v8, %v6602_v58 }
 0x264   : > { %5054 = vmatprep.subr.bf16.mxu0 %v5053_v35  ;;  %v3321_v21 = vand.u32 2147483647, %v3317_v9  ;;  %v3322_v30 = vand.u32 2147483647, %v3318_v0  ;;  %v5357_v37 = vunpack.i.h.bf16 %v8774_v13  ;;  %v5356_v25 = vunpack.i.l.bf16 %v8774_v13 }
 0x265   : > { %5459 = vperm.xlu1 %5141, %v5458_v12   ;;  %5056 = vmatpush1.bf16.xpose.msra.mxu0 %v5055_v56  ;;  %v3324_v34 = vsub.f32 1.0, %v3320_v1  ;;  %v3323_v23 = vand.u32 2147483647, %v3319_v52  ;;  %v5362_v38 = vunpack.i.h.bf16 %v8783_v24  ;;  %v5361_v17 = vunpack.i.l.bf16 %v8783_v24  ;;  %v9066_v52 = vpop.permute.xlu1 %3861 }
 0x266   : > { %v3325_v51 = vsub.f32 1.0, %v3321_v21  ;;  %v3326_v36 = vsub.f32 1.0, %v3322_v30  ;;  %v3282_v8 = vmul.f32 %v5356_v25, %v3268_v31  ;;  %v3283_v20 = vmul.f32 %v5356_v25, %v3269_v33 }
 0x267   : > { %v3328_v55 = vmax.f32 %v3324_v34, 0.0  ;;  %v3327_v5 = vsub.f32 1.0, %v3323_v23  ;;  %v3284_v27 = vmul.f32 %v5357_v37, %v3270_v57  ;;  %v3285_v13 = vmul.f32 %v5357_v37, %v3271_v11 }
 0x268   : > { %v3329_v60 = vmax.f32 %v3325_v51, 0.0  ;;  %v3330_v22 = vmax.f32 %v3326_v36, 0.0  ;;  %v3286_v10 = vadd.f32 %v3282_v8, %v8933_v14  ;;  %v3287_v41 = vadd.f32 %v3283_v20, %v8935_v4 }
 0x269   : > { %v3331_v48 = vmax.f32 %v3327_v5, 0.0  ;;  %v3288_v24 = vadd.f32 %v3284_v27, %v8937_v32  ;;  %v3289_v6 = vadd.f32 %v3285_v13, %v8945_v29  ;;  %v3342_v35 = vmul.f32 %v5361_v17, %v3328_v55  ;;  %v9062_v32 = vpop.permute.xlu0 %3856 }
 0x26a   : > { %v3343_v31 = vmul.f32 %v5361_v17, %v3329_v60  ;;  %v3344_v33 = vmul.f32 %v5362_v38, %v3330_v22  ;;  %v3416_v9 = vsub.f32 %v8801_v19, %v6551_v40  ;;  %v3417_v57 = vsub.f32 %v8801_v19, %v6553_v16 }
 0x26b   : > { %v3345_v11 = vmul.f32 %v5362_v38, %v3331_v48  ;;  %v3346_v0 = vadd.f32 %v3342_v35, %v8969_v43  ;;  %v3418_v14 = vsub.f32 %v8810_v47, %v6551_v40  ;;  %v3419_v4 = vsub.f32 %v8810_v47, %v6553_v16  ;;  %v9083_v48 = vpop.permute.xlu1 %5389 }
 0x26c   : > { %v3347_v29 = vadd.f32 %v3343_v31, %v8975_v59  ;;  %v3348_v12 = vadd.f32 %v3344_v33, %v8980_v49  ;;  %v3420_v56 = vand.u32 2147483647, %v3416_v9  ;;  %v3421_v1 = vand.u32 2147483647, %v3417_v57 }
 0x26d   : > { %v3349_v19 = vadd.f32 %v3345_v11, %v8985_v42  ;;  %v3422_v21 = vand.u32 2147483647, %v3418_v14  ;;  %v3423_v43 = vand.u32 2147483647, %v3419_v4  ;;  %v3474_v30 = vsub.f32 %v8834_v3, %v6569_v45  ;;  %v9077_v27 = vpop.permute.xlu0 %5384 }
 0x26e   : > { %v3424_v37 = vsub.f32 1.0, %v3420_v56  ;;  %v3425_v25 = vsub.f32 1.0, %v3421_v1  ;;  %v3475_v47 = vsub.f32 %v8834_v3, %v6602_v58  ;;  %v3476_v59 = vsub.f32 %v8847_v54, %v6569_v45 }
 0x26f   : > { %v3426_v49 = vsub.f32 1.0, %v3422_v21  ;;  %v3427_v34 = vsub.f32 1.0, %v3423_v43  ;;  %v3478_v23 = vand.u32 2147483647, %v3474_v30  ;;  %v3477_v38 = vsub.f32 %v8847_v54, %v6602_v58 }
 0x270   : > { %v3428_v42 = vmax.f32 %v3424_v37, 0.0  ;;  %v3429_v17 = vmax.f32 %v3425_v25, 0.0  ;;  %v3479_v51 = vand.u32 2147483647, %v3475_v47  ;;  %v3480_v36 = vand.u32 2147483647, %v3476_v59 }
 0x271   : > { %v3430_v8 = vmax.f32 %v3426_v49, 0.0  ;;  %v3431_v20 = vmax.f32 %v3427_v34, 0.0  ;;  %v3482_v55 = vsub.f32 1.0, %v3478_v23  ;;  %v3481_v5 = vand.u32 2147483647, %v3477_v38  ;;  %v9091_v34 = vpop.permute.xlu0 %5394 }
 0x272   : > { %v3483_v3 = vsub.f32 1.0, %v3479_v51  ;;  %v3484_v13 = vsub.f32 1.0, %v3480_v36  ;;  %v3530_v60 = vsub.f32 %v8878_v46, %v6551_v40  ;;  %v3531_v22 = vsub.f32 %v8878_v46, %v6553_v16  ;;  %v9095_v36 = vpop.permute.xlu1 %5399 }
 0x273   : > { %v3486_v54 = vmax.f32 %v3482_v55, 0.0  ;;  %v3485_v35 = vsub.f32 1.0, %v3481_v5  ;;  %v3532_v31 = vsub.f32 %v8881_v7, %v6551_v40  ;;  %v3533_v33 = vsub.f32 %v8881_v7, %v6553_v16 }
 0x274   : > { %v3487_v9 = vmax.f32 %v3483_v3, 0.0  ;;  %v3488_v57 = vmax.f32 %v3484_v13, 0.0  ;;  %v3534_v11 = vand.u32 2147483647, %v3530_v60  ;;  %v3535_v14 = vand.u32 2147483647, %v3531_v22 }
 0x275   : > { %v3489_v4 = vmax.f32 %v3485_v35, 0.0  ;;  %v3536_v56 = vand.u32 2147483647, %v3532_v31  ;;  %v3537_v1 = vand.u32 2147483647, %v3533_v33  ;;  %v3351_v21 = vmul.f32 %v3347_v29, %v3287_v41 }
 0x276   : > { %v3538_v43 = vsub.f32 1.0, %v3534_v11  ;;  %v3539_v46 = vsub.f32 1.0, %v3535_v14  ;;  %v3353_v30 = vmul.f32 %v3349_v19, %v3289_v6  ;;  %v3350_v37 = vmul.f32 %v3346_v0, %v3286_v10 }
 0x277   : > { %v3540_v25 = vsub.f32 1.0, %v3536_v56  ;;  %v3541_v47 = vsub.f32 1.0, %v3537_v1  ;;  %v3352_v59 = vmul.f32 %v3348_v12, %v3288_v24  ;;  %v3590_v49 = vsub.f32 %v8909_v28, %v6569_v45  ;;  %v9105_v56 = vpop.permute.xlu0 %3956 }
 0x278   : > { %v3542_v7 = vmax.f32 %v3538_v43, 0.0  ;;  %v3543_v23 = vmax.f32 %v3539_v46, 0.0  ;;  %v5057_v38 = vpack.c.bf16 %v3353_v30, %v3351_v21  ;;  %v3591_v51 = vsub.f32 %v8909_v28, %v6602_v58  ;;  %v9107_v46 = vpop.permute.xlu1 %3961 }
 0x279   : > { %v3544_v41 = vmax.f32 %v3540_v25, 0.0  ;;  %v3545_v29 = vmax.f32 %v3541_v47, 0.0  ;;  %v5059_v6 = vpack.c.bf16 %v3352_v59, %v3350_v37  ;;  %v3594_v10 = vand.u32 2147483647, %v3590_v49 }
 0x27a   : > { %5058 = vmatprep.subr.bf16.mxu0 %v5057_v38  ;;  %v3595_v0 = vand.u32 2147483647, %v3591_v51  ;;  %v3592_v24 = vsub.f32 %v8917_v63, %v6569_v45  ;;  %v3593_v12 = vsub.f32 %v8917_v63, %v6602_v58  ;;  %v5367_v19 = vunpack.i.h.bf16 %v8941_v62 }
 0x27b   : > { %5060 = vmatpush1.bf16.xpose.msra.mxu0 %v5059_v6  ;;  %v3598_v55 = vsub.f32 1.0, %v3594_v10  ;;  %v5366_v28 = vunpack.i.l.bf16 %v8941_v62  ;;  %v5372_v5 = vunpack.i.h.bf16 %v8947_v50  ;;  %v5371_v3 = vunpack.i.l.bf16 %v8947_v50 }
 0x27c   : > { %v3599_v13 = vsub.f32 1.0, %v3595_v0  ;;  %v3596_v60 = vand.u32 2147483647, %v3592_v24  ;;  %v3597_v22 = vand.u32 2147483647, %v3593_v12  ;;  %v3444_v35 = vmul.f32 %v5367_v19, %v3430_v8  ;;  %v9115_v0 = vpop.permute.xlu0 %4014 }
 0x27d   : > { %v3602_v31 = vmax.f32 %v3598_v55, 0.0  ;;  %v3442_v33 = vmul.f32 %v5366_v28, %v3428_v42  ;;  %v3443_v11 = vmul.f32 %v5366_v28, %v3429_v17  ;;  %v3445_v14 = vmul.f32 %v5367_v19, %v3431_v20 }
 0x27e   : > { %v3603_v63 = vmax.f32 %v3599_v13, 0.0  ;;  %v3600_v1 = vsub.f32 1.0, %v3596_v60  ;;  %v3601_v21 = vsub.f32 1.0, %v3597_v22  ;;  %v3500_v43 = vmul.f32 %v5371_v3, %v3486_v54 }
 0x27f   : > { %v3501_v62 = vmul.f32 %v5371_v3, %v3487_v9  ;;  %v3502_v30 = vmul.f32 %v5372_v5, %v3488_v57  ;;  %v3503_v37 = vmul.f32 %v5372_v5, %v3489_v4  ;;  %v5377_v50 = vunpack.i.h.bf16 %v8967_v61 }
 0x280   : > { %v3604_v25 = vmax.f32 %v3600_v1, 0.0  ;;  %v3605_v47 = vmax.f32 %v3601_v21, 0.0  ;;  %v5376_v8 = vunpack.i.l.bf16 %v8967_v61  ;;  %v5382_v42 = vunpack.i.h.bf16 %v8973_v39  ;;  %v9135_v21 = vpop.permute.xlu0 %4070 }
 0x281   : > { %v3558_v17 = vmul.f32 %v5377_v50, %v3544_v41  ;;  %v3559_v20 = vmul.f32 %v5377_v50, %v3545_v29  ;;  %v5381_v59 = vunpack.i.l.bf16 %v8973_v39  ;;  %v3690_v54 = vsub.f32 %v9000_v15, %v6551_v40  ;;  %v9117_v29 = vpop.permute.xlu1 %4019 }
 0x282   : > { %v3556_v49 = vmul.f32 %v5376_v8, %v3542_v7  ;;  %v3557_v38 = vmul.f32 %v5376_v8, %v3543_v23  ;;  %v3618_v9 = vmul.f32 %v5382_v42, %v3604_v25  ;;  %v3619_v57 = vmul.f32 %v5382_v42, %v3605_v47 }
 0x283   : > { %v3562_v4 = vadd.f32 %v3558_v17, %v3444_v35  ;;  %v3563_v51 = vadd.f32 %v3559_v20, %v3445_v14  ;;  %v3616_v6 = vmul.f32 %v5381_v59, %v3602_v31  ;;  %v3617_v10 = vmul.f32 %v5381_v59, %v3603_v63 }
 0x284   : > { %v3560_v61 = vadd.f32 %v3556_v49, %v3442_v33  ;;  %v3561_v24 = vadd.f32 %v3557_v38, %v3443_v11  ;;  %v3622_v12 = vadd.f32 %v3618_v9, %v3502_v30  ;;  %v3623_v41 = vadd.f32 %v3619_v57, %v3503_v37 }
 0x285   : > { %v3620_v39 = vadd.f32 %v3616_v6, %v3500_v43  ;;  %v3621_v19 = vadd.f32 %v3617_v10, %v3501_v62  ;;  %v3691_v7 = vsub.f32 %v9000_v15, %v6553_v16  ;;  %v3694_v23 = vand.u32 2147483647, %v3690_v54  ;;  %v9137_v37 = vpop.permute.xlu1 %4075 }
 0x286   : > { %v3692_v55 = vsub.f32 %v9005_v26, %v6551_v40  ;;  %v3693_v28 = vsub.f32 %v9005_v26, %v6553_v16  ;;  %v3748_v5 = vsub.f32 %v9018_v44, %v6569_v45  ;;  %v3749_v3 = vsub.f32 %v9018_v44, %v6602_v58 }
 0x287   : > { %v3695_v13 = vand.u32 2147483647, %v3691_v7  ;;  %v3698_v60 = vsub.f32 1.0, %v3694_v23  ;;  %v3750_v22 = vsub.f32 %v9025_v2, %v6569_v45  ;;  %v3751_v15 = vsub.f32 %v9025_v2, %v6602_v58  ;;  %v9149_v7 = vpop.permute.xlu0 %4130 }
 0x288   : > { %v3696_v35 = vand.u32 2147483647, %v3692_v55  ;;  %v3697_v31 = vand.u32 2147483647, %v3693_v28  ;;  %v3752_v33 = vand.u32 2147483647, %v3748_v5  ;;  %v3625_v11 = vmul.f32 %v3621_v19, %v3561_v24 }
 0x289   : > { %v3699_v14 = vsub.f32 1.0, %v3695_v13  ;;  %v9133_v26 = vmax.f32 %v3698_v60, 0.0  ;;  %v3753_v63 = vand.u32 2147483647, %v3749_v3  ;;  %v3754_v1 = vand.u32 2147483647, %v3750_v22  ;;  %v9153_v5 = vpop.permute.xlu1 %4135 }
 0x28a   : > { %v3700_v44 = vsub.f32 1.0, %v3696_v35  ;;  %v3701_v43 = vsub.f32 1.0, %v3697_v31  ;;  %v3756_v62 = vsub.f32 1.0, %v3752_v33  ;;  %v3755_v30 = vand.u32 2147483647, %v3751_v15 }
 0x28b   : > { %v3703_v50 = vmax.f32 %v3699_v14, 0.0  ;;  %v3757_v25 = vsub.f32 1.0, %v3753_v63  ;;  %v3758_v2 = vsub.f32 1.0, %v3754_v1  ;;  %v3627_v47 = vmul.f32 %v3623_v41, %v3563_v51 }
 0x28c   : > { %v3704_v8 = vmax.f32 %v3700_v44, 0.0  ;;  %v3705_v42 = vmax.f32 %v3701_v43, 0.0  ;;  %v3760_v17 = vmax.f32 %v3756_v62, 0.0  ;;  %v3759_v20 = vsub.f32 1.0, %v3755_v30  ;;  %v9160_v62 = vpop.permute.xlu0 %5404 }
 0x28d   : > { %v3761_v59 = vmax.f32 %v3757_v25, 0.0  ;;  %v3762_v54 = vmax.f32 %v3758_v2, 0.0  ;;  %v5061_v49 = vpack.c.bf16 %v3627_v47, %v3625_v11  ;;  %v3804_v38 = vsub.f32 %v9045_v18, %v6551_v40 }
 0x28e   : > { %v3763_v9 = vmax.f32 %v3759_v20, 0.0  ;;  %v3805_v57 = vsub.f32 %v9045_v18, %v6553_v16  ;;  %v3806_v6 = vsub.f32 %v9047_v53, %v6551_v40  ;;  %v3807_v51 = vsub.f32 %v9047_v53, %v6553_v16 }
 0x28f   : > { %5062 = vmatprep.subr.bf16.mxu0 %v5061_v49  ;;  %v3808_v10 = vand.u32 2147483647, %v3804_v38  ;;  %v3624_v24 = vmul.f32 %v3620_v39, %v3560_v61  ;;  %v3626_v41 = vmul.f32 %v3622_v12, %v3562_v4  ;;  %v3864_v19 = vsub.f32 %v9062_v32, %v6569_v45 }
 0x290   : > { %v3809_v23 = vand.u32 2147483647, %v3805_v57  ;;  %v3810_v55 = vand.u32 2147483647, %v3806_v6  ;;  %v3811_v28 = vand.u32 2147483647, %v3807_v51  ;;  %v3865_v18 = vsub.f32 %v9062_v32, %v6602_v58 }
 0x291   : > { %v3812_v3 = vsub.f32 1.0, %v3808_v10  ;;  %v5063_v13 = vpack.c.bf16 %v3626_v41, %v3624_v24  ;;  %v3868_v53 = vand.u32 2147483647, %v3864_v19  ;;  %v3866_v61 = vsub.f32 %v9066_v52, %v6569_v45 }
 0x292   : > { %v3813_v4 = vsub.f32 1.0, %v3809_v23  ;;  %v3814_v12 = vsub.f32 1.0, %v3810_v55  ;;  %v3815_v39 = vsub.f32 1.0, %v3811_v28  ;;  %v3869_v60 = vand.u32 2147483647, %v3865_v18 }
 0x293   : > { %v3816_v22 = vmax.f32 %v3812_v3, 0.0  ;;  %5064 = vmatpush1.bf16.xpose.msra.mxu0 %v5063_v13  ;;  %v3872_v15 = vsub.f32 1.0, %v3868_v53  ;;  %v3867_v35 = vsub.f32 %v9066_v52, %v6602_v58  ;;  %v3870_v31 = vand.u32 2147483647, %v3866_v61  ;;  %v9165_v52 = vpop.permute.xlu1 %5409 }
 0x294   : > { %v3817_v32 = vmax.f32 %v3813_v4, 0.0  ;;  %v3818_v33 = vmax.f32 %v3814_v12, 0.0  ;;  %v3819_v11 = vmax.f32 %v3815_v39, 0.0  ;;  %v3873_v14 = vsub.f32 1.0, %v3869_v60 }
 0x295   : > { %v3876_v63 = vmax.f32 %v3872_v15, 0.0  ;;  %v3871_v1 = vand.u32 2147483647, %v3867_v35  ;;  %v3874_v44 = vsub.f32 1.0, %v3870_v31  ;;  %v5387_v43 = vunpack.i.h.bf16 %v9077_v27 }
 0x296   : > { %v3877_v30 = vmax.f32 %v3873_v14, 0.0  ;;  %v5386_v25 = vunpack.i.l.bf16 %v9077_v27  ;;  %v5392_v2 = vunpack.i.h.bf16 %v9083_v48  ;;  %v5391_v47 = vunpack.i.l.bf16 %v9083_v48 }
 0x297   : > { %v3875_v20 = vsub.f32 1.0, %v3871_v1  ;;  %v3878_v49 = vmax.f32 %v3874_v44, 0.0  ;;  %v3718_v38 = vmul.f32 %v5387_v43, %v3704_v8  ;;  %v3719_v57 = vmul.f32 %v5387_v43, %v3705_v42  ;;  %v9180_v3 = vpop.permute.xlu1 %5419 }
 0x298   : > { %v3716_v6 = vmul.f32 %v5386_v25, %v9133_v26  ;;  %v3717_v51 = vmul.f32 %v5386_v25, %v3703_v50  ;;  %v3774_v10 = vmul.f32 %v5391_v47, %v3760_v17  ;;  %v3775_v24 = vmul.f32 %v5391_v47, %v3761_v59  ;;  %v9178_v17 = vpop.permute.xlu0 %5414 }
 0x299   : > { %v3879_v41 = vmax.f32 %v3875_v20, 0.0  ;;  %v3776_v19 = vmul.f32 %v5392_v2, %v3762_v54  ;;  %v3777_v23 = vmul.f32 %v5392_v2, %v3763_v9  ;;  %v5397_v27 = vunpack.i.h.bf16 %v9091_v34 }
 0x29a   : > { %v5396_v55 = vunpack.i.l.bf16 %v9091_v34  ;;  %v5402_v48 = vunpack.i.h.bf16 %v9095_v36  ;;  %v5401_v28 = vunpack.i.l.bf16 %v9095_v36  ;;  %v3964_v8 = vsub.f32 %v9105_v56, %v6551_v40 }
 0x29b   : > { %v3832_v42 = vmul.f32 %v5397_v27, %v3818_v33  ;;  %v3833_v18 = vmul.f32 %v5397_v27, %v3819_v11  ;;  %v3965_v26 = vsub.f32 %v9105_v56, %v6553_v16  ;;  %v3966_v50 = vsub.f32 %v9107_v46, %v6551_v40  ;;  %v9194_v47 = vpop.permute.xlu1 %4235 }
 0x29c   : > { %v3830_v59 = vmul.f32 %v5396_v55, %v3816_v22  ;;  %v3831_v54 = vmul.f32 %v5396_v55, %v3817_v32  ;;  %v3890_v34 = vmul.f32 %v5401_v28, %v3876_v63  ;;  %v3891_v9 = vmul.f32 %v5401_v28, %v3877_v30  ;;  %v9192_v43 = vpop.permute.xlu0 %4230 }
 0x29d   : > { %v3836_v36 = vadd.f32 %v3832_v42, %v3718_v38  ;;  %v3837_v13 = vadd.f32 %v3833_v18, %v3719_v57  ;;  %v3892_v53 = vmul.f32 %v5402_v48, %v3878_v49  ;;  %v3893_v61 = vmul.f32 %v5402_v48, %v3879_v41 }
 0x29e   : > { %v3834_v4 = vadd.f32 %v3830_v59, %v3716_v6  ;;  %v3835_v12 = vadd.f32 %v3831_v54, %v3717_v51  ;;  %v3894_v39 = vadd.f32 %v3890_v34, %v3774_v10  ;;  %v3895_v60 = vadd.f32 %v3891_v9, %v3775_v24 }
 0x29f   : > { %v3896_v56 = vadd.f32 %v3892_v53, %v3776_v19  ;;  %v3897_v15 = vadd.f32 %v3893_v61, %v3777_v23  ;;  %v3968_v35 = vand.u32 2147483647, %v3964_v8  ;;  %v3969_v31 = vand.u32 2147483647, %v3965_v26 }
 0x2a0   : > { %v3967_v22 = vsub.f32 %v9107_v46, %v6553_v16  ;;  %v3970_v32 = vand.u32 2147483647, %v3966_v50  ;;  %v4022_v33 = vsub.f32 %v9115_v0, %v6569_v45  ;;  %v4023_v11 = vsub.f32 %v9115_v0, %v6602_v58  ;;  %v9200_v26 = vpop.permute.xlu0 %4288  ;;  %v9206_v9 = vpop.permute.xlu1 %4293 }
 0x2a1   : > { %v3972_v14 = vsub.f32 1.0, %v3968_v35  ;;  %v3973_v63 = vsub.f32 1.0, %v3969_v31  ;;  %v4024_v1 = vsub.f32 %v9117_v29, %v6569_v45  ;;  %v4025_v44 = vsub.f32 %v9117_v29, %v6602_v58 }
 0x2a2   : > { %v3971_v30 = vand.u32 2147483647, %v3967_v22  ;;  %v3974_v25 = vsub.f32 1.0, %v3970_v32  ;;  %v4026_v46 = vand.u32 2147483647, %v4022_v33  ;;  %v3899_v2 = vmul.f32 %v3895_v60, %v3835_v12 }
 0x2a3   : > { %v3976_v20 = vmax.f32 %v3972_v14, 0.0  ;;  %v3977_v49 = vmax.f32 %v3973_v63, 0.0  ;;  %v4027_v38 = vand.u32 2147483647, %v4023_v11  ;;  %v4028_v0 = vand.u32 2147483647, %v4024_v1 }
 0x2a4   : > { %v3975_v57 = vsub.f32 1.0, %v3971_v30  ;;  %v3978_v6 = vmax.f32 %v3974_v25, 0.0  ;;  %v4030_v51 = vsub.f32 1.0, %v4026_v46  ;;  %v4029_v10 = vand.u32 2147483647, %v4025_v44 }
 0x2a5   : > { %v4031_v24 = vsub.f32 1.0, %v4027_v38  ;;  %v4032_v41 = vsub.f32 1.0, %v4028_v0  ;;  %v3901_v19 = vmul.f32 %v3897_v15, %v3837_v13  ;;  %v4078_v29 = vsub.f32 %v9135_v21, %v6551_v40 }
 0x2a6   : > { %v3979_v23 = vmax.f32 %v3975_v57, 0.0  ;;  %v4034_v27 = vmax.f32 %v4030_v51, 0.0  ;;  %v4033_v55 = vsub.f32 1.0, %v4029_v10  ;;  %v4079_v48 = vsub.f32 %v9135_v21, %v6553_v16 }
 0x2a7   : > { %v4035_v28 = vmax.f32 %v4031_v24, 0.0  ;;  %v4036_v8 = vmax.f32 %v4032_v41, 0.0  ;;  %v5065_v42 = vpack.c.bf16 %v3901_v19, %v3899_v2  ;;  %v4082_v18 = vand.u32 2147483647, %v4078_v29  ;;  %v9217_v1 = vpop.permute.xlu0 %4344  ;;  %v9220_v46 = vpop.permute.xlu1 %4349 }
 0x2a8   : > { %v4037_v50 = vmax.f32 %v4033_v55, 0.0  ;;  %v4083_v59 = vand.u32 2147483647, %v4079_v48  ;;  %v4080_v54 = vsub.f32 %v9137_v37, %v6551_v40  ;;  %v4081_v34 = vsub.f32 %v9137_v37, %v6553_v16 }
 0x2a9   : > { %5066 = vmatprep.subr.bf16.mxu0 %v5065_v42  ;;  %v4086_v13 = vsub.f32 1.0, %v4082_v18  ;;  %v3898_v53 = vmul.f32 %v3894_v39, %v3834_v4  ;;  %v3900_v21 = vmul.f32 %v3896_v56, %v3836_v36  ;;  %v4138_v61 = vsub.f32 %v9149_v7, %v6569_v45 }
 0x2aa   : > { %v4087_v12 = vsub.f32 1.0, %v4083_v59  ;;  %v4084_v60 = vand.u32 2147483647, %v4080_v54  ;;  %v4085_v15 = vand.u32 2147483647, %v4081_v34  ;;  %v4139_v35 = vsub.f32 %v9149_v7, %v6602_v58 }
 0x2ab   : > { %v4090_v31 = vmax.f32 %v4086_v13, 0.0  ;;  %v5067_v22 = vpack.c.bf16 %v3900_v21, %v3898_v53  ;;  %v4142_v32 = vand.u32 2147483647, %v4138_v61  ;;  %v4140_v37 = vsub.f32 %v9153_v5, %v6569_v45 }
 0x2ac   : > { %v4091_v33 = vmax.f32 %v4087_v12, 0.0  ;;  %v4088_v11 = vsub.f32 1.0, %v4084_v60  ;;  %v4089_v14 = vsub.f32 1.0, %v4085_v15  ;;  %v4143_v4 = vand.u32 2147483647, %v4139_v35 }
 0x2ad   : > { %5068 = vmatpush1.bf16.xpose.msra.mxu0 %v5067_v22  ;;  %v4146_v36 = vsub.f32 1.0, %v4142_v32  ;;  %v4141_v39 = vsub.f32 %v9153_v5, %v6602_v58  ;;  %v4144_v56 = vand.u32 2147483647, %v4140_v37  ;;  %v5407_v63 = vunpack.i.h.bf16 %v9160_v62  ;;  %v9230_v21 = vpop.permute.xlu1 %4409 }
 0x2ae   : > { %v4092_v7 = vmax.f32 %v4088_v11, 0.0  ;;  %v4093_v44 = vmax.f32 %v4089_v14, 0.0  ;;  %v4147_v30 = vsub.f32 1.0, %v4143_v4  ;;  %v5406_v25 = vunpack.i.l.bf16 %v9160_v62 }
 0x2af   : > { %v4150_v2 = vmax.f32 %v4146_v36, 0.0  ;;  %v4145_v38 = vand.u32 2147483647, %v4141_v39  ;;  %v4148_v0 = vsub.f32 1.0, %v4144_v56  ;;  %v3992_v57 = vmul.f32 %v5407_v63, %v3978_v6 }
 0x2b0   : > { %v4151_v51 = vmax.f32 %v4147_v30, 0.0  ;;  %v3990_v10 = vmul.f32 %v5406_v25, %v3976_v20  ;;  %v3991_v24 = vmul.f32 %v5406_v25, %v3977_v49  ;;  %v3993_v5 = vmul.f32 %v5407_v63, %v3979_v23  ;;  %v9228_v49 = vpop.permute.xlu0 %4404 }
 0x2b1   : > { %v4149_v41 = vsub.f32 1.0, %v4145_v38  ;;  %v4152_v19 = vmax.f32 %v4148_v0, 0.0  ;;  %v5412_v29 = vunpack.i.h.bf16 %v9165_v52  ;;  %v5411_v55 = vunpack.i.l.bf16 %v9165_v52 }
 0x2b2   : > { %v5417_v48 = vunpack.i.h.bf16 %v9178_v17  ;;  %v5416_v62 = vunpack.i.l.bf16 %v9178_v17  ;;  %v5422_v42 = vunpack.i.h.bf16 %v9180_v3  ;;  %v5421_v18 = vunpack.i.l.bf16 %v9180_v3 }
 0x2b3   : > { %v4153_v59 = vmax.f32 %v4149_v41, 0.0  ;;  %v4048_v6 = vmul.f32 %v5411_v55, %v4034_v27  ;;  %v4049_v54 = vmul.f32 %v5411_v55, %v4035_v28  ;;  %v4050_v20 = vmul.f32 %v5412_v29, %v4036_v8 }
 0x2b4   : > { %v4051_v23 = vmul.f32 %v5412_v29, %v4037_v50  ;;  %v4104_v34 = vmul.f32 %v5416_v62, %v4090_v31  ;;  %v4105_v13 = vmul.f32 %v5416_v62, %v4091_v33  ;;  %v4106_v53 = vmul.f32 %v5417_v48, %v4092_v7  ;;  %v9246_v36 = vpop.permute.xlu0 %5424  ;;  %v9250_v7 = vpop.permute.xlu1 %5429 }
 0x2b5   : > { %v4107_v52 = vmul.f32 %v5417_v48, %v4093_v44  ;;  %v4164_v61 = vmul.f32 %v5421_v18, %v4150_v2  ;;  %v4165_v12 = vmul.f32 %v5421_v18, %v4151_v51  ;;  %v4166_v17 = vmul.f32 %v5422_v42, %v4152_v19 }
 0x2b6   : > { %v4108_v60 = vadd.f32 %v4104_v34, %v3990_v10  ;;  %v4109_v15 = vadd.f32 %v4105_v13, %v3991_v24  ;;  %v4110_v35 = vadd.f32 %v4106_v53, %v3992_v57  ;;  %v4167_v3 = vmul.f32 %v5422_v42, %v4153_v59 }
 0x2b7   : > { %v4111_v22 = vadd.f32 %v4107_v52, %v3993_v5  ;;  %v4168_v27 = vadd.f32 %v4164_v61, %v4048_v6  ;;  %v4169_v28 = vadd.f32 %v4165_v12, %v4049_v54  ;;  %v4170_v8 = vadd.f32 %v4166_v17, %v4050_v20 }
 0x2b8   : > { %v4171_v32 = vadd.f32 %v4167_v3, %v4051_v23  ;;  %v4238_v50 = vsub.f32 %v9192_v43, %v6551_v40  ;;  %v4239_v31 = vsub.f32 %v9192_v43, %v6553_v16  ;;  %v4240_v37 = vsub.f32 %v9194_v47, %v6551_v40  ;;  %v9252_v42 = vpop.permute.xlu0 %5434 }
 0x2b9   : > { %v4241_v33 = vsub.f32 %v9194_v47, %v6553_v16  ;;  %v4296_v11 = vsub.f32 %v9200_v26, %v6569_v45  ;;  %v4297_v14 = vsub.f32 %v9200_v26, %v6602_v58  ;;  %v4298_v4 = vsub.f32 %v9206_v9, %v6569_v45 }
 0x2ba   : > { %v4242_v39 = vand.u32 2147483647, %v4238_v50  ;;  %v4243_v56 = vand.u32 2147483647, %v4239_v31  ;;  %v4244_v43 = vand.u32 2147483647, %v4240_v37  ;;  %v4299_v63 = vsub.f32 %v9206_v9, %v6602_v58  ;;  %v9258_v20 = vpop.permute.xlu1 %5439 }
 0x2bb   : > { %v4245_v47 = vand.u32 2147483647, %v4241_v33  ;;  %v4300_v44 = vand.u32 2147483647, %v4296_v11  ;;  %v4301_v30 = vand.u32 2147483647, %v4297_v14  ;;  %v4173_v25 = vmul.f32 %v4169_v28, %v4109_v15 }
 0x2bc   : > { %v4246_v2 = vsub.f32 1.0, %v4242_v39  ;;  %v4247_v38 = vsub.f32 1.0, %v4243_v56  ;;  %v4248_v26 = vsub.f32 1.0, %v4244_v43  ;;  %v4302_v0 = vand.u32 2147483647, %v4298_v4 }
 0x2bd   : > { %v4249_v57 = vsub.f32 1.0, %v4245_v47  ;;  %v4304_v51 = vsub.f32 1.0, %v4300_v44  ;;  %v4305_v10 = vsub.f32 1.0, %v4301_v30  ;;  %v4303_v24 = vand.u32 2147483647, %v4299_v63 }
 0x2be   : > { %v4250_v5 = vmax.f32 %v4246_v2, 0.0  ;;  %v4251_v41 = vmax.f32 %v4247_v38, 0.0  ;;  %v4252_v19 = vmax.f32 %v4248_v26, 0.0  ;;  %v4306_v29 = vsub.f32 1.0, %v4302_v0 }
 0x2bf   : > { %v4253_v55 = vmax.f32 %v4249_v57, 0.0  ;;  %v4308_v9 = vmax.f32 %v4304_v51, 0.0  ;;  %v4309_v48 = vmax.f32 %v4305_v10, 0.0  ;;  %v4307_v62 = vsub.f32 1.0, %v4303_v24 }
 0x2c0   : > { %v4310_v18 = vmax.f32 %v4306_v29, 0.0  ;;  %v4175_v59 = vmul.f32 %v4171_v32, %v4111_v22  ;;  %v4352_v6 = vsub.f32 %v9217_v1, %v6551_v40  ;;  %v4353_v54 = vsub.f32 %v9217_v1, %v6553_v16 }
 0x2c1   : > { %v4311_v23 = vmax.f32 %v4307_v62, 0.0  ;;  %v4354_v34 = vsub.f32 %v9220_v46, %v6551_v40  ;;  %v4355_v13 = vsub.f32 %v9220_v46, %v6553_v16  ;;  %v4172_v53 = vmul.f32 %v4168_v27, %v4108_v60 }
 0x2c2   : > { %v5069_v52 = vpack.c.bf16 %v4175_v59, %v4173_v25  ;;  %v4356_v61 = vand.u32 2147483647, %v4352_v6  ;;  %v4357_v12 = vand.u32 2147483647, %v4353_v54  ;;  %v4174_v17 = vmul.f32 %v4170_v8, %v4110_v35 }
 0x2c3   : > { %v4358_v15 = vand.u32 2147483647, %v4354_v34  ;;  %v4359_v3 = vand.u32 2147483647, %v4355_v13  ;;  %v4412_v22 = vsub.f32 %v9228_v49, %v6569_v45  ;;  %v4413_v1 = vsub.f32 %v9228_v49, %v6602_v58  ;;  %v4505_v35 = vpop.permute.xlu0 %4504 }
 0x2c4   : > { %5070 = vmatprep.subr.bf16.mxu0 %v5069_v52  ;;  %v4360_v28 = vsub.f32 1.0, %v4356_v61  ;;  %v4361_v32 = vsub.f32 1.0, %v4357_v12  ;;  %v5071_v50 = vpack.c.bf16 %v4174_v17, %v4172_v53  ;;  %v4414_v46 = vsub.f32 %v9230_v21, %v6569_v45 }
 0x2c5   : > { %v4362_v60 = vsub.f32 1.0, %v4358_v15  ;;  %v4363_v27 = vsub.f32 1.0, %v4359_v3  ;;  %v4416_v31 = vand.u32 2147483647, %v4412_v22  ;;  %v4417_v37 = vand.u32 2147483647, %v4413_v1  ;;  %v4510_v49 = vpop.permute.xlu1 %4509 }
 0x2c6   : > { %v4364_v8 = vmax.f32 %v4360_v28, 0.0  ;;  %v4365_v33 = vmax.f32 %v4361_v32, 0.0  ;;  %5072 = vmatpush1.bf16.xpose.msra.mxu0 %v5071_v50  ;;  %v4415_v11 = vsub.f32 %v9230_v21, %v6602_v58  ;;  %v4418_v14 = vand.u32 2147483647, %v4414_v46 }
 0x2c7   : > { %v4366_v4 = vmax.f32 %v4362_v60, 0.0  ;;  %v4367_v39 = vmax.f32 %v4363_v27, 0.0  ;;  %v4420_v56 = vsub.f32 1.0, %v4416_v31  ;;  %v4421_v43 = vsub.f32 1.0, %v4417_v37 }
 0x2c8   : > { %v4419_v63 = vand.u32 2147483647, %v4415_v11  ;;  %v4422_v47 = vsub.f32 1.0, %v4418_v14  ;;  %v5427_v44 = vunpack.i.h.bf16 %v9246_v36  ;;  %v5426_v30 = vunpack.i.l.bf16 %v9246_v36 }
 0x2c9   : > { %v4424_v25 = vmax.f32 %v4420_v56, 0.0  ;;  %v4425_v2 = vmax.f32 %v4421_v43, 0.0  ;;  %v5432_v38 = vunpack.i.h.bf16 %v9250_v7  ;;  %v5431_v26 = vunpack.i.l.bf16 %v9250_v7 }
 0x2ca   : > { %v4423_v0 = vsub.f32 1.0, %v4419_v63  ;;  %v4426_v21 = vmax.f32 %v4422_v47, 0.0  ;;  %v4264_v57 = vmul.f32 %v5426_v30, %v4250_v5  ;;  %v4265_v51 = vmul.f32 %v5426_v30, %v4251_v41  ;;  %v4563_v59 = vpop.permute.xlu0 %4562  ;;  %v4568_v13 = vpop.permute.xlu1 %4567 }
 0x2cb   : > { %v4266_v10 = vmul.f32 %v5427_v44, %v4252_v19  ;;  %v4267_v24 = vmul.f32 %v5427_v44, %v4253_v55  ;;  %v4322_v29 = vmul.f32 %v5431_v26, %v4308_v9  ;;  %v4323_v62 = vmul.f32 %v5431_v26, %v4309_v48 }
 0x2cc   : > { %v4427_v6 = vmax.f32 %v4423_v0, 0.0  ;;  %v4324_v54 = vmul.f32 %v5432_v38, %v4310_v18  ;;  %v4325_v34 = vmul.f32 %v5432_v38, %v4311_v23  ;;  %v5437_v36 = vunpack.i.h.bf16 %v9252_v42 }
 0x2cd   : > { %v5436_v53 = vunpack.i.l.bf16 %v9252_v42  ;;  %v5442_v52 = vunpack.i.h.bf16 %v9258_v20  ;;  %v5441_v7 = vunpack.i.l.bf16 %v9258_v20  ;;  %v4512_v5 = vsub.f32 %v4505_v35, %v6551_v40 }
 0x2ce   : > { %v4380_v41 = vmul.f32 %v5437_v36, %v4366_v4  ;;  %v4381_v19 = vmul.f32 %v5437_v36, %v4367_v39  ;;  %v4513_v55 = vsub.f32 %v4505_v35, %v6553_v16  ;;  %v4514_v9 = vsub.f32 %v4510_v49, %v6551_v40 }
 0x2cf   : > { %v4378_v48 = vmul.f32 %v5436_v53, %v4364_v8  ;;  %v4379_v18 = vmul.f32 %v5436_v53, %v4365_v33  ;;  %v4438_v23 = vmul.f32 %v5441_v7, %v4424_v25  ;;  %v4439_v61 = vmul.f32 %v5441_v7, %v4425_v2 }
 0x2d0   : > { %v4384_v12 = vadd.f32 %v4380_v41, %v4266_v10  ;;  %v4385_v17 = vadd.f32 %v4381_v19, %v4267_v24  ;;  %v4440_v42 = vmul.f32 %v5442_v52, %v4426_v21  ;;  %v4441_v15 = vmul.f32 %v5442_v52, %v4427_v6 }
 0x2d1   : > { %v4382_v3 = vadd.f32 %v4378_v48, %v4264_v57  ;;  %v4383_v22 = vadd.f32 %v4379_v18, %v4265_v51  ;;  %v4442_v20 = vadd.f32 %v4438_v23, %v4322_v29  ;;  %v4443_v1 = vadd.f32 %v4439_v61, %v4323_v62  ;;  %v4619_v28 = vpop.permute.xlu0 %4618  ;;  %v4624_v27 = vpop.permute.xlu1 %4623 }
 0x2d2   : > { %v4444_v32 = vadd.f32 %v4440_v42, %v4324_v54  ;;  %v4445_v50 = vadd.f32 %v4441_v15, %v4325_v34  ;;  %v4516_v46 = vand.u32 2147483647, %v4512_v5  ;;  %v4517_v60 = vand.u32 2147483647, %v4513_v55 }
 0x2d3   : > { %v4515_v31 = vsub.f32 %v4510_v49, %v6553_v16  ;;  %v4518_v37 = vand.u32 2147483647, %v4514_v9  ;;  %v4570_v35 = vsub.f32 %v4563_v59, %v6569_v45  ;;  %v4571_v8 = vsub.f32 %v4563_v59, %v6602_v58 }
 0x2d4   : > { %v4520_v33 = vsub.f32 1.0, %v4516_v46  ;;  %v4521_v11 = vsub.f32 1.0, %v4517_v60  ;;  %v4572_v14 = vsub.f32 %v4568_v13, %v6569_v45  ;;  %v4573_v4 = vsub.f32 %v4568_v13, %v6602_v58 }
 0x2d5   : > { %v4519_v39 = vand.u32 2147483647, %v4515_v31  ;;  %v4522_v56 = vsub.f32 1.0, %v4518_v37  ;;  %v4574_v43 = vand.u32 2147483647, %v4570_v35  ;;  %v4447_v63 = vmul.f32 %v4443_v1, %v4383_v22 }
 0x2d6   : > { %v9291_v47 = vmax.f32 %v4520_v33, 0.0  ;;  %v9293_v44 = vmax.f32 %v4521_v11, 0.0  ;;  %v4575_v49 = vand.u32 2147483647, %v4571_v8  ;;  %v4576_v30 = vand.u32 2147483647, %v4572_v14  ;;  %v4679_v25 = vpop.permute.xlu0 %4678  ;;  %v4684_v24 = vpop.permute.xlu1 %4683 }
 0x2d7   : > { %v4523_v2 = vsub.f32 1.0, %v4519_v39  ;;  %v4526_v38 = vmax.f32 %v4522_v56, 0.0  ;;  %v4578_v26 = vsub.f32 1.0, %v4574_v43  ;;  %v4577_v0 = vand.u32 2147483647, %v4573_v4 }
 0x2d8   : > { %v4579_v21 = vsub.f32 1.0, %v4575_v49  ;;  %v4580_v57 = vsub.f32 1.0, %v4576_v30  ;;  %v4449_v51 = vmul.f32 %v4445_v50, %v4385_v17  ;;  %v4626_v10 = vsub.f32 %v4619_v28, %v6551_v40 }
 0x2d9   : > { %v4527_v29 = vmax.f32 %v4523_v2, 0.0  ;;  %v4582_v62 = vmax.f32 %v4578_v26, 0.0  ;;  %v4581_v59 = vsub.f32 1.0, %v4577_v0  ;;  %v4627_v6 = vsub.f32 %v4619_v28, %v6553_v16 }
 0x2da   : > { %v4583_v54 = vmax.f32 %v4579_v21, 0.0  ;;  %v4584_v34 = vmax.f32 %v4580_v57, 0.0  ;;  %v5073_v36 = vpack.c.bf16 %v4449_v51, %v4447_v63  ;;  %v4630_v13 = vand.u32 2147483647, %v4626_v10 }
 0x2db   : > { %v4585_v53 = vmax.f32 %v4581_v59, 0.0  ;;  %v4631_v52 = vand.u32 2147483647, %v4627_v6  ;;  %v4628_v7 = vsub.f32 %v4624_v27, %v6551_v40  ;;  %v4629_v5 = vsub.f32 %v4624_v27, %v6553_v16  ;;  %v5445_v48 = vpop.permute.xlu0 %5444 }
 0x2dc   : > { %5074 = vmatprep.subr.bf16.mxu0 %v5073_v36  ;;  %v4634_v41 = vsub.f32 1.0, %v4630_v13  ;;  %v4446_v19 = vmul.f32 %v4442_v20, %v4382_v3  ;;  %v4448_v55 = vmul.f32 %v4444_v32, %v4384_v12  ;;  %v4686_v9 = vsub.f32 %v4679_v25, %v6569_v45  ;;  %v4728_v13 = vld [vmem:[%s295_s23] sm:$0xff] }
 0x2dd   : > { %v4635_v18 = vsub.f32 1.0, %v4631_v52  ;;  %v4632_v23 = vand.u32 2147483647, %v4628_v7  ;;  %v4633_v61 = vand.u32 2147483647, %v4629_v5  ;;  %v4687_v17 = vsub.f32 %v4679_v25, %v6602_v58  ;;  %v5450_v16 = vpop.permute.xlu1 %5449 }
 0x2de   : > { %v4638_v42 = vmax.f32 %v4634_v41, 0.0  ;;  %v5075_v15 = vpack.c.bf16 %v4448_v55, %v4446_v19  ;;  %v4690_v22 = vand.u32 2147483647, %v4686_v9  ;;  %v4688_v40 = vsub.f32 %v4684_v24, %v6569_v45 }
 0x2df   : > { %v4639_v1 = vmax.f32 %v4635_v18, 0.0  ;;  %v4636_v3 = vsub.f32 1.0, %v4632_v23  ;;  %v4637_v12 = vsub.f32 1.0, %v4633_v61  ;;  %v4691_v20 = vand.u32 2147483647, %v4687_v17 }
 0x2e0   : > { %5076 = vmatpush1.bf16.xpose.msra.mxu0 %v5075_v15  ;;  %v4694_v28 = vsub.f32 1.0, %v4690_v22  ;;  %v4689_v32 = vsub.f32 %v4684_v24, %v6602_v58  ;;  %v4692_v50 = vand.u32 2147483647, %v4688_v40  ;;  %v5447_v46 = vunpack.i.h.bf16 %v5445_v48 }
 0x2e1   : > { %v4640_v60 = vmax.f32 %v4636_v3, 0.0  ;;  %v4641_v27 = vmax.f32 %v4637_v12, 0.0  ;;  %v4695_v31 = vsub.f32 1.0, %v4691_v20  ;;  %v5446_v37 = vunpack.i.l.bf16 %v5445_v48  ;;  %v5455_v11 = vpop.permute.xlu0 %5454 }
 0x2e2   : > { %v4698_v45 = vmax.f32 %v4694_v28, 0.0  ;;  %v4693_v35 = vand.u32 2147483647, %v4689_v32  ;;  %v4696_v8 = vsub.f32 1.0, %v4692_v50  ;;  %v4540_v33 = vmul.f32 %v5447_v46, %v4526_v38 }
 0x2e3   : > { %v4699_v14 = vmax.f32 %v4695_v31, 0.0  ;;  %v4538_v4 = vmul.f32 %v5446_v37, %v9291_v47  ;;  %v4539_v39 = vmul.f32 %v5446_v37, %v9293_v44  ;;  %v4541_v56 = vmul.f32 %v5447_v46, %v4527_v29 }
 0x2e4   : > { %v4697_v43 = vsub.f32 1.0, %v4693_v35  ;;  %v4700_v58 = vmax.f32 %v4696_v8, 0.0  ;;  %v5452_v63 = vunpack.i.h.bf16 %v5450_v16  ;;  %v5451_v49 = vunpack.i.l.bf16 %v5450_v16  ;;  %v5460_v30 = vpop.permute.xlu1 %5459 }
 0x2e5   : > { %v5457_v25 = vunpack.i.h.bf16 %v5455_v11  ;;  %v5456_v2 = vunpack.i.l.bf16 %v5455_v11  ;;  %v5462_v26 = vunpack.i.h.bf16 %v5460_v30  ;;  %v5461_v0 = vunpack.i.l.bf16 %v5460_v30 }
 0x2e6   : > { %v4701_v38 = vmax.f32 %v4697_v43, 0.0  ;;  %v4596_v21 = vmul.f32 %v5451_v49, %v4582_v62  ;;  %v4597_v57 = vmul.f32 %v5451_v49, %v4583_v54  ;;  %v4598_v47 = vmul.f32 %v5452_v63, %v4584_v34 }
 0x2e7   : > { %v4599_v51 = vmul.f32 %v5452_v63, %v4585_v53  ;;  %v4652_v44 = vmul.f32 %v5456_v2, %v4638_v42  ;;  %v4653_v10 = vmul.f32 %v5456_v2, %v4639_v1  ;;  %v4654_v24 = vmul.f32 %v5457_v25, %v4640_v60 }
 0x2e8   : > { %v4655_v29 = vmul.f32 %v5457_v25, %v4641_v27  ;;  %v4712_v59 = vmul.f32 %v5461_v0, %v4698_v45  ;;  %v4713_v6 = vmul.f32 %v5461_v0, %v4699_v14  ;;  %v4714_v36 = vmul.f32 %v5462_v26, %v4700_v58 }
 0x2e9   : > { %v4656_v52 = vadd.f32 %v4652_v44, %v4538_v4  ;;  %v4657_v7 = vadd.f32 %v4653_v10, %v4539_v39  ;;  %v4658_v5 = vadd.f32 %v4654_v24, %v4540_v33  ;;  %v4715_v41 = vmul.f32 %v5462_v26, %v4701_v38 }
 0x2ea   : > { %v4659_v19 = vadd.f32 %v4655_v29, %v4541_v56  ;;  %v4716_v55 = vadd.f32 %v4712_v59, %v4596_v21  ;;  %v4717_v9 = vadd.f32 %v4713_v6, %v4597_v57  ;;  %v4718_v62 = vadd.f32 %v4714_v36, %v4598_v47 }
 0x2eb   : > { %v4719_v54 = vadd.f32 %v4715_v41, %v4599_v51  ;;  %v4794_v34 = vcombine.high %v4728_v13, %v4728_v13 }
 0x2ec   : > { %v4721_v53 = vmul.f32 %v4717_v9, %v4657_v7  ;;  %v4720_v48 = vmul.f32 %v4716_v55, %v4656_v52  ;;  %v4722_v18 = vmul.f32 %v4718_v62, %v4658_v5 }
 0x2ed   : > { %v4723_v23 = vmul.f32 %v4719_v54, %v4659_v19  ;;  %4860 = vmatprep.mubr.f32.mxu0 %v4794_v34 }
 0x2ee   : > { %v5079_v61 = vpack.c.bf16 %v4722_v18, %v4720_v48 }
 0x2ef   : > { %v5077_v17 = vpack.c.bf16 %v4723_v23, %v4721_v53 }
 0x2f1   : > { %5078 = vmatprep.subr.bf16.mxu0 %v5077_v17 }
 0x2f2   : > { %5080 = vmatpush1.bf16.xpose.msra.mxu0 %v5079_v61 }
 0x2f9   : > { %4861 = vmatmul.mubr.f32.vlgmr.msra.gmra.mrb[0].mxu0 %v4728_v13 }
 0x3cc   : > { %v4862_v42 = vpop.f32.mrb[0].mxu0 }
 0x3cd   : > { %v4864_v15 = vpop.f32.mrb[1].mxu0 }
 0x3ce   : > { %v4873_v22 = vcombine.low %v4862_v42, %v4864_v15 }
 0x3d0   : > { %4875 = vst [vmem:[%s285_s17] sm:$0xff] %v4873_v22 }
 0x3d1   : > { %5501 = shalt.err (!%p5498_p1)
}
 0x3d2   : > { %s5502_s16 = scalar_lea.hbm %s9320_s26, 128  ;;  %s5506_s28 = scalar_lea.hbm %s9592_s22, 256 }
 0x3d3   : > { %p5503_p2 = scmp.ne.s32.totalorder %s9320_s26, %s5502_s16  ;;  %p5507_p6 = scmp.lt.u32.totalorder %s9320_s26, %s9592_s22 }
 0x3d4   : > { %p5508_p7 = scmp.lt.u32.totalorder %s5506_s28, %s5502_s16  ;;  %p5510_p9 = scmp.lt.u32.totalorder %s5502_s16, %s9320_s26 }
 0x3d5   : > { %p5504_p3 = pnand %p5503_p2, %p5662_p0 }
 0x3d6   : > { %p5509_p8 = por %p5508_p7, %p5507_p6 }
 0x3d7   : > { %p5505_p5 = pneg %p5504_p3 }
 0x3d8   : > { %p5511_p10 = por %p5510_p9, %p5509_p8 }
 0x3da   : > { %p5512_p11 = pnand %p5511_p10, %p5505_p5 }
 0x3dc   : > { %5515 = shalt.err (!%p5512_p11)
}
 0x3dd   : > { %5081 = dma.vmem_to_hbm [thread:$0]  (%p5662_p0), %s9322_s20, 128, %s9320_s26, %s4888_s1  }
 0x3de PF: > { %s9593_s21 = sld [smem:[#allocation13_spill]]  ;;  %s9594_s25 = sld [smem:[#allocation10_spill]] }
 0x3e4   : > { %p5087_p12 = scmp.ge.s32.totalorder %s9593_s21, 2  ;;  %s4914_s23 = sand.u32 1, %s9594_s25  }
 0x3e5   : > { %s4915_s11 = scalar_lea.sflag [#allocation7], %s4914_s23 }
 0x3e6   : > { %p5084_p13 = pnand %p5087_p12, %p5669_p4 }
 0x3e8   : > { %5543 = dma.done.wait (!%p5084_p13), %s4915_s11, 128  }
 0x3e9   : > { %5545 = vsyncadd (!%p5084_p13), %s4915_s11, 4294967168  ;;  %s30_s14 = sadd.s32 1, %s9593_s21   ;;  %s9596_s27 = sld [smem:[#allocation11_spill]] }
 0x3ea   : > { %p27_p1 = scmp.ge.s32.totalorder %s30_s14, 4   ;;  %s9597_s11 = sld [smem:[#allocation16_spill]] }
 0x3eb   : > { %s9598_s12 = sld [smem:[#allocation12_spill]]  ;;  %s9599_s13 = sld [smem:[#allocation14_spill]] }
 0x3ec   : > { %s9600_s1 = smov %s5552_s10  ;;  %29 = sbr.rel (!%p27_p1) target bundleno = 30 (0x1e), region = 89 }
 0x3ef   : > { %s9601_s10 = smov %s9596_s27 }
 0x3f3   :  { %4920 = vsyncpa [#allocation7], 1 }
 0x3f4   :  { %4922 = vsyncpa [#allocation7 + $0x1], 1 }

</bundles_post_ra>
